<compile_context>
chip_gen: v7x
topology: tpu7x:2x2x1
jax: 0.10.0
libtpu: 0.0.40
codegen_flags: <defaults>
</compile_context>

<pallas_src>
import functools

import jax
import jax.numpy as jnp
from jax.experimental import pallas as pl
from jax.experimental.pallas import tpu as pltpu


# ---------------------------------------------------------------------------
# Fused kernel: partial 3x3 conv + CBAM channel attention + CBAM spatial
# attention, one grid step per image. Nothing intermediate touches HBM.
# ---------------------------------------------------------------------------
def _fused_kernel(x_ref, wc_ref, w1_ref, w2_ref, sa_ref, o_ref, *, dim_conv):
    # x_ref : (1, H, W, C)    full NHWC input slice
    # wc_ref: (9*Cc, Cc)      im2col conv weight (kh-major, kw, ci) x co
    # w1_ref: (C, Ch)         channel-MLP weight 1
    # w2_ref: (Ch, C)         channel-MLP weight 2
    # sa_ref: (7, 7, 2)       spatial 7x7 conv weight (SMEM, scalar reads)
    # o_ref : (1, H, W, C)
    _, H, W, C = x_ref.shape
    Cc = dim_conv
    f32 = jnp.float32

    x = x_ref[0].astype(f32)                       # (H, W, C)
    x1 = x[:, :, :Cc]
    x2 = x[:, :, Cc:]

    # ---- partial 3x3 conv (stride 1, pad 1, no bias) on first Cc channels --
    # Zero padding built in VMEM (no HBM copy of a padded tensor).
    zrow = jnp.zeros((1, W, Cc), f32)
    zcol = jnp.zeros((H + 2, 1, Cc), f32)
    xp = jnp.concatenate([zrow, x1, zrow], axis=0)           # (H+2, W,   Cc)
    xp = jnp.concatenate([zcol, xp, zcol], axis=1)           # (H+2, W+2, Cc)

    # im2col: one (H*W, 9*Cc) x (9*Cc, Cc) MXU matmul instead of 9 tiny ones.
    cols = [xp[kh:kh + H, kw:kw + W, :]
            for kh in range(3) for kw in range(3)]           # kh-major order
    patch = jnp.concatenate(cols, axis=-1).reshape(H * W, 9 * Cc)
    x1c = jnp.dot(patch, wc_ref[...], preferred_element_type=f32)  # (H*W, Cc)

    # Pass-through of the untouched channels (replaces the wrapper concat).
    y = jnp.concatenate([x1c.reshape(H, W, Cc), x2], axis=-1)      # (H, W, C)

    # ---- CBAM channel attention (avg+max pool -> shared MLP -> sigmoid) ----
    yf = y.reshape(H * W, C)
    pooled = jnp.concatenate(
        [jnp.mean(yf, axis=0, keepdims=True),
         jnp.max(yf, axis=0, keepdims=True)], axis=0)              # (2, C)
    h = jnp.maximum(
        jnp.dot(pooled, w1_ref[...], preferred_element_type=f32), 0.0)
    mlp = jnp.dot(h, w2_ref[...], preferred_element_type=f32)      # (2, C)
    ca = jax.nn.sigmoid(mlp[0:1, :] + mlp[1:2, :])                 # (1, C)
    y = y * ca.reshape(1, 1, C)                                    # (H, W, C)

    # ---- CBAM spatial attention (7x7 conv over channel avg/max maps) -------
    s_avg = jnp.mean(y, axis=-1)                                   # (H, W)
    s_max = jnp.max(y, axis=-1)                                    # (H, W)
    zc = jnp.zeros((H, 3), f32)
    zr = jnp.zeros((3, W + 6), f32)
    pa = jnp.concatenate(
        [zr, jnp.concatenate([zc, s_avg, zc], axis=1), zr], axis=0)  # (H+6,W+6)
    pm = jnp.concatenate(
        [zr, jnp.concatenate([zc, s_max, zc], axis=1), zr], axis=0)

    acc = jnp.zeros((H, W), f32)
    for kh in range(7):
        for kw in range(7):
            acc = acc + pa[kh:kh + H, kw:kw + W] * sa_ref[kh, kw, 0]
            acc = acc + pm[kh:kh + H, kw:kw + W] * sa_ref[kh, kw, 1]
    sa = jax.nn.sigmoid(acc)                                       # (H, W)

    o_ref[0] = (y * sa[:, :, None]).astype(o_ref.dtype)


# ---------------------------------------------------------------------------
# Wrapper: NCHW <-> NHWC transposes + one pallas_call over the batch.
# ---------------------------------------------------------------------------
def pconv2d_cbam_forward(x_nchw, params):
    conv_w = params["conv_w"]   # (3, 3, Cc, Cc)  HWIO
    fc1_w = params["fc1_w"]     # (C, Ch)
    fc2_w = params["fc2_w"]     # (Ch, C)
    sa_w = params["sa_w"]       # (7, 7, 2)

    N, C, H, W = x_nchw.shape
    Cc = conv_w.shape[2]
    Ch = fc1_w.shape[1]

    x = jnp.transpose(x_nchw, (0, 2, 3, 1))      # NHWC
    wc = conv_w.reshape(9 * Cc, Cc)              # im2col weight layout

    out = pl.pallas_call(
        functools.partial(_fused_kernel, dim_conv=Cc),
        out_shape=jax.ShapeDtypeStruct((N, H, W, C), x.dtype),
        grid=(N,),
        in_specs=[
            pl.BlockSpec((1, H, W, C), lambda n: (n, 0, 0, 0)),
            pl.BlockSpec((9 * Cc, Cc), lambda n: (0, 0)),
            pl.BlockSpec((C, Ch), lambda n: (0, 0)),
            pl.BlockSpec((Ch, C), lambda n: (0, 0)),
            pl.BlockSpec(memory_space=pltpu.MemorySpace.SMEM),
        ],
        out_specs=pl.BlockSpec((1, H, W, C), lambda n: (n, 0, 0, 0)),
        compiler_params=pltpu.CompilerParams(
            dimension_semantics=("parallel",)),   # v7x: shard batch over TCs
    )(x, wc, fc1_w, fc2_w, sa_w)

    return jnp.transpose(out, (0, 3, 1, 2))      # back to NCHW


# ---------------------------------------------------------------------------
# Pure-JAX reference (for a correctness check of the Pallas kernel).
# ---------------------------------------------------------------------------
def reference_forward(x_nchw, params):
    conv_w = params["conv_w"]
    N, C, H, W = x_nchw.shape
    Cc = conv_w.shape[2]
    x1, x2 = x_nchw[:, :Cc], x_nchw[:, Cc:]
    w_oihw = jnp.transpose(conv_w, (3, 2, 0, 1))
    x1c = jax.lax.conv_general_dilated(
        x1, w_oihw, (1, 1), ((1, 1), (1, 1)),
        dimension_numbers=("NCHW", "OIHW", "NCHW"),
        precision=jax.lax.Precision.HIGHEST)
    y = jnp.concatenate([x1c, x2], axis=1)

    avg = jnp.mean(y, axis=(2, 3))
    mx = jnp.max(y, axis=(2, 3))

    def mlp(v):
        h = jnp.maximum(v @ params["fc1_w"], 0.0)
        return h @ params["fc2_w"]

    attn = jax.nn.sigmoid(mlp(avg) + mlp(mx))
    y = y * attn[:, :, None, None]

    s = jnp.concatenate([jnp.mean(y, axis=1, keepdims=True),
                         jnp.max(y, axis=1, keepdims=True)], axis=1)
    sa_oihw = jnp.transpose(params["sa_w"], (2, 0, 1))[None]   # (1,2,7,7)
    sa = jax.lax.conv_general_dilated(
        s, sa_oihw, (1, 1), ((3, 3), (3, 3)),
        dimension_numbers=("NCHW", "OIHW", "NCHW"),
        precision=jax.lax.Precision.HIGHEST)
    return y * jax.nn.sigmoid(sa)


if __name__ == "__main__":
    # Shapes implied by the module: in_channels must be a multiple of
    # n_div(=2) and >= CBAM ratio(=16) for a non-degenerate MLP.
    N, C, H, W = 2, 32, 16, 16
    ratio = 16
    Cc = C // 2            # dim_conv
    Ch = C // ratio        # CBAM hidden width

    key = jax.random.PRNGKey(0)
    k1, k2, k3, k4, kx = jax.random.split(key, 5)
    params = {
        # nn.Conv2d(Cc, Cc, 3) weight (OIHW) stored here as HWIO.
        "conv_w": jax.random.normal(k1, (3, 3, Cc, Cc), jnp.float32) * 0.1,
        # CBAM channel-attention MLP (1x1 convs, no bias) as matmul weights.
        "fc1_w": jax.random.normal(k2, (C, Ch), jnp.float32) * 0.1,
        "fc2_w": jax.random.normal(k3, (Ch, C), jnp.float32) * 0.1,
        # CBAM spatial-attention 7x7 conv weight (1,2,7,7) stored as (7,7,2).
        "sa_w": jax.random.normal(k4, (7, 7, 2), jnp.float32) * 0.1,
    }
    x = jax.random.normal(kx, (N, C, H, W), jnp.float32)

    out = jax.block_until_ready(pconv2d_cbam_forward(x, params))
    ref = jax.block_until_ready(reference_forward(x, params))

    assert out.shape == (N, C, H, W)
    assert jnp.allclose(out, ref, rtol=2e-2, atol=2e-2), (
        float(jnp.max(jnp.abs(out - ref))))
    print("KERNEL_OK")
</pallas_src>

<mosaic_0001>
module attributes {stable_mosaic.version = 11 : i64} {
  func.func @_fused_kernel(%arg0: i32, %arg1: memref<1x16x16x32xf32, #tpu.memory_space<vmem>>, %arg2: memref<144x16xf32, #tpu.memory_space<vmem>>, %arg3: memref<32x2xf32, #tpu.memory_space<vmem>>, %arg4: memref<2x32xf32, #tpu.memory_space<vmem>>, %arg5: memref<7x7x2xf32, #tpu.memory_space<smem>>, %arg6: memref<1x16x16x32xf32, #tpu.memory_space<vmem>>) attributes {dimension_semantics = [#tpu.dimension_semantics<parallel>], iteration_bounds = array<i64: 2>, scalar_prefetch = 0 : i64, scratch_operands = 0 : i64, tpu.core_type = #tpu.core_type<tc>, window_params = [{transform_indices = @transform_0, window_bounds = array<i64: 1, 16, 16, 32>}, {pipeline_mode = #tpu.pipeline_mode<synchronous>, transform_indices = @transform_1, window_bounds = array<i64: 144, 16>}, {pipeline_mode = #tpu.pipeline_mode<synchronous>, transform_indices = @transform_2, window_bounds = array<i64: 32, 2>}, {pipeline_mode = #tpu.pipeline_mode<synchronous>, transform_indices = @transform_3, window_bounds = array<i64: 2, 32>}, {transform_indices = @transform_4, window_bounds = array<i64: 7, 7, 2>}, {transform_indices = @transform_5, window_bounds = array<i64: 1, 16, 16, 32>}]} {
    %c0 = arith.constant 0 : index
    %c0_0 = arith.constant 0 : index
    %c0_1 = arith.constant 0 : index
    %c0_2 = arith.constant 0 : index
    %0 = vector.load %arg1[%c0, %c0_0, %c0_1, %c0_2] : memref<1x16x16x32xf32, #tpu.memory_space<vmem>>, vector<1x16x16x32xf32>
    %1 = vector.shape_cast %0 : vector<1x16x16x32xf32> to vector<16x16x32xf32>
    %2 = vector.extract_strided_slice %1 {offsets = [0, 0, 0], sizes = [16, 16, 16], strides = [1, 1, 1]} : vector<16x16x32xf32> to vector<16x16x16xf32>
    %3 = vector.extract_strided_slice %1 {offsets = [0, 0, 16], sizes = [16, 16, 16], strides = [1, 1, 1]} : vector<16x16x32xf32> to vector<16x16x16xf32>
    %cst = arith.constant 0.000000e+00 : f32
    %4 = vector.broadcast %cst : f32 to vector<1x16x16xf32>
    %cst_3 = arith.constant 0.000000e+00 : f32
    %5 = vector.broadcast %cst_3 : f32 to vector<18x1x16xf32>
    %6 = tpu.concatenate %4, %2, %4 in 0 : vector<1x16x16xf32>, vector<16x16x16xf32>, vector<1x16x16xf32> -> vector<18x16x16xf32>
    %7 = tpu.concatenate %5, %6, %5 in 1 : vector<18x1x16xf32>, vector<18x16x16xf32>, vector<18x1x16xf32> -> vector<18x18x16xf32>
    %8 = vector.extract_strided_slice %7 {offsets = [0, 0, 0], sizes = [16, 16, 16], strides = [1, 1, 1]} : vector<18x18x16xf32> to vector<16x16x16xf32>
    %9 = vector.extract_strided_slice %7 {offsets = [0, 1, 0], sizes = [16, 16, 16], strides = [1, 1, 1]} : vector<18x18x16xf32> to vector<16x16x16xf32>
    %10 = vector.extract_strided_slice %7 {offsets = [0, 2, 0], sizes = [16, 16, 16], strides = [1, 1, 1]} : vector<18x18x16xf32> to vector<16x16x16xf32>
    %11 = vector.extract_strided_slice %7 {offsets = [1, 0, 0], sizes = [16, 16, 16], strides = [1, 1, 1]} : vector<18x18x16xf32> to vector<16x16x16xf32>
    %12 = vector.extract_strided_slice %7 {offsets = [1, 1, 0], sizes = [16, 16, 16], strides = [1, 1, 1]} : vector<18x18x16xf32> to vector<16x16x16xf32>
    %13 = vector.extract_strided_slice %7 {offsets = [1, 2, 0], sizes = [16, 16, 16], strides = [1, 1, 1]} : vector<18x18x16xf32> to vector<16x16x16xf32>
    %14 = vector.extract_strided_slice %7 {offsets = [2, 0, 0], sizes = [16, 16, 16], strides = [1, 1, 1]} : vector<18x18x16xf32> to vector<16x16x16xf32>
    %15 = vector.extract_strided_slice %7 {offsets = [2, 1, 0], sizes = [16, 16, 16], strides = [1, 1, 1]} : vector<18x18x16xf32> to vector<16x16x16xf32>
    %16 = vector.extract_strided_slice %7 {offsets = [2, 2, 0], sizes = [16, 16, 16], strides = [1, 1, 1]} : vector<18x18x16xf32> to vector<16x16x16xf32>
    %17 = tpu.concatenate %8, %9, %10, %11, %12, %13, %14, %15, %16 in 2 : vector<16x16x16xf32>, vector<16x16x16xf32>, vector<16x16x16xf32>, vector<16x16x16xf32>, vector<16x16x16xf32>, vector<16x16x16xf32>, vector<16x16x16xf32>, vector<16x16x16xf32>, vector<16x16x16xf32> -> vector<16x16x144xf32>
    %18 = vector.shape_cast %17 : vector<16x16x144xf32> to vector<256x144xf32>
    %c0_4 = arith.constant 0 : index
    %c0_5 = arith.constant 0 : index
    %19 = vector.load %arg2[%c0_4, %c0_5] : memref<144x16xf32, #tpu.memory_space<vmem>>, vector<144x16xf32>
    %cst_6 = arith.constant dense<0.000000e+00> : vector<256x16xf32>
    %20 = tpu.matmul %18, %19, %cst_6 {dimension_numbers = #tpu.dot_dimension_numbers<[1], [0], [0], [1], [0, 0, 1, 1], [], []>} : vector<256x144xf32>, vector<144x16xf32>, vector<256x16xf32> -> vector<256x16xf32>
    %21 = vector.shape_cast %20 : vector<256x16xf32> to vector<16x16x16xf32>
    %22 = tpu.concatenate %21, %3 in 2 : vector<16x16x16xf32>, vector<16x16x16xf32> -> vector<16x16x32xf32>
    %23 = vector.shape_cast %22 : vector<16x16x32xf32> to vector<256x32xf32>
    %cst_7 = arith.constant dense<0.000000e+00> : vector<32xf32>
    %24 = vector.multi_reduction <add>, %23, %cst_7 [0] : vector<256x32xf32> to vector<32xf32>
    %25 = vector.shape_cast %24 : vector<32xf32> to vector<1x32xf32>
    %cst_8 = arith.constant 2.560000e+02 : f32
    %26 = vector.broadcast %cst_8 : f32 to vector<1x32xf32>
    %27 = arith.divf %25, %26 : vector<1x32xf32>
    %cst_9 = arith.constant dense<0xFF800000> : vector<32xf32>
    %28 = vector.multi_reduction <maximumf>, %23, %cst_9 [0] : vector<256x32xf32> to vector<32xf32>
    %29 = vector.shape_cast %28 : vector<32xf32> to vector<1x32xf32>
    %30 = tpu.concatenate %27, %29 in 0 : vector<1x32xf32>, vector<1x32xf32> -> vector<2x32xf32>
    %c0_10 = arith.constant 0 : index
    %c0_11 = arith.constant 0 : index
    %31 = vector.load %arg3[%c0_10, %c0_11] : memref<32x2xf32, #tpu.memory_space<vmem>>, vector<32x2xf32>
    %cst_12 = arith.constant dense<0.000000e+00> : vector<2x2xf32>
    %32 = tpu.matmul %30, %31, %cst_12 {dimension_numbers = #tpu.dot_dimension_numbers<[1], [0], [0], [1], [0, 0, 1, 1], [], []>} : vector<2x32xf32>, vector<32x2xf32>, vector<2x2xf32> -> vector<2x2xf32>
    %cst_13 = arith.constant 0.000000e+00 : f32
    %33 = vector.broadcast %cst_13 : f32 to vector<2x2xf32>
    %34 = arith.maximumf %32, %33 : vector<2x2xf32>
    %c0_14 = arith.constant 0 : index
    %c0_15 = arith.constant 0 : index
    %35 = vector.load %arg4[%c0_14, %c0_15] : memref<2x32xf32, #tpu.memory_space<vmem>>, vector<2x32xf32>
    %cst_16 = arith.constant dense<0.000000e+00> : vector<2x32xf32>
    %36 = tpu.matmul %34, %35, %cst_16 {dimension_numbers = #tpu.dot_dimension_numbers<[1], [0], [0], [1], [0, 0, 1, 1], [], []>} : vector<2x2xf32>, vector<2x32xf32>, vector<2x32xf32> -> vector<2x32xf32>
    %37 = vector.extract_strided_slice %36 {offsets = [0, 0], sizes = [1, 32], strides = [1, 1]} : vector<2x32xf32> to vector<1x32xf32>
    %38 = vector.extract_strided_slice %36 {offsets = [1, 0], sizes = [1, 32], strides = [1, 1]} : vector<2x32xf32> to vector<1x32xf32>
    %39 = arith.addf %37, %38 : vector<1x32xf32>
    %40 = arith.negf %39 : vector<1x32xf32>
    %41 = math.exp %40 : vector<1x32xf32>
    %cst_17 = arith.constant 1.000000e+00 : f32
    %42 = vector.broadcast %cst_17 : f32 to vector<1x32xf32>
    %43 = arith.addf %42, %41 : vector<1x32xf32>
    %44 = arith.divf %42, %43 : vector<1x32xf32>
    %45 = vector.shape_cast %44 : vector<1x32xf32> to vector<1x1x32xf32>
    %46 = vector.broadcast %45 : vector<1x1x32xf32> to vector<16x16x32xf32>
    %47 = arith.mulf %22, %46 : vector<16x16x32xf32>
    %cst_18 = arith.constant dense<0.000000e+00> : vector<16x16xf32>
    %48 = vector.multi_reduction <add>, %47, %cst_18 [2] : vector<16x16x32xf32> to vector<16x16xf32>
    %cst_19 = arith.constant 3.200000e+01 : f32
    %49 = vector.broadcast %cst_19 : f32 to vector<16x16xf32>
    %50 = arith.divf %48, %49 : vector<16x16xf32>
    %cst_20 = arith.constant dense<0xFF800000> : vector<16x16xf32>
    %51 = vector.multi_reduction <maximumf>, %47, %cst_20 [2] : vector<16x16x32xf32> to vector<16x16xf32>
    %cst_21 = arith.constant 0.000000e+00 : f32
    %52 = vector.broadcast %cst_21 : f32 to vector<16x3xf32>
    %cst_22 = arith.constant 0.000000e+00 : f32
    %53 = vector.broadcast %cst_22 : f32 to vector<3x22xf32>
    %54 = tpu.concatenate %52, %50, %52 in 1 : vector<16x3xf32>, vector<16x16xf32>, vector<16x3xf32> -> vector<16x22xf32>
    %55 = tpu.concatenate %53, %54, %53 in 0 : vector<3x22xf32>, vector<16x22xf32>, vector<3x22xf32> -> vector<22x22xf32>
    %56 = tpu.concatenate %52, %51, %52 in 1 : vector<16x3xf32>, vector<16x16xf32>, vector<16x3xf32> -> vector<16x22xf32>
    %57 = tpu.concatenate %53, %56, %53 in 0 : vector<3x22xf32>, vector<16x22xf32>, vector<3x22xf32> -> vector<22x22xf32>
    %cst_23 = arith.constant 0.000000e+00 : f32
    %58 = vector.broadcast %cst_23 : f32 to vector<16x16xf32>
    %59 = vector.extract_strided_slice %55 {offsets = [0, 0], sizes = [16, 16], strides = [1, 1]} : vector<22x22xf32> to vector<16x16xf32>
    %c0_24 = arith.constant 0 : index
    %c0_25 = arith.constant 0 : index
    %c0_26 = arith.constant 0 : index
    %60 = memref.load %arg5[%c0_24, %c0_25, %c0_26] : memref<7x7x2xf32, #tpu.memory_space<smem>>
    %61 = vector.broadcast %60 : f32 to vector<16x16xf32>
    %62 = arith.mulf %59, %61 : vector<16x16xf32>
    %63 = arith.addf %58, %62 : vector<16x16xf32>
    %64 = vector.extract_strided_slice %57 {offsets = [0, 0], sizes = [16, 16], strides = [1, 1]} : vector<22x22xf32> to vector<16x16xf32>
    %c0_27 = arith.constant 0 : index
    %c0_28 = arith.constant 0 : index
    %c1 = arith.constant 1 : index
    %65 = memref.load %arg5[%c0_27, %c0_28, %c1] : memref<7x7x2xf32, #tpu.memory_space<smem>>
    %66 = vector.broadcast %65 : f32 to vector<16x16xf32>
    %67 = arith.mulf %64, %66 : vector<16x16xf32>
    %68 = arith.addf %63, %67 : vector<16x16xf32>
    %69 = vector.extract_strided_slice %55 {offsets = [0, 1], sizes = [16, 16], strides = [1, 1]} : vector<22x22xf32> to vector<16x16xf32>
    %c0_29 = arith.constant 0 : index
    %c1_30 = arith.constant 1 : index
    %c0_31 = arith.constant 0 : index
    %70 = memref.load %arg5[%c0_29, %c1_30, %c0_31] : memref<7x7x2xf32, #tpu.memory_space<smem>>
    %71 = vector.broadcast %70 : f32 to vector<16x16xf32>
    %72 = arith.mulf %69, %71 : vector<16x16xf32>
    %73 = arith.addf %68, %72 : vector<16x16xf32>
    %74 = vector.extract_strided_slice %57 {offsets = [0, 1], sizes = [16, 16], strides = [1, 1]} : vector<22x22xf32> to vector<16x16xf32>
    %c0_32 = arith.constant 0 : index
    %c1_33 = arith.constant 1 : index
    %c1_34 = arith.constant 1 : index
    %75 = memref.load %arg5[%c0_32, %c1_33, %c1_34] : memref<7x7x2xf32, #tpu.memory_space<smem>>
    %76 = vector.broadcast %75 : f32 to vector<16x16xf32>
    %77 = arith.mulf %74, %76 : vector<16x16xf32>
    %78 = arith.addf %73, %77 : vector<16x16xf32>
    %79 = vector.extract_strided_slice %55 {offsets = [0, 2], sizes = [16, 16], strides = [1, 1]} : vector<22x22xf32> to vector<16x16xf32>
    %c0_35 = arith.constant 0 : index
    %c2 = arith.constant 2 : index
    %c0_36 = arith.constant 0 : index
    %80 = memref.load %arg5[%c0_35, %c2, %c0_36] : memref<7x7x2xf32, #tpu.memory_space<smem>>
    %81 = vector.broadcast %80 : f32 to vector<16x16xf32>
    %82 = arith.mulf %79, %81 : vector<16x16xf32>
    %83 = arith.addf %78, %82 : vector<16x16xf32>
    %84 = vector.extract_strided_slice %57 {offsets = [0, 2], sizes = [16, 16], strides = [1, 1]} : vector<22x22xf32> to vector<16x16xf32>
    %c0_37 = arith.constant 0 : index
    %c2_38 = arith.constant 2 : index
    %c1_39 = arith.constant 1 : index
    %85 = memref.load %arg5[%c0_37, %c2_38, %c1_39] : memref<7x7x2xf32, #tpu.memory_space<smem>>
    %86 = vector.broadcast %85 : f32 to vector<16x16xf32>
    %87 = arith.mulf %84, %86 : vector<16x16xf32>
    %88 = arith.addf %83, %87 : vector<16x16xf32>
    %89 = vector.extract_strided_slice %55 {offsets = [0, 3], sizes = [16, 16], strides = [1, 1]} : vector<22x22xf32> to vector<16x16xf32>
    %c0_40 = arith.constant 0 : index
    %c3 = arith.constant 3 : index
    %c0_41 = arith.constant 0 : index
    %90 = memref.load %arg5[%c0_40, %c3, %c0_41] : memref<7x7x2xf32, #tpu.memory_space<smem>>
    %91 = vector.broadcast %90 : f32 to vector<16x16xf32>
    %92 = arith.mulf %89, %91 : vector<16x16xf32>
    %93 = arith.addf %88, %92 : vector<16x16xf32>
    %94 = vector.extract_strided_slice %57 {offsets = [0, 3], sizes = [16, 16], strides = [1, 1]} : vector<22x22xf32> to vector<16x16xf32>
    %c0_42 = arith.constant 0 : index
    %c3_43 = arith.constant 3 : index
    %c1_44 = arith.constant 1 : index
    %95 = memref.load %arg5[%c0_42, %c3_43, %c1_44] : memref<7x7x2xf32, #tpu.memory_space<smem>>
    %96 = vector.broadcast %95 : f32 to vector<16x16xf32>
    %97 = arith.mulf %94, %96 : vector<16x16xf32>
    %98 = arith.addf %93, %97 : vector<16x16xf32>
    %99 = vector.extract_strided_slice %55 {offsets = [0, 4], sizes = [16, 16], strides = [1, 1]} : vector<22x22xf32> to vector<16x16xf32>
    %c0_45 = arith.constant 0 : index
    %c4 = arith.constant 4 : index
    %c0_46 = arith.constant 0 : index
    %100 = memref.load %arg5[%c0_45, %c4, %c0_46] : memref<7x7x2xf32, #tpu.memory_space<smem>>
    %101 = vector.broadcast %100 : f32 to vector<16x16xf32>
    %102 = arith.mulf %99, %101 : vector<16x16xf32>
    %103 = arith.addf %98, %102 : vector<16x16xf32>
    %104 = vector.extract_strided_slice %57 {offsets = [0, 4], sizes = [16, 16], strides = [1, 1]} : vector<22x22xf32> to vector<16x16xf32>
    %c0_47 = arith.constant 0 : index
    %c4_48 = arith.constant 4 : index
    %c1_49 = arith.constant 1 : index
    %105 = memref.load %arg5[%c0_47, %c4_48, %c1_49] : memref<7x7x2xf32, #tpu.memory_space<smem>>
    %106 = vector.broadcast %105 : f32 to vector<16x16xf32>
    %107 = arith.mulf %104, %106 : vector<16x16xf32>
    %108 = arith.addf %103, %107 : vector<16x16xf32>
    %109 = vector.extract_strided_slice %55 {offsets = [0, 5], sizes = [16, 16], strides = [1, 1]} : vector<22x22xf32> to vector<16x16xf32>
    %c0_50 = arith.constant 0 : index
    %c5 = arith.constant 5 : index
    %c0_51 = arith.constant 0 : index
    %110 = memref.load %arg5[%c0_50, %c5, %c0_51] : memref<7x7x2xf32, #tpu.memory_space<smem>>
    %111 = vector.broadcast %110 : f32 to vector<16x16xf32>
    %112 = arith.mulf %109, %111 : vector<16x16xf32>
    %113 = arith.addf %108, %112 : vector<16x16xf32>
    %114 = vector.extract_strided_slice %57 {offsets = [0, 5], sizes = [16, 16], strides = [1, 1]} : vector<22x22xf32> to vector<16x16xf32>
    %c0_52 = arith.constant 0 : index
    %c5_53 = arith.constant 5 : index
    %c1_54 = arith.constant 1 : index
    %115 = memref.load %arg5[%c0_52, %c5_53, %c1_54] : memref<7x7x2xf32, #tpu.memory_space<smem>>
    %116 = vector.broadcast %115 : f32 to vector<16x16xf32>
    %117 = arith.mulf %114, %116 : vector<16x16xf32>
    %118 = arith.addf %113, %117 : vector<16x16xf32>
    %119 = vector.extract_strided_slice %55 {offsets = [0, 6], sizes = [16, 16], strides = [1, 1]} : vector<22x22xf32> to vector<16x16xf32>
    %c0_55 = arith.constant 0 : index
    %c6 = arith.constant 6 : index
    %c0_56 = arith.constant 0 : index
    %120 = memref.load %arg5[%c0_55, %c6, %c0_56] : memref<7x7x2xf32, #tpu.memory_space<smem>>
    %121 = vector.broadcast %120 : f32 to vector<16x16xf32>
    %122 = arith.mulf %119, %121 : vector<16x16xf32>
    %123 = arith.addf %118, %122 : vector<16x16xf32>
    %124 = vector.extract_strided_slice %57 {offsets = [0, 6], sizes = [16, 16], strides = [1, 1]} : vector<22x22xf32> to vector<16x16xf32>
    %c0_57 = arith.constant 0 : index
    %c6_58 = arith.constant 6 : index
    %c1_59 = arith.constant 1 : index
    %125 = memref.load %arg5[%c0_57, %c6_58, %c1_59] : memref<7x7x2xf32, #tpu.memory_space<smem>>
    %126 = vector.broadcast %125 : f32 to vector<16x16xf32>
    %127 = arith.mulf %124, %126 : vector<16x16xf32>
    %128 = arith.addf %123, %127 : vector<16x16xf32>
    %129 = vector.extract_strided_slice %55 {offsets = [1, 0], sizes = [16, 16], strides = [1, 1]} : vector<22x22xf32> to vector<16x16xf32>
    %c1_60 = arith.constant 1 : index
    %c0_61 = arith.constant 0 : index
    %c0_62 = arith.constant 0 : index
    %130 = memref.load %arg5[%c1_60, %c0_61, %c0_62] : memref<7x7x2xf32, #tpu.memory_space<smem>>
    %131 = vector.broadcast %130 : f32 to vector<16x16xf32>
    %132 = arith.mulf %129, %131 : vector<16x16xf32>
    %133 = arith.addf %128, %132 : vector<16x16xf32>
    %134 = vector.extract_strided_slice %57 {offsets = [1, 0], sizes = [16, 16], strides = [1, 1]} : vector<22x22xf32> to vector<16x16xf32>
    %c1_63 = arith.constant 1 : index
    %c0_64 = arith.constant 0 : index
    %c1_65 = arith.constant 1 : index
    %135 = memref.load %arg5[%c1_63, %c0_64, %c1_65] : memref<7x7x2xf32, #tpu.memory_space<smem>>
    %136 = vector.broadcast %135 : f32 to vector<16x16xf32>
    %137 = arith.mulf %134, %136 : vector<16x16xf32>
    %138 = arith.addf %133, %137 : vector<16x16xf32>
    %139 = vector.extract_strided_slice %55 {offsets = [1, 1], sizes = [16, 16], strides = [1, 1]} : vector<22x22xf32> to vector<16x16xf32>
    %c1_66 = arith.constant 1 : index
    %c1_67 = arith.constant 1 : index
    %c0_68 = arith.constant 0 : index
    %140 = memref.load %arg5[%c1_66, %c1_67, %c0_68] : memref<7x7x2xf32, #tpu.memory_space<smem>>
    %141 = vector.broadcast %140 : f32 to vector<16x16xf32>
    %142 = arith.mulf %139, %141 : vector<16x16xf32>
    %143 = arith.addf %138, %142 : vector<16x16xf32>
    %144 = vector.extract_strided_slice %57 {offsets = [1, 1], sizes = [16, 16], strides = [1, 1]} : vector<22x22xf32> to vector<16x16xf32>
    %c1_69 = arith.constant 1 : index
    %c1_70 = arith.constant 1 : index
    %c1_71 = arith.constant 1 : index
    %145 = memref.load %arg5[%c1_69, %c1_70, %c1_71] : memref<7x7x2xf32, #tpu.memory_space<smem>>
    %146 = vector.broadcast %145 : f32 to vector<16x16xf32>
    %147 = arith.mulf %144, %146 : vector<16x16xf32>
    %148 = arith.addf %143, %147 : vector<16x16xf32>
    %149 = vector.extract_strided_slice %55 {offsets = [1, 2], sizes = [16, 16], strides = [1, 1]} : vector<22x22xf32> to vector<16x16xf32>
    %c1_72 = arith.constant 1 : index
    %c2_73 = arith.constant 2 : index
    %c0_74 = arith.constant 0 : index
    %150 = memref.load %arg5[%c1_72, %c2_73, %c0_74] : memref<7x7x2xf32, #tpu.memory_space<smem>>
    %151 = vector.broadcast %150 : f32 to vector<16x16xf32>
    %152 = arith.mulf %149, %151 : vector<16x16xf32>
    %153 = arith.addf %148, %152 : vector<16x16xf32>
    %154 = vector.extract_strided_slice %57 {offsets = [1, 2], sizes = [16, 16], strides = [1, 1]} : vector<22x22xf32> to vector<16x16xf32>
    %c1_75 = arith.constant 1 : index
    %c2_76 = arith.constant 2 : index
    %c1_77 = arith.constant 1 : index
    %155 = memref.load %arg5[%c1_75, %c2_76, %c1_77] : memref<7x7x2xf32, #tpu.memory_space<smem>>
    %156 = vector.broadcast %155 : f32 to vector<16x16xf32>
    %157 = arith.mulf %154, %156 : vector<16x16xf32>
    %158 = arith.addf %153, %157 : vector<16x16xf32>
    %159 = vector.extract_strided_slice %55 {offsets = [1, 3], sizes = [16, 16], strides = [1, 1]} : vector<22x22xf32> to vector<16x16xf32>
    %c1_78 = arith.constant 1 : index
    %c3_79 = arith.constant 3 : index
    %c0_80 = arith.constant 0 : index
    %160 = memref.load %arg5[%c1_78, %c3_79, %c0_80] : memref<7x7x2xf32, #tpu.memory_space<smem>>
    %161 = vector.broadcast %160 : f32 to vector<16x16xf32>
    %162 = arith.mulf %159, %161 : vector<16x16xf32>
    %163 = arith.addf %158, %162 : vector<16x16xf32>
    %164 = vector.extract_strided_slice %57 {offsets = [1, 3], sizes = [16, 16], strides = [1, 1]} : vector<22x22xf32> to vector<16x16xf32>
    %c1_81 = arith.constant 1 : index
    %c3_82 = arith.constant 3 : index
    %c1_83 = arith.constant 1 : index
    %165 = memref.load %arg5[%c1_81, %c3_82, %c1_83] : memref<7x7x2xf32, #tpu.memory_space<smem>>
    %166 = vector.broadcast %165 : f32 to vector<16x16xf32>
    %167 = arith.mulf %164, %166 : vector<16x16xf32>
    %168 = arith.addf %163, %167 : vector<16x16xf32>
    %169 = vector.extract_strided_slice %55 {offsets = [1, 4], sizes = [16, 16], strides = [1, 1]} : vector<22x22xf32> to vector<16x16xf32>
    %c1_84 = arith.constant 1 : index
    %c4_85 = arith.constant 4 : index
    %c0_86 = arith.constant 0 : index
    %170 = memref.load %arg5[%c1_84, %c4_85, %c0_86] : memref<7x7x2xf32, #tpu.memory_space<smem>>
    %171 = vector.broadcast %170 : f32 to vector<16x16xf32>
    %172 = arith.mulf %169, %171 : vector<16x16xf32>
    %173 = arith.addf %168, %172 : vector<16x16xf32>
    %174 = vector.extract_strided_slice %57 {offsets = [1, 4], sizes = [16, 16], strides = [1, 1]} : vector<22x22xf32> to vector<16x16xf32>
    %c1_87 = arith.constant 1 : index
    %c4_88 = arith.constant 4 : index
    %c1_89 = arith.constant 1 : index
    %175 = memref.load %arg5[%c1_87, %c4_88, %c1_89] : memref<7x7x2xf32, #tpu.memory_space<smem>>
    %176 = vector.broadcast %175 : f32 to vector<16x16xf32>
    %177 = arith.mulf %174, %176 : vector<16x16xf32>
    %178 = arith.addf %173, %177 : vector<16x16xf32>
    %179 = vector.extract_strided_slice %55 {offsets = [1, 5], sizes = [16, 16], strides = [1, 1]} : vector<22x22xf32> to vector<16x16xf32>
    %c1_90 = arith.constant 1 : index
    %c5_91 = arith.constant 5 : index
    %c0_92 = arith.constant 0 : index
    %180 = memref.load %arg5[%c1_90, %c5_91, %c0_92] : memref<7x7x2xf32, #tpu.memory_space<smem>>
    %181 = vector.broadcast %180 : f32 to vector<16x16xf32>
    %182 = arith.mulf %179, %181 : vector<16x16xf32>
    %183 = arith.addf %178, %182 : vector<16x16xf32>
    %184 = vector.extract_strided_slice %57 {offsets = [1, 5], sizes = [16, 16], strides = [1, 1]} : vector<22x22xf32> to vector<16x16xf32>
    %c1_93 = arith.constant 1 : index
    %c5_94 = arith.constant 5 : index
    %c1_95 = arith.constant 1 : index
    %185 = memref.load %arg5[%c1_93, %c5_94, %c1_95] : memref<7x7x2xf32, #tpu.memory_space<smem>>
    %186 = vector.broadcast %185 : f32 to vector<16x16xf32>
    %187 = arith.mulf %184, %186 : vector<16x16xf32>
    %188 = arith.addf %183, %187 : vector<16x16xf32>
    %189 = vector.extract_strided_slice %55 {offsets = [1, 6], sizes = [16, 16], strides = [1, 1]} : vector<22x22xf32> to vector<16x16xf32>
    %c1_96 = arith.constant 1 : index
    %c6_97 = arith.constant 6 : index
    %c0_98 = arith.constant 0 : index
    %190 = memref.load %arg5[%c1_96, %c6_97, %c0_98] : memref<7x7x2xf32, #tpu.memory_space<smem>>
    %191 = vector.broadcast %190 : f32 to vector<16x16xf32>
    %192 = arith.mulf %189, %191 : vector<16x16xf32>
    %193 = arith.addf %188, %192 : vector<16x16xf32>
    %194 = vector.extract_strided_slice %57 {offsets = [1, 6], sizes = [16, 16], strides = [1, 1]} : vector<22x22xf32> to vector<16x16xf32>
    %c1_99 = arith.constant 1 : index
    %c6_100 = arith.constant 6 : index
    %c1_101 = arith.constant 1 : index
    %195 = memref.load %arg5[%c1_99, %c6_100, %c1_101] : memref<7x7x2xf32, #tpu.memory_space<smem>>
    %196 = vector.broadcast %195 : f32 to vector<16x16xf32>
    %197 = arith.mulf %194, %196 : vector<16x16xf32>
    %198 = arith.addf %193, %197 : vector<16x16xf32>
    %199 = vector.extract_strided_slice %55 {offsets = [2, 0], sizes = [16, 16], strides = [1, 1]} : vector<22x22xf32> to vector<16x16xf32>
    %c2_102 = arith.constant 2 : index
    %c0_103 = arith.constant 0 : index
    %c0_104 = arith.constant 0 : index
    %200 = memref.load %arg5[%c2_102, %c0_103, %c0_104] : memref<7x7x2xf32, #tpu.memory_space<smem>>
    %201 = vector.broadcast %200 : f32 to vector<16x16xf32>
    %202 = arith.mulf %199, %201 : vector<16x16xf32>
    %203 = arith.addf %198, %202 : vector<16x16xf32>
    %204 = vector.extract_strided_slice %57 {offsets = [2, 0], sizes = [16, 16], strides = [1, 1]} : vector<22x22xf32> to vector<16x16xf32>
    %c2_105 = arith.constant 2 : index
    %c0_106 = arith.constant 0 : index
    %c1_107 = arith.constant 1 : index
    %205 = memref.load %arg5[%c2_105, %c0_106, %c1_107] : memref<7x7x2xf32, #tpu.memory_space<smem>>
    %206 = vector.broadcast %205 : f32 to vector<16x16xf32>
    %207 = arith.mulf %204, %206 : vector<16x16xf32>
    %208 = arith.addf %203, %207 : vector<16x16xf32>
    %209 = vector.extract_strided_slice %55 {offsets = [2, 1], sizes = [16, 16], strides = [1, 1]} : vector<22x22xf32> to vector<16x16xf32>
    %c2_108 = arith.constant 2 : index
    %c1_109 = arith.constant 1 : index
    %c0_110 = arith.constant 0 : index
    %210 = memref.load %arg5[%c2_108, %c1_109, %c0_110] : memref<7x7x2xf32, #tpu.memory_space<smem>>
    %211 = vector.broadcast %210 : f32 to vector<16x16xf32>
    %212 = arith.mulf %209, %211 : vector<16x16xf32>
    %213 = arith.addf %208, %212 : vector<16x16xf32>
    %214 = vector.extract_strided_slice %57 {offsets = [2, 1], sizes = [16, 16], strides = [1, 1]} : vector<22x22xf32> to vector<16x16xf32>
    %c2_111 = arith.constant 2 : index
    %c1_112 = arith.constant 1 : index
    %c1_113 = arith.constant 1 : index
    %215 = memref.load %arg5[%c2_111, %c1_112, %c1_113] : memref<7x7x2xf32, #tpu.memory_space<smem>>
    %216 = vector.broadcast %215 : f32 to vector<16x16xf32>
    %217 = arith.mulf %214, %216 : vector<16x16xf32>
    %218 = arith.addf %213, %217 : vector<16x16xf32>
    %219 = vector.extract_strided_slice %55 {offsets = [2, 2], sizes = [16, 16], strides = [1, 1]} : vector<22x22xf32> to vector<16x16xf32>
    %c2_114 = arith.constant 2 : index
    %c2_115 = arith.constant 2 : index
    %c0_116 = arith.constant 0 : index
    %220 = memref.load %arg5[%c2_114, %c2_115, %c0_116] : memref<7x7x2xf32, #tpu.memory_space<smem>>
    %221 = vector.broadcast %220 : f32 to vector<16x16xf32>
    %222 = arith.mulf %219, %221 : vector<16x16xf32>
    %223 = arith.addf %218, %222 : vector<16x16xf32>
    %224 = vector.extract_strided_slice %57 {offsets = [2, 2], sizes = [16, 16], strides = [1, 1]} : vector<22x22xf32> to vector<16x16xf32>
    %c2_117 = arith.constant 2 : index
    %c2_118 = arith.constant 2 : index
    %c1_119 = arith.constant 1 : index
    %225 = memref.load %arg5[%c2_117, %c2_118, %c1_119] : memref<7x7x2xf32, #tpu.memory_space<smem>>
    %226 = vector.broadcast %225 : f32 to vector<16x16xf32>
    %227 = arith.mulf %224, %226 : vector<16x16xf32>
    %228 = arith.addf %223, %227 : vector<16x16xf32>
    %229 = vector.extract_strided_slice %55 {offsets = [2, 3], sizes = [16, 16], strides = [1, 1]} : vector<22x22xf32> to vector<16x16xf32>
    %c2_120 = arith.constant 2 : index
    %c3_121 = arith.constant 3 : index
    %c0_122 = arith.constant 0 : index
    %230 = memref.load %arg5[%c2_120, %c3_121, %c0_122] : memref<7x7x2xf32, #tpu.memory_space<smem>>
    %231 = vector.broadcast %230 : f32 to vector<16x16xf32>
    %232 = arith.mulf %229, %231 : vector<16x16xf32>
    %233 = arith.addf %228, %232 : vector<16x16xf32>
    %234 = vector.extract_strided_slice %57 {offsets = [2, 3], sizes = [16, 16], strides = [1, 1]} : vector<22x22xf32> to vector<16x16xf32>
    %c2_123 = arith.constant 2 : index
    %c3_124 = arith.constant 3 : index
    %c1_125 = arith.constant 1 : index
    %235 = memref.load %arg5[%c2_123, %c3_124, %c1_125] : memref<7x7x2xf32, #tpu.memory_space<smem>>
    %236 = vector.broadcast %235 : f32 to vector<16x16xf32>
    %237 = arith.mulf %234, %236 : vector<16x16xf32>
    %238 = arith.addf %233, %237 : vector<16x16xf32>
    %239 = vector.extract_strided_slice %55 {offsets = [2, 4], sizes = [16, 16], strides = [1, 1]} : vector<22x22xf32> to vector<16x16xf32>
    %c2_126 = arith.constant 2 : index
    %c4_127 = arith.constant 4 : index
    %c0_128 = arith.constant 0 : index
    %240 = memref.load %arg5[%c2_126, %c4_127, %c0_128] : memref<7x7x2xf32, #tpu.memory_space<smem>>
    %241 = vector.broadcast %240 : f32 to vector<16x16xf32>
    %242 = arith.mulf %239, %241 : vector<16x16xf32>
    %243 = arith.addf %238, %242 : vector<16x16xf32>
    %244 = vector.extract_strided_slice %57 {offsets = [2, 4], sizes = [16, 16], strides = [1, 1]} : vector<22x22xf32> to vector<16x16xf32>
    %c2_129 = arith.constant 2 : index
    %c4_130 = arith.constant 4 : index
    %c1_131 = arith.constant 1 : index
    %245 = memref.load %arg5[%c2_129, %c4_130, %c1_131] : memref<7x7x2xf32, #tpu.memory_space<smem>>
    %246 = vector.broadcast %245 : f32 to vector<16x16xf32>
    %247 = arith.mulf %244, %246 : vector<16x16xf32>
    %248 = arith.addf %243, %247 : vector<16x16xf32>
    %249 = vector.extract_strided_slice %55 {offsets = [2, 5], sizes = [16, 16], strides = [1, 1]} : vector<22x22xf32> to vector<16x16xf32>
    %c2_132 = arith.constant 2 : index
    %c5_133 = arith.constant 5 : index
    %c0_134 = arith.constant 0 : index
    %250 = memref.load %arg5[%c2_132, %c5_133, %c0_134] : memref<7x7x2xf32, #tpu.memory_space<smem>>
    %251 = vector.broadcast %250 : f32 to vector<16x16xf32>
    %252 = arith.mulf %249, %251 : vector<16x16xf32>
    %253 = arith.addf %248, %252 : vector<16x16xf32>
    %254 = vector.extract_strided_slice %57 {offsets = [2, 5], sizes = [16, 16], strides = [1, 1]} : vector<22x22xf32> to vector<16x16xf32>
    %c2_135 = arith.constant 2 : index
    %c5_136 = arith.constant 5 : index
    %c1_137 = arith.constant 1 : index
    %255 = memref.load %arg5[%c2_135, %c5_136, %c1_137] : memref<7x7x2xf32, #tpu.memory_space<smem>>
    %256 = vector.broadcast %255 : f32 to vector<16x16xf32>
    %257 = arith.mulf %254, %256 : vector<16x16xf32>
    %258 = arith.addf %253, %257 : vector<16x16xf32>
    %259 = vector.extract_strided_slice %55 {offsets = [2, 6], sizes = [16, 16], strides = [1, 1]} : vector<22x22xf32> to vector<16x16xf32>
    %c2_138 = arith.constant 2 : index
    %c6_139 = arith.constant 6 : index
    %c0_140 = arith.constant 0 : index
    %260 = memref.load %arg5[%c2_138, %c6_139, %c0_140] : memref<7x7x2xf32, #tpu.memory_space<smem>>
    %261 = vector.broadcast %260 : f32 to vector<16x16xf32>
    %262 = arith.mulf %259, %261 : vector<16x16xf32>
    %263 = arith.addf %258, %262 : vector<16x16xf32>
    %264 = vector.extract_strided_slice %57 {offsets = [2, 6], sizes = [16, 16], strides = [1, 1]} : vector<22x22xf32> to vector<16x16xf32>
    %c2_141 = arith.constant 2 : index
    %c6_142 = arith.constant 6 : index
    %c1_143 = arith.constant 1 : index
    %265 = memref.load %arg5[%c2_141, %c6_142, %c1_143] : memref<7x7x2xf32, #tpu.memory_space<smem>>
    %266 = vector.broadcast %265 : f32 to vector<16x16xf32>
    %267 = arith.mulf %264, %266 : vector<16x16xf32>
    %268 = arith.addf %263, %267 : vector<16x16xf32>
    %269 = vector.extract_strided_slice %55 {offsets = [3, 0], sizes = [16, 16], strides = [1, 1]} : vector<22x22xf32> to vector<16x16xf32>
    %c3_144 = arith.constant 3 : index
    %c0_145 = arith.constant 0 : index
    %c0_146 = arith.constant 0 : index
    %270 = memref.load %arg5[%c3_144, %c0_145, %c0_146] : memref<7x7x2xf32, #tpu.memory_space<smem>>
    %271 = vector.broadcast %270 : f32 to vector<16x16xf32>
    %272 = arith.mulf %269, %271 : vector<16x16xf32>
    %273 = arith.addf %268, %272 : vector<16x16xf32>
    %274 = vector.extract_strided_slice %57 {offsets = [3, 0], sizes = [16, 16], strides = [1, 1]} : vector<22x22xf32> to vector<16x16xf32>
    %c3_147 = arith.constant 3 : index
    %c0_148 = arith.constant 0 : index
    %c1_149 = arith.constant 1 : index
    %275 = memref.load %arg5[%c3_147, %c0_148, %c1_149] : memref<7x7x2xf32, #tpu.memory_space<smem>>
    %276 = vector.broadcast %275 : f32 to vector<16x16xf32>
    %277 = arith.mulf %274, %276 : vector<16x16xf32>
    %278 = arith.addf %273, %277 : vector<16x16xf32>
    %279 = vector.extract_strided_slice %55 {offsets = [3, 1], sizes = [16, 16], strides = [1, 1]} : vector<22x22xf32> to vector<16x16xf32>
    %c3_150 = arith.constant 3 : index
    %c1_151 = arith.constant 1 : index
    %c0_152 = arith.constant 0 : index
    %280 = memref.load %arg5[%c3_150, %c1_151, %c0_152] : memref<7x7x2xf32, #tpu.memory_space<smem>>
    %281 = vector.broadcast %280 : f32 to vector<16x16xf32>
    %282 = arith.mulf %279, %281 : vector<16x16xf32>
    %283 = arith.addf %278, %282 : vector<16x16xf32>
    %284 = vector.extract_strided_slice %57 {offsets = [3, 1], sizes = [16, 16], strides = [1, 1]} : vector<22x22xf32> to vector<16x16xf32>
    %c3_153 = arith.constant 3 : index
    %c1_154 = arith.constant 1 : index
    %c1_155 = arith.constant 1 : index
    %285 = memref.load %arg5[%c3_153, %c1_154, %c1_155] : memref<7x7x2xf32, #tpu.memory_space<smem>>
    %286 = vector.broadcast %285 : f32 to vector<16x16xf32>
    %287 = arith.mulf %284, %286 : vector<16x16xf32>
    %288 = arith.addf %283, %287 : vector<16x16xf32>
    %289 = vector.extract_strided_slice %55 {offsets = [3, 2], sizes = [16, 16], strides = [1, 1]} : vector<22x22xf32> to vector<16x16xf32>
    %c3_156 = arith.constant 3 : index
    %c2_157 = arith.constant 2 : index
    %c0_158 = arith.constant 0 : index
    %290 = memref.load %arg5[%c3_156, %c2_157, %c0_158] : memref<7x7x2xf32, #tpu.memory_space<smem>>
    %291 = vector.broadcast %290 : f32 to vector<16x16xf32>
    %292 = arith.mulf %289, %291 : vector<16x16xf32>
    %293 = arith.addf %288, %292 : vector<16x16xf32>
    %294 = vector.extract_strided_slice %57 {offsets = [3, 2], sizes = [16, 16], strides = [1, 1]} : vector<22x22xf32> to vector<16x16xf32>
    %c3_159 = arith.constant 3 : index
    %c2_160 = arith.constant 2 : index
    %c1_161 = arith.constant 1 : index
    %295 = memref.load %arg5[%c3_159, %c2_160, %c1_161] : memref<7x7x2xf32, #tpu.memory_space<smem>>
    %296 = vector.broadcast %295 : f32 to vector<16x16xf32>
    %297 = arith.mulf %294, %296 : vector<16x16xf32>
    %298 = arith.addf %293, %297 : vector<16x16xf32>
    %299 = vector.extract_strided_slice %55 {offsets = [3, 3], sizes = [16, 16], strides = [1, 1]} : vector<22x22xf32> to vector<16x16xf32>
    %c3_162 = arith.constant 3 : index
    %c3_163 = arith.constant 3 : index
    %c0_164 = arith.constant 0 : index
    %300 = memref.load %arg5[%c3_162, %c3_163, %c0_164] : memref<7x7x2xf32, #tpu.memory_space<smem>>
    %301 = vector.broadcast %300 : f32 to vector<16x16xf32>
    %302 = arith.mulf %299, %301 : vector<16x16xf32>
    %303 = arith.addf %298, %302 : vector<16x16xf32>
    %304 = vector.extract_strided_slice %57 {offsets = [3, 3], sizes = [16, 16], strides = [1, 1]} : vector<22x22xf32> to vector<16x16xf32>
    %c3_165 = arith.constant 3 : index
    %c3_166 = arith.constant 3 : index
    %c1_167 = arith.constant 1 : index
    %305 = memref.load %arg5[%c3_165, %c3_166, %c1_167] : memref<7x7x2xf32, #tpu.memory_space<smem>>
    %306 = vector.broadcast %305 : f32 to vector<16x16xf32>
    %307 = arith.mulf %304, %306 : vector<16x16xf32>
    %308 = arith.addf %303, %307 : vector<16x16xf32>
    %309 = vector.extract_strided_slice %55 {offsets = [3, 4], sizes = [16, 16], strides = [1, 1]} : vector<22x22xf32> to vector<16x16xf32>
    %c3_168 = arith.constant 3 : index
    %c4_169 = arith.constant 4 : index
    %c0_170 = arith.constant 0 : index
    %310 = memref.load %arg5[%c3_168, %c4_169, %c0_170] : memref<7x7x2xf32, #tpu.memory_space<smem>>
    %311 = vector.broadcast %310 : f32 to vector<16x16xf32>
    %312 = arith.mulf %309, %311 : vector<16x16xf32>
    %313 = arith.addf %308, %312 : vector<16x16xf32>
    %314 = vector.extract_strided_slice %57 {offsets = [3, 4], sizes = [16, 16], strides = [1, 1]} : vector<22x22xf32> to vector<16x16xf32>
    %c3_171 = arith.constant 3 : index
    %c4_172 = arith.constant 4 : index
    %c1_173 = arith.constant 1 : index
    %315 = memref.load %arg5[%c3_171, %c4_172, %c1_173] : memref<7x7x2xf32, #tpu.memory_space<smem>>
    %316 = vector.broadcast %315 : f32 to vector<16x16xf32>
    %317 = arith.mulf %314, %316 : vector<16x16xf32>
    %318 = arith.addf %313, %317 : vector<16x16xf32>
    %319 = vector.extract_strided_slice %55 {offsets = [3, 5], sizes = [16, 16], strides = [1, 1]} : vector<22x22xf32> to vector<16x16xf32>
    %c3_174 = arith.constant 3 : index
    %c5_175 = arith.constant 5 : index
    %c0_176 = arith.constant 0 : index
    %320 = memref.load %arg5[%c3_174, %c5_175, %c0_176] : memref<7x7x2xf32, #tpu.memory_space<smem>>
    %321 = vector.broadcast %320 : f32 to vector<16x16xf32>
    %322 = arith.mulf %319, %321 : vector<16x16xf32>
    %323 = arith.addf %318, %322 : vector<16x16xf32>
    %324 = vector.extract_strided_slice %57 {offsets = [3, 5], sizes = [16, 16], strides = [1, 1]} : vector<22x22xf32> to vector<16x16xf32>
    %c3_177 = arith.constant 3 : index
    %c5_178 = arith.constant 5 : index
    %c1_179 = arith.constant 1 : index
    %325 = memref.load %arg5[%c3_177, %c5_178, %c1_179] : memref<7x7x2xf32, #tpu.memory_space<smem>>
    %326 = vector.broadcast %325 : f32 to vector<16x16xf32>
    %327 = arith.mulf %324, %326 : vector<16x16xf32>
    %328 = arith.addf %323, %327 : vector<16x16xf32>
    %329 = vector.extract_strided_slice %55 {offsets = [3, 6], sizes = [16, 16], strides = [1, 1]} : vector<22x22xf32> to vector<16x16xf32>
    %c3_180 = arith.constant 3 : index
    %c6_181 = arith.constant 6 : index
    %c0_182 = arith.constant 0 : index
    %330 = memref.load %arg5[%c3_180, %c6_181, %c0_182] : memref<7x7x2xf32, #tpu.memory_space<smem>>
    %331 = vector.broadcast %330 : f32 to vector<16x16xf32>
    %332 = arith.mulf %329, %331 : vector<16x16xf32>
    %333 = arith.addf %328, %332 : vector<16x16xf32>
    %334 = vector.extract_strided_slice %57 {offsets = [3, 6], sizes = [16, 16], strides = [1, 1]} : vector<22x22xf32> to vector<16x16xf32>
    %c3_183 = arith.constant 3 : index
    %c6_184 = arith.constant 6 : index
    %c1_185 = arith.constant 1 : index
    %335 = memref.load %arg5[%c3_183, %c6_184, %c1_185] : memref<7x7x2xf32, #tpu.memory_space<smem>>
    %336 = vector.broadcast %335 : f32 to vector<16x16xf32>
    %337 = arith.mulf %334, %336 : vector<16x16xf32>
    %338 = arith.addf %333, %337 : vector<16x16xf32>
    %339 = vector.extract_strided_slice %55 {offsets = [4, 0], sizes = [16, 16], strides = [1, 1]} : vector<22x22xf32> to vector<16x16xf32>
    %c4_186 = arith.constant 4 : index
    %c0_187 = arith.constant 0 : index
    %c0_188 = arith.constant 0 : index
    %340 = memref.load %arg5[%c4_186, %c0_187, %c0_188] : memref<7x7x2xf32, #tpu.memory_space<smem>>
    %341 = vector.broadcast %340 : f32 to vector<16x16xf32>
    %342 = arith.mulf %339, %341 : vector<16x16xf32>
    %343 = arith.addf %338, %342 : vector<16x16xf32>
    %344 = vector.extract_strided_slice %57 {offsets = [4, 0], sizes = [16, 16], strides = [1, 1]} : vector<22x22xf32> to vector<16x16xf32>
    %c4_189 = arith.constant 4 : index
    %c0_190 = arith.constant 0 : index
    %c1_191 = arith.constant 1 : index
    %345 = memref.load %arg5[%c4_189, %c0_190, %c1_191] : memref<7x7x2xf32, #tpu.memory_space<smem>>
    %346 = vector.broadcast %345 : f32 to vector<16x16xf32>
    %347 = arith.mulf %344, %346 : vector<16x16xf32>
    %348 = arith.addf %343, %347 : vector<16x16xf32>
    %349 = vector.extract_strided_slice %55 {offsets = [4, 1], sizes = [16, 16], strides = [1, 1]} : vector<22x22xf32> to vector<16x16xf32>
    %c4_192 = arith.constant 4 : index
    %c1_193 = arith.constant 1 : index
    %c0_194 = arith.constant 0 : index
    %350 = memref.load %arg5[%c4_192, %c1_193, %c0_194] : memref<7x7x2xf32, #tpu.memory_space<smem>>
    %351 = vector.broadcast %350 : f32 to vector<16x16xf32>
    %352 = arith.mulf %349, %351 : vector<16x16xf32>
    %353 = arith.addf %348, %352 : vector<16x16xf32>
    %354 = vector.extract_strided_slice %57 {offsets = [4, 1], sizes = [16, 16], strides = [1, 1]} : vector<22x22xf32> to vector<16x16xf32>
    %c4_195 = arith.constant 4 : index
    %c1_196 = arith.constant 1 : index
    %c1_197 = arith.constant 1 : index
    %355 = memref.load %arg5[%c4_195, %c1_196, %c1_197] : memref<7x7x2xf32, #tpu.memory_space<smem>>
    %356 = vector.broadcast %355 : f32 to vector<16x16xf32>
    %357 = arith.mulf %354, %356 : vector<16x16xf32>
    %358 = arith.addf %353, %357 : vector<16x16xf32>
    %359 = vector.extract_strided_slice %55 {offsets = [4, 2], sizes = [16, 16], strides = [1, 1]} : vector<22x22xf32> to vector<16x16xf32>
    %c4_198 = arith.constant 4 : index
    %c2_199 = arith.constant 2 : index
    %c0_200 = arith.constant 0 : index
    %360 = memref.load %arg5[%c4_198, %c2_199, %c0_200] : memref<7x7x2xf32, #tpu.memory_space<smem>>
    %361 = vector.broadcast %360 : f32 to vector<16x16xf32>
    %362 = arith.mulf %359, %361 : vector<16x16xf32>
    %363 = arith.addf %358, %362 : vector<16x16xf32>
    %364 = vector.extract_strided_slice %57 {offsets = [4, 2], sizes = [16, 16], strides = [1, 1]} : vector<22x22xf32> to vector<16x16xf32>
    %c4_201 = arith.constant 4 : index
    %c2_202 = arith.constant 2 : index
    %c1_203 = arith.constant 1 : index
    %365 = memref.load %arg5[%c4_201, %c2_202, %c1_203] : memref<7x7x2xf32, #tpu.memory_space<smem>>
    %366 = vector.broadcast %365 : f32 to vector<16x16xf32>
    %367 = arith.mulf %364, %366 : vector<16x16xf32>
    %368 = arith.addf %363, %367 : vector<16x16xf32>
    %369 = vector.extract_strided_slice %55 {offsets = [4, 3], sizes = [16, 16], strides = [1, 1]} : vector<22x22xf32> to vector<16x16xf32>
    %c4_204 = arith.constant 4 : index
    %c3_205 = arith.constant 3 : index
    %c0_206 = arith.constant 0 : index
    %370 = memref.load %arg5[%c4_204, %c3_205, %c0_206] : memref<7x7x2xf32, #tpu.memory_space<smem>>
    %371 = vector.broadcast %370 : f32 to vector<16x16xf32>
    %372 = arith.mulf %369, %371 : vector<16x16xf32>
    %373 = arith.addf %368, %372 : vector<16x16xf32>
    %374 = vector.extract_strided_slice %57 {offsets = [4, 3], sizes = [16, 16], strides = [1, 1]} : vector<22x22xf32> to vector<16x16xf32>
    %c4_207 = arith.constant 4 : index
    %c3_208 = arith.constant 3 : index
    %c1_209 = arith.constant 1 : index
    %375 = memref.load %arg5[%c4_207, %c3_208, %c1_209] : memref<7x7x2xf32, #tpu.memory_space<smem>>
    %376 = vector.broadcast %375 : f32 to vector<16x16xf32>
    %377 = arith.mulf %374, %376 : vector<16x16xf32>
    %378 = arith.addf %373, %377 : vector<16x16xf32>
    %379 = vector.extract_strided_slice %55 {offsets = [4, 4], sizes = [16, 16], strides = [1, 1]} : vector<22x22xf32> to vector<16x16xf32>
    %c4_210 = arith.constant 4 : index
    %c4_211 = arith.constant 4 : index
    %c0_212 = arith.constant 0 : index
    %380 = memref.load %arg5[%c4_210, %c4_211, %c0_212] : memref<7x7x2xf32, #tpu.memory_space<smem>>
    %381 = vector.broadcast %380 : f32 to vector<16x16xf32>
    %382 = arith.mulf %379, %381 : vector<16x16xf32>
    %383 = arith.addf %378, %382 : vector<16x16xf32>
    %384 = vector.extract_strided_slice %57 {offsets = [4, 4], sizes = [16, 16], strides = [1, 1]} : vector<22x22xf32> to vector<16x16xf32>
    %c4_213 = arith.constant 4 : index
    %c4_214 = arith.constant 4 : index
    %c1_215 = arith.constant 1 : index
    %385 = memref.load %arg5[%c4_213, %c4_214, %c1_215] : memref<7x7x2xf32, #tpu.memory_space<smem>>
    %386 = vector.broadcast %385 : f32 to vector<16x16xf32>
    %387 = arith.mulf %384, %386 : vector<16x16xf32>
    %388 = arith.addf %383, %387 : vector<16x16xf32>
    %389 = vector.extract_strided_slice %55 {offsets = [4, 5], sizes = [16, 16], strides = [1, 1]} : vector<22x22xf32> to vector<16x16xf32>
    %c4_216 = arith.constant 4 : index
    %c5_217 = arith.constant 5 : index
    %c0_218 = arith.constant 0 : index
    %390 = memref.load %arg5[%c4_216, %c5_217, %c0_218] : memref<7x7x2xf32, #tpu.memory_space<smem>>
    %391 = vector.broadcast %390 : f32 to vector<16x16xf32>
    %392 = arith.mulf %389, %391 : vector<16x16xf32>
    %393 = arith.addf %388, %392 : vector<16x16xf32>
    %394 = vector.extract_strided_slice %57 {offsets = [4, 5], sizes = [16, 16], strides = [1, 1]} : vector<22x22xf32> to vector<16x16xf32>
    %c4_219 = arith.constant 4 : index
    %c5_220 = arith.constant 5 : index
    %c1_221 = arith.constant 1 : index
    %395 = memref.load %arg5[%c4_219, %c5_220, %c1_221] : memref<7x7x2xf32, #tpu.memory_space<smem>>
    %396 = vector.broadcast %395 : f32 to vector<16x16xf32>
    %397 = arith.mulf %394, %396 : vector<16x16xf32>
    %398 = arith.addf %393, %397 : vector<16x16xf32>
    %399 = vector.extract_strided_slice %55 {offsets = [4, 6], sizes = [16, 16], strides = [1, 1]} : vector<22x22xf32> to vector<16x16xf32>
    %c4_222 = arith.constant 4 : index
    %c6_223 = arith.constant 6 : index
    %c0_224 = arith.constant 0 : index
    %400 = memref.load %arg5[%c4_222, %c6_223, %c0_224] : memref<7x7x2xf32, #tpu.memory_space<smem>>
    %401 = vector.broadcast %400 : f32 to vector<16x16xf32>
    %402 = arith.mulf %399, %401 : vector<16x16xf32>
    %403 = arith.addf %398, %402 : vector<16x16xf32>
    %404 = vector.extract_strided_slice %57 {offsets = [4, 6], sizes = [16, 16], strides = [1, 1]} : vector<22x22xf32> to vector<16x16xf32>
    %c4_225 = arith.constant 4 : index
    %c6_226 = arith.constant 6 : index
    %c1_227 = arith.constant 1 : index
    %405 = memref.load %arg5[%c4_225, %c6_226, %c1_227] : memref<7x7x2xf32, #tpu.memory_space<smem>>
    %406 = vector.broadcast %405 : f32 to vector<16x16xf32>
    %407 = arith.mulf %404, %406 : vector<16x16xf32>
    %408 = arith.addf %403, %407 : vector<16x16xf32>
    %409 = vector.extract_strided_slice %55 {offsets = [5, 0], sizes = [16, 16], strides = [1, 1]} : vector<22x22xf32> to vector<16x16xf32>
    %c5_228 = arith.constant 5 : index
    %c0_229 = arith.constant 0 : index
    %c0_230 = arith.constant 0 : index
    %410 = memref.load %arg5[%c5_228, %c0_229, %c0_230] : memref<7x7x2xf32, #tpu.memory_space<smem>>
    %411 = vector.broadcast %410 : f32 to vector<16x16xf32>
    %412 = arith.mulf %409, %411 : vector<16x16xf32>
    %413 = arith.addf %408, %412 : vector<16x16xf32>
    %414 = vector.extract_strided_slice %57 {offsets = [5, 0], sizes = [16, 16], strides = [1, 1]} : vector<22x22xf32> to vector<16x16xf32>
    %c5_231 = arith.constant 5 : index
    %c0_232 = arith.constant 0 : index
    %c1_233 = arith.constant 1 : index
    %415 = memref.load %arg5[%c5_231, %c0_232, %c1_233] : memref<7x7x2xf32, #tpu.memory_space<smem>>
    %416 = vector.broadcast %415 : f32 to vector<16x16xf32>
    %417 = arith.mulf %414, %416 : vector<16x16xf32>
    %418 = arith.addf %413, %417 : vector<16x16xf32>
    %419 = vector.extract_strided_slice %55 {offsets = [5, 1], sizes = [16, 16], strides = [1, 1]} : vector<22x22xf32> to vector<16x16xf32>
    %c5_234 = arith.constant 5 : index
    %c1_235 = arith.constant 1 : index
    %c0_236 = arith.constant 0 : index
    %420 = memref.load %arg5[%c5_234, %c1_235, %c0_236] : memref<7x7x2xf32, #tpu.memory_space<smem>>
    %421 = vector.broadcast %420 : f32 to vector<16x16xf32>
    %422 = arith.mulf %419, %421 : vector<16x16xf32>
    %423 = arith.addf %418, %422 : vector<16x16xf32>
    %424 = vector.extract_strided_slice %57 {offsets = [5, 1], sizes = [16, 16], strides = [1, 1]} : vector<22x22xf32> to vector<16x16xf32>
    %c5_237 = arith.constant 5 : index
    %c1_238 = arith.constant 1 : index
    %c1_239 = arith.constant 1 : index
    %425 = memref.load %arg5[%c5_237, %c1_238, %c1_239] : memref<7x7x2xf32, #tpu.memory_space<smem>>
    %426 = vector.broadcast %425 : f32 to vector<16x16xf32>
    %427 = arith.mulf %424, %426 : vector<16x16xf32>
    %428 = arith.addf %423, %427 : vector<16x16xf32>
    %429 = vector.extract_strided_slice %55 {offsets = [5, 2], sizes = [16, 16], strides = [1, 1]} : vector<22x22xf32> to vector<16x16xf32>
    %c5_240 = arith.constant 5 : index
    %c2_241 = arith.constant 2 : index
    %c0_242 = arith.constant 0 : index
    %430 = memref.load %arg5[%c5_240, %c2_241, %c0_242] : memref<7x7x2xf32, #tpu.memory_space<smem>>
    %431 = vector.broadcast %430 : f32 to vector<16x16xf32>
    %432 = arith.mulf %429, %431 : vector<16x16xf32>
    %433 = arith.addf %428, %432 : vector<16x16xf32>
    %434 = vector.extract_strided_slice %57 {offsets = [5, 2], sizes = [16, 16], strides = [1, 1]} : vector<22x22xf32> to vector<16x16xf32>
    %c5_243 = arith.constant 5 : index
    %c2_244 = arith.constant 2 : index
    %c1_245 = arith.constant 1 : index
    %435 = memref.load %arg5[%c5_243, %c2_244, %c1_245] : memref<7x7x2xf32, #tpu.memory_space<smem>>
    %436 = vector.broadcast %435 : f32 to vector<16x16xf32>
    %437 = arith.mulf %434, %436 : vector<16x16xf32>
    %438 = arith.addf %433, %437 : vector<16x16xf32>
    %439 = vector.extract_strided_slice %55 {offsets = [5, 3], sizes = [16, 16], strides = [1, 1]} : vector<22x22xf32> to vector<16x16xf32>
    %c5_246 = arith.constant 5 : index
    %c3_247 = arith.constant 3 : index
    %c0_248 = arith.constant 0 : index
    %440 = memref.load %arg5[%c5_246, %c3_247, %c0_248] : memref<7x7x2xf32, #tpu.memory_space<smem>>
    %441 = vector.broadcast %440 : f32 to vector<16x16xf32>
    %442 = arith.mulf %439, %441 : vector<16x16xf32>
    %443 = arith.addf %438, %442 : vector<16x16xf32>
    %444 = vector.extract_strided_slice %57 {offsets = [5, 3], sizes = [16, 16], strides = [1, 1]} : vector<22x22xf32> to vector<16x16xf32>
    %c5_249 = arith.constant 5 : index
    %c3_250 = arith.constant 3 : index
    %c1_251 = arith.constant 1 : index
    %445 = memref.load %arg5[%c5_249, %c3_250, %c1_251] : memref<7x7x2xf32, #tpu.memory_space<smem>>
    %446 = vector.broadcast %445 : f32 to vector<16x16xf32>
    %447 = arith.mulf %444, %446 : vector<16x16xf32>
    %448 = arith.addf %443, %447 : vector<16x16xf32>
    %449 = vector.extract_strided_slice %55 {offsets = [5, 4], sizes = [16, 16], strides = [1, 1]} : vector<22x22xf32> to vector<16x16xf32>
    %c5_252 = arith.constant 5 : index
    %c4_253 = arith.constant 4 : index
    %c0_254 = arith.constant 0 : index
    %450 = memref.load %arg5[%c5_252, %c4_253, %c0_254] : memref<7x7x2xf32, #tpu.memory_space<smem>>
    %451 = vector.broadcast %450 : f32 to vector<16x16xf32>
    %452 = arith.mulf %449, %451 : vector<16x16xf32>
    %453 = arith.addf %448, %452 : vector<16x16xf32>
    %454 = vector.extract_strided_slice %57 {offsets = [5, 4], sizes = [16, 16], strides = [1, 1]} : vector<22x22xf32> to vector<16x16xf32>
    %c5_255 = arith.constant 5 : index
    %c4_256 = arith.constant 4 : index
    %c1_257 = arith.constant 1 : index
    %455 = memref.load %arg5[%c5_255, %c4_256, %c1_257] : memref<7x7x2xf32, #tpu.memory_space<smem>>
    %456 = vector.broadcast %455 : f32 to vector<16x16xf32>
    %457 = arith.mulf %454, %456 : vector<16x16xf32>
    %458 = arith.addf %453, %457 : vector<16x16xf32>
    %459 = vector.extract_strided_slice %55 {offsets = [5, 5], sizes = [16, 16], strides = [1, 1]} : vector<22x22xf32> to vector<16x16xf32>
    %c5_258 = arith.constant 5 : index
    %c5_259 = arith.constant 5 : index
    %c0_260 = arith.constant 0 : index
    %460 = memref.load %arg5[%c5_258, %c5_259, %c0_260] : memref<7x7x2xf32, #tpu.memory_space<smem>>
    %461 = vector.broadcast %460 : f32 to vector<16x16xf32>
    %462 = arith.mulf %459, %461 : vector<16x16xf32>
    %463 = arith.addf %458, %462 : vector<16x16xf32>
    %464 = vector.extract_strided_slice %57 {offsets = [5, 5], sizes = [16, 16], strides = [1, 1]} : vector<22x22xf32> to vector<16x16xf32>
    %c5_261 = arith.constant 5 : index
    %c5_262 = arith.constant 5 : index
    %c1_263 = arith.constant 1 : index
    %465 = memref.load %arg5[%c5_261, %c5_262, %c1_263] : memref<7x7x2xf32, #tpu.memory_space<smem>>
    %466 = vector.broadcast %465 : f32 to vector<16x16xf32>
    %467 = arith.mulf %464, %466 : vector<16x16xf32>
    %468 = arith.addf %463, %467 : vector<16x16xf32>
    %469 = vector.extract_strided_slice %55 {offsets = [5, 6], sizes = [16, 16], strides = [1, 1]} : vector<22x22xf32> to vector<16x16xf32>
    %c5_264 = arith.constant 5 : index
    %c6_265 = arith.constant 6 : index
    %c0_266 = arith.constant 0 : index
    %470 = memref.load %arg5[%c5_264, %c6_265, %c0_266] : memref<7x7x2xf32, #tpu.memory_space<smem>>
    %471 = vector.broadcast %470 : f32 to vector<16x16xf32>
    %472 = arith.mulf %469, %471 : vector<16x16xf32>
    %473 = arith.addf %468, %472 : vector<16x16xf32>
    %474 = vector.extract_strided_slice %57 {offsets = [5, 6], sizes = [16, 16], strides = [1, 1]} : vector<22x22xf32> to vector<16x16xf32>
    %c5_267 = arith.constant 5 : index
    %c6_268 = arith.constant 6 : index
    %c1_269 = arith.constant 1 : index
    %475 = memref.load %arg5[%c5_267, %c6_268, %c1_269] : memref<7x7x2xf32, #tpu.memory_space<smem>>
    %476 = vector.broadcast %475 : f32 to vector<16x16xf32>
    %477 = arith.mulf %474, %476 : vector<16x16xf32>
    %478 = arith.addf %473, %477 : vector<16x16xf32>
    %479 = vector.extract_strided_slice %55 {offsets = [6, 0], sizes = [16, 16], strides = [1, 1]} : vector<22x22xf32> to vector<16x16xf32>
    %c6_270 = arith.constant 6 : index
    %c0_271 = arith.constant 0 : index
    %c0_272 = arith.constant 0 : index
    %480 = memref.load %arg5[%c6_270, %c0_271, %c0_272] : memref<7x7x2xf32, #tpu.memory_space<smem>>
    %481 = vector.broadcast %480 : f32 to vector<16x16xf32>
    %482 = arith.mulf %479, %481 : vector<16x16xf32>
    %483 = arith.addf %478, %482 : vector<16x16xf32>
    %484 = vector.extract_strided_slice %57 {offsets = [6, 0], sizes = [16, 16], strides = [1, 1]} : vector<22x22xf32> to vector<16x16xf32>
    %c6_273 = arith.constant 6 : index
    %c0_274 = arith.constant 0 : index
    %c1_275 = arith.constant 1 : index
    %485 = memref.load %arg5[%c6_273, %c0_274, %c1_275] : memref<7x7x2xf32, #tpu.memory_space<smem>>
    %486 = vector.broadcast %485 : f32 to vector<16x16xf32>
    %487 = arith.mulf %484, %486 : vector<16x16xf32>
    %488 = arith.addf %483, %487 : vector<16x16xf32>
    %489 = vector.extract_strided_slice %55 {offsets = [6, 1], sizes = [16, 16], strides = [1, 1]} : vector<22x22xf32> to vector<16x16xf32>
    %c6_276 = arith.constant 6 : index
    %c1_277 = arith.constant 1 : index
    %c0_278 = arith.constant 0 : index
    %490 = memref.load %arg5[%c6_276, %c1_277, %c0_278] : memref<7x7x2xf32, #tpu.memory_space<smem>>
    %491 = vector.broadcast %490 : f32 to vector<16x16xf32>
    %492 = arith.mulf %489, %491 : vector<16x16xf32>
    %493 = arith.addf %488, %492 : vector<16x16xf32>
    %494 = vector.extract_strided_slice %57 {offsets = [6, 1], sizes = [16, 16], strides = [1, 1]} : vector<22x22xf32> to vector<16x16xf32>
    %c6_279 = arith.constant 6 : index
    %c1_280 = arith.constant 1 : index
    %c1_281 = arith.constant 1 : index
    %495 = memref.load %arg5[%c6_279, %c1_280, %c1_281] : memref<7x7x2xf32, #tpu.memory_space<smem>>
    %496 = vector.broadcast %495 : f32 to vector<16x16xf32>
    %497 = arith.mulf %494, %496 : vector<16x16xf32>
    %498 = arith.addf %493, %497 : vector<16x16xf32>
    %499 = vector.extract_strided_slice %55 {offsets = [6, 2], sizes = [16, 16], strides = [1, 1]} : vector<22x22xf32> to vector<16x16xf32>
    %c6_282 = arith.constant 6 : index
    %c2_283 = arith.constant 2 : index
    %c0_284 = arith.constant 0 : index
    %500 = memref.load %arg5[%c6_282, %c2_283, %c0_284] : memref<7x7x2xf32, #tpu.memory_space<smem>>
    %501 = vector.broadcast %500 : f32 to vector<16x16xf32>
    %502 = arith.mulf %499, %501 : vector<16x16xf32>
    %503 = arith.addf %498, %502 : vector<16x16xf32>
    %504 = vector.extract_strided_slice %57 {offsets = [6, 2], sizes = [16, 16], strides = [1, 1]} : vector<22x22xf32> to vector<16x16xf32>
    %c6_285 = arith.constant 6 : index
    %c2_286 = arith.constant 2 : index
    %c1_287 = arith.constant 1 : index
    %505 = memref.load %arg5[%c6_285, %c2_286, %c1_287] : memref<7x7x2xf32, #tpu.memory_space<smem>>
    %506 = vector.broadcast %505 : f32 to vector<16x16xf32>
    %507 = arith.mulf %504, %506 : vector<16x16xf32>
    %508 = arith.addf %503, %507 : vector<16x16xf32>
    %509 = vector.extract_strided_slice %55 {offsets = [6, 3], sizes = [16, 16], strides = [1, 1]} : vector<22x22xf32> to vector<16x16xf32>
    %c6_288 = arith.constant 6 : index
    %c3_289 = arith.constant 3 : index
    %c0_290 = arith.constant 0 : index
    %510 = memref.load %arg5[%c6_288, %c3_289, %c0_290] : memref<7x7x2xf32, #tpu.memory_space<smem>>
    %511 = vector.broadcast %510 : f32 to vector<16x16xf32>
    %512 = arith.mulf %509, %511 : vector<16x16xf32>
    %513 = arith.addf %508, %512 : vector<16x16xf32>
    %514 = vector.extract_strided_slice %57 {offsets = [6, 3], sizes = [16, 16], strides = [1, 1]} : vector<22x22xf32> to vector<16x16xf32>
    %c6_291 = arith.constant 6 : index
    %c3_292 = arith.constant 3 : index
    %c1_293 = arith.constant 1 : index
    %515 = memref.load %arg5[%c6_291, %c3_292, %c1_293] : memref<7x7x2xf32, #tpu.memory_space<smem>>
    %516 = vector.broadcast %515 : f32 to vector<16x16xf32>
    %517 = arith.mulf %514, %516 : vector<16x16xf32>
    %518 = arith.addf %513, %517 : vector<16x16xf32>
    %519 = vector.extract_strided_slice %55 {offsets = [6, 4], sizes = [16, 16], strides = [1, 1]} : vector<22x22xf32> to vector<16x16xf32>
    %c6_294 = arith.constant 6 : index
    %c4_295 = arith.constant 4 : index
    %c0_296 = arith.constant 0 : index
    %520 = memref.load %arg5[%c6_294, %c4_295, %c0_296] : memref<7x7x2xf32, #tpu.memory_space<smem>>
    %521 = vector.broadcast %520 : f32 to vector<16x16xf32>
    %522 = arith.mulf %519, %521 : vector<16x16xf32>
    %523 = arith.addf %518, %522 : vector<16x16xf32>
    %524 = vector.extract_strided_slice %57 {offsets = [6, 4], sizes = [16, 16], strides = [1, 1]} : vector<22x22xf32> to vector<16x16xf32>
    %c6_297 = arith.constant 6 : index
    %c4_298 = arith.constant 4 : index
    %c1_299 = arith.constant 1 : index
    %525 = memref.load %arg5[%c6_297, %c4_298, %c1_299] : memref<7x7x2xf32, #tpu.memory_space<smem>>
    %526 = vector.broadcast %525 : f32 to vector<16x16xf32>
    %527 = arith.mulf %524, %526 : vector<16x16xf32>
    %528 = arith.addf %523, %527 : vector<16x16xf32>
    %529 = vector.extract_strided_slice %55 {offsets = [6, 5], sizes = [16, 16], strides = [1, 1]} : vector<22x22xf32> to vector<16x16xf32>
    %c6_300 = arith.constant 6 : index
    %c5_301 = arith.constant 5 : index
    %c0_302 = arith.constant 0 : index
    %530 = memref.load %arg5[%c6_300, %c5_301, %c0_302] : memref<7x7x2xf32, #tpu.memory_space<smem>>
    %531 = vector.broadcast %530 : f32 to vector<16x16xf32>
    %532 = arith.mulf %529, %531 : vector<16x16xf32>
    %533 = arith.addf %528, %532 : vector<16x16xf32>
    %534 = vector.extract_strided_slice %57 {offsets = [6, 5], sizes = [16, 16], strides = [1, 1]} : vector<22x22xf32> to vector<16x16xf32>
    %c6_303 = arith.constant 6 : index
    %c5_304 = arith.constant 5 : index
    %c1_305 = arith.constant 1 : index
    %535 = memref.load %arg5[%c6_303, %c5_304, %c1_305] : memref<7x7x2xf32, #tpu.memory_space<smem>>
    %536 = vector.broadcast %535 : f32 to vector<16x16xf32>
    %537 = arith.mulf %534, %536 : vector<16x16xf32>
    %538 = arith.addf %533, %537 : vector<16x16xf32>
    %539 = vector.extract_strided_slice %55 {offsets = [6, 6], sizes = [16, 16], strides = [1, 1]} : vector<22x22xf32> to vector<16x16xf32>
    %c6_306 = arith.constant 6 : index
    %c6_307 = arith.constant 6 : index
    %c0_308 = arith.constant 0 : index
    %540 = memref.load %arg5[%c6_306, %c6_307, %c0_308] : memref<7x7x2xf32, #tpu.memory_space<smem>>
    %541 = vector.broadcast %540 : f32 to vector<16x16xf32>
    %542 = arith.mulf %539, %541 : vector<16x16xf32>
    %543 = arith.addf %538, %542 : vector<16x16xf32>
    %544 = vector.extract_strided_slice %57 {offsets = [6, 6], sizes = [16, 16], strides = [1, 1]} : vector<22x22xf32> to vector<16x16xf32>
    %c6_309 = arith.constant 6 : index
    %c6_310 = arith.constant 6 : index
    %c1_311 = arith.constant 1 : index
    %545 = memref.load %arg5[%c6_309, %c6_310, %c1_311] : memref<7x7x2xf32, #tpu.memory_space<smem>>
    %546 = vector.broadcast %545 : f32 to vector<16x16xf32>
    %547 = arith.mulf %544, %546 : vector<16x16xf32>
    %548 = arith.addf %543, %547 : vector<16x16xf32>
    %549 = arith.negf %548 : vector<16x16xf32>
    %550 = math.exp %549 : vector<16x16xf32>
    %cst_312 = arith.constant 1.000000e+00 : f32
    %551 = vector.broadcast %cst_312 : f32 to vector<16x16xf32>
    %552 = arith.addf %551, %550 : vector<16x16xf32>
    %553 = arith.divf %551, %552 : vector<16x16xf32>
    %554 = vector.shape_cast %553 : vector<16x16xf32> to vector<16x16x1xf32>
    %555 = vector.broadcast %554 : vector<16x16x1xf32> to vector<16x16x32xf32>
    %556 = arith.mulf %47, %555 : vector<16x16x32xf32>
    %c0_313 = arith.constant 0 : index
    %c0_314 = arith.constant 0 : index
    %c0_315 = arith.constant 0 : index
    %c0_316 = arith.constant 0 : index
    %557 = vector.load %arg6[%c0_313, %c0_314, %c0_315, %c0_316] : memref<1x16x16x32xf32, #tpu.memory_space<vmem>>, vector<1x16x16x32xf32>
    %558 = vector.shape_cast %557 : vector<1x16x16x32xf32> to vector<16x16x32xf32>
    %559 = vector.shape_cast %556 : vector<16x16x32xf32> to vector<1x16x16x32xf32>
    tpu.vector_store %arg6[%c0_313, %c0_314, %c0_315, %c0_316], %559 {strides = array<i32>} : memref<1x16x16x32xf32, #tpu.memory_space<vmem>>, vector<1x16x16x32xf32>,
    return
  }
  func.func @transform_0(%arg0: i32) -> (i32, i32, i32, i32) {
    %c0_i32 = arith.constant 0 : i32
    %c0_i32_0 = arith.constant 0 : i32
    %c0_i32_1 = arith.constant 0 : i32
    %c0_i32_2 = arith.constant 0 : i32
    return %arg0, %c0_i32, %c0_i32_0, %c0_i32_1 : i32, i32, i32, i32
  }
  func.func @transform_1(%arg0: i32) -> (i32, i32) {
    %c0_i32 = arith.constant 0 : i32
    %c0_i32_0 = arith.constant 0 : i32
    %c0_i32_1 = arith.constant 0 : i32
    return %c0_i32, %c0_i32_0 : i32, i32
  }
  func.func @transform_2(%arg0: i32) -> (i32, i32) {
    %c0_i32 = arith.constant 0 : i32
    %c0_i32_0 = arith.constant 0 : i32
    %c0_i32_1 = arith.constant 0 : i32
    return %c0_i32, %c0_i32_0 : i32, i32
  }
  func.func @transform_3(%arg0: i32) -> (i32, i32) {
    %c0_i32 = arith.constant 0 : i32
    %c0_i32_0 = arith.constant 0 : i32
    %c0_i32_1 = arith.constant 0 : i32
    return %c0_i32, %c0_i32_0 : i32, i32
  }
  func.func @transform_4(%arg0: i32) -> (i32, i32, i32) {
    %c0_i32 = arith.constant 0 : i32
    %c0_i32_0 = arith.constant 0 : i32
    %c0_i32_1 = arith.constant 0 : i32
    %c0_i32_2 = arith.constant 0 : i32
    return %c0_i32, %c0_i32_0, %c0_i32_1 : i32, i32, i32
  }
  func.func @transform_5(%arg0: i32) -> (i32, i32, i32, i32) {
    %c0_i32 = arith.constant 0 : i32
    %c0_i32_0 = arith.constant 0 : i32
    %c0_i32_1 = arith.constant 0 : i32
    %c0_i32_2 = arith.constant 0 : i32
    return %arg0, %c0_i32, %c0_i32_0, %c0_i32_1 : i32, i32, i32, i32
  }
}

</mosaic_0001>

<bundles_post_ra>
// kernel: tpu_custom_call.1
= control target key start
LH: loop header
LB: loop body
LE: loop exit
PB: predicated region body
PF: predicated region fallthrough
CT: control target
= control target key end

     0   :  { %s10696_s0 = inlined_call_operand.hbm [shape: f32[2,16,16,32], index: 0, kind: input, shape index: {}]   ;;  %s10697_s1 = inlined_call_operand.vmem [shape: f32[144,16], index: 1, kind: input, shape index: {}]   ;;  %s10698_s2 = inlined_call_operand.vmem [shape: f32[32,2], index: 2, kind: input, shape index: {}]   ;;  %s10699_s3 = inlined_call_operand.vmem [shape: f32[2,32], index: 3, kind: input, shape index: {}]   ;;  %s10700_s4 = inlined_call_operand.vmem [shape: f32[7,7,2], index: 4, kind: input, shape index: {}]   ;;  %s10701_s5 = inlined_call_operand.hbm [shape: f32[2,16,16,32], index: 5, kind: output, shape index: {}]  }
   0x1   :  { %10812 = sst [smem:[#allocation90_spill]] %s10696_s0 }
   0x2   :  { %10813 = sst [smem:[#allocation91_spill]] %s10697_s1 }
   0x3   :  { %10814 = sst [smem:[#allocation92_spill]] %s10698_s2 }
   0x4   :  { %10 = vsyncpa [#allocation3], 0 }
   0x5   :  { %12 = vsyncpa [#allocation3 + $0x1], 0 }
   0x6   :  { %13 = vsyncpa [#allocation5], 0 }
   0x7   :  { %14 = vsyncpa [#allocation4], 0 }
   0x8   :  { %16 = vsyncpa [#allocation4 + $0x1], 0  ;;  %s6214_s18 = smov 0   ;;  %s6216_s19 = smov 0  }
   0x9   :  { %s6218_s20 = smov 0   ;;  %s6220_s21 = smov 0  }
   0xa LB: > { %s6235_s22 = sadd.s32 4294967295, %s6159_s21   ;;  %s5151_s23 = sadd.s32 4294967294, %s6159_s21   ;;  %s6159_s21 = sphi %s6220_s21, %s11138_s21   ;;  %s6155_s20 = sphi %s6218_s20, %s11137_s20   ;;  %s6151_s19 = sphi %s6216_s19, %s11136_s19   ;;  %s6147_s18 = sphi %s6214_s18, %s11135_s18  }
   0xb   : > { %p42_p0 = scmp.ne.s32.totalorder %s6151_s19, %s6147_s18  ;;  %p10702_p1 = scmp.eq.s32.totalorder %s6235_s22, 0 }
   0xc   : > { %p156_p3 = scmp.eq.s32.totalorder %s5151_s23, 1  ;;  %p5152_p5 = scmp.ge.s32.totalorder %s6159_s21, 1 }
   0xd   : > { %p6244_p4 = por %p10702_p1, %p42_p0  ;;  %p163_p7 = scmp.lt.s32.totalorder %s6159_s21, 3 }
   0xe   : > { %p6249_p6 = por %p156_p3, %p42_p0  ;;  %s184_s28 = sshll.u32 %s10700_s4, 4  ;;  %s185_s28 = int_to_ptr.vmem [resolvable:$true] %s184_s28 }
   0xf   : > { %s10815_s24 = scalar_select %p6244_p4, 1, 0 }
  0x10   : > { %s10816_s25 = scalar_select %p6249_p6, 1, 0 }
  0x11   : > { %p6257_p8 = pnand %p5152_p5, %p163_p7  ;;  %s6271_s6 = sadd.s32 1, %s6159_s21  }
  0x12   : > { %s29_s7 = sadd.s32 1, %s6155_s20  ;;  %s26_s8 = ssub.s32 %s6159_s21, %s6271_s6 }
  0x13   : > { %p5386_p9 = pneg %p6257_p8  ;;  %s6044_s9 = scalar_lea.vmem %s185_s28, 896 }
  0x14   : > { %p6045_p12 = scmp.ne.s32.totalorder %s185_s28, %s6044_s9  ;;  %p6052_p5 = scmp.lt.s32.totalorder %s185_s28, %s185_s28 }
  0x15   : > { %p6266_p11 = pnand %p5386_p9, %p10702_p1  ;;  %p6053_p7 = scmp.lt.s32.totalorder %s6044_s9, %s6044_s9 }
  0x17   : > { %p6046_p13 = pneg %p6266_p11  ;;  %p6054_p10 = por %p6053_p7, %p6052_p5 }
  0x19   : > { %p6047_p0 = pnand %p6046_p13, %p6045_p12 }
  0x1b   : > { %p6048_p3 = pneg %p6047_p0 }
  0x1d   : > { %p6055_p2 = pnand %p6054_p10, %p6048_p3 }
  0x1f   : > { %6058 = shalt.err (!%p6055_p2)
}
  0x20   : > { %s6161_s10 = smov [#allocation6]   ;;  %s6162_s11 = smov 128  }
  0x21   : > { %s6163_s12 = smov 8   ;;  %p27_p9 = scmp.eq.s32.totalorder %s26_s8, 0 }
  0x22   : > { %5389 = dma.vmem_to_smem (!%p6266_p11), %s185_s28, 896, %s6161_s10, [#allocation5], %s6162_s11, %s6162_s11, %s6163_s12  }
  0x23   : > { %p36_p10 = scmp.ne.s32.totalorder %s6155_s20, %s6151_s19  ;;  %p37_p2 = scmp.eq.s32.totalorder %s6159_s21, 0 }
  0x24   : > { %p5399_p12 = scmp.lt.s32.totalorder %s6159_s21, 2  ;;  %p10819_p0 = scmp.eq.s32.totalorder %s6235_s22, 1 }
  0x25   : > { %s6288_s13 = scalar_select %p27_p9, %s6155_s20, %s29_s7  }
  0x26   : > { %p38_p13 = por %p37_p2, %p36_p10  ;;  %p6292_p3 = por %p10819_p0, %p36_p10 }
  0x27   : > { %s198_s15 = sand.u32 1, %s6155_s20   ;;  %s5302_s16 = sshll.u32 %s6159_s21, 12 }
  0x28   : > { %s10820_s14 = scalar_select %p6292_p3, 1, 0 }
  0x29   : > { %s5155_s17 = sshll.u32 %s198_s15, 8  ;;  %s10821_s0 = sld [smem:[#allocation90_spill]] }
  0x2a   : > { %s202_s28 = scalar_lea.vmem [#allocation2], %s5155_s17  ;;  %p6303_p11 = pnand %p5399_p12, %p38_p13 }
  0x2b   : > { %s209_s30 = sshll.u32 %s202_s28, 4  ;;  %s6309_s8 = scalar_lea.sflag [#allocation3], %s198_s15  ;;  %s6307_s30 = int_to_ptr.vmem [resolvable:$true] %s209_s30 }
  0x2c   : > { %p6061_p7 = pneg %p6303_p11 }
  0x2f   : > { %s6301_s27 = scalar_lea.hbm %s10821_s0, %s5302_s16  ;;  %s6064_s17 = scalar_lea.hbm %s10821_s0, 8192 }
  0x30   : > { %s6059_s9 = scalar_lea.hbm %s6301_s27, 4096  ;;  %p6065_p2 = scmp.lt.u32.totalorder %s6301_s27, %s10821_s0 }
  0x31   : > { %p6060_p5 = scmp.ne.s32.totalorder %s6301_s27, %s6059_s9  ;;  %p6066_p12 = scmp.lt.u32.totalorder %s6064_s17, %s6059_s9 }
  0x32   : > { %p6068_p0 = scmp.lt.u32.totalorder %s6059_s9, %s6301_s27 }
  0x33   : > { %p6062_p9 = pnand %p6061_p7, %p6060_p5  ;;  %p6067_p13 = por %p6066_p12, %p6065_p2 }
  0x35   : > { %p6063_p10 = pneg %p6062_p9  ;;  %p6069_p1 = por %p6068_p0, %p6067_p13 }
  0x37   : > { %p6070_p6 = pnand %p6069_p1, %p6063_p10 }
  0x39   : > { %6073 = shalt.err (!%p6070_p6)
}
  0x3a   : > { %s6074_s15 = scalar_lea.vmem %s6307_s30, 4096  ;;  %s6164_s28 = smov [#allocation2]  }
  0x3b   : > { %p6075_p5 = scmp.ne.s32.totalorder %s6307_s30, %s6074_s15  ;;  %s6079_s10 = sshll.u32 %s6164_s28, 4  ;;  %s6080_s10 = int_to_ptr.vmem [resolvable:$false] %s6079_s10 }
  0x3c   : > { %s6081_s16 = scalar_lea.vmem %s6080_s10, 8192  ;;  %p6082_p4 = scmp.lt.s32.totalorder %s6307_s30, %s6080_s10 }
  0x3d   : > { %p6077_p9 = pnand %p6075_p5, %p6061_p7  ;;  %p6083_p2 = scmp.lt.s32.totalorder %s6081_s16, %s6074_s15 }
  0x3f   : > { %p6078_p3 = pneg %p6077_p9  ;;  %p6084_p12 = por %p6083_p2, %p6082_p4 }
  0x41   : > { %p6085_p13 = pnand %p6084_p12, %p6078_p3 }
  0x43   : > { %6088 = shalt.err (!%p6085_p13)
}
  0x44   : > { %5393 = dma.hbm_to_vmem [thread:$0]  (!%p6303_p11), %s6301_s27, 4096, %s6307_s30, %s6309_s8, %s6162_s11, %s6162_s11, %s6163_s12  }
  0x45   : > { %221 = sbr.rel (%p6257_p8) target bundleno = 2048 (0x800), region = 40 }
  0x4c   : > { %s6343_s9 = sand.u32 1, %s6151_s19   ;;  %p10823_p1 = scmp.ne.s32.totalorder %s10815_s24, 0 }
  0x4d   : > { %s10753_s17 = sshll.u32 %s6343_s9, 8  ;;  %s224_s23 = scalar_lea.sflag [#allocation3], %s6343_s9 }
  0x4e   : > { %s6349_s7 = scalar_lea.vmem [#allocation2], %s10753_s17 }
  0x4f   : > { %6134 = dma.done.wait (%p10823_p1), %s224_s23, 4096  }
  0x50   : > { %6136 = vsyncadd (%p10823_p1), %s224_s23, 4294963200  ;;  %p10824_p4 = scmp.eq.s32.totalorder %s6235_s22, 0 }
  0x52   : > { %6138 = dma.done.wait (%p10824_p4), [#allocation5], 896   ;;  %p10825_p6 = pmov %p10824_p4 }
  0x54   : > { %6140 = vsyncadd (%p10825_p6), [#allocation5], 4294966400 }
  0x55   : > { %236 = sfence }
  0x56   : > { %v259_v0 = vld [vmem:[%s6349_s7] sm:$0xff]  ;;  %v260_v1 = vld [vmem:[%s6349_s7 + $0x8] sm:$0xff]  ;;  %vm324_vm0 = vcmask 1040384   ;;  %v10705_v4 = vmov 0.0   ;;  %vm490_vm1 = vcmask 1046528   ;;  %vm667_vm2 = vcmask 1045504  }
  0x57   : > { %v327_v2 = vrot.slane %v259_v0, 7  ;;  %v328_v3 = vrot.slane %v260_v1, 7  ;;  %v6362_v5 = vrot.slane %v10705_v4, 7  ;;  %v10711_v10 = vmov 0.0|0.0   ;;  %v261_v15 = vld [vmem:[%s6349_s7 + $0x10] sm:$0xff]  ;;  %v262_v20 = vld [vmem:[%s6349_s7 + $0x18] sm:$0xff] }
  0x58   : > { %5327 = vmatprep.subr.bf16.mxu0 %v10711_v10  ;;  %5360 = vmatprep.subr.bf16.mxu1 %v10711_v10  ;;  %s6167_s24 = smov 48   ;;  %v330_v28 = vrot.slane %v261_v15, 7  ;;  %v331_v30 = vrot.slane %v262_v20, 7  ;;  %s6168_s29 = smov 16   ;;  %v263_v44 = vld [vmem:[%s6349_s7 + $0x20] sm:$0xff]  ;;  %v264_v48 = vld [vmem:[%s6349_s7 + $0x28] sm:$0xff] }
  0x59   : > { %10826 = vst [vmem:[#allocation11_spill] sm:$0xff] %v6362_v5  ;;  %v6365_v6 = vsel %vm324_vm0, %v327_v2, %v328_v3  ;;  %v6368_v7 = vsel %vm324_vm0, 0.0, %v327_v2  ;;  %v6372_v8 = vsel %vm324_vm0, 0.0, %v6362_v5  ;;  %v441_v9 = vsel %vm324_vm0, %v6362_v5, 0.0  ;;  %s6169_s11 = smov 64   ;;  %s6170_s12 = smov 32  }
  0x5a   : > { %v5455_v11 = vpack.i.bf16 %v6365_v6, %v6368_v7  ;;  %v491_v12 = vrot.slane %v6372_v8, 1  ;;  %v492_v13 = vrot.slane %v6362_v5, 1  ;;  %v494_v14 = vrot.slane %v441_v9, 1  ;;  %s6171_s27 = smov 96   ;;  %s6172_s30 = smov 80  }
  0x5b   : > { %v671_v16 = vrot.slane %v441_v9, 2  ;;  %v442_v17 = vsel %vm324_vm0, %v328_v3, 0.0  ;;  %v496_v18 = vrot.slane %v6368_v7, 1  ;;  %v497_v19 = vrot.slane %v6365_v6, 1  ;;  %s6173_s8 = smov 112   ;;  %s10831_s1 = sld [smem:[#allocation91_spill]] }
  0x5c   : > { %5456 = vrot.lane.b32.xlu1 %v5455_v11, %s6167_s24  ;;  %v6389_v21 = vsel %vm490_vm1, %v491_v12, %v492_v13  ;;  %v6392_v22 = vsel %vm490_vm1, %v492_v13, %v494_v14  ;;  %v499_v23 = vrot.slane %v442_v17, 1  ;;  %v668_v24 = vrot.slane %v6372_v8, 2  ;;  %v265_v13 = vld [vmem:[%s6349_s7 + $0x30] sm:$0xff]  ;;  %v266_v14 = vld [vmem:[%s6349_s7 + $0x38] sm:$0xff]  ;;  %s10865_s2 = sld [smem:[#allocation92_spill]]  ;;  %s8195_s28 = sld [smem:[#allocation6 + $0x81]] }
  0x5d   : > { %10827 = vst [vmem:[#allocation12_spill] sm:$0xff] %v6389_v21  ;;  %10828 = vst [vmem:[#allocation13_spill] sm:$0xff] %v6392_v22  ;;  %v5460_v25 = vpack.i.bf16 %v6392_v22, %v6389_v21  ;;  %v498_v26 = vsel %vm490_vm1, %v496_v18, %v497_v19  ;;  %v669_v27 = vrot.slane %v6362_v5, 2  ;;  %v673_v31 = vrot.slane %v6368_v7, 2  ;;  %s8199_s10 = sld [smem:[#allocation6 + $0x101]]  ;;  %s8454_s26 = sld [smem:[#allocation6 + $0x100]] }
  0x5e   : > { %v500_v29 = vsel %vm490_vm1, %v497_v19, %v499_v23  ;;  %v674_v32 = vrot.slane %v6365_v6, 2  ;;  %v6410_v36 = vsel %vm324_vm0, 0.0, %v330_v28  ;;  %v6415_v38 = vsel %vm324_vm0, %v330_v28, %v331_v30  ;;  %s8201_s16 = sld [smem:[#allocation6 + $0x181]]  ;;  %s8474_s15 = sld [smem:[#allocation6 + $0x180]] }
  0x5f   : > { %5461 = vrot.lane.b32.xlu0 %v5460_v25, %s6168_s29  ;;  %v5470_v33 = vpack.i.bf16 %v500_v29, %v498_v26  ;;  %v6404_v34 = vsel %vm667_vm2, %v668_v24, %v669_v27  ;;  %v6407_v35 = vsel %vm667_vm2, %v669_v27, %v671_v16  ;;  %v676_v40 = vrot.slane %v442_v17, 2  ;;  %s8358_s23 = sld [smem:[#allocation6 + $0x201]]  ;;  %s10754_s17 = smov 122  }
  0x60   : > { %10829 = vst [vmem:[#allocation14_spill] sm:$0xff] %v6404_v34  ;;  %10830 = vst [vmem:[#allocation15_spill] sm:$0xff] %v6407_v35  ;;  %v5465_v37 = vpack.i.bf16 %v6407_v35, %v6404_v34  ;;  %v675_v39 = vsel %vm667_vm2, %v673_v31, %v674_v32  ;;  %v5480_v41 = vpack.i.bf16 %v6415_v38, %v6410_v36  ;;  %v443_v42 = vsel %vm324_vm0, %v331_v30, 0.0  ;;  %v267_v30 = vld [vmem:[%s6349_s7 + $0x40] sm:$0xff]  ;;  %v268_v31 = vld [vmem:[%s6349_s7 + $0x48] sm:$0xff]  ;;  %s5216_s0 = sld [smem:[#allocation6 + $0x501]] }
  0x61   : > { %5471 = vrot.lane.b32.xlu1 %v5470_v33, %s6169_s11  ;;  %v501_v43 = vrot.slane %v6410_v36, 1  ;;  %v677_v45 = vsel %vm667_vm2, %v674_v32, %v676_v40  ;;  %v502_v46 = vrot.slane %v6415_v38, 1  ;;  %v504_v47 = vrot.slane %v443_v42, 1  ;;  %p11132_p3 = scmp.ne.s32.totalorder %s10820_s14, 0 }
  0x62   : > { %v5475_v49 = vpack.i.bf16 %v677_v45, %v675_v39  ;;  %v333_v52 = vrot.slane %v263_v44, 7  ;;  %v678_v53 = vrot.slane %v6410_v36, 2  ;;  %v679_v54 = vrot.slane %v6415_v38, 2 }
  0x63   : > { %5466 = vrot.lane.b32.xlu0 %v5465_v37, %s6170_s12  ;;  %v503_v50 = vsel %vm490_vm1, %v501_v43, %v502_v46  ;;  %v505_v51 = vsel %vm490_vm1, %v502_v46, %v504_v47  ;;  %v334_v55 = vrot.slane %v264_v48, 7  ;;  %v681_v56 = vrot.slane %v443_v42, 2 }
  0x64   : > { %v5485_v57 = vpack.i.bf16 %v505_v51, %v503_v50  ;;  %v6438_v59 = vsel %vm324_vm0, 0.0, %v333_v52  ;;  %v6443_v61 = vsel %vm667_vm2, %v678_v53, %v679_v54  ;;  %v336_v15 = vrot.slane %v265_v13, 7  ;;  %v1567_v50 = vld [vmem:[%s10831_s1] sm:$0xff]  ;;  %v1568_v51 = vld [vmem:[%s10831_s1 + $0x8] sm:$0xff] }
  0x65   : > { %5481 = vrot.lane.b32.xlu1 %v5480_v41, %s6171_s27  ;;  %v6435_v58 = vsel %vm324_vm0, %v333_v52, %v334_v55  ;;  %v444_v60 = vsel %vm324_vm0, %v334_v55, 0.0  ;;  %v6446_v62 = vsel %vm667_vm2, %v679_v54, %v681_v56  ;;  %v506_v63 = vrot.slane %v6438_v59, 1 }
  0x66   : > { %v507_v0 = vrot.slane %v6435_v58, 1  ;;  %v509_v1 = vrot.slane %v444_v60, 1  ;;  %v5510_v2 = vpack.i.bf16 %v6446_v62, %v6443_v61  ;;  %v5515_v12 = vpack.i.bf16 %v6435_v58, %v6438_v59 }
  0x67   : > { %5476 = vrot.lane.b32.xlu0 %v5475_v49, %s6172_s30  ;;  %v337_v16 = vrot.slane %v266_v14, 7  ;;  %v683_v17 = vrot.slane %v6438_v59, 2  ;;  %v684_v18 = vrot.slane %v6435_v58, 2  ;;  %v686_v19 = vrot.slane %v444_v60, 2  ;;  %v1570_v60 = vld [vmem:[%s10831_s1 + $0x18] sm:$0xff] }
  0x68   : > { %v508_v3 = vsel %vm490_vm1, %v506_v63, %v507_v0  ;;  %v510_v9 = vsel %vm490_vm1, %v507_v0, %v509_v1  ;;  %v6473_v24 = vsel %vm324_vm0, 0.0, %v336_v15  ;;  %v339_v37 = vrot.slane %v267_v30, 7 }
  0x69   : > { %5491 = vrot.lane.b32.xlu1 %v5470_v33, %s6168_s29  ;;  %v5520_v11 = vpack.i.bf16 %v510_v9, %v508_v3  ;;  %v445_v20 = vsel %vm324_vm0, %v337_v16, 0.0  ;;  %v6470_v23 = vsel %vm324_vm0, %v336_v15, %v337_v16  ;;  %v6477_v25 = vsel %vm667_vm2, %v683_v17, %v684_v18  ;;  %v274_v3 = vld [vmem:[%s6349_s7 + $0x78] sm:$0xff]  ;;  %v6561_v16 = vld [vmem:[%s6349_s7 + $0x90] sm:$0xff] }
  0x6a   : > { %v6480_v26 = vsel %vm667_vm2, %v684_v18, %v686_v19  ;;  %v511_v27 = vrot.slane %v6473_v24, 1  ;;  %v512_v28 = vrot.slane %v6470_v23, 1  ;;  %v514_v29 = vrot.slane %v445_v20, 1  ;;  %v278_v17 = vld [vmem:[%s6349_s7 + $0x98] sm:$0xff]  ;;  %v269_v18 = vld [vmem:[%s6349_s7 + $0x50] sm:$0xff] }
  0x6b   : > { %5486 = vrot.lane.b32.xlu0 %v5485_v57, %s6173_s8  ;;  %v5550_v32 = vpack.i.bf16 %v6470_v23, %v6473_v24  ;;  %v5545_v33 = vpack.i.bf16 %v6480_v26, %v6477_v25  ;;  %v340_v39 = vrot.slane %v268_v31, 7  ;;  %v688_v42 = vrot.slane %v6473_v24, 2 }
  0x6c   : > { %v513_v40 = vsel %vm490_vm1, %v511_v27, %v512_v28  ;;  %v689_v43 = vrot.slane %v6470_v23, 2  ;;  %v691_v44 = vrot.slane %v445_v20, 2  ;;  %v6504_v47 = vsel %vm324_vm0, 0.0, %v339_v37  ;;  %v270_v27 = vld [vmem:[%s6349_s7 + $0x58] sm:$0xff] }
  0x6d   : > { %5501 = vrot.lane.b32.xlu1 %v5480_v41, %s6167_s24  ;;  %v515_v41 = vsel %vm490_vm1, %v512_v28, %v514_v29  ;;  %v6501_v46 = vsel %vm324_vm0, %v339_v37, %v340_v39  ;;  %v6507_v48 = vsel %vm324_vm0, %v340_v39, 0.0  ;;  %v516_v53 = vrot.slane %v6504_v47, 1  ;;  %v1573_v28 = vld [vmem:[%s10831_s1 + $0x30] sm:$0xff]  ;;  %v1574_v29 = vld [vmem:[%s10831_s1 + $0x38] sm:$0xff] }
  0x6e   : > { %v6498_v45 = vpack.i.bf16 %v515_v41, %v513_v40  ;;  %v6520_v52 = vsel %vm667_vm2, %v689_v43, %v691_v44  ;;  %v517_v54 = vrot.slane %v6501_v46, 1  ;;  %v519_v55 = vrot.slane %v6507_v48, 1 }
  0x6f   : > { %5496 = vrot.lane.b32.xlu0 %v5475_v49, %s6170_s12  ;;  %v6511_v49 = vsel %vm667_vm2, %v688_v42, %v689_v43  ;;  %v5328_v56 = vpack.c.bf16 %v1568_v51, %v1567_v50  ;;  %v349_v15 = vrot.slane %v274_v3, 7  ;;  %v6570_v20 = vpack.i.bf16 %v6501_v46, %v6504_v47  ;;  %v1575_v50 = vld [vmem:[%s10831_s1 + $0x40] sm:$0xff]  ;;  %v1576_v51 = vld [vmem:[%s10831_s1 + $0x48] sm:$0xff] }
  0x70   : > { %v5580_v63 = vpack.i.bf16 %v6520_v52, %v6511_v49  ;;  %v6537_v0 = vsel %vm490_vm1, %v516_v53, %v517_v54  ;;  %v6540_v1 = vsel %vm490_vm1, %v517_v54, %v519_v55  ;;  %v693_v30 = vrot.slane %v6504_v47, 2  ;;  %v275_v55 = vld [vmem:[%s6349_s7 + $0x80] sm:$0xff] }
  0x71   : > { %5511 = vrot.lane.b32.xlu1 %v5510_v2, %s6172_s30  ;;  %5329 = vmatpush1.bf16.msra.mxu0 %v5328_v56  ;;  %v6557_v13 = vpack.i.bf16 %v6540_v1, %v6537_v0  ;;  %v694_v31 = vrot.slane %v6501_v46, 2  ;;  %v696_v37 = vrot.slane %v6507_v48, 2  ;;  %v449_v40 = vsel %vm324_vm0, %v349_v15, 0.0 }
  0x72   : > { %5330 = vmatprep.subr.bf16.mxu0 %v10711_v10  ;;  %5369 = vmatpush1.bf16.msra.mxu1 %v5328_v56  ;;  %vm1336_vm3 = vcmask 130048   ;;  %v342_v41 = vrot.slane %v269_v18, 7  ;;  %v343_v42 = vrot.slane %v270_v27, 7  ;;  %v5337_v44 = vpack.c.bf16 %v1574_v29, %v1573_v28 }
  0x73   : > { %5506 = vrot.lane.b32.xlu0 %v5485_v57, %s6169_s11  ;;  %5361 = vmatprep.subr.bf16.mxu1 %v10711_v10  ;;  %v534_v54 = vrot.slane %v449_v40, 1  ;;  %v6623_v3 = vsel %vm667_vm2, %v694_v31, %v696_v37  ;;  %v711_v29 = vrot.slane %v449_v40, 2  ;;  %vm1369_vm4 = vcmask 261120  }
  0x74   : > { %5162 = vmatprep.mubr.msk.f32.mxu0 %vm1336_vm3, %v6443_v61  ;;  %v276_v61 = vld [vmem:[%s6349_s7 + $0x88] sm:$0xff]  ;;  %vm1402_vm5 = vcmask 392192   ;;  %vm1435_vm6 = vcmask 523264   ;;  %vm1468_vm7 = vcmask 654336   ;;  %vm1501_vm8 = vcmask 785408  }
  0x75   : > { %5521 = vrot.lane.b32.xlu1 %v5520_v11, %s6173_s8  ;;  %vm1534_vm9 = vcmask 916480   ;;  %vm6174_vm10 = vmmov 0   ;;  %vm2130_vm11 = vcmask 1041408   ;;  %vm2126_vm12 = vcmask 15360  }
  0x76   : > { %vm2519_vm13 = vcmask 154712   ;;  %vm2656_vm14 = vcmask 1041409   ;;  %vm2658_vm15 = vcmask 1042434  }
  0x77   : > { %5516 = vrot.lane.b32.xlu0 %v5515_v12, %s6171_s27 }
  0x79   : > { %5531 = vrot.lane.b32.xlu1 %v5510_v2, %s6170_s12  ;;  %v6543_v2 = vld [vmem:[%s6349_s7 + $0x70] sm:$0xff] }
  0x7a   : > { %v10709_v14 = vrot.slane %v6543_v2, 7 }
  0x7b   : > { %5526 = vrot.lane.b32.xlu0 %v5485_v57, %s6168_s29  ;;  %v1569_v57 = vld [vmem:[%s10831_s1 + $0x10] sm:$0xff] }
  0x7c   : > { %v5331_v9 = vpack.c.bf16 %v1570_v60, %v1569_v57  ;;  %v6589_v39 = vsel %vm324_vm0, %v10709_v14, %v349_v15  ;;  %v6618_v57 = vsel %vm667_vm2, %v693_v30, %v694_v31  ;;  %v351_v15 = vrot.slane %v275_v55, 7 }
  0x7d   : > { %5541 = vrot.lane.b32.xlu1 %v5520_v11, %s6169_s11  ;;  %v10708_v53 = vrot.slane %v6589_v39, 1  ;;  %v10707_v28 = vrot.slane %v6589_v39, 2  ;;  %v5620_v30 = vpack.i.bf16 %v6623_v3, %v6618_v57  ;;  %v10843_v34 = vrot.slane %v6589_v39, 1 }
  0x7e   : > { %5332 = vmatpush1.bf16.msra.mxu0 %v5331_v9  ;;  %5370 = vmatpush1.bf16.msra.mxu1 %v5331_v9  ;;  %v6626_v9 = vsel %vm324_vm0, %v342_v41, %v343_v42 }
  0x7f   : > { %5536 = vrot.lane.b32.xlu0 %v5515_v12, %s6167_s24  ;;  %v1572_v12 = vld [vmem:[%s10831_s1 + $0x28] sm:$0xff]  ;;  %5333 = vmatprep.subr.bf16.mxu0 %v10711_v10  ;;  %10833 = vst [vmem:[#allocation17_spill] sm:$0xff] %v6626_v9  ;;  %v6651_v27 = vsel %vm490_vm1, %v10708_v53, %v534_v54 }
  0x80   : > { %5362 = vmatprep.subr.bf16.mxu1 %v10711_v10 }
  0x81   : > { %5551 = vrot.lane.b32.xlu1 %v5550_v32, %s6171_s27 }
  0x83   : > { %5546 = vrot.lane.b32.xlu0 %v5545_v33, %s6172_s30 }
  0x85   : > { %5561 = vrot.lane.b32.xlu1 %v5520_v11, %s6168_s29  ;;  %v1571_v11 = vld [vmem:[%s10831_s1 + $0x20] sm:$0xff] }
  0x86   : > { %v5334_v19 = vpack.c.bf16 %v1572_v12, %v1571_v11  ;;  %v6629_v11 = vsel %vm324_vm0, 0.0, %v342_v41  ;;  %v5340_v12 = vpack.c.bf16 %v1576_v51, %v1575_v50  ;;  %v5615_v41 = vpack.i.bf16 %v6537_v0, %v6651_v27 }
  0x87   : > { %5556 = vrot.lane.b32.xlu0 %v6498_v45, %s6173_s8  ;;  %10834 = vst [vmem:[#allocation18_spill] sm:$0xff] %v6629_v11  ;;  %v521_v31 = vrot.slane %v6629_v11, 1  ;;  %v6684_v0 = vsel %vm667_vm2, %v10707_v28, %v711_v29 }
  0x88   : > { %5335 = vmatpush1.bf16.msra.mxu0 %v5334_v19  ;;  %5371 = vmatpush1.bf16.msra.mxu1 %v5334_v19  ;;  %v1577_v19 = vld [vmem:[%s10831_s1 + $0x50] sm:$0xff] }
  0x89   : > { %5571 = vrot.lane.b32.xlu1 %v5550_v32, %s6167_s24  ;;  %v354_v32 = vrot.slane %v6561_v16, 7  ;;  %5336 = vmatprep.subr.bf16.mxu0 %v10711_v10 }
  0x8a   : > { %5363 = vmatprep.subr.bf16.mxu1 %v10711_v10 }
  0x8b   : > { %5566 = vrot.lane.b32.xlu0 %v5545_v33, %s6170_s12  ;;  %v355_v33 = vrot.slane %v278_v17, 7  ;;  %v352_v17 = vrot.slane %v276_v61, 7 }
  0x8c   : > { %5338 = vmatpush1.bf16.msra.mxu0 %v5337_v44  ;;  %5372 = vmatpush1.bf16.msra.mxu1 %v5337_v44  ;;  %v1579_v44 = vld [vmem:[%s10831_s1 + $0x60] sm:$0xff] }
  0x8d   : > { %5581 = vrot.lane.b32.xlu1 %v5580_v63, %s6172_s30  ;;  %v6594_v43 = vsel %vm324_vm0, %v355_v33, 0.0  ;;  %v6614_v56 = vsel %vm324_vm0, %v354_v32, %v355_v33  ;;  %5339 = vmatprep.subr.bf16.mxu0 %v10711_v10  ;;  %v522_v33 = vrot.slane %v6626_v9, 1  ;;  %v450_v51 = vsel %vm324_vm0, %v352_v17, 0.0 }
  0x8e   : > { %v721_v48 = vrot.slane %v6594_v43, 2  ;;  %10832 = vst [vmem:[#allocation16_spill] sm:$0xff] %v6614_v56  ;;  %v10710_v60 = vrot.slane %v6614_v56, 2  ;;  %5364 = vmatprep.subr.bf16.mxu1 %v10711_v10 }
  0x8f   : > { %5576 = vrot.lane.b32.xlu0 %v6498_v45, %s6169_s11  ;;  %v523_v50 = vsel %vm490_vm1, %v521_v31, %v522_v33 }
  0x90   : > { %v6639_v18 = vsel %vm667_vm2, %v10710_v60, %v721_v48  ;;  %5341 = vmatpush1.bf16.msra.mxu0 %v5340_v12  ;;  %v1580_v48 = vld [vmem:[%s10831_s1 + $0x68] sm:$0xff]  ;;  %5373 = vmatpush1.bf16.msra.mxu1 %v5340_v12 }
  0x91   : > { %5591 = vrot.lane.b32.xlu1 %v6557_v13, %s6173_s8  ;;  %5179 = vmatprep.mubr.msk.f32.mxu1 %vm1336_vm3, %v6639_v18  ;;  %v5346_v12 = vpack.c.bf16 %v1580_v48, %v1579_v44  ;;  %v1583_v48 = vld [vmem:[%s10831_s1 + $0x80] sm:$0xff] }
  0x92   : > { %5342 = vmatprep.subr.bf16.mxu0 %v10711_v10  ;;  %5365 = vmatprep.subr.bf16.mxu1 %v10711_v10 }
  0x93   : > { %5586 = vrot.lane.b32.xlu0 %v6570_v20, %s6171_s27 }
  0x95   : > { %5601 = vrot.lane.b32.xlu1 %v5580_v63, %s6170_s12  ;;  %v6634_v63 = vsel %vm324_vm0, %v343_v42, 0.0  ;;  %v6672_v42 = vsel %vm324_vm0, 0.0, %v351_v15 }
  0x96   : > { %v524_v37 = vrot.slane %v6634_v63, 1  ;;  %v536_v55 = vrot.slane %v6672_v42, 1  ;;  %v713_v31 = vrot.slane %v6672_v42, 2 }
  0x97   : > { %5596 = vrot.lane.b32.xlu0 %v6498_v45, %s6168_s29  ;;  %v1578_v45 = vld [vmem:[%s10831_s1 + $0x58] sm:$0xff] }
  0x98   : > { %v5343_v40 = vpack.c.bf16 %v1578_v45, %v1577_v19  ;;  %v6693_v54 = vsel %vm490_vm1, %v522_v33, %v524_v37  ;;  %v1582_v19 = vld [vmem:[%s10831_s1 + $0x78] sm:$0xff]  ;;  %v539_v45 = vrot.slane %v450_v51, 1  ;;  %v271_v37 = vld [vmem:[%s6349_s7 + $0x60] sm:$0xff] }
  0x99   : > { %5611 = vrot.lane.b32.xlu1 %v6557_v13, %s6169_s11  ;;  %v6669_v13 = vsel %vm324_vm0, %v351_v15, %v352_v17  ;;  %v5625_v15 = vpack.i.bf16 %v6618_v57, %v6684_v0  ;;  %v1581_v17 = vld [vmem:[%s10831_s1 + $0x70] sm:$0xff]  ;;  %v5640_v29 = vpack.i.bf16 %v6693_v54, %v523_v50  ;;  %v345_v28 = vrot.slane %v271_v37, 7 }
  0x9a   : > { %v537_v61 = vrot.slane %v6669_v13, 1  ;;  %5344 = vmatpush1.bf16.msra.mxu0 %v5343_v40  ;;  %5374 = vmatpush1.bf16.msra.mxu1 %v5343_v40  ;;  %v714_v33 = vrot.slane %v6669_v13, 2  ;;  %v5349_v44 = vpack.c.bf16 %v1582_v19, %v1581_v17  ;;  %v5635_v40 = vpack.i.bf16 %v6629_v11, %v6669_v13 }
  0x9b   : > { %5606 = vrot.lane.b32.xlu0 %v6570_v20, %s6167_s24  ;;  %v5630_v20 = vpack.i.bf16 %v6626_v9, %v6629_v11  ;;  %5345 = vmatprep.subr.bf16.mxu0 %v10711_v10  ;;  %v698_v17 = vrot.slane %v6629_v11, 2  ;;  %v716_v19 = vrot.slane %v450_v51, 2  ;;  %v6760_v16 = vsel %vm324_vm0, 0.0, %v345_v28 }
  0x9c   : > { %5366 = vmatprep.subr.bf16.mxu1 %v10711_v10  ;;  %v6740_v14 = vsel %vm667_vm2, %v713_v31, %v714_v33  ;;  %10836 = vst [vmem:[#allocation20_spill] sm:$0xff] %v6760_v16  ;;  %v542_v31 = vrot.slane %v6614_v56, 1 }
  0x9d   : > { %5621 = vrot.lane.b32.xlu1 %v5620_v30, %s6172_s30  ;;  %v6711_v30 = vsel %vm490_vm1, %v536_v55, %v537_v61  ;;  %v6730_v55 = vsel %vm490_vm1, %v537_v61, %v539_v45  ;;  %v6754_v45 = vsel %vm667_vm2, %v714_v33, %v716_v19  ;;  %v526_v33 = vrot.slane %v6760_v16, 1 }
  0x9e   : > { %5347 = vmatpush1.bf16.msra.mxu0 %v5346_v12  ;;  %5375 = vmatpush1.bf16.msra.mxu1 %v5346_v12  ;;  %v5650_v4 = vpack.i.bf16 %v6540_v1, %v6711_v30  ;;  %v5645_v51 = vpack.i.bf16 %v523_v50, %v6730_v55  ;;  %v6747_v12 = vsel %vm324_vm0, 0.0, %v354_v32  ;;  %10835 = vst [vmem:[#allocation19_spill] sm:$0xff] %v6754_v45 }
  0x9f   : > { %5616 = vrot.lane.b32.xlu0 %v5615_v41, %s6168_s29  ;;  %v6717_v41 = vld [vmem:[%s6349_s7 + $0x68] sm:$0xff]  ;;  %5348 = vmatprep.subr.bf16.mxu0 %v10711_v10  ;;  %v5660_v50 = vpack.i.bf16 %v6623_v3, %v6740_v14 }
  0xa0   : > { %v346_v53 = vrot.slane %v6717_v41, 7  ;;  %5367 = vmatprep.subr.bf16.mxu1 %v10711_v10  ;;  %v544_v41 = vrot.slane %v6594_v43, 1  ;;  %v5665_v43 = vpack.i.bf16 %v6760_v16, %v6614_v56 }
  0xa1   : > { %5631 = vrot.lane.b32.xlu1 %v5630_v20, %s6171_s27  ;;  %v1584_v20 = vld [vmem:[%s10831_s1 + $0x88] sm:$0xff]  ;;  %s10913_s1 = smov 126  }
  0xa2   : > { %5350 = vmatpush1.bf16.msra.mxu0 %v5349_v44  ;;  %v5352_v61 = vpack.c.bf16 %v1584_v20, %v1583_v48  ;;  %5376 = vmatpush1.bf16.msra.mxu1 %v5349_v44  ;;  %v6763_v32 = vsel %vm324_vm0, %v345_v28, %v346_v53  ;;  %v279_v28 = vld [vmem:[%s6349_s7 + $0xa0] sm:$0xff]  ;;  %v280_v44 = vld [vmem:[%s6349_s7 + $0xa8] sm:$0xff]  ;;  %v701_v20 = vrot.slane %v6634_v63, 2  ;;  %v545_v60 = vsel %vm490_vm1, %v542_v31, %v544_v41 }
  0xa3   : > { %5626 = vrot.lane.b32.xlu0 %v5625_v15, %s6170_s12  ;;  %v699_v15 = vrot.slane %v6626_v9, 2  ;;  %5351 = vmatprep.subr.bf16.mxu0 %v10711_v10  ;;  %10837 = vst [vmem:[#allocation21_spill] sm:$0xff] %v6763_v32  ;;  %v527_v37 = vrot.slane %v6763_v32, 1  ;;  %v357_v19 = vrot.slane %v279_v28, 7 }
  0xa4   : > { %5368 = vmatprep.subr.bf16.mxu1 %v10711_v10 }
  0xa5   : > { %5641 = vrot.lane.b32.xlu1 %v5640_v29, %s6173_s8  ;;  %v6751_v1 = vsel %vm667_vm2, %v698_v17, %v699_v15  ;;  %v541_v29 = vrot.slane %v6747_v12, 1  ;;  %v718_v17 = vrot.slane %v6747_v12, 2  ;;  %v6794_v63 = vsel %vm667_vm2, %v699_v15, %v701_v20 }
  0xa6   : > { %5353 = vmatpush1.bf16.msra.mxu0 %v5352_v61  ;;  %5377 = vmatpush1.bf16.msra.mxu1 %v5352_v61  ;;  %v358_v61 = vrot.slane %v280_v44, 7 }
  0xa7   : > { %5636 = vrot.lane.b32.xlu0 %v5635_v40, %s6167_s24  ;;  %v5670_v40 = vpack.i.bf16 %v6626_v9, %v6747_v12  ;;  %5354 = vmatprep.subr.bf16.mxu1 %v10711_v10  ;;  %v6781_v48 = vsel %vm490_vm1, %v541_v29, %v542_v31  ;;  %v10838_v10 = vrot.slane %v6614_v56, 2  ;;  %v6808_v31 = vsel %vm324_vm0, 0.0, %v357_v19 }
  0xa8   : > { %v5680_v29 = vpack.i.bf16 %v6693_v54, %v6781_v48  ;;  %10840 = vst [vmem:[#allocation23_spill] sm:$0xff] %v6808_v31  ;;  %v448_v54 = vsel %vm324_vm0, %v346_v53, 0.0 }
  0xa9   : > { %5651 = vrot.lane.b32.xlu1 %v5650_v4, %s6168_s29  ;;  %v5655_v4 = vpack.i.bf16 %v6751_v1, %v6754_v45  ;;  %v6799_v35 = vsel %vm667_vm2, %v718_v17, %v10838_v10  ;;  %v529_v41 = vrot.slane %v448_v54, 1  ;;  %v546_v10 = vrot.slane %v6808_v31, 1 }
  0xaa   : > { %10839 = vst [vmem:[#allocation22_spill] sm:$0xff] %v6799_v35  ;;  %v5690_v15 = vpack.i.bf16 %v6794_v63, %v6799_v35  ;;  %v703_v17 = vrot.slane %v6760_v16, 2 }
  0xab   : > { %5646 = vrot.lane.b32.xlu0 %v5645_v51, %s6169_s11  ;;  %v530_v53 = vsel %vm490_vm1, %v527_v37, %v529_v41 }
  0xad   : > { %5661 = vrot.lane.b32.xlu1 %v5660_v50, %s6170_s12  ;;  %v528_v50 = vsel %vm490_vm1, %v526_v33, %v527_v37  ;;  %v6805_v33 = vsel %vm324_vm0, %v357_v19, %v358_v61  ;;  %v704_v19 = vrot.slane %v6763_v32, 2 }
  0xae   : > { %v6802_v28 = vpack.i.bf16 %v528_v50, %v545_v60  ;;  %v547_v44 = vrot.slane %v6805_v33, 1  ;;  %v5700_v60 = vpack.i.bf16 %v6763_v32, %v6808_v31  ;;  %v10844_v45 = vrot.slane %v6805_v33, 2 }
  0xaf   : > { %5656 = vrot.lane.b32.xlu0 %v5655_v4, %s6172_s30  ;;  %v6834_v37 = vsel %vm667_vm2, %v703_v17, %v704_v19 }
  0xb0   : > { %v5725_v41 = vpack.i.bf16 %v6834_v37, %v6639_v18 }
  0xb1   : > { %5671 = vrot.lane.b32.xlu1 %v5670_v40, %s6167_s24  ;;  %v548_v40 = vsel %vm490_vm1, %v546_v10, %v547_v44 }
  0xb2   : > { %v6825_v20 = vpack.i.bf16 %v530_v53, %v548_v40  ;;  %v281_v53 = vld [vmem:[%s6349_s7 + $0xb0] sm:$0xff]  ;;  %v723_v40 = vrot.slane %v6808_v31, 2 }
  0xb3   : > { %5666 = vrot.lane.b32.xlu0 %v5665_v43, %s6171_s27  ;;  %v360_v18 = vrot.slane %v281_v53, 7 }
  0xb4   : > { %v6875_v31 = vsel %vm667_vm2, %v723_v40, %v10844_v45 }
  0xb5   : > { %5681 = vrot.lane.b32.xlu1 %v5680_v29, %s6169_s11  ;;  %10845 = vst [vmem:[#allocation25_spill] sm:$0xff] %v6875_v31 }
  0xb7   : > { %5676 = vrot.lane.b32.xlu0 %v6802_v28, %s6173_s8 }
  0xb9   : > { %5691 = vrot.lane.b32.xlu1 %v5690_v15, %s6172_s30 }
  0xbb   : > { %5686 = vrot.lane.b32.xlu0 %v5645_v51, %s6168_s29  ;;  %v10841_v51 = vrot.slane %v6543_v2, 7  ;;  %v706_v2 = vrot.slane %v448_v54, 2 }
  0xbd   : > { %5701 = vrot.lane.b32.xlu1 %v5700_v60, %s6171_s27  ;;  %v6840_v50 = vsel %vm324_vm0, 0.0, %v10841_v51 }
  0xbe   : > { %10842 = vst [vmem:[#allocation24_spill] sm:$0xff] %v6840_v50  ;;  %v6861_v17 = vpack.i.bf16 %v6840_v50, %v6805_v33 }
  0xbf   : > { %5696 = vrot.lane.b32.xlu0 %v5655_v4, %s6170_s12  ;;  %v6843_v4 = vsel %vm324_vm0, %v358_v61, 0.0  ;;  %v6870_v61 = vsel %vm667_vm2, %v704_v19, %v706_v2 }
  0xc0   : > { %v549_v10 = vrot.slane %v6843_v4, 1  ;;  %v6893_v45 = vpack.i.bf16 %v6870_v61, %v6875_v31 }
  0xc1   : > { %5711 = vrot.lane.b32.xlu1 %v6825_v20, %s6173_s8 }
  0xc3   : > { %5706 = vrot.lane.b32.xlu0 %v5665_v43, %s6167_s24  ;;  %v531_v43 = vrot.slane %v6840_v50, 1 }
  0xc5   : > { %5721 = vrot.lane.b32.xlu1 %v5680_v29, %s6168_s29  ;;  %v6853_v29 = vld [vmem:[%s6349_s7 + $0xb8] sm:$0xff]  ;;  %v533_v35 = vsel %vm490_vm1, %v531_v43, %v10843_v34 }
  0xc6   : > { %v10717_v51 = vrot.slane %v6853_v29, 7 }
  0xc7   : > { %5716 = vrot.lane.b32.xlu0 %v6802_v28, %s6169_s11 }
  0xc8   : > { %v6884_v34 = vsel %vm324_vm0, %v360_v18, %v10717_v51 }
  0xc9   : > { %5731 = vrot.lane.b32.xlu1 %v5690_v15, %s6170_s12  ;;  %v550_v15 = vsel %vm490_vm1, %v547_v44, %v549_v10  ;;  %v6887_v44 = vsel %vm324_vm0, 0.0, %v360_v18 }
  0xca   : > { %v6879_v53 = vpack.i.bf16 %v533_v35, %v550_v15  ;;  %v551_v19 = vrot.slane %v6887_v44, 1  ;;  %v10726_v35 = vrot.slane %v6884_v34, 1  ;;  %v6903_v18 = vpack.i.bf16 %v6589_v39, %v6887_v44 }
  0xcb   : > { %5726 = vrot.lane.b32.xlu0 %v5725_v41, %s6172_s30 }
  0xcd   : > { %5741 = vrot.lane.b32.xlu1 %v5700_v60, %s6167_s24 }
  0xce   : > { %v5457_v54 = vpop.permute.xlu1 %5456 }
  0xcf   : > { %5736 = vrot.lane.b32.xlu0 %v6861_v17, %s6171_s27  ;;  %v5458_v56 = vunpack.i.l.bf16 %v5457_v54  ;;  %v5459_v11 = vunpack.i.h.bf16 %v5457_v54 }
  0xd1   : > { %5751 = vrot.lane.b32.xlu1 %v6825_v20, %s6169_s11  ;;  %v5462_v60 = vpop.permute.xlu0 %5461 }
  0xd2   : > { %v5464_v43 = vunpack.i.h.bf16 %v5462_v60  ;;  %v5463_v10 = vunpack.i.l.bf16 %v5462_v60  ;;  %v6908_v60 = vsel %vm490_vm1, %v551_v19, %v10726_v35 }
  0xd3   : > { %v5472_v2 = vpop.permute.xlu1 %5471  ;;  %5746 = vrot.lane.b32.xlu0 %v6879_v53, %s6173_s8 }
  0xd4   : > { %v5473_v15 = vunpack.i.l.bf16 %v5472_v2  ;;  %v1338_v16 = vsel %vm1336_vm3, %v6362_v5, %v5464_v43  ;;  %v1337_v9 = vsel %vm1336_vm3, %v6372_v8, %v5463_v10  ;;  %v5474_v31 = vunpack.i.h.bf16 %v5472_v2 }
  0xd5   : > { %5761 = vrot.lane.b32.xlu1 %v6893_v45, %s6172_s30  ;;  %v5467_v40 = vpop.permute.xlu0 %5466  ;;  %v6923_v10 = vpack.i.bf16 %v6651_v27, %v6908_v60  ;;  %v726_v2 = vrot.slane %v6843_v4, 2 }
  0xd6   : > { %v5469_v51 = vunpack.i.h.bf16 %v5467_v40  ;;  %v5468_v32 = vunpack.i.l.bf16 %v5467_v40 }
  0xd7   : > { %v5482_v22 = vpop.permute.xlu1 %5481  ;;  %5756 = vrot.lane.b32.xlu0 %v6802_v28, %s6168_s29 }
  0xd8   : > { %v1370_v40 = vsel %vm1369_vm4, %v1337_v9, %v5468_v32  ;;  %v1371_v21 = vsel %vm1369_vm4, %v1338_v16, %v5469_v51  ;;  %v5483_v9 = vunpack.i.l.bf16 %v5482_v22 }
  0xd9   : > { %v1403_v19 = vsel %vm1402_vm5, %v1370_v40, %v5458_v56  ;;  %5771 = vrot.lane.b32.xlu1 %v6903_v18, %s6171_s27  ;;  %v5477_v43 = vpop.permute.xlu0 %5476  ;;  %v1404_v28 = vsel %vm1402_vm5, %v1371_v21, %v5459_v11  ;;  %v708_v56 = vrot.slane %v6840_v50, 2  ;;  %v5484_v40 = vunpack.i.h.bf16 %v5482_v22 }
  0xda   : > { %v5478_v35 = vunpack.i.l.bf16 %v5477_v43  ;;  %v1436_v54 = vsel %vm1435_vm6, %v1403_v19, %v5473_v15  ;;  %v5479_v16 = vunpack.i.h.bf16 %v5477_v43  ;;  %v1437_v11 = vsel %vm1435_vm6, %v1404_v28, %v5474_v31 }
  0xdb   : > { %v5492_v32 = vpop.permute.xlu1 %5491  ;;  %5766 = vrot.lane.b32.xlu0 %v5725_v41, %s6170_s12  ;;  %v10846_v43 = vrot.slane %v6589_v39, 2  ;;  %v10847_v31 = vrot.slane %v6805_v33, 2 }
  0xdc   : > { %v1469_v51 = vsel %vm1468_vm7, %v1436_v54, %v5478_v35  ;;  %v5493_v27 = vunpack.i.l.bf16 %v5492_v32  ;;  %v5494_v19 = vunpack.i.h.bf16 %v5492_v32  ;;  %v1470_v5 = vsel %vm1468_vm7, %v1437_v11, %v5479_v16  ;;  %v6974_v11 = vld [vmem:[%s6349_s7 + $0xc8] sm:$0xff] }
  0xdd   : > { %5781 = vrot.lane.b32.xlu1 %v6923_v10, %s6173_s8  ;;  %v5487_v21 = vpop.permute.xlu0 %5486  ;;  %v1502_v35 = vsel %vm1501_vm8, %v1469_v51, %v5483_v9  ;;  %v6940_v4 = vsel %vm667_vm2, %v708_v56, %v10846_v43  ;;  %v6947_v22 = vsel %vm667_vm2, %v10847_v31, %v726_v2  ;;  %v10848_v9 = vrot.slane %v6853_v29, 7 }
  0xde   : > { %v5488_v15 = vunpack.i.l.bf16 %v5487_v21  ;;  %v5489_v54 = vunpack.i.h.bf16 %v5487_v21  ;;  %v283_v21 = vld [vmem:[%s6349_s7 + $0xc0] sm:$0xff] }
  0xdf   : > { %v5502_v41 = vpop.permute.xlu1 %5501  ;;  %5776 = vrot.lane.b32.xlu0 %v6861_v17, %s6167_s24  ;;  %v1339_v17 = vsel %vm1336_vm3, %v6368_v7, %v5493_v27  ;;  %v6956_v32 = vsel %vm324_vm0, %v10848_v9, 0.0  ;;  %v1340_v7 = vsel %vm1336_vm3, %v6365_v6, %v5494_v19 }
  0xe0   : > { %v1535_v50 = vsel %vm1534_vm9, %v1502_v35, %v5488_v15  ;;  %v5503_v51 = vunpack.i.l.bf16 %v5502_v41  ;;  %v5504_v6 = vunpack.i.h.bf16 %v5502_v41  ;;  %v729_v41 = vrot.slane %v6884_v34, 2 }
  0xe1   : > { %5791 = vrot.lane.b32.xlu1 %v6825_v20, %s6168_s29  ;;  %v5497_v28 = vpop.permute.xlu0 %5496  ;;  %1714 = vmatmul.mubr.f32.vlgmr.msra.gmra.mrb[0].mxu0 %v1535_v50  ;;  %v1503_v20 = vsel %vm1501_vm8, %v1470_v5, %v5484_v40  ;;  %v6967_v50 = vpack.i.bf16 %v6940_v4, %v6947_v22  ;;  %v6980_v5 = vpack.i.bf16 %v6672_v42, %v6884_v34  ;;  %v728_v40 = vrot.slane %v6887_v44, 2 }
  0xe2   : > { %v5499_v56 = vunpack.i.h.bf16 %v5497_v28  ;;  %v5498_v16 = vunpack.i.l.bf16 %v5497_v28  ;;  %5163 = vmatprep.mubr.msk.f32.mxu0 %vm1336_vm3, %v6446_v62  ;;  %v1536_v27 = vsel %vm1534_vm9, %v1503_v20, %v5489_v54  ;;  %v554_v62 = vrot.slane %v6956_v32, 1 }
  0xe3   : > { %v5512_v2 = vpop.permute.xlu1 %5511  ;;  %5786 = vrot.lane.b32.xlu0 %v6879_v53, %s6169_s11  ;;  %v364_v28 = vrot.slane %v6974_v11, 7 }
  0xe4   : > { %v1372_v29 = vsel %vm1369_vm4, %v1339_v17, %v5498_v16  ;;  %v1373_v19 = vsel %vm1369_vm4, %v1340_v7, %v5499_v56  ;;  %v5513_v54 = vunpack.i.l.bf16 %v5512_v2  ;;  %v363_v17 = vrot.slane %v283_v21, 7 }
  0xe5   : > { %5801 = vrot.lane.b32.xlu1 %v6893_v45, %s6170_s12  ;;  %v5507_v15 = vpop.permute.xlu0 %5506  ;;  %1719 = vmatmul.mubr.f32.gmra.mrb[2].mxu0 %v1536_v27  ;;  %v1405_v45 = vsel %vm1402_vm5, %v1372_v29, %v5503_v51  ;;  %v10849_v56 = vrot.slane %v6884_v34, 1  ;;  %v1406_v7 = vsel %vm1402_vm5, %v1373_v19, %v5504_v6 }
  0xe6   : > { %v5509_v35 = vunpack.i.h.bf16 %v5507_v15  ;;  %v5508_v43 = vunpack.i.l.bf16 %v5507_v15  ;;  %5164 = vmatprep.mubr.msk.f32.mxu0 %vm1336_vm3, %v6477_v25  ;;  %v5514_v25 = vunpack.i.h.bf16 %v5512_v2  ;;  %v7004_v15 = vsel %vm667_vm2, %v728_v40, %v729_v41 }
  0xe7   : > { %v5522_v31 = vpop.permute.xlu1 %5521  ;;  %5796 = vrot.lane.b32.xlu0 %v6967_v50, %s6172_s30  ;;  %v6995_v16 = vsel %vm490_vm1, %v10849_v56, %v554_v62  ;;  %v7019_v6 = vsel %vm324_vm0, 0.0, %v363_v17 }
  0xe8   : > { %v1438_v9 = vsel %vm1435_vm6, %v1405_v45, %v5508_v43  ;;  %v5523_v20 = vunpack.i.l.bf16 %v5522_v31  ;;  %v1439_v29 = vsel %vm1435_vm6, %v1406_v7, %v5509_v35  ;;  %v7011_v62 = vpack.i.bf16 %v6711_v30, %v6995_v16 }
  0xe9   : > { %5811 = vrot.lane.b32.xlu1 %v6903_v18, %s6167_s24  ;;  %v5517_v51 = vpop.permute.xlu0 %5516  ;;  %v1471_v2 = vsel %vm1468_vm7, %v1438_v9, %v5513_v54  ;;  %v7016_v18 = vsel %vm324_vm0, %v363_v17, %v364_v28  ;;  %v5524_v19 = vunpack.i.h.bf16 %v5522_v31  ;;  %v5830_v30 = vpack.i.bf16 %v6684_v0, %v7004_v15 }
  0xea   : > { %v5519_v27 = vunpack.i.h.bf16 %v5517_v51  ;;  %v5518_v21 = vunpack.i.l.bf16 %v5517_v51  ;;  %v1472_v45 = vsel %vm1468_vm7, %v1439_v29, %v5514_v25  ;;  %v556_v17 = vrot.slane %v7019_v6, 1 }
  0xeb   : > { %v5532_v43 = vpop.permute.xlu1 %5531  ;;  %5806 = vrot.lane.b32.xlu0 %v6980_v5, %s6171_s27  ;;  %v557_v7 = vrot.slane %v7016_v18, 1 }
  0xec   : > { %v1504_v40 = vsel %vm1501_vm8, %v1471_v2, %v5518_v21  ;;  %v1505_v56 = vsel %vm1501_vm8, %v1472_v45, %v5519_v27  ;;  %v5533_v31 = vunpack.i.l.bf16 %v5532_v43  ;;  %v5840_v27 = vpack.i.bf16 %v6669_v13, %v7019_v6 }
  0xed   : > { %5821 = vrot.lane.b32.xlu1 %v6923_v10, %s6169_s11  ;;  %v5527_v35 = vpop.permute.xlu0 %5526  ;;  %v1537_v54 = vsel %vm1534_vm9, %v1504_v40, %v5523_v20  ;;  %v1538_v29 = vsel %vm1534_vm9, %v1505_v56, %v5524_v19  ;;  %v7044_v2 = vsel %vm490_vm1, %v556_v17, %v557_v7  ;;  %v731_v56 = vrot.slane %v6956_v32, 2 }
  0xee   : > { %v5528_v9 = vunpack.i.l.bf16 %v5527_v35  ;;  %1724 = vmatmul.mubr.f32.gmra.mrb[4].mxu0 %v1537_v54  ;;  %v5529_v10 = vunpack.i.h.bf16 %v5527_v35  ;;  %v5860_v32 = vpack.i.bf16 %v6995_v16, %v6908_v60 }
  0xef   : > { %v5542_v51 = vpop.permute.xlu1 %5541  ;;  %5816 = vrot.lane.b32.xlu0 %v7011_v62, %s6173_s8  ;;  %5165 = vmatprep.mubr.msk.f32.mxu0 %vm1336_vm3, %v6480_v26  ;;  %v5534_v26 = vunpack.i.h.bf16 %v5532_v43  ;;  %v5850_v43 = vpack.i.bf16 %v6730_v55, %v7044_v2 }
  0xf0   : > { %v1341_v25 = vsel %vm1336_vm3, %v6410_v36, %v5528_v9  ;;  %v5543_v40 = vunpack.i.l.bf16 %v5542_v51  ;;  %v1342_v19 = vsel %vm1336_vm3, %v6415_v38, %v5529_v10  ;;  %v5544_v17 = vunpack.i.h.bf16 %v5542_v51 }
  0xf1   : > { %5831 = vrot.lane.b32.xlu1 %v5830_v30, %s6172_s30  ;;  %v5537_v20 = vpop.permute.xlu0 %5536  ;;  %v1374_v35 = vsel %vm1369_vm4, %v1341_v25, %v5533_v31 }
  0xf2   : > { %v5538_v21 = vunpack.i.l.bf16 %v5537_v20  ;;  %1729 = vmatmul.mubr.f32.gmra.mrb[6].mxu0 %v1538_v29  ;;  %v5539_v54 = vunpack.i.h.bf16 %v5537_v20 }
  0xf3   : > { %v5552_v36 = vpop.permute.xlu1 %5551  ;;  %5826 = vrot.lane.b32.xlu0 %v6879_v53, %s6168_s29  ;;  %5166 = vmatprep.mubr.msk.f32.mxu0 %vm1336_vm3, %v6511_v49  ;;  %v1375_v53 = vsel %vm1369_vm4, %v1342_v19, %v5534_v26 }
  0xf4   : > { %v1407_v30 = vsel %vm1402_vm5, %v1374_v35, %v5538_v21  ;;  %v5553_v31 = vunpack.i.l.bf16 %v5552_v36  ;;  %v1408_v10 = vsel %vm1402_vm5, %v1375_v53, %v5539_v54  ;;  %v5554_v21 = vunpack.i.h.bf16 %v5552_v36  ;;  %v285_v54 = vld [vmem:[%s6349_s7 + $0xd0] sm:$0xff] }
  0xf5   : > { %5841 = vrot.lane.b32.xlu1 %v5840_v27, %s6171_s27  ;;  %v5547_v45 = vpop.permute.xlu0 %5546  ;;  %v1440_v38 = vsel %vm1435_vm6, %v1407_v30, %v5543_v40  ;;  %v7070_v27 = vsel %vm667_vm2, %v729_v41, %v731_v56  ;;  %v1441_v16 = vsel %vm1435_vm6, %v1408_v10, %v5544_v17  ;;  %v286_v30 = vld [vmem:[%s6349_s7 + $0xd8] sm:$0xff] }
  0xf6   : > { %v5548_v9 = vunpack.i.l.bf16 %v5547_v45  ;;  %v5549_v25 = vunpack.i.h.bf16 %v5547_v45  ;;  %v5870_v19 = vpack.i.bf16 %v7070_v27, %v7004_v15  ;;  %v5865_v53 = vpack.i.bf16 %v6740_v14, %v7070_v27 }
  0xf7   : > { %v5562_v49 = vpop.permute.xlu1 %5561  ;;  %5836 = vrot.lane.b32.xlu0 %v6967_v50, %s6170_s12  ;;  %v7075_v50 = vsel %vm324_vm0, %v364_v28, 0.0  ;;  %v367_v10 = vrot.slane %v286_v30, 7 }
  0xf8   : > { %v1473_v20 = vsel %vm1468_vm7, %v1440_v38, %v5548_v9  ;;  %v5563_v29 = vunpack.i.l.bf16 %v5562_v49  ;;  %v5564_v26 = vunpack.i.h.bf16 %v5562_v49  ;;  %v1474_v11 = vsel %vm1468_vm7, %v1441_v16, %v5549_v25 }
  0xf9   : > { %5851 = vrot.lane.b32.xlu1 %v5850_v43, %s6173_s8  ;;  %v5557_v55 = vpop.permute.xlu0 %5556  ;;  %v1506_v60 = vsel %vm1501_vm8, %v1473_v20, %v5553_v31  ;;  %v1507_v17 = vsel %vm1501_vm8, %v1474_v11, %v5554_v21  ;;  %v366_v38 = vrot.slane %v285_v54, 7  ;;  %v5875_v25 = vpack.i.bf16 %v6747_v12, %v7016_v18 }
  0xfa   : > { %v5558_v51 = vunpack.i.l.bf16 %v5557_v55  ;;  %v5559_v35 = vunpack.i.h.bf16 %v5557_v55  ;;  %v1343_v28 = vsel %vm1336_vm3, %v6438_v59, %v5563_v29  ;;  %v1344_v9 = vsel %vm1336_vm3, %v6435_v58, %v5564_v26 }
  0xfb   : > { %v5572_v40 = vpop.permute.xlu1 %5571  ;;  %5846 = vrot.lane.b32.xlu0 %v6980_v5, %s6167_s24  ;;  %v559_v5 = vrot.slane %v7075_v50, 1  ;;  %v736_v16 = vrot.slane %v7075_v50, 2  ;;  %v7127_v11 = vsel %vm324_vm0, 0.0, %v366_v38 }
  0xfc   : > { %v1539_v41 = vsel %vm1534_vm9, %v1506_v60, %v5558_v51  ;;  %v5573_v59 = vunpack.i.l.bf16 %v5572_v40  ;;  %v1540_v49 = vsel %vm1534_vm9, %v1507_v17, %v5559_v35  ;;  %v733_v51 = vrot.slane %v7019_v6, 2 }
  0xfd   : > { %5861 = vrot.lane.b32.xlu1 %v5860_v32, %s6168_s29  ;;  %v5567_v36 = vpop.permute.xlu0 %5566  ;;  %1734 = vmatmul.mubr.f32.gmra.mrb[8].mxu0 %v1539_v41  ;;  %v560_v20 = vsel %vm490_vm1, %v557_v7, %v559_v5  ;;  %v734_v60 = vrot.slane %v7016_v18, 2  ;;  %v287_v7 = vld [vmem:[%s6349_s7 + $0xe0] sm:$0xff]  ;;  %v455_v5 = vsel %vm324_vm0, %v367_v10, 0.0 }
  0xfe   : > { %v5569_v45 = vunpack.i.h.bf16 %v5567_v36  ;;  %v5568_v43 = vunpack.i.l.bf16 %v5567_v36  ;;  %5167 = vmatprep.mubr.msk.f32.mxu0 %vm1336_vm3, %v6520_v52  ;;  %v5574_v52 = vunpack.i.h.bf16 %v5572_v40  ;;  %v7121_v41 = vpack.i.bf16 %v560_v20, %v7044_v2 }
  0xff   : > { %v5582_v56 = vpop.permute.xlu1 %5581  ;;  %5856 = vrot.lane.b32.xlu0 %v7011_v62, %s6169_s11  ;;  %v5880_v62 = vpack.i.bf16 %v7016_v18, %v7019_v6  ;;  %v7142_v17 = vsel %vm667_vm2, %v734_v60, %v736_v16  ;;  %v741_v16 = vrot.slane %v455_v5, 2 }
 0x100   : > { %v1376_v31 = vsel %vm1369_vm4, %v1343_v28, %v5568_v43  ;;  %v1377_v29 = vsel %vm1369_vm4, %v1344_v9, %v5569_v45  ;;  %v5583_v21 = vunpack.i.l.bf16 %v5582_v56  ;;  %v5584_v28 = vunpack.i.h.bf16 %v5582_v56 }
 0x101   : > { %5871 = vrot.lane.b32.xlu1 %v5870_v19, %s6170_s12  ;;  %v5577_v58 = vpop.permute.xlu0 %5576  ;;  %1739 = vmatmul.mubr.f32.gmra.mrb[10].mxu0 %v1540_v49  ;;  %v1409_v26 = vsel %vm1402_vm5, %v1376_v31, %v5573_v59  ;;  %v1410_v36 = vsel %vm1402_vm5, %v1377_v29, %v5574_v52  ;;  %v369_v45 = vrot.slane %v287_v7, 7  ;;  %v5885_v59 = vpack.i.bf16 %v6781_v48, %v560_v20 }
 0x102   : > { %v5579_v55 = vunpack.i.h.bf16 %v5577_v58  ;;  %v5578_v32 = vunpack.i.l.bf16 %v5577_v58  ;;  %5168 = vmatprep.mubr.msk.f32.mxu0 %vm1336_vm3, %v6618_v57  ;;  %v7124_v57 = vsel %vm324_vm0, %v366_v38, %v367_v10  ;;  %v7139_v56 = vsel %vm667_vm2, %v733_v51, %v734_v60 }
 0x103   : > { %v5592_v40 = vpop.permute.xlu1 %5591  ;;  %5866 = vrot.lane.b32.xlu0 %v5865_v53, %s6172_s30  ;;  %v288_v53 = vld [vmem:[%s6349_s7 + $0xe8] sm:$0xff]  ;;  %v561_v49 = vrot.slane %v7127_v11, 1  ;;  %v562_v38 = vrot.slane %v7124_v57, 1  ;;  %v564_v10 = vrot.slane %v455_v5, 1  ;;  %v5895_v51 = vpack.i.bf16 %v7142_v17, %v7139_v56 }
 0x104   : > { %v1442_v35 = vsel %vm1435_vm6, %v1409_v26, %v5578_v32  ;;  %v5593_v19 = vunpack.i.l.bf16 %v5592_v40  ;;  %v1443_v54 = vsel %vm1435_vm6, %v1410_v36, %v5579_v55  ;;  %v5594_v52 = vunpack.i.h.bf16 %v5592_v40 }
 0x105   : > { %5881 = vrot.lane.b32.xlu1 %v5880_v62, %s6167_s24  ;;  %v5587_v50 = vpop.permute.xlu0 %5586  ;;  %v1475_v9 = vsel %vm1468_vm7, %v1442_v35, %v5583_v21  ;;  %v1476_v62 = vsel %vm1468_vm7, %v1443_v54, %v5584_v28  ;;  %v370_v55 = vrot.slane %v288_v53, 7  ;;  %v738_v21 = vrot.slane %v7127_v11, 2 }
 0x106   : > { %v5589_v2 = vunpack.i.h.bf16 %v5587_v50  ;;  %v5588_v30 = vunpack.i.l.bf16 %v5587_v50  ;;  %v563_v26 = vsel %vm490_vm1, %v561_v49, %v562_v38  ;;  %v565_v40 = vsel %vm490_vm1, %v562_v38, %v564_v10 }
 0x107   : > { %v7133_v43 = vpop.permute.xlu1 %5601  ;;  %5876 = vrot.lane.b32.xlu0 %v5875_v25, %s6171_s27  ;;  %v5900_v25 = vpack.i.bf16 %v7124_v57, %v7127_v11  ;;  %v739_v60 = vrot.slane %v7124_v57, 2  ;;  %v7175_v54 = vsel %vm324_vm0, %v369_v45, %v370_v55 }
 0x108   : > { %v1508_v31 = vsel %vm1501_vm8, %v1475_v9, %v5588_v30  ;;  %v1509_v29 = vsel %vm1501_vm8, %v1476_v62, %v5589_v2  ;;  %v5603_v7 = vunpack.i.l.bf16 %v7133_v43  ;;  %v7178_v2 = vpack.i.bf16 %v565_v40, %v563_v26 }
 0x109   : > { %5891 = vrot.lane.b32.xlu1 %v7121_v41, %s6169_s11  ;;  %v5597_v58 = vpop.permute.xlu0 %5596  ;;  %v1541_v48 = vsel %vm1534_vm9, %v1508_v31, %v5593_v19  ;;  %v1542_v28 = vsel %vm1534_vm9, %v1509_v29, %v5594_v52  ;;  %v7183_v30 = vsel %vm324_vm0, %v370_v55, 0.0  ;;  %v7186_v9 = vsel %vm667_vm2, %v738_v21, %v739_v60 }
 0x10a   : > { %v5598_v20 = vunpack.i.l.bf16 %v5597_v58  ;;  %1744 = vmatmul.mubr.f32.gmra.mrb[12].mxu0 %v1541_v48  ;;  %v5599_v36 = vunpack.i.h.bf16 %v5597_v58  ;;  %v569_v58 = vrot.slane %v7183_v30, 1 }
 0x10b   : > { %v7155_v32 = vpop.permute.xlu1 %5611  ;;  %5886 = vrot.lane.b32.xlu0 %v5885_v59, %s6173_s8  ;;  %5169 = vmatprep.mubr.msk.f32.mxu0 %vm1336_vm3, %v6623_v3  ;;  %v7170_v3 = vsel %vm324_vm0, 0.0, %v369_v45  ;;  %v5604_v59 = vunpack.i.h.bf16 %v7133_v43 }
 0x10c   : > { %v1345_v19 = vsel %vm1336_vm3, %v6473_v24, %v5598_v20  ;;  %v7189_v24 = vsel %vm667_vm2, %v739_v60, %v741_v16  ;;  %v566_v45 = vrot.slane %v7170_v3, 1  ;;  %v5613_v53 = vunpack.i.l.bf16 %v7155_v32  ;;  %v289_v16 = vld [vmem:[%s6349_s7 + $0xf0] sm:$0xff] }
 0x10d   : > { %v5607_v35 = vpop.permute.xlu0 %5606  ;;  %5901 = vrot.lane.b32.xlu1 %v5900_v25, %s6171_s27  ;;  %v1378_v31 = vsel %vm1369_vm4, %v1345_v19, %v5603_v7  ;;  %v1346_v38 = vsel %vm1336_vm3, %v6470_v23, %v5599_v36  ;;  %v5614_v62 = vunpack.i.h.bf16 %v7155_v32  ;;  %v290_v32 = vld [vmem:[%s6349_s7 + $0xf8] sm:$0xff] }
 0x10e   : > { %v5608_v50 = vunpack.i.l.bf16 %v5607_v35  ;;  %1749 = vmatmul.mubr.f32.gmra.mrb[14].mxu0 %v1542_v28  ;;  %v5609_v10 = vunpack.i.h.bf16 %v5607_v35  ;;  %v1379_v20 = vsel %vm1369_vm4, %v1346_v38, %v5604_v59 }
 0x10f   : > { %v5622_v5 = vpop.permute.xlu1 %5621  ;;  %5896 = vrot.lane.b32.xlu0 %v5895_v51, %s6172_s30  ;;  %5170 = vmatprep.mubr.msk.f32.mxu0 %vm1336_vm3, %v6751_v1  ;;  %v567_v1 = vrot.slane %v7175_v54, 1 }
 0x110   : > { %v1411_v52 = vsel %vm1402_vm5, %v1378_v31, %v5608_v50  ;;  %v5623_v48 = vunpack.i.l.bf16 %v5622_v5  ;;  %v1412_v21 = vsel %vm1402_vm5, %v1379_v20, %v5609_v10  ;;  %v5624_v7 = vunpack.i.h.bf16 %v5622_v5 }
 0x111   : > { %v7195_v49 = vpop.permute.xlu0 %5616  ;;  %5911 = vrot.lane.b32.xlu1 %v7121_v41, %s6168_s29  ;;  %v5930_v41 = vpack.i.bf16 %v7189_v24, %v7186_v9  ;;  %v1444_v55 = vsel %vm1435_vm6, %v1411_v52, %v5613_v53  ;;  %v568_v26 = vsel %vm490_vm1, %v566_v45, %v567_v1  ;;  %v570_v40 = vsel %vm490_vm1, %v567_v1, %v569_v58 }
 0x112   : > { %v1477_v28 = vsel %vm1468_vm7, %v1444_v55, %v5623_v48  ;;  %v1445_v50 = vsel %vm1435_vm6, %v1412_v21, %v5614_v62  ;;  %v7226_v45 = vpack.i.bf16 %v570_v40, %v568_v26  ;;  %v372_v53 = vrot.slane %v289_v16, 7 }
 0x113   : > { %v5632_v43 = vpop.permute.xlu1 %5631  ;;  %5906 = vrot.lane.b32.xlu0 %v7178_v2, %s6173_s8  ;;  %v373_v31 = vrot.slane %v290_v32, 7  ;;  %v5935_v1 = vpack.i.bf16 %v7175_v54, %v7170_v3  ;;  %v1478_v38 = vsel %vm1468_vm7, %v1445_v50, %v5624_v7  ;;  %v743_v10 = vrot.slane %v7170_v3, 2 }
 0x114   : > { %v5633_v23 = vunpack.i.l.bf16 %v5632_v43  ;;  %v5634_v36 = vunpack.i.h.bf16 %v5632_v43  ;;  %v744_v52 = vrot.slane %v7175_v54, 2  ;;  %v746_v48 = vrot.slane %v7183_v30, 2 }
 0x115   : > { %v7210_v29 = vpop.permute.xlu0 %5626  ;;  %5921 = vrot.lane.b32.xlu1 %v5900_v25, %s6167_s24  ;;  %v7246_v20 = vsel %vm324_vm0, %v372_v53, %v373_v31  ;;  %v5619_v32 = vunpack.i.h.bf16 %v7195_v49  ;;  %v5618_v7 = vunpack.i.l.bf16 %v7195_v49 }
 0x116   : > { %v1510_v25 = vsel %vm1501_vm8, %v1477_v28, %v5633_v23  ;;  %v1511_v43 = vsel %vm1501_vm8, %v1478_v38, %v5634_v36  ;;  %v7252_v23 = vsel %vm324_vm0, %v373_v31, 0.0  ;;  %v7258_v30 = vsel %vm667_vm2, %v743_v10, %v744_v52 }
 0x117   : > { %v5642_v60 = vpop.permute.xlu1 %5641  ;;  %5916 = vrot.lane.b32.xlu0 %v5895_v51, %s6170_s12  ;;  %v7264_v26 = vsel %vm667_vm2, %v744_v52, %v746_v48  ;;  %v945_v16 = vrot.slane %v7252_v23, 1 }
 0x118   : > { %v5643_v35 = vunpack.i.l.bf16 %v5642_v60  ;;  %v5644_v59 = vunpack.i.h.bf16 %v5642_v60  ;;  %v943_v60 = vrot.slane %v7246_v20, 1 }
 0x119   : > { %v7221_v19 = vpop.permute.xlu0 %5636  ;;  %5931 = vrot.lane.b32.xlu1 %v5930_v41, %s6172_s30 }
 0x11a   : > { %v1543_v51 = vsel %vm1534_vm9, %v1510_v25, %v5643_v35  ;;  %v1544_v62 = vsel %vm1534_vm9, %v1511_v43, %v5644_v59  ;;  %v5629_v35 = vunpack.i.h.bf16 %v7210_v29  ;;  %v5638_v36 = vunpack.i.l.bf16 %v7221_v19 }
 0x11b   : > { %v7229_v5 = vpop.permute.xlu1 %5651  ;;  %1754 = vmatmul.mubr.f32.gmra.mrb[16].mxu0 %v1543_v51  ;;  %5926 = vrot.lane.b32.xlu0 %v7178_v2, %s6169_s11  ;;  %v7281_v25 = vpack.i.bf16 %v7264_v26, %v7258_v30  ;;  %v946_v51 = vsel %vm490_vm1, %v943_v60, %v945_v16 }
 0x11c   : > { %5171 = vmatprep.mubr.msk.f32.mxu0 %vm1336_vm3, %v6794_v63  ;;  %v7249_v63 = vsel %vm324_vm0, 0.0, %v372_v53  ;;  %v1354_v53 = vsel %vm1336_vm3, %v6589_v39, %v5618_v7 }
 0x11d   : > { %v5647_v58 = vpop.permute.xlu0 %5646  ;;  %5941 = vrot.lane.b32.xlu1 %v7226_v45, %s6173_s8  ;;  %v942_v40 = vrot.slane %v7249_v63, 1  ;;  %v7285_v49 = vpack.i.bf16 %v7246_v20, %v7249_v63 }
 0x11e   : > { %v5649_v50 = vunpack.i.h.bf16 %v5647_v58  ;;  %v5648_v59 = vunpack.i.l.bf16 %v5647_v58 }
 0x11f   : > { %v7254_v55 = vpop.permute.xlu1 %5661  ;;  %1759 = vmatmul.mubr.f32.gmra.mrb[18].mxu0 %v1544_v62  ;;  %5936 = vrot.lane.b32.xlu0 %v5935_v1, %s6171_s27 }
 0x120   : > { %5172 = vmatprep.mubr.msk.f32.mxu0 %vm1336_vm3, %v6834_v37  ;;  %v5628_v37 = vunpack.i.l.bf16 %v7210_v29 }
 0x121   : > { %v5657_v21 = vpop.permute.xlu0 %5656  ;;  %5951 = vrot.lane.b32.xlu1 %v5930_v41, %s6170_s12  ;;  %v5639_v41 = vunpack.i.h.bf16 %v7221_v19  ;;  %v1347_v19 = vsel %vm1336_vm3, %v6504_v47, %v5619_v32  ;;  %v5654_v47 = vunpack.i.h.bf16 %v7229_v5 }
 0x122   : > { %v5659_v31 = vunpack.i.h.bf16 %v5657_v21  ;;  %v5658_v38 = vunpack.i.l.bf16 %v5657_v21  ;;  %v1380_v10 = vsel %vm1369_vm4, %v1347_v19, %v5629_v35  ;;  %v1387_v52 = vsel %vm1369_vm4, %v1354_v53, %v5628_v37 }
 0x123   : > { %v7273_v28 = vpop.permute.xlu1 %5671  ;;  %5946 = vrot.lane.b32.xlu0 %v7178_v2, %s6168_s29  ;;  %v944_v2 = vsel %vm490_vm1, %v942_v40, %v943_v60  ;;  %v1413_v62 = vsel %vm1402_vm5, %v1380_v10, %v5639_v41  ;;  %v1420_v40 = vsel %vm1402_vm5, %v1387_v52, %v5638_v36  ;;  %v5653_v60 = vunpack.i.l.bf16 %v7229_v5 }
 0x124   : > { %v1446_v39 = vsel %vm1435_vm6, %v1413_v62, %v5649_v50  ;;  %v1453_v21 = vsel %vm1435_vm6, %v1420_v40, %v5648_v59  ;;  %v5975_v32 = vpack.i.bf16 %v946_v51, %v944_v2  ;;  %v5664_v41 = vunpack.i.h.bf16 %v7254_v55 }
 0x125   : > { %v5667_v29 = vpop.permute.xlu0 %5666  ;;  %5961 = vrot.lane.b32.xlu1 %v7226_v45, %s6169_s11  ;;  %v1486_v37 = vsel %vm1468_vm7, %v1453_v21, %v5658_v38  ;;  %v5663_v36 = vunpack.i.l.bf16 %v7254_v55  ;;  %v1355_v2 = vsel %vm1336_vm3, %v6672_v42, %v5653_v60  ;;  %v5674_v55 = vunpack.i.h.bf16 %v7273_v28 }
 0x126   : > { %v5669_v58 = vunpack.i.h.bf16 %v5667_v29  ;;  %v5668_v43 = vunpack.i.l.bf16 %v5667_v29  ;;  %v1348_v29 = vsel %vm1336_vm3, %v6501_v46, %v5654_v47  ;;  %v1043_v46 = vrot.slane %v7249_v63, 2 }
 0x127   : > { %v5682_v48 = vpop.permute.xlu1 %5681  ;;  %5956 = vrot.lane.b32.xlu0 %v5935_v1, %s6167_s24  ;;  %v1479_v1 = vsel %vm1468_vm7, %v1446_v39, %v5659_v31  ;;  %v5673_v31 = vunpack.i.l.bf16 %v7273_v28  ;;  %v1044_v42 = vrot.slane %v7246_v20, 2  ;;  %v1381_v38 = vsel %vm1369_vm4, %v1348_v29, %v5664_v41  ;;  %v10850_v28 = vld [vmem:[#allocation25_spill] sm:$0xff]  ;;  %v10851_v29 = vld [vmem:[#allocation12_spill] sm:$0xff] }
 0x128   : > { %v1512_v50 = vsel %vm1501_vm8, %v1479_v1, %v5669_v58  ;;  %v1519_v59 = vsel %vm1501_vm8, %v1486_v37, %v5668_v43  ;;  %v1388_v10 = vsel %vm1369_vm4, %v1355_v2, %v5663_v36  ;;  %v5684_v52 = vunpack.i.h.bf16 %v5682_v48 }
 0x129   : > { %v5677_v16 = vpop.permute.xlu0 %5676  ;;  %5971 = vrot.lane.b32.xlu1 %v7285_v49, %s6171_s27  ;;  %v5683_v58 = vunpack.i.l.bf16 %v5682_v48  ;;  %v1414_v63 = vsel %vm1402_vm5, %v1381_v38, %v5674_v55  ;;  %v1421_v20 = vsel %vm1402_vm5, %v1388_v10, %v5673_v31  ;;  %v7344_v21 = vsel %vm667_vm2, %v1043_v46, %v1044_v42 }
 0x12a   : > { %v5679_v7 = vunpack.i.h.bf16 %v5677_v16  ;;  %v5678_v35 = vunpack.i.l.bf16 %v5677_v16  ;;  %v1447_v48 = vsel %vm1435_vm6, %v1414_v63, %v5684_v52 }
 0x12b   : > { %v5692_v5 = vpop.permute.xlu1 %5691  ;;  %5966 = vrot.lane.b32.xlu0 %v7281_v25, %s6172_s30  ;;  %v1454_v60 = vsel %vm1435_vm6, %v1421_v20, %v5683_v58 }
 0x12c   : > { %v1545_v51 = vsel %vm1534_vm9, %v1512_v50, %v5679_v7  ;;  %v1552_v19 = vsel %vm1534_vm9, %v1519_v59, %v5678_v35  ;;  %v5693_v62 = vunpack.i.l.bf16 %v5692_v5  ;;  %v1046_v59 = vrot.slane %v7252_v23, 2  ;;  %v10852_v23 = vld [vmem:[#allocation11_spill] sm:$0xff] }
 0x12d   : > { %v7320_v53 = vpop.permute.xlu0 %5686  ;;  %1764 = vmatmul.mubr.f32.gmra.mrb[20].mxu0 %v1545_v51  ;;  %1799 = vmatmul.mubr.f32.vlgmr.msra.gmra.mrb[0].mxu1 %v1552_v19 }
 0x12e   : > { %5981 = vrot.lane.b32.xlu1 %v7226_v45, %s6168_s29  ;;  %5173 = vmatprep.mubr.msk.f32.mxu0 %vm1336_vm3, %v6870_v61  ;;  %v5694_v45 = vunpack.i.h.bf16 %v5692_v5  ;;  %v1487_v1 = vsel %vm1468_vm7, %v1454_v60, %v5693_v62  ;;  %v7365_v19 = vsel %vm667_vm2, %v1044_v42, %v1046_v59  ;;  %v10853_v42 = vld [vmem:[#allocation18_spill] sm:$0xff]  ;;  %v10855_v59 = vld [vmem:[#allocation17_spill] sm:$0xff]  ;;  %s8402_s29 = sld [smem:[#allocation6 + $0x281]] }
 0x12f   : > { %v5702_v43 = vpop.permute.xlu1 %5701  ;;  %5976 = vrot.lane.b32.xlu0 %v5975_v32, %s6173_s8  ;;  %5180 = vmatprep.mubr.msk.f32.mxu1 %vm1336_vm3, %v10850_v28 }
 0x130   : > { %v5704_v40 = vunpack.i.h.bf16 %v5702_v43  ;;  %v5703_v61 = vunpack.i.l.bf16 %v5702_v43  ;;  %v1480_v35 = vsel %vm1468_vm7, %v1447_v48, %v5694_v45 }
 0x131   : > { %v5697_v47 = vpop.permute.xlu0 %5696 }
 0x132   : > { %5991 = vrot.lane.b32.xlu1 %v7285_v49, %s6167_s24  ;;  %v1513_v49 = vsel %vm1501_vm8, %v1480_v35, %v5704_v40  ;;  %v1520_v41 = vsel %vm1501_vm8, %v1487_v1, %v5703_v61  ;;  %v5699_v55 = vunpack.i.h.bf16 %v5697_v47  ;;  %s10760_s24 = smov 127  }
 0x133   : > { %v5712_v39 = vpop.permute.xlu1 %5711  ;;  %5986 = vrot.lane.b32.xlu0 %v7281_v25, %s6170_s12  ;;  %s8414_s12 = sld [smem:[#allocation6 + $0x301]] }
 0x134   : > { %v5714_v16 = vunpack.i.h.bf16 %v5712_v39  ;;  %v5713_v7 = vunpack.i.l.bf16 %v5712_v39  ;;  %v10854_v39 = vld [vmem:[#allocation13_spill] sm:$0xff] }
 0x135   : > { %v5707_v37 = vpop.permute.xlu0 %5706 }
 0x136   : > { %v1546_v36 = vsel %vm1534_vm9, %v1513_v49, %v5714_v16  ;;  %v1553_v5 = vsel %vm1534_vm9, %v1520_v41, %v5713_v7  ;;  %1108 = vrot.lane.b32.xlu1 %v7344_v21, %s6172_s30  ;;  %v5709_v46 = vunpack.i.h.bf16 %v5707_v37  ;;  %v5708_v38 = vunpack.i.l.bf16 %v5707_v37 }
 0x137   : > { %v5722_v25 = vpop.permute.xlu1 %5721  ;;  %1769 = vmatmul.mubr.f32.gmra.mrb[22].mxu0 %v1546_v36  ;;  %1804 = vmatmul.mubr.f32.gmra.mrb[2].mxu1 %v1553_v5 }
 0x138   : > { %5996 = vrot.lane.b32.xlu0 %v5975_v32, %s6169_s11  ;;  %5174 = vmatprep.mubr.msk.f32.mxu0 %vm1336_vm3, %v6940_v4  ;;  %v5689_v32 = vunpack.i.h.bf16 %v7320_v53  ;;  %v5688_v4 = vunpack.i.l.bf16 %v7320_v53  ;;  %v5724_v48 = vunpack.i.h.bf16 %v5722_v25  ;;  %v5723_v60 = vunpack.i.l.bf16 %v5722_v25  ;;  %s10762_s11 = smov 126  }
 0x139   : > { %v5717_v50 = vpop.permute.xlu0 %5716  ;;  %5181 = vmatprep.mubr.msk.f32.mxu1 %vm1336_vm3, %v6947_v22  ;;  %v5698_v22 = vunpack.i.l.bf16 %v5697_v47 }
 0x13a   : > { %1300 = vrot.lane.b32.xlu1 %v10851_v29, %s6173_s8  ;;  %v5718_v10 = vunpack.i.l.bf16 %v5717_v50  ;;  %v1349_v58 = vsel %vm1336_vm3, %v10853_v42, %v5689_v32  ;;  %v1356_v53 = vsel %vm1336_vm3, %v6669_v13, %v5688_v4  ;;  %v1350_v29 = vsel %vm1336_vm3, %v10855_v59, %v5724_v48 }
 0x13b   : > { %v5732_v2 = vpop.permute.xlu1 %5731  ;;  %v1382_v45 = vsel %vm1369_vm4, %v1349_v58, %v5699_v55  ;;  %v1389_v62 = vsel %vm1369_vm4, %v1356_v53, %v5698_v22 }
 0x13c   : > { %1204 = vrot.lane.b32.xlu0 %v6372_v8, %s6171_s27  ;;  %v5719_v8 = vunpack.i.h.bf16 %v5717_v50  ;;  %v1415_v63 = vsel %vm1402_vm5, %v1382_v45, %v5709_v46  ;;  %v1422_v20 = vsel %vm1402_vm5, %v1389_v62, %v5708_v38  ;;  %v5734_v41 = vunpack.i.h.bf16 %v5732_v2 }
 0x13d   : > { %v5727_v51 = vpop.permute.xlu0 %5726  ;;  %v1455_v16 = vsel %vm1435_vm6, %v1422_v20, %v5718_v10  ;;  %v5733_v36 = vunpack.i.l.bf16 %v5732_v2 }
 0x13e   : > { %1206 = vrot.lane.b32.xlu1 %v10852_v23, %s6171_s27  ;;  %v5729_v43 = vunpack.i.h.bf16 %v5727_v51  ;;  %v5728_v28 = vunpack.i.l.bf16 %v5727_v51  ;;  %v1448_v13 = vsel %vm1435_vm6, %v1415_v63, %v5719_v8  ;;  %v1357_v51 = vsel %vm1336_vm3, %v6747_v12, %v5723_v60  ;;  %s10764_s27 = smov 125  }
 0x13f   : > { %v5742_v31 = vpop.permute.xlu1 %5741  ;;  %v1383_v22 = vsel %vm1369_vm4, %v1350_v29, %v5734_v41  ;;  %v1390_v46 = vsel %vm1369_vm4, %v1357_v51, %v5733_v36  ;;  %v10856_v29 = vld [vmem:[#allocation20_spill] sm:$0xff] }
 0x140   : > { %1110 = vrot.lane.b32.xlu0 %v7365_v19, %s6172_s30  ;;  %v1481_v37 = vsel %vm1468_vm7, %v1448_v13, %v5729_v43  ;;  %v1488_v49 = vsel %vm1468_vm7, %v1455_v16, %v5728_v28  ;;  %v5744_v55 = vunpack.i.h.bf16 %v5742_v31  ;;  %v5743_v2 = vunpack.i.l.bf16 %v5742_v31  ;;  %s10758_s30 = smov 124  }
 0x141   : > { %v5737_v52 = vpop.permute.xlu0 %5736 }
 0x142   : > { %v5739_v40 = vunpack.i.h.bf16 %v5737_v52  ;;  %v5738_v61 = vunpack.i.l.bf16 %v5737_v52  ;;  %v1416_v31 = vsel %vm1402_vm5, %v1383_v22, %v5744_v55  ;;  %v1423_v43 = vsel %vm1402_vm5, %v1390_v46, %v5743_v2 }
 0x143   : > { %v5752_v47 = vpop.permute.xlu1 %5751 }
 0x144   : > { %1302 = vrot.lane.b32.xlu0 %v10854_v39, %s6173_s8  ;;  %v1514_v50 = vsel %vm1501_vm8, %v1481_v37, %v5739_v40  ;;  %v1521_v25 = vsel %vm1501_vm8, %v1488_v49, %v5738_v61  ;;  %v5754_v12 = vunpack.i.h.bf16 %v5752_v47  ;;  %v5753_v38 = vunpack.i.l.bf16 %v5752_v47  ;;  %s8442_s8 = sld [smem:[#allocation6 + $0x80]] }
 0x145   : > { %v5747_v7 = vpop.permute.xlu0 %5746 }
 0x146   : > { %v5749_v35 = vunpack.i.h.bf16 %v5747_v7  ;;  %v5748_v1 = vunpack.i.l.bf16 %v5747_v7 }
 0x147   : > { %v5762_v5 = vpop.permute.xlu1 %5761 }
 0x148   : > { %v1547_v32 = vsel %vm1534_vm9, %v1514_v50, %v5749_v35  ;;  %v1554_v4 = vsel %vm1534_vm9, %v1521_v25, %v5748_v1  ;;  %v5764_v10 = vunpack.i.h.bf16 %v5762_v5  ;;  %v5763_v52 = vunpack.i.l.bf16 %v5762_v5 }
 0x149   : > { %v5757_v23 = vpop.permute.xlu0 %5756  ;;  %1774 = vmatmul.mubr.f32.gmra.mrb[24].mxu0 %v1547_v32  ;;  %1809 = vmatmul.mubr.f32.gmra.mrb[4].mxu1 %v1554_v4 }
 0x14a   : > { %5175 = vmatprep.mubr.msk.f32.mxu0 %vm1336_vm3, %v6684_v0  ;;  %5182 = vmatprep.mubr.msk.f32.mxu1 %vm1336_vm3, %v7004_v15  ;;  %v1449_v0 = vsel %vm1435_vm6, %v1416_v31, %v5754_v12  ;;  %v1456_v15 = vsel %vm1435_vm6, %v1423_v43, %v5753_v38  ;;  %v5759_v35 = vunpack.i.h.bf16 %v5757_v23  ;;  %v5758_v1 = vunpack.i.l.bf16 %v5757_v23 }
 0x14b   : > { %v5772_v8 = vpop.permute.xlu1 %5771  ;;  %v1482_v40 = vsel %vm1468_vm7, %v1449_v0, %v5764_v10  ;;  %v1489_v61 = vsel %vm1468_vm7, %v1456_v15, %v5763_v52 }
 0x14c   : > { %v5774_v42 = vunpack.i.h.bf16 %v5772_v8  ;;  %v5773_v58 = vunpack.i.l.bf16 %v5772_v8  ;;  %v1351_v51 = vsel %vm1336_vm3, %v10856_v29, %v5759_v35 }
 0x14d   : > { %v5767_v53 = vpop.permute.xlu0 %5766 }
 0x14e   : > { %v1515_v63 = vsel %vm1501_vm8, %v1482_v40, %v5774_v42  ;;  %v1522_v20 = vsel %vm1501_vm8, %v1489_v61, %v5773_v58  ;;  %v5769_v37 = vunpack.i.h.bf16 %v5767_v53  ;;  %v5768_v49 = vunpack.i.l.bf16 %v5767_v53  ;;  %v10858_v61 = vld [vmem:[#allocation21_spill] sm:$0xff] }
 0x14f   : > { %v5782_v28 = vpop.permute.xlu1 %5781 }
 0x150   : > { %v5784_v45 = vunpack.i.h.bf16 %v5782_v28  ;;  %v5783_v62 = vunpack.i.l.bf16 %v5782_v28  ;;  %v1384_v55 = vsel %vm1369_vm4, %v1351_v51, %v5769_v37 }
 0x151   : > { %v5777_v47 = vpop.permute.xlu0 %5776 }
 0x152   : > { %v1548_v48 = vsel %vm1534_vm9, %v1515_v63, %v5784_v45  ;;  %v1555_v60 = vsel %vm1534_vm9, %v1522_v20, %v5783_v62  ;;  %v5779_v36 = vunpack.i.h.bf16 %v5777_v47  ;;  %v5778_v5 = vunpack.i.l.bf16 %v5777_v47  ;;  %v10859_v63 = vld [vmem:[#allocation23_spill] sm:$0xff] }
 0x153   : > { %v5792_v39 = vpop.permute.xlu1 %5791  ;;  %1779 = vmatmul.mubr.f32.gmra.mrb[26].mxu0 %v1548_v48  ;;  %1814 = vmatmul.mubr.f32.gmra.mrb[6].mxu1 %v1555_v60 }
 0x154   : > { %5176 = vmatprep.mubr.msk.f32.mxu0 %vm1336_vm3, %v6740_v14  ;;  %5183 = vmatprep.mubr.msk.f32.mxu1 %vm1336_vm3, %v7070_v27  ;;  %v10857_v14 = vld [vmem:[#allocation16_spill] sm:$0xff]  ;;  %v1417_v12 = vsel %vm1402_vm5, %v1384_v55, %v5779_v36  ;;  %v5794_v8 = vunpack.i.h.bf16 %v5792_v39  ;;  %v5793_v10 = vunpack.i.l.bf16 %v5792_v39 }
 0x155   : > { %v5787_v13 = vpop.permute.xlu0 %5786  ;;  %v1358_v32 = vsel %vm1336_vm3, %v10857_v14, %v5758_v1 }
 0x156   : > { %v5789_v50 = vunpack.i.h.bf16 %v5787_v13  ;;  %v5788_v25 = vunpack.i.l.bf16 %v5787_v13  ;;  %v1391_v23 = vsel %vm1369_vm4, %v1358_v32, %v5768_v49  ;;  %v1352_v47 = vsel %vm1336_vm3, %v10858_v61, %v5794_v8 }
 0x157   : > { %v5802_v16 = vpop.permute.xlu1 %5801  ;;  %v1424_v38 = vsel %vm1402_vm5, %v1391_v23, %v5778_v5  ;;  %v1359_v20 = vsel %vm1336_vm3, %v10859_v63, %v5793_v10  ;;  %v10861_v10 = vld [vmem:[#allocation22_spill] sm:$0xff] }
 0x158   : > { %v1450_v52 = vsel %vm1435_vm6, %v1417_v12, %v5789_v50  ;;  %v1457_v42 = vsel %vm1435_vm6, %v1424_v38, %v5788_v25  ;;  %v5804_v15 = vunpack.i.h.bf16 %v5802_v16  ;;  %v5803_v28 = vunpack.i.l.bf16 %v5802_v16 }
 0x159   : > { %v5797_v7 = vpop.permute.xlu0 %5796 }
 0x15a   : > { %v5799_v27 = vunpack.i.h.bf16 %v5797_v7  ;;  %v5798_v4 = vunpack.i.l.bf16 %v5797_v7  ;;  %v10860_v7 = vld [vmem:[#allocation19_spill] sm:$0xff]  ;;  %v1385_v35 = vsel %vm1369_vm4, %v1352_v47, %v5804_v15  ;;  %v1392_v1 = vsel %vm1369_vm4, %v1359_v20, %v5803_v28 }
 0x15b   : > { %v5812_v41 = vpop.permute.xlu1 %5811 }
 0x15c   : > { %v1483_v43 = vsel %vm1468_vm7, %v1450_v52, %v5799_v27  ;;  %v1490_v0 = vsel %vm1468_vm7, %v1457_v42, %v5798_v4  ;;  %v5814_v13 = vunpack.i.h.bf16 %v5812_v41  ;;  %v5813_v16 = vunpack.i.l.bf16 %v5812_v41 }
 0x15d   : > { %v5807_v59 = vpop.permute.xlu0 %5806 }
 0x15e   : > { %v5809_v2 = vunpack.i.h.bf16 %v5807_v59  ;;  %v5808_v22 = vunpack.i.l.bf16 %v5807_v59  ;;  %v1418_v41 = vsel %vm1402_vm5, %v1385_v35, %v5814_v13  ;;  %v1425_v51 = vsel %vm1402_vm5, %v1392_v1, %v5813_v16 }
 0x15f   : > { %v5822_v46 = vpop.permute.xlu1 %5821 }
 0x160   : > { %v1516_v62 = vsel %vm1501_vm8, %v1483_v43, %v5809_v2  ;;  %v1523_v40 = vsel %vm1501_vm8, %v1490_v0, %v5808_v22  ;;  %v5824_v37 = vunpack.i.h.bf16 %v5822_v46  ;;  %v5823_v49 = vunpack.i.l.bf16 %v5822_v46 }
 0x161   : > { %v5817_v58 = vpop.permute.xlu0 %5816 }
 0x162   : > { %v5819_v53 = vunpack.i.h.bf16 %v5817_v58  ;;  %v5818_v31 = vunpack.i.l.bf16 %v5817_v58  ;;  %v1451_v14 = vsel %vm1435_vm6, %v1418_v41, %v5824_v37 }
 0x163   : > { %v5832_v45 = vpop.permute.xlu1 %5831 }
 0x164   : > { %v1549_v48 = vsel %vm1534_vm9, %v1516_v62, %v5819_v53  ;;  %v1556_v60 = vsel %vm1534_vm9, %v1523_v40, %v5818_v31  ;;  %v5834_v5 = vunpack.i.h.bf16 %v5832_v45  ;;  %v5833_v50 = vunpack.i.l.bf16 %v5832_v45  ;;  %v10862_v40 = vld [vmem:[#allocation24_spill] sm:$0xff] }
 0x165   : > { %v5827_v39 = vpop.permute.xlu0 %5826  ;;  %1784 = vmatmul.mubr.f32.gmra.mrb[28].mxu0 %v1549_v48  ;;  %1819 = vmatmul.mubr.f32.gmra.mrb[8].mxu1 %v1556_v60 }
 0x166   : > { %5177 = vmatprep.mubr.msk.f32.mxu0 %vm1336_vm3, %v10860_v7  ;;  %5184 = vmatprep.mubr.msk.f32.mxu1 %vm1336_vm3, %v7139_v56  ;;  %v1458_v56 = vsel %vm1435_vm6, %v1425_v51, %v5823_v49  ;;  %v1484_v55 = vsel %vm1468_vm7, %v1451_v14, %v5834_v5  ;;  %v5829_v58 = vunpack.i.h.bf16 %v5827_v39  ;;  %v5828_v31 = vunpack.i.l.bf16 %v5827_v39 }
 0x167   : > { %v5842_v36 = vpop.permute.xlu1 %5841  ;;  %v1491_v23 = vsel %vm1468_vm7, %v1458_v56, %v5833_v50 }
 0x168   : > { %v5844_v25 = vunpack.i.h.bf16 %v5842_v36  ;;  %v5843_v59 = vunpack.i.l.bf16 %v5842_v36  ;;  %v1353_v61 = vsel %vm1336_vm3, %v10862_v40, %v5829_v58 }
 0x169   : > { %v5837_v29 = vpop.permute.xlu0 %5836 }
 0x16a   : > { %v1517_v22 = vsel %vm1501_vm8, %v1484_v55, %v5844_v25  ;;  %v1524_v46 = vsel %vm1501_vm8, %v1491_v23, %v5843_v59  ;;  %v5839_v43 = vunpack.i.h.bf16 %v5837_v29  ;;  %v5838_v0 = vunpack.i.l.bf16 %v5837_v29 }
 0x16b   : > { %v5852_v32 = vpop.permute.xlu1 %5851 }
 0x16c   : > { %v5854_v27 = vunpack.i.h.bf16 %v5852_v32  ;;  %v5853_v4 = vunpack.i.l.bf16 %v5852_v32  ;;  %v1386_v48 = vsel %vm1369_vm4, %v1353_v61, %v5839_v43 }
 0x16d   : > { %v5847_v2 = vpop.permute.xlu0 %5846 }
 0x16e   : > { %v1550_v12 = vsel %vm1534_vm9, %v1517_v22, %v5854_v27  ;;  %v1557_v38 = vsel %vm1534_vm9, %v1524_v46, %v5853_v4  ;;  %v5849_v28 = vunpack.i.h.bf16 %v5847_v2  ;;  %v5848_v45 = vunpack.i.l.bf16 %v5847_v2 }
 0x16f   : > { %v5862_v8 = vpop.permute.xlu1 %5861  ;;  %1789 = vmatmul.mubr.f32.gmra.mrb[30].mxu0 %v1550_v12  ;;  %1824 = vmatmul.mubr.f32.gmra.mrb[10].mxu1 %v1557_v38 }
 0x170   : > { %5178 = vmatprep.mubr.msk.f32.mxu0 %vm1336_vm3, %v10861_v10  ;;  %5185 = vmatprep.mubr.msk.f32.mxu1 %vm1336_vm3, %v7142_v17  ;;  %v5863_v62 = vunpack.i.l.bf16 %v5862_v8  ;;  %v1360_v17 = vsel %vm1336_vm3, %v6805_v33, %v5828_v31  ;;  %v1419_v37 = vsel %vm1402_vm5, %v1386_v48, %v5849_v28  ;;  %v5864_v36 = vunpack.i.h.bf16 %v5862_v8 }
 0x171   : > { %v5857_v52 = vpop.permute.xlu0 %5856  ;;  %v1393_v39 = vsel %vm1369_vm4, %v1360_v17, %v5838_v0 }
 0x172   : > { %v5859_v47 = vunpack.i.h.bf16 %v5857_v52  ;;  %v5858_v63 = vunpack.i.l.bf16 %v5857_v52  ;;  %v1426_v49 = vsel %vm1402_vm5, %v1393_v39, %v5848_v45  ;;  %v1361_v5 = vsel %vm1336_vm3, %v6887_v44, %v5863_v62 }
 0x173   : > { %v5872_v42 = vpop.permute.xlu1 %5871  ;;  %v1362_v23 = vsel %vm1336_vm3, %v6884_v34, %v5864_v36 }
 0x174   : > { %v5873_v16 = vunpack.i.l.bf16 %v5872_v42  ;;  %v1452_v33 = vsel %vm1435_vm6, %v1419_v37, %v5859_v47  ;;  %v1459_v50 = vsel %vm1435_vm6, %v1426_v49, %v5858_v63  ;;  %v5874_v25 = vunpack.i.h.bf16 %v5872_v42 }
 0x175   : > { %v5867_v53 = vpop.permute.xlu0 %5866 }
 0x176   : > { %v5869_v60 = vunpack.i.h.bf16 %v5867_v53  ;;  %v5868_v13 = vunpack.i.l.bf16 %v5867_v53  ;;  %v1394_v32 = vsel %vm1369_vm4, %v1361_v5, %v5873_v16  ;;  %v1395_v10 = vsel %vm1369_vm4, %v1362_v23, %v5874_v25 }
 0x177   : > { %v5882_v15 = vpop.permute.xlu1 %5881 }
 0x178   : > { %v5883_v59 = vunpack.i.l.bf16 %v5882_v15  ;;  %v1485_v14 = vsel %vm1468_vm7, %v1452_v33, %v5869_v60  ;;  %v1492_v56 = vsel %vm1468_vm7, %v1459_v50, %v5868_v13  ;;  %v5884_v12 = vunpack.i.h.bf16 %v5882_v15 }
 0x179   : > { %v5877_v20 = vpop.permute.xlu0 %5876 }
 0x17a   : > { %v5879_v7 = vunpack.i.h.bf16 %v5877_v20  ;;  %v5878_v35 = vunpack.i.l.bf16 %v5877_v20  ;;  %v1427_v38 = vsel %vm1402_vm5, %v1394_v32, %v5883_v59  ;;  %v1428_v15 = vsel %vm1402_vm5, %v1395_v10, %v5884_v12 }
 0x17b   : > { %v5892_v1 = vpop.permute.xlu1 %5891 }
 0x17c   : > { %v5893_v27 = vunpack.i.l.bf16 %v5892_v1  ;;  %v1518_v4 = vsel %vm1501_vm8, %v1485_v14, %v5879_v7  ;;  %v1525_v44 = vsel %vm1501_vm8, %v1492_v56, %v5878_v35  ;;  %v5894_v52 = vunpack.i.h.bf16 %v5892_v1 }
 0x17d   : > { %v5887_v29 = vpop.permute.xlu0 %5886 }
 0x17e   : > { %v5889_v41 = vunpack.i.h.bf16 %v5887_v29  ;;  %v5888_v51 = vunpack.i.l.bf16 %v5887_v29  ;;  %v1460_v42 = vsel %vm1435_vm6, %v1427_v38, %v5893_v27  ;;  %v1461_v45 = vsel %vm1435_vm6, %v1428_v15, %v5894_v52 }
 0x17f   : > { %v5902_v55 = vpop.permute.xlu1 %5901 }
 0x180   : > { %v1551_v2 = vsel %vm1534_vm9, %v1518_v4, %v5889_v41  ;;  %v1558_v22 = vsel %vm1534_vm9, %v1525_v44, %v5888_v51  ;;  %v5903_v34 = vunpack.i.l.bf16 %v5902_v55  ;;  %v5904_v62 = vunpack.i.h.bf16 %v5902_v55 }
 0x181   : > { %v5897_v46 = vpop.permute.xlu0 %5896  ;;  %1794 = vmatmul.mubr.f32.gmra.mrb[32].mxu0 %v1551_v2  ;;  %1829 = vmatmul.mubr.f32.gmra.mrb[12].mxu1 %v1558_v22 }
 0x182   : > { %v5898_v8 = vunpack.i.l.bf16 %v5897_v46  ;;  %5186 = vmatprep.mubr.msk.f32.mxu1 %vm1336_vm3, %v7186_v9  ;;  %v5899_v53 = vunpack.i.h.bf16 %v5897_v46 }
 0x183   : > { %v5912_v58 = vpop.permute.xlu1 %5911 }
 0x184   : > { %v1493_v31 = vsel %vm1468_vm7, %v1460_v42, %v5898_v8  ;;  %v5913_v0 = vunpack.i.l.bf16 %v5912_v58  ;;  %v5914_v40 = vunpack.i.h.bf16 %v5912_v58  ;;  %v1494_v20 = vsel %vm1468_vm7, %v1461_v45, %v5899_v53 }
 0x185   : > { %v5907_v43 = vpop.permute.xlu0 %5906  ;;  %v1526_v9 = vsel %vm1501_vm8, %v1493_v31, %v5903_v34  ;;  %v1527_v7 = vsel %vm1501_vm8, %v1494_v20, %v5904_v62 }
 0x186   : > { %v5908_v28 = vunpack.i.l.bf16 %v5907_v43  ;;  %v5909_v47 = vunpack.i.h.bf16 %v5907_v43  ;;  %v1363_v17 = vsel %vm1336_vm3, %v7019_v6, %v5913_v0  ;;  %v1364_v39 = vsel %vm1336_vm3, %v7016_v18, %v5914_v40 }
 0x187   : > { %v5922_v61 = vpop.permute.xlu1 %5921 }
 0x188   : > { %v1559_v63 = vsel %vm1534_vm9, %v1526_v9, %v5908_v28  ;;  %v5923_v16 = vunpack.i.l.bf16 %v5922_v61  ;;  %v1560_v37 = vsel %vm1534_vm9, %v1527_v7, %v5909_v47  ;;  %v5924_v49 = vunpack.i.h.bf16 %v5922_v61 }
 0x189   : > { %v5917_v48 = vpop.permute.xlu0 %5916  ;;  %1834 = vmatmul.mubr.f32.gmra.mrb[14].mxu1 %v1559_v63 }
 0x18a   : > { %v5919_v60 = vunpack.i.h.bf16 %v5917_v48  ;;  %v5918_v13 = vunpack.i.l.bf16 %v5917_v48  ;;  %5187 = vmatprep.mubr.msk.f32.mxu1 %vm1336_vm3, %v7189_v24 }
 0x18b   : > { %v5932_v35 = vpop.permute.xlu1 %5931 }
 0x18c   : > { %v1396_v1 = vsel %vm1369_vm4, %v1363_v17, %v5918_v13  ;;  %v1397_v36 = vsel %vm1369_vm4, %v1364_v39, %v5919_v60  ;;  %v5933_v24 = vunpack.i.l.bf16 %v5932_v35  ;;  %v5934_v29 = vunpack.i.h.bf16 %v5932_v35 }
 0x18d   : > { %v5927_v6 = vpop.permute.xlu0 %5926  ;;  %1839 = vmatmul.mubr.f32.gmra.mrb[16].mxu1 %v1560_v37  ;;  %v1429_v18 = vsel %vm1402_vm5, %v1396_v1, %v5923_v16  ;;  %v1430_v59 = vsel %vm1402_vm5, %v1397_v36, %v5924_v49 }
 0x18e   : > { %v5929_v5 = vunpack.i.h.bf16 %v5927_v6  ;;  %v5928_v33 = vunpack.i.l.bf16 %v5927_v6  ;;  %5188 = vmatprep.mubr.msk.f32.mxu1 %vm1336_vm3, %v7258_v30 }
 0x18f   : > { %v5942_v50 = vpop.permute.xlu1 %5941 }
 0x190   : > { %v1462_v25 = vsel %vm1435_vm6, %v1429_v18, %v5928_v33  ;;  %v5943_v51 = vunpack.i.l.bf16 %v5942_v50  ;;  %v1463_v14 = vsel %vm1435_vm6, %v1430_v59, %v5929_v5  ;;  %v5944_v44 = vunpack.i.h.bf16 %v5942_v50  ;;  %v10863_v59 = vld [vmem:[#allocation14_spill] sm:$0xff] }
 0x191   : > { %v5937_v41 = vpop.permute.xlu0 %5936  ;;  %v1495_v4 = vsel %vm1468_vm7, %v1462_v25, %v5933_v24  ;;  %v1496_v2 = vsel %vm1468_vm7, %v1463_v14, %v5934_v29 }
 0x192   : > { %v5939_v56 = vunpack.i.h.bf16 %v5937_v41  ;;  %v5938_v32 = vunpack.i.l.bf16 %v5937_v41 }
 0x193   : > { %v5952_v27 = vpop.permute.xlu1 %5951 }
 0x194   : > { %v1528_v30 = vsel %vm1501_vm8, %v1495_v4, %v5938_v32  ;;  %v1529_v46 = vsel %vm1501_vm8, %v1496_v2, %v5939_v56  ;;  %v5953_v12 = vunpack.i.l.bf16 %v5952_v27  ;;  %v5954_v58 = vunpack.i.h.bf16 %v5952_v27  ;;  %v10864_v2 = vld [vmem:[#allocation15_spill] sm:$0xff] }
 0x195   : > { %v5947_v55 = vpop.permute.xlu0 %5946  ;;  %v1561_v23 = vsel %vm1534_vm9, %v1528_v30, %v5943_v51  ;;  %v1562_v42 = vsel %vm1534_vm9, %v1529_v46, %v5944_v44 }
 0x196   : > { %v5948_v22 = vunpack.i.l.bf16 %v5947_v55  ;;  %1844 = vmatmul.mubr.f32.gmra.mrb[18].mxu1 %v1561_v23  ;;  %v5949_v8 = vunpack.i.h.bf16 %v5947_v55 }
 0x197   : > { %5189 = vmatprep.mubr.msk.f32.mxu1 %vm1336_vm3, %v7264_v26  ;;  %v5962_v38 = vpop.permute.xlu1 %5961 }
 0x198   : > { %v1365_v10 = vsel %vm1336_vm3, %v7127_v11, %v5948_v22  ;;  %v5963_v31 = vunpack.i.l.bf16 %v5962_v38  ;;  %v1366_v26 = vsel %vm1336_vm3, %v7124_v57, %v5949_v8  ;;  %v5964_v62 = vunpack.i.h.bf16 %v5962_v38 }
 0x199   : > { %v5957_v52 = vpop.permute.xlu0 %5956  ;;  %v1398_v53 = vsel %vm1369_vm4, %v1365_v10, %v5953_v12  ;;  %v1399_v45 = vsel %vm1369_vm4, %v1366_v26, %v5954_v58 }
 0x19a   : > { %v5958_v34 = vunpack.i.l.bf16 %v5957_v52  ;;  %1849 = vmatmul.mubr.f32.gmra.mrb[20].mxu1 %v1562_v42  ;;  %v5959_v0 = vunpack.i.h.bf16 %v5957_v52 }
 0x19b   : > { %v5972_v43 = vpop.permute.xlu1 %5971  ;;  %5190 = vmatprep.mubr.msk.f32.mxu1 %vm1336_vm3, %v7344_v21 }
 0x19c   : > { %v1431_v15 = vsel %vm1402_vm5, %v1398_v53, %v5958_v34  ;;  %v5973_v9 = vunpack.i.l.bf16 %v5972_v43  ;;  %v1432_v61 = vsel %vm1402_vm5, %v1399_v45, %v5959_v0  ;;  %v5974_v60 = vunpack.i.h.bf16 %v5972_v43 }
 0x19d   : > { %v5967_v11 = vpop.permute.xlu0 %5966  ;;  %v1464_v40 = vsel %vm1435_vm6, %v1431_v15, %v5963_v31  ;;  %v1465_v48 = vsel %vm1435_vm6, %v1432_v61, %v5964_v62  ;;  %v2048_v61 = vld [vmem:[%s10865_s2 + $0x8] sm:$0xff] }
 0x19e   : > { %v5968_v28 = vunpack.i.l.bf16 %v5967_v11  ;;  %v5969_v47 = vunpack.i.h.bf16 %v5967_v11 }
 0x1a0   : > { %v5982_v63 = vpop.permute.xlu1 %5981  ;;  %v1497_v21 = vsel %vm1468_vm7, %v1464_v40, %v5968_v28  ;;  %v1498_v35 = vsel %vm1468_vm7, %v1465_v48, %v5969_v47 }
 0x1a1   : > { %v5977_v20 = vpop.permute.xlu0 %5976  ;;  %v5983_v57 = vunpack.i.l.bf16 %v5982_v63  ;;  %v1530_v13 = vsel %vm1501_vm8, %v1497_v21, %v5973_v9  ;;  %v5984_v6 = vunpack.i.h.bf16 %v5982_v63  ;;  %v1531_v36 = vsel %vm1501_vm8, %v1498_v35, %v5974_v60  ;;  %v2047_v9 = vld [vmem:[%s10865_s2] sm:$0xff] }
 0x1a2   : > { %v5978_v17 = vunpack.i.l.bf16 %v5977_v20  ;;  %v5979_v39 = vunpack.i.h.bf16 %v5977_v20  ;;  %v5355_v47 = vpack.c.bf16 %v2048_v61, %v2047_v9  ;;  %v10866_v63 = vmov 0.0|0.0   ;;  %v6020_v61 = vld [vmem:[%s6349_s7 + $0x40] sm:$0xff] }
 0x1a3   : > { %v1367_v37 = vsel %vm1336_vm3, %v7170_v3, %v5983_v57  ;;  %v1368_v3 = vsel %vm1336_vm3, %v7175_v54, %v5984_v6 }
 0x1a4   : > { %v1563_v16 = vsel %vm1534_vm9, %v1530_v13, %v5978_v17  ;;  %v5992_v7 = vpop.permute.xlu1 %5991  ;;  %v1564_v33 = vsel %vm1534_vm9, %v1531_v36, %v5979_v39  ;;  %5356 = vmatpush3.bf16.msra.mxu1 %v5355_v47 }
 0x1a5   : > { %v5987_v1 = vpop.permute.xlu0 %5986  ;;  %1854 = vmatmul.mubr.f32.gmra.mrb[22].mxu1 %v1563_v16  ;;  %v5993_v5 = vunpack.i.l.bf16 %v5992_v7  ;;  %v5994_v41 = vunpack.i.h.bf16 %v5992_v7  ;;  %5357 = vmatprep.subr.bf16.mxu1 %v10866_v63  ;;  %v2049_v16 = vld [vmem:[%s10865_s2 + $0x10] sm:$0xff]  ;;  %v2050_v7 = vld [vmem:[%s10865_s2 + $0x18] sm:$0xff]  ;;  %s10916_s2 = smov 125  }
 0x1a6   : > { %v5988_v49 = vunpack.i.l.bf16 %v5987_v1  ;;  %5191 = vmatprep.mubr.msk.f32.mxu1 %vm1336_vm3, %v7365_v19  ;;  %v5989_v50 = vunpack.i.h.bf16 %v5987_v1  ;;  %v5358_v35 = vpack.c.bf16 %v2050_v7, %v2049_v16  ;;  %v10867_v1 = vmov 0.0   ;;  %v6022_v16 = vld [vmem:[%s6349_s7 + $0x50] sm:$0xff] }
 0x1a8   : > { %v1109_v18 = vpop.permute.xlu1 %1108  ;;  %v1400_v24 = vsel %vm1369_vm4, %v1367_v37, %v5988_v49  ;;  %v1401_v56 = vsel %vm1369_vm4, %v1368_v3, %v5989_v50  ;;  %5359 = vmatpush3.bf16.msra.mxu1 %v5358_v35 }
 0x1a9   : > { %1859 = vmatmul.mubr.f32.gmra.mrb[24].mxu1 %v1564_v33  ;;  %v1433_v19 = vsel %vm1402_vm5, %v1400_v24, %v5993_v5  ;;  %v1434_v54 = vsel %vm1402_vm5, %v1401_v56, %v5994_v41  ;;  %5322 = vmatprep.subr.mxu1 %v10867_v1  ;;  %vm2664_vm5 = vcmask 1045509  }
 0x1aa   : > { %v5997_v25 = vpop.permute.xlu0 %5996  ;;  %5192 = vmatprep.mubr.msk.f32.mxu1 %vm1336_vm3, %v10863_v59 }
 0x1ab   : > { %v5998_v29 = vunpack.i.l.bf16 %v5997_v25  ;;  %v5999_v32 = vunpack.i.h.bf16 %v5997_v25 }
 0x1ac   : > { %v1301_v14 = vpop.permute.xlu1 %1300 }
 0x1ad   : > { %v1466_v51 = vsel %vm1435_vm6, %v1433_v19, %v5998_v29  ;;  %v1467_v23 = vsel %vm1435_vm6, %v1434_v54, %v5999_v32  ;;  %v6012_v29 = vld [vmem:[%s6349_s7 + $0x8] sm:$0xff]  ;;  %v6013_v32 = vld [vmem:[%s6349_s7] sm:$0xff]  ;;  %v6015_v54 = vld [vmem:[%s6349_s7 + $0x18] sm:$0xff]  ;;  %vm2666_vm6 = vcmask 1046534  }
 0x1ae   : > { %v1499_v27 = vsel %vm1468_vm7, %v1466_v51, %v1109_v18  ;;  %v1205_v4 = vpop.permute.xlu0 %1204 }
 0x1af   : > { %v1532_v30 = vsel %vm1501_vm8, %v1499_v27, %v1205_v4  ;;  %v6014_v4 = vld [vmem:[%s6349_s7 + $0x10] sm:$0xff] }
 0x1b0   : > { %v1565_v44 = vsel %vm1534_vm9, %v1532_v30, %v1301_v14  ;;  %v1207_v46 = vpop.permute.xlu1 %1206 }
 0x1b1   : > { %1864 = vmatmul.mubr.f32.gmra.mrb[26].mxu1 %v1565_v44 }
 0x1b2   : > { %v1111_v55 = vpop.permute.xlu0 %1110  ;;  %5193 = vmatprep.mubr.msk.f32.mxu1 %vm1336_vm3, %v10864_v2 }
 0x1b3   : > { %v1500_v22 = vsel %vm1468_vm7, %v1467_v23, %v1111_v55  ;;  %vm2668_vm7 = vcmask 1047559  }
 0x1b4   : > { %v1715_v12 = vpop.f32.mrb[0].mxu0  ;;  %v1533_v8 = vsel %vm1501_vm8, %v1500_v22, %v1207_v46  ;;  %v6016_v46 = vld [vmem:[%s6349_s7 + $0x20] sm:$0xff]  ;;  %vm2679_vm8 = vcmask 23552  }
 0x1b5   : > { %v1717_v38 = vpop.f32.mrb[1].mxu0  ;;  %v7595_v27 = vsel %vm1336_vm3, %v1715_v12, %v6013_v32  ;;  %v6026_v32 = vld [vmem:[%s6349_s7 + $0x70] sm:$0xff] }
 0x1b6   : > { %v1303_v10 = vpop.permute.xlu0 %1302  ;;  %v1906_v23 = vsel %vm1369_vm4, %v7595_v27, 0.0 }
 0x1b7   : > { %v1566_v52 = vsel %vm1534_vm9, %v1533_v8, %v1303_v10  ;;  %v6017_v10 = vld [vmem:[%s6349_s7 + $0x28] sm:$0xff]  ;;  %vm2682_vm9 = vcmask 154624  }
 0x1b8   : > { %1869 = vmatmul.mubr.f32.gmra.mrb[28].mxu1 %v1566_v52  ;;  %v1720_v42 = vpop.f32.mrb[2].mxu0 }
 0x1b9   : > { %v1722_v34 = vpop.f32.mrb[3].mxu0  ;;  %5319 = vmatprep.mubr.msk.f32.mxu1 %vm6174_vm10, %v10867_v1  ;;  %v7589_v19 = vsel %vm1336_vm3, %v1720_v42, %v6012_v29  ;;  %v6025_v29 = vld [vmem:[%s6349_s7 + $0x68] sm:$0xff] }
 0x1ba   : > { %v1907_v44 = vsel %vm1369_vm4, %v7589_v19, 0.0 }
 0x1bb   : > { %v1908_v22 = vadd.f32 %v1907_v44, %v1906_v23 }
 0x1c1   : > { %v1725_v58 = vpop.f32.mrb[4].mxu0 }
 0x1c2   : > { %v1727_v53 = vpop.f32.mrb[5].mxu0  ;;  %v7599_v30 = vsel %vm1336_vm3, %v1725_v58, %v6014_v4  ;;  %v6018_v58 = vld [vmem:[%s6349_s7 + $0x30] sm:$0xff] }
 0x1c3   : > { %v1909_v2 = vsel %vm1369_vm4, %v7599_v30, 0.0 }
 0x1c4   : > { %v1910_v8 = vadd.f32 %v1909_v2, %v1908_v22 }
 0x1c5   : > { %v1730_v31 = vpop.f32.mrb[6].mxu0 }
 0x1c6   : > { %v1732_v43 = vpop.f32.mrb[7].mxu0  ;;  %v7605_v55 = vsel %vm1336_vm3, %v1730_v31, %v6015_v54  ;;  %v6027_v54 = vld [vmem:[%s6349_s7 + $0x78] sm:$0xff] }
 0x1c7   : > { %v1911_v38 = vsel %vm1369_vm4, %v7605_v55, 0.0 }
 0x1c8   : > { %v1912_v34 = vadd.f32 %v1911_v38, %v1910_v8 }
 0x1d0   : > { %v1735_v26 = vpop.f32.mrb[8].mxu0 }
 0x1d1   : > { %v1737_v0 = vpop.f32.mrb[9].mxu0  ;;  %v7613_v12 = vsel %vm1336_vm3, %v1735_v26, %v6016_v46 }
 0x1d2   : > { %v1913_v42 = vsel %vm1369_vm4, %v7613_v12, 0.0 }
 0x1d4   : > { %v1740_v15 = vpop.f32.mrb[10].mxu0 }
 0x1d5   : > { %v1742_v11 = vpop.f32.mrb[11].mxu0  ;;  %v7619_v52 = vsel %vm1336_vm3, %v1740_v15, %v6017_v10  ;;  %v1914_v15 = vadd.f32 %v1913_v42, %v1912_v34 }
 0x1d6   : > { %v1915_v26 = vsel %vm1369_vm4, %v7619_v52, 0.0 }
 0x1d7   : > { %v1916_v9 = vadd.f32 %v1915_v26, %v1914_v15  ;;  %v6029_v26 = vld [vmem:[%s6349_s7 + $0x88] sm:$0xff] }
 0x1dd   : > { %v1745_v28 = vpop.f32.mrb[12].mxu0 }
 0x1de   : > { %v1747_v45 = vpop.f32.mrb[13].mxu0  ;;  %v7625_v53 = vsel %vm1336_vm3, %v1745_v28, %v6018_v58 }
 0x1df   : > { %v6019_v45 = vld [vmem:[%s6349_s7 + $0x38] sm:$0xff]  ;;  %v1917_v28 = vsel %vm1369_vm4, %v7625_v53, 0.0 }
 0x1e1   : > { %v7551_v62 = vpop.f32.mrb[14].mxu0 }
 0x1e2   : > { %v1752_v40 = vpop.f32.mrb[15].mxu0 }
 0x1e3   : > { %v7634_v40 = vsel %vm1336_vm3, %v7551_v62, %v6019_v45 }
 0x1e4   : > { %v1919_v63 = vsel %vm1369_vm4, %v7634_v40, 0.0 }
 0x1ee   : > { %v7560_v21 = vpop.f32.mrb[16].mxu0 }
 0x1ef   : > { %v1757_v20 = vpop.f32.mrb[17].mxu0  ;;  %v7641_v47 = vsel %vm1336_vm3, %v7560_v21, %v6020_v61 }
 0x1f0   : > { %v1918_v20 = vadd.f32 %v1917_v28, %v1916_v9  ;;  %v6030_v9 = vld [vmem:[%s6349_s7 + $0x90] sm:$0xff] }
 0x1f2   : > { %v7562_v17 = vpop.f32.mrb[18].mxu0 }
 0x1f3   : > { %v1762_v57 = vpop.f32.mrb[19].mxu0 }
 0x1f4   : > { %v6021_v57 = vld [vmem:[%s6349_s7 + $0x48] sm:$0xff] }
 0x1f5   : > { %v7648_v62 = vsel %vm1336_vm3, %v7562_v17, %v6021_v57 }
 0x1f6   : > { %v1923_v7 = vsel %vm1369_vm4, %v7648_v62, 0.0 }
 0x200   : > { %v7564_v48 = vpop.f32.mrb[20].mxu0  ;;  %v7566_v60 = vpop.f32.mrb[0].mxu1 }
 0x201   : > { %v1767_v13 = vpop.f32.mrb[21].mxu0  ;;  %v1802_v39 = vpop.f32.mrb[1].mxu1  ;;  %v7655_v21 = vsel %vm1336_vm3, %v7564_v48, %v6022_v16 }
 0x202   : > { %v1921_v13 = vsel %vm1369_vm4, %v7641_v47, 0.0  ;;  %v1920_v39 = vadd.f32 %v1919_v63, %v1918_v20 }
 0x204   : > { %v1922_v35 = vadd.f32 %v1921_v13, %v1920_v39 }
 0x20a   : > { %v7575_v37 = vpop.f32.mrb[22].mxu0  ;;  %v7577_v49 = vpop.f32.mrb[2].mxu1 }
 0x20b   : > { %v1772_v6 = vpop.f32.mrb[23].mxu0  ;;  %v1807_v36 = vpop.f32.mrb[3].mxu1  ;;  %v7709_v61 = vsel %vm1336_vm3, %v7577_v49, %v6030_v9  ;;  %v1993_v9 = vsel %vm1369_vm4, %v7655_v21, -inf }
 0x20c   : > { %v6023_v6 = vld [vmem:[%s6349_s7 + $0x58] sm:$0xff]  ;;  %v1925_v36 = vsel %vm1369_vm4, %v7655_v21, 0.0  ;;  %v1941_v13 = vsel %vm1369_vm4, %v7709_v61, 0.0 }
 0x20d   : > { %v7662_v17 = vsel %vm1336_vm3, %v7575_v37, %v6023_v6 }
 0x20e   : > { %v1927_v48 = vsel %vm1369_vm4, %v7662_v17, 0.0 }
 0x21c   : > { %v7579_v5 = vpop.f32.mrb[24].mxu0  ;;  %v7581_v33 = vpop.f32.mrb[4].mxu1 }
 0x21d   : > { %v1777_v18 = vpop.f32.mrb[25].mxu0  ;;  %v1812_v24 = vpop.f32.mrb[5].mxu1 }
 0x21e   : > { %v1924_v18 = vadd.f32 %v1923_v7, %v1922_v35  ;;  %v6024_v24 = vld [vmem:[%s6349_s7 + $0x60] sm:$0xff] }
 0x21f   : > { %v6032_v35 = vld [vmem:[%s6349_s7 + $0xa0] sm:$0xff] }
 0x226   : > { %v1780_v50 = vpop.f32.mrb[26].mxu0  ;;  %v7585_v25 = vpop.f32.mrb[6].mxu1 }
 0x227   : > { %v1782_v59 = vpop.f32.mrb[27].mxu0  ;;  %v1817_v3 = vpop.f32.mrb[7].mxu1  ;;  %v7723_v49 = vsel %vm1336_vm3, %v7585_v25, %v6032_v35  ;;  %v6034_v25 = vld [vmem:[%s6349_s7 + $0xb0] sm:$0xff] }
 0x228   : > { %v7669_v59 = vsel %vm1336_vm3, %v7579_v5, %v6024_v24  ;;  %v1926_v3 = vadd.f32 %v1925_v36, %v1924_v18  ;;  %v1945_v24 = vsel %vm1369_vm4, %v7723_v49, 0.0 }
 0x229   : > { %v1929_v37 = vsel %vm1369_vm4, %v7669_v59, 0.0 }
 0x238   : > { %v1785_v41 = vpop.f32.mrb[28].mxu0  ;;  %v7591_v51 = vpop.f32.mrb[8].mxu1 }
 0x239   : > { %v1787_v14 = vpop.f32.mrb[29].mxu0  ;;  %v1822_v56 = vpop.f32.mrb[9].mxu1  ;;  %v7681_v4 = vsel %vm1336_vm3, %v1785_v41, %v6026_v32  ;;  %v6028_v41 = vld [vmem:[%s6349_s7 + $0x80] sm:$0xff] }
 0x23a   : > { %v7675_v14 = vsel %vm1336_vm3, %v1780_v50, %v6025_v29  ;;  %v1928_v56 = vadd.f32 %v1927_v48, %v1926_v3  ;;  %v1933_v22 = vsel %vm1369_vm4, %v7681_v4, 0.0  ;;  %v6033_v48 = vld [vmem:[%s6349_s7 + $0xa8] sm:$0xff] }
 0x23b   : > { %v1931_v5 = vsel %vm1369_vm4, %v7675_v14, 0.0 }
 0x23c   : > { %v1930_v44 = vadd.f32 %v1929_v37, %v1928_v56 }
 0x23e   : > { %v1932_v8 = vadd.f32 %v1931_v5, %v1930_v44 }
 0x240   : > { %v1934_v34 = vadd.f32 %v1933_v22, %v1932_v8  ;;  %v6036_v8 = vld [vmem:[%s6349_s7 + $0xc0] sm:$0xff] }
 0x242   : > { %v1790_v31 = vpop.f32.mrb[30].mxu0  ;;  %v7627_v43 = vpop.f32.mrb[10].mxu1 }
 0x243   : > { %v1792_v0 = vpop.f32.mrb[31].mxu0  ;;  %v1827_v11 = vpop.f32.mrb[11].mxu1  ;;  %v7687_v23 = vsel %vm1336_vm3, %v1790_v31, %v6027_v54  ;;  %v7737_v32 = vsel %vm1336_vm3, %v7627_v43, %v6034_v25  ;;  %v6035_v54 = vld [vmem:[%s6349_s7 + $0xb8] sm:$0xff] }
 0x244   : > { %v1935_v42 = vsel %vm1369_vm4, %v7687_v23, 0.0  ;;  %v7702_v0 = vsel %vm1336_vm3, %v7566_v60, %v6029_v26  ;;  %v6031_v60 = vld [vmem:[%s6349_s7 + $0x98] sm:$0xff]  ;;  %v1949_v44 = vsel %vm1369_vm4, %v7737_v32, 0.0  ;;  %v1991_v26 = vsel %vm1369_vm4, %v7648_v62, -inf }
 0x245   : > { %v1936_v31 = vadd.f32 %v1935_v42, %v1934_v34  ;;  %v1939_v28 = vsel %vm1369_vm4, %v7702_v0, 0.0  ;;  %v7716_v39 = vsel %vm1336_vm3, %v7581_v33, %v6031_v60  ;;  %v7730_v33 = vsel %vm1336_vm3, %v7591_v51, %v6033_v48 }
 0x246   : > { %v1943_v7 = vsel %vm1369_vm4, %v7716_v39, 0.0  ;;  %v1947_v56 = vsel %vm1369_vm4, %v7730_v33, 0.0  ;;  %v1977_v42 = vsel %vm1369_vm4, %v7595_v27, -inf }
 0x254   : > { %v1795_v2 = vpop.f32.mrb[32].mxu0  ;;  %v1830_v50 = vpop.f32.mrb[12].mxu1 }
 0x255   : > { %v1797_v46 = vpop.f32.mrb[33].mxu0  ;;  %v1832_v38 = vpop.f32.mrb[13].mxu1  ;;  %v7693_v10 = vsel %vm1336_vm3, %v1795_v2, %v6028_v41  ;;  %v7743_v2 = vsel %vm1336_vm3, %v1830_v50, %v6035_v54  ;;  %v1978_v50 = vsel %vm1369_vm4, %v7589_v19, -inf }
 0x256   : > { %v1937_v58 = vsel %vm1369_vm4, %v7693_v10, 0.0  ;;  %v1951_v22 = vsel %vm1369_vm4, %v7743_v2, 0.0  ;;  %v1983_v46 = vsel %vm1369_vm4, %v7619_v52, -inf }
 0x257   : > { %v1938_v11 = vadd.f32 %v1937_v58, %v1936_v31  ;;  %v1979_v58 = vsel %vm1369_vm4, %v7599_v30, -inf  ;;  %v1985_v31 = vsel %vm1369_vm4, %v7625_v53, -inf }
 0x258   : > { %v1986_v35 = vmax.f32 %v1979_v58, %v1985_v31  ;;  %v2009_v31 = vsel %vm1369_vm4, %v7709_v61, -inf }
 0x259   : > { %v1940_v63 = vadd.f32 %v1939_v28, %v1938_v11  ;;  %v1981_v11 = vsel %vm1369_vm4, %v7613_v12, -inf }
 0x25a   : > { %v1982_v48 = vmax.f32 %v1977_v42, %v1981_v11  ;;  %v1994_v25 = vmax.f32 %v1986_v35, %v1993_v9 }
 0x25b   : > { %v1942_v16 = vadd.f32 %v1941_v13, %v1940_v63  ;;  %v1999_v63 = vsel %vm1369_vm4, %v7675_v14, -inf  ;;  %v6037_v13 = vld [vmem:[%s6349_s7 + $0xc8] sm:$0xff] }
 0x25c   : > { %v1835_v15 = vpop.f32.mrb[14].mxu1 }
 0x25d   : > { %v1837_v45 = vpop.f32.mrb[15].mxu1  ;;  %v1944_v6 = vadd.f32 %v1943_v7, %v1942_v16  ;;  %v7751_v43 = vsel %vm1336_vm3, %v1835_v15, %v6036_v8  ;;  %v1984_v15 = vmax.f32 %v1978_v50, %v1983_v46  ;;  %v1980_v7 = vsel %vm1369_vm4, %v7605_v55, -inf }
 0x25e   : > { %v1987_v45 = vsel %vm1369_vm4, %v7634_v40, -inf  ;;  %v1953_v28 = vsel %vm1369_vm4, %v7751_v43, 0.0 }
 0x25f   : > { %v1946_v3 = vadd.f32 %v1945_v24, %v1944_v6  ;;  %v1989_v6 = vsel %vm1369_vm4, %v7641_v47, -inf }
 0x260   : > { %v1840_v20 = vpop.f32.mrb[16].mxu1 }
 0x261   : > { %v1842_v57 = vpop.f32.mrb[17].mxu1  ;;  %v1948_v5 = vadd.f32 %v1947_v56, %v1946_v3  ;;  %v7775_v60 = vsel %vm1336_vm3, %v1840_v20, %v6037_v13  ;;  %v1988_v3 = vmax.f32 %v1980_v7, %v1987_v45  ;;  %v6038_v56 = vld [vmem:[%s6349_s7 + $0xd0] sm:$0xff]  ;;  %v6041_v7 = vld [vmem:[%s6349_s7 + $0xe8] sm:$0xff] }
 0x262   : > { %v1955_v54 = vsel %vm1369_vm4, %v7775_v60, 0.0 }
 0x263   : > { %v1950_v51 = vadd.f32 %v1949_v44, %v1948_v5  ;;  %v1995_v5 = vsel %vm1369_vm4, %v7662_v17, -inf }
 0x264   : > { %v1996_v58 = vmax.f32 %v1988_v3, %v1995_v5  ;;  %v6042_v5 = vld [vmem:[%s6349_s7 + $0xf0] sm:$0xff] }
 0x265   : > { %v1952_v38 = vadd.f32 %v1951_v22, %v1950_v51  ;;  %v1990_v51 = vmax.f32 %v1982_v48, %v1989_v6  ;;  %v1997_v22 = vsel %vm1369_vm4, %v7669_v59, -inf  ;;  %v2011_v6 = vsel %vm1369_vm4, %v7716_v39, -inf }
 0x267   : > { %v1954_v57 = vadd.f32 %v1953_v28, %v1952_v38  ;;  %v6039_v38 = vld [vmem:[%s6349_s7 + $0xd8] sm:$0xff]  ;;  %v2015_v28 = vsel %vm1369_vm4, %v7730_v33, -inf }
 0x269   : > { %v1845_v36 = vpop.f32.mrb[18].mxu1  ;;  %v1956_v46 = vadd.f32 %v1955_v54, %v1954_v57  ;;  %v2017_v57 = vsel %vm1369_vm4, %v7737_v32, -inf  ;;  %v2019_v54 = vsel %vm1369_vm4, %v7743_v2, -inf }
 0x26a   : > { %v1847_v18 = vpop.f32.mrb[19].mxu1  ;;  %v7785_v20 = vsel %vm1336_vm3, %v1845_v36, %v6038_v56  ;;  %v2007_v36 = vsel %vm1369_vm4, %v7702_v0, -inf }
 0x26b   : > { %v1992_v18 = vmax.f32 %v1984_v15, %v1991_v26  ;;  %v1957_v50 = vsel %vm1369_vm4, %v7785_v20, 0.0  ;;  %v2005_v26 = vsel %vm1369_vm4, %v7693_v10, -inf  ;;  %v1998_v15 = vmax.f32 %v1990_v51, %v1997_v22 }
 0x26c   : > { %v1958_v13 = vadd.f32 %v1957_v50, %v1956_v46  ;;  %v2023_v51 = vsel %vm1369_vm4, %v7775_v60, -inf }
 0x26d   : > { %v1850_v29 = vpop.f32.mrb[20].mxu1  ;;  %v2000_v44 = vmax.f32 %v1992_v18, %v1999_v63 }
 0x26e   : > { %v1852_v37 = vpop.f32.mrb[21].mxu1  ;;  %v7795_v8 = vsel %vm1336_vm3, %v1850_v29, %v6039_v38  ;;  %v6040_v29 = vld [vmem:[%s6349_s7 + $0xe0] sm:$0xff]  ;;  %v2021_v38 = vsel %vm1369_vm4, %v7751_v43, -inf }
 0x26f   : > { %v2001_v37 = vsel %vm1369_vm4, %v7681_v4, -inf  ;;  %v2008_v45 = vmax.f32 %v2000_v44, %v2007_v36  ;;  %v1959_v9 = vsel %vm1369_vm4, %v7795_v8, 0.0  ;;  %v2025_v36 = vsel %vm1369_vm4, %v7785_v20, -inf }
 0x270   : > { %v2002_v42 = vmax.f32 %v1994_v25, %v2001_v37  ;;  %v2013_v37 = vsel %vm1369_vm4, %v7723_v49, -inf  ;;  %v1960_v25 = vadd.f32 %v1959_v9, %v1958_v13  ;;  %v2027_v50 = vsel %vm1369_vm4, %v7795_v8, -inf }
 0x271   : > { %v2016_v56 = vmax.f32 %v2008_v45, %v2015_v28 }
 0x272   : > { %v2010_v18 = vmax.f32 %v2002_v42, %v2009_v31 }
 0x278   : > { %v1855_v41 = vpop.f32.mrb[22].mxu1 }
 0x279   : > { %v1857_v34 = vpop.f32.mrb[23].mxu1  ;;  %v7809_v11 = vsel %vm1336_vm3, %v1855_v41, %v6040_v29  ;;  %v2024_v29 = vmax.f32 %v2016_v56, %v2023_v51 }
 0x27a   : > { %v2003_v34 = vsel %vm1369_vm4, %v7687_v23, -inf  ;;  %v1961_v48 = vsel %vm1369_vm4, %v7809_v11, 0.0  ;;  %v2029_v9 = vsel %vm1369_vm4, %v7809_v11, -inf }
 0x27b   : > { %v2004_v63 = vmax.f32 %v1996_v58, %v2003_v34  ;;  %v1962_v42 = vadd.f32 %v1961_v48, %v1960_v25 }
 0x27c   : > { %v1860_v16 = vpop.f32.mrb[24].mxu1 }
 0x27d   : > { %v1862_v24 = vpop.f32.mrb[25].mxu1  ;;  %v7819_v35 = vsel %vm1336_vm3, %v1860_v16, %v6041_v7  ;;  %v2018_v16 = vmax.f32 %v2010_v18, %v2017_v57  ;;  %v2012_v46 = vmax.f32 %v2004_v63, %v2011_v6  ;;  %v6043_v6 = vld [vmem:[%s6349_s7 + $0xf8] sm:$0xff]  ;;  %s10756_s7 = smov 123  }
 0x27e   : > { %v2006_v24 = vmax.f32 %v1998_v15, %v2005_v26  ;;  %v1963_v22 = vsel %vm1369_vm4, %v7819_v35, 0.0  ;;  %v2031_v58 = vsel %vm1369_vm4, %v7819_v35, -inf }
 0x27f   : > { %v2020_v26 = vmax.f32 %v2012_v46, %v2019_v54  ;;  %v1964_v15 = vadd.f32 %v1963_v22, %v1962_v42  ;;  %v2026_v28 = vmax.f32 %v2018_v16, %v2025_v36  ;;  %v2032_v7 = vmax.f32 %v2024_v29, %v2031_v58 }
 0x280   : > { %v2014_v34 = vmax.f32 %v2006_v24, %v2013_v37 }
 0x281   : > { %v2028_v13 = vmax.f32 %v2020_v26, %v2027_v50 }
 0x282   : > { %v2022_v45 = vmax.f32 %v2014_v34, %v2021_v38 }
 0x284   : > { %v1865_v41 = vpop.f32.mrb[26].mxu1  ;;  %v2030_v37 = vmax.f32 %v2022_v45, %v2029_v9  ;;  %v2125_v45 = vld [vmem:[%s10699_s3] sm:$0x3] }
 0x285   : > { %v1867_v3 = vpop.f32.mrb[27].mxu1  ;;  %v7829_v44 = vsel %vm1336_vm3, %v1865_v41, %v6042_v5 }
 0x286   : > { %v1965_v31 = vsel %vm1369_vm4, %v7829_v44, 0.0  ;;  %v2033_v63 = vsel %vm1369_vm4, %v7829_v44, -inf  ;;  %v2037_v16 = vmax.f32 %v2030_v37, %v2032_v7 }
 0x287   : > { %v1966_v41 = vadd.f32 %v1965_v31, %v1964_v15  ;;  %v2034_v56 = vmax.f32 %v2026_v28, %v2033_v63 }
 0x28b   : > { %v1870_v57 = vpop.f32.mrb[28].mxu1 }
 0x28c   : > { %v7853_v18 = vsel %vm1336_vm3, %v1870_v57, %v6043_v6  ;;  %v1872_v24 = vpop.f32.mrb[29].mxu1  ;;  %vm2662_vm3 = vcmask 1044484  }
 0x28d   : > { %v1967_v48 = vsel %vm1369_vm4, %v7853_v18, 0.0  ;;  %v2035_v3 = vsel %vm1369_vm4, %v7853_v18, -inf }
 0x28e   : > { %v1968_v25 = vadd.f32 %v1967_v48, %v1966_v41  ;;  %v2036_v5 = vmax.f32 %v2028_v13, %v2035_v3 }
 0x290   : > { %v1969_v54 = vrot.slane %v1968_v25, 4  ;;  %v2038_v51 = vmax.f32 %v2034_v56, %v2036_v5  ;;  %v10729_v56 = vlaneseq }
 0x292   : > { %v1970_v22 = vadd.f32 %v1969_v54, %v1968_v25  ;;  %v2039_v46 = vmax.f32 %v2037_v16, %v2038_v51  ;;  %v7868_v25 = vshrl.u32 %v10729_v56, 7 }
 0x294   : > { %v1971_v38 = vrot.slane %v1970_v22, 2  ;;  %v2040_v36 = vrot.slane %v2039_v46, 4  ;;  %10868 = vst [vmem:[#allocation25_spill] sm:$0xff] %v7868_v25 }
 0x296   : > { %v1972_v42 = vadd.f32 %v1971_v38, %v1970_v22  ;;  %v2041_v34 = vmax.f32 %v2039_v46, %v2040_v36 }
 0x298   : > { %v1973_v50 = vrot.slane %v1972_v42, 1  ;;  %v2042_v58 = vrot.slane %v2041_v34, 2 }
 0x29a   : > { %v1974_v31 = vadd.f32 %v1973_v50, %v1972_v42  ;;  %v2043_v26 = vmax.f32 %v2041_v34, %v2042_v58 }
 0x29c   : > { %v2044_v29 = vrot.slane %v2043_v26, 1  ;;  %v1976_v15 = vmul.f32 0.00390625, %v1974_v31 }
 0x29e   : > { %v2045_v57 = vmax.f32 %v2043_v26, %v2044_v29 }
 0x2a0   : > { %v2046_v28 = vsel %vm324_vm0, %v1976_v15, %v2045_v57  ;;  %vm2660_vm0 = vcmask 1043459  }
 0x2a1   : > { %5320 = vmatmul.mubr.msk.f32.vlgmr.msra.gmra.mrb[30].mxu1 %vm1369_vm4, %v2046_v28 }
 0x2a2   : > { %5323 = vmatpush3.msk.msra.mxu1 %vm2130_vm11, %v2125_v45  ;;  %5324 = vmatprep.mubr.msk.f32.mxu1 %vm6174_vm10, %v10867_v1  ;;  %v7871_v1 = vsub.s32 0, %v7868_v25  ;;  %vm2687_vm10 = vcmask 1042432  }
 0x2a4   : > { %10869 = vst [vmem:[#allocation12_spill] sm:$0xff] %v7871_v1 }
 0x374   : > { %v2120_v9 = vpop.f32.mrb[30].mxu1 }
 0x375   : > { %v2124_v63 = vmax.f32 %v2120_v9, 0.0  ;;  %v5321_v13 = vpop.f32.mrb[31].mxu1 }
 0x377   : > { %5325 = vmatmul.mubr.msk.f32.vlgmr.msra.gmra.mrb[32].mxu1 %vm2126_vm12, %v2124_v63  ;;  %vm3662_vm12 = vcmask 1044480  }
 0x44a   : > { %v2200_v7 = vpop.f32.mrb[32].mxu1 }
 0x44b   : > { %v2205_v41 = vrot.slane %v2200_v7, 1  ;;  %v5326_v6 = vpop.f32.mrb[33].mxu1 }
 0x44d   : > { %v2207_v24 = vadd.f32 %v2205_v41, %v2200_v7 }
 0x44f   : > { %v5197_v48 = vmul.f32 -1.442695, %v2207_v24 }
 0x451   : > { %6000 = vpow2.f32 %v5197_v48 }
 0x45b   : > { %v6001_v3 = vpop.eup %6000 }
 0x45c   : > { %v2211_v37 = vadd.f32 1.0, %v6001_v3 }
 0x45e   : > { %6002 = vrcp.f32 %v2211_v37 }
 0x468   : > { %v6003_v5 = vpop.eup %6002 }
 0x469   : > { %v7874_v16 = vrot.slane %v6003_v5, %v7871_v1 }
 0x46b   : > { %v7878_v54 = vmul.f32 %v7874_v16, %v7595_v27  ;;  %v7882_v51 = vmul.f32 %v7874_v16, %v7589_v19  ;;  %v7886_v22 = vmul.f32 %v7874_v16, %v7599_v30  ;;  %v7890_v46 = vmul.f32 %v7874_v16, %v7605_v55 }
 0x46c   : > { %v7898_v19 = vmul.f32 %v7874_v16, %v7613_v12  ;;  %v7902_v27 = vmul.f32 %v7874_v16, %v7619_v52  ;;  %v7910_v42 = vmul.f32 %v7874_v16, %v7625_v53  ;;  %v7914_v12 = vmul.f32 %v7874_v16, %v7634_v40 }
 0x46d   : > { %10870 = vst [vmem:[#allocation11_spill] sm:$0xff] %v7878_v54  ;;  %10871 = vst [vmem:[#allocation18_spill] sm:$0xff] %v7882_v51  ;;  %v2253_v38 = vsel %vm1369_vm4, %v7882_v51, 0.0  ;;  %v2250_v36 = vsel %vm1369_vm4, %v7878_v54, 0.0  ;;  %v2256_v30 = vsel %vm1369_vm4, %v7886_v22, 0.0  ;;  %v2259_v55 = vsel %vm1369_vm4, %v7890_v46, 0.0 }
 0x46e   : > { %10872 = vst [vmem:[#allocation13_spill] sm:$0xff] %v7886_v22  ;;  %10873 = vst [vmem:[#allocation17_spill] sm:$0xff] %v7890_v46  ;;  %2254 = vadd.xlane.f32.xlu0 %v2253_v38  ;;  %2251 = vadd.xlane.f32.xlu1 %v2250_v36  ;;  %v2262_v52 = vsel %vm1369_vm4, %v7898_v19, 0.0  ;;  %v2265_v34 = vsel %vm1369_vm4, %v7902_v27, 0.0  ;;  %v7922_v50 = vmul.f32 %v7874_v16, %v7641_v47  ;;  %v2268_v40 = vsel %vm1369_vm4, %v7910_v42, 0.0 }
 0x46f   : > { %10874 = vst [vmem:[#allocation20_spill] sm:$0xff] %v7898_v19  ;;  %10875 = vst [vmem:[#allocation16_spill] sm:$0xff] %v7902_v27  ;;  %v7926_v53 = vmul.f32 %v7874_v16, %v7648_v62  ;;  %v2271_v58 = vsel %vm1369_vm4, %v7914_v12, 0.0  ;;  %v7934_v31 = vmul.f32 %v7874_v16, %v7655_v21  ;;  %v7938_v47 = vmul.f32 %v7874_v16, %v7662_v17 }
 0x470   : > { %10876 = vst [vmem:[#allocation21_spill] sm:$0xff] %v7910_v42  ;;  %10877 = vst [vmem:[#allocation23_spill] sm:$0xff] %v7914_v12  ;;  %v2274_v62 = vsel %vm1369_vm4, %v7922_v50, 0.0  ;;  %v7946_v29 = vmul.f32 %v7874_v16, %v7669_v59  ;;  %v7950_v21 = vmul.f32 %v7874_v16, %v7675_v14  ;;  %v7958_v57 = vmul.f32 %v7874_v16, %v7681_v4 }
 0x471   : > { %10878 = vst [vmem:[#allocation19_spill] sm:$0xff] %v7922_v50  ;;  %10879 = vst [vmem:[#allocation22_spill] sm:$0xff] %v7926_v53  ;;  %v2277_v26 = vsel %vm1369_vm4, %v7926_v53, 0.0  ;;  %v2280_v17 = vsel %vm1369_vm4, %v7934_v31, 0.0  ;;  %v2283_v15 = vsel %vm1369_vm4, %v7938_v47, 0.0  ;;  %v7962_v59 = vmul.f32 %v7874_v16, %v7687_v23 }
 0x472   : > { %2257 = vadd.xlane.f32.xlu0 %v2256_v30  ;;  %2260 = vadd.xlane.f32.xlu1 %v2259_v55  ;;  %10880 = vst [vmem:[#allocation24_spill] sm:$0xff] %v7934_v31  ;;  %10881 = vst [vmem:[#allocation14_spill] sm:$0xff] %v7938_v47  ;;  %v2286_v14 = vsel %vm1369_vm4, %v7946_v29, 0.0  ;;  %v2289_v45 = vsel %vm1369_vm4, %v7950_v21, 0.0  ;;  %v7970_v28 = vmul.f32 %v7874_v16, %v7693_v10  ;;  %v2292_v23 = vsel %vm1369_vm4, %v7958_v57, 0.0 }
 0x473   : > { %10882 = vst [vmem:[#allocation15_spill] sm:$0xff] %v7946_v29  ;;  %10883 = vst [vmem:[#allocation26_spill] sm:$0xff] %v7950_v21  ;;  %v7974_v4 = vmul.f32 %v7874_v16, %v7702_v0  ;;  %v2295_v9 = vsel %vm1369_vm4, %v7962_v59, 0.0  ;;  %v7982_v63 = vmul.f32 %v7874_v16, %v7709_v61  ;;  %v7986_v10 = vmul.f32 %v7874_v16, %v7716_v39 }
 0x474   : > { %10884 = vst [vmem:[#allocation27_spill] sm:$0xff] %v7958_v57  ;;  %10885 = vst [vmem:[#allocation28_spill] sm:$0xff] %v7962_v59  ;;  %v2298_v0 = vsel %vm1369_vm4, %v7970_v28, 0.0  ;;  %v7994_v7 = vmul.f32 %v7874_v16, %v7723_v49  ;;  %v7998_v61 = vmul.f32 %v7874_v16, %v7730_v33  ;;  %v8006_v6 = vmul.f32 %v7874_v16, %v7737_v32 }
 0x475   : > { %10886 = vst [vmem:[#allocation29_spill] sm:$0xff] %v7970_v28  ;;  %10887 = vst [vmem:[#allocation30_spill] sm:$0xff] %v7974_v4  ;;  %v2301_v13 = vsel %vm1369_vm4, %v7974_v4, 0.0  ;;  %v2304_v39 = vsel %vm1369_vm4, %v7982_v63, 0.0  ;;  %v2307_v41 = vsel %vm1369_vm4, %v7986_v10, 0.0  ;;  %v8010_v49 = vmul.f32 %v7874_v16, %v7743_v2 }
 0x476   : > { %2263 = vadd.xlane.f32.xlu0 %v2262_v52  ;;  %2266 = vadd.xlane.f32.xlu1 %v2265_v34  ;;  %10888 = vst [vmem:[#allocation31_spill] sm:$0xff] %v7982_v63  ;;  %10889 = vst [vmem:[#allocation32_spill] sm:$0xff] %v7986_v10  ;;  %v2310_v33 = vsel %vm1369_vm4, %v7994_v7, 0.0  ;;  %v2313_v24 = vsel %vm1369_vm4, %v7998_v61, 0.0  ;;  %v8018_v48 = vmul.f32 %v7874_v16, %v7751_v43  ;;  %v2316_v2 = vsel %vm1369_vm4, %v8006_v6, 0.0 }
 0x477   : > { %10890 = vst [vmem:[#allocation33_spill] sm:$0xff] %v7994_v7  ;;  %10891 = vst [vmem:[#allocation34_spill] sm:$0xff] %v7998_v61  ;;  %v8022_v32 = vmul.f32 %v7874_v16, %v7775_v60  ;;  %v2319_v3 = vsel %vm1369_vm4, %v8010_v49, 0.0  ;;  %v8030_v37 = vmul.f32 %v7874_v16, %v7785_v20  ;;  %v8034_v43 = vmul.f32 %v7874_v16, %v7795_v8 }
 0x478   : > { %10892 = vst [vmem:[#allocation35_spill] sm:$0xff] %v8006_v6  ;;  %10893 = vst [vmem:[#allocation36_spill] sm:$0xff] %v8010_v49  ;;  %v2322_v60 = vsel %vm1369_vm4, %v8018_v48, 0.0  ;;  %v8042_v38 = vmul.f32 %v7874_v16, %v7809_v11  ;;  %v8046_v20 = vmul.f32 %v7874_v16, %v7819_v35  ;;  %v8054_v30 = vmul.f32 %v7874_v16, %v7829_v44 }
 0x479   : > { %10894 = vst [vmem:[#allocation37_spill] sm:$0xff] %v8018_v48  ;;  %10895 = vst [vmem:[#allocation38_spill] sm:$0xff] %v8022_v32  ;;  %v2325_v5 = vsel %vm1369_vm4, %v8022_v32, 0.0  ;;  %v2328_v8 = vsel %vm1369_vm4, %v8030_v37, 0.0  ;;  %v2331_v36 = vsel %vm1369_vm4, %v8034_v43, 0.0  ;;  %v8058_v11 = vmul.f32 %v7874_v16, %v7853_v18 }
 0x47a   : > { %2269 = vadd.xlane.f32.xlu0 %v2268_v40  ;;  %2272 = vadd.xlane.f32.xlu1 %v2271_v58  ;;  %10896 = vst [vmem:[#allocation39_spill] sm:$0xff] %v8030_v37  ;;  %10897 = vst [vmem:[#allocation40_spill] sm:$0xff] %v8034_v43  ;;  %v2334_v35 = vsel %vm1369_vm4, %v8042_v38, 0.0  ;;  %v2337_v55 = vsel %vm1369_vm4, %v8046_v20, 0.0  ;;  %v2340_v52 = vsel %vm1369_vm4, %v8054_v30, 0.0  ;;  %v2379_v44 = vsel %vm1369_vm4, %v7878_v54, -inf }
 0x47b   : > { %10898 = vst [vmem:[#allocation41_spill] sm:$0xff] %v8042_v38  ;;  %10899 = vst [vmem:[#allocation42_spill] sm:$0xff] %v8046_v20  ;;  %v2343_v34 = vsel %vm1369_vm4, %v8058_v11, 0.0  ;;  %v2382_v18 = vsel %vm1369_vm4, %v7882_v51, -inf  ;;  %v2385_v16 = vsel %vm1369_vm4, %v7886_v22, -inf  ;;  %v2388_v40 = vsel %vm1369_vm4, %v7890_v46, -inf }
 0x47c   : > { %10900 = vst [vmem:[#allocation43_spill] sm:$0xff] %v8054_v30  ;;  %10901 = vst [vmem:[#allocation44_spill] sm:$0xff] %v8058_v11  ;;  %v2391_v58 = vsel %vm1369_vm4, %v7898_v19, -inf }
 0x47e   : > { %2275 = vadd.xlane.f32.xlu0 %v2274_v62  ;;  %2278 = vadd.xlane.f32.xlu1 %v2277_v26  ;;  %v2394_v62 = vsel %vm1369_vm4, %v7902_v27, -inf  ;;  %v2397_v26 = vsel %vm1369_vm4, %v7910_v42, -inf }
 0x482   : > { %2281 = vadd.xlane.f32.xlu0 %v2280_v17  ;;  %2284 = vadd.xlane.f32.xlu1 %v2283_v15  ;;  %v2400_v17 = vsel %vm1369_vm4, %v7914_v12, -inf  ;;  %v2403_v15 = vsel %vm1369_vm4, %v7922_v50, -inf }
 0x486   : > { %2287 = vadd.xlane.f32.xlu0 %v2286_v14  ;;  %2290 = vadd.xlane.f32.xlu1 %v2289_v45  ;;  %v2406_v14 = vsel %vm1369_vm4, %v7926_v53, -inf  ;;  %v2409_v45 = vsel %vm1369_vm4, %v7934_v31, -inf }
 0x48a   : > { %2293 = vadd.xlane.f32.xlu0 %v2292_v23  ;;  %2296 = vadd.xlane.f32.xlu1 %v2295_v9  ;;  %v2412_v23 = vsel %vm1369_vm4, %v7938_v47, -inf  ;;  %v2415_v9 = vsel %vm1369_vm4, %v7946_v29, -inf }
 0x48e   : > { %2299 = vadd.xlane.f32.xlu0 %v2298_v0  ;;  %2302 = vadd.xlane.f32.xlu1 %v2301_v13  ;;  %v2418_v0 = vsel %vm1369_vm4, %v7950_v21, -inf  ;;  %v2421_v13 = vsel %vm1369_vm4, %v7958_v57, -inf }
 0x492   : > { %2305 = vadd.xlane.f32.xlu0 %v2304_v39  ;;  %2308 = vadd.xlane.f32.xlu1 %v2307_v41  ;;  %v2424_v39 = vsel %vm1369_vm4, %v7962_v59, -inf  ;;  %v2427_v41 = vsel %vm1369_vm4, %v7970_v28, -inf }
 0x496   : > { %2311 = vadd.xlane.f32.xlu0 %v2310_v33  ;;  %2314 = vadd.xlane.f32.xlu1 %v2313_v24  ;;  %v2430_v33 = vsel %vm1369_vm4, %v7974_v4, -inf  ;;  %v2433_v24 = vsel %vm1369_vm4, %v7982_v63, -inf }
 0x49a   : > { %2317 = vadd.xlane.f32.xlu0 %v2316_v2  ;;  %2320 = vadd.xlane.f32.xlu1 %v2319_v3  ;;  %v2436_v2 = vsel %vm1369_vm4, %v7986_v10, -inf  ;;  %v2439_v3 = vsel %vm1369_vm4, %v7994_v7, -inf }
 0x49e   : > { %2323 = vadd.xlane.f32.xlu0 %v2322_v60  ;;  %2326 = vadd.xlane.f32.xlu1 %v2325_v5  ;;  %v2442_v60 = vsel %vm1369_vm4, %v7998_v61, -inf  ;;  %v2445_v5 = vsel %vm1369_vm4, %v8006_v6, -inf }
 0x4a2   : > { %2329 = vadd.xlane.f32.xlu0 %v2328_v8  ;;  %2332 = vadd.xlane.f32.xlu1 %v2331_v36  ;;  %v2448_v8 = vsel %vm1369_vm4, %v8010_v49, -inf  ;;  %v2451_v36 = vsel %vm1369_vm4, %v8018_v48, -inf }
 0x4a6   : > { %2335 = vadd.xlane.f32.xlu0 %v2334_v35  ;;  %2338 = vadd.xlane.f32.xlu1 %v2337_v55  ;;  %v2454_v35 = vsel %vm1369_vm4, %v8022_v32, -inf  ;;  %v2457_v55 = vsel %vm1369_vm4, %v8030_v37, -inf }
 0x4aa   : > { %2341 = vadd.xlane.f32.xlu0 %v2340_v52  ;;  %2344 = vadd.xlane.f32.xlu1 %v2343_v34  ;;  %v2460_v52 = vsel %vm1369_vm4, %v8034_v43, -inf  ;;  %v2463_v34 = vsel %vm1369_vm4, %v8042_v38, -inf  ;;  %v10902_v38 = vlaneseq }
 0x4ae   : > { %2380 = vmax.xlane.f32.xlu0 %v2379_v44  ;;  %2383 = vmax.xlane.f32.xlu1 %v2382_v18  ;;  %v2466_v44 = vsel %vm1369_vm4, %v8046_v20, -inf  ;;  %v2469_v18 = vsel %vm1369_vm4, %v8054_v30, -inf  ;;  %v2508_v20 = vand.u32 127, %v10902_v38 }
 0x4b0   : > { %v2509_v48 = vadd.s32 4294967293, %v2508_v20  ;;  %v2514_v32 = vadd.s32 4294967285, %v2508_v20 }
 0x4b2   : > { %2386 = vmax.xlane.f32.xlu0 %v2385_v16  ;;  %2389 = vmax.xlane.f32.xlu1 %v2388_v40  ;;  %v2472_v16 = vsel %vm1369_vm4, %v8058_v11, -inf  ;;  %v8186_v63 = vsub.s32 %v2514_v32, %v7868_v25  ;;  %v8189_v10 = vsub.s32 %v2509_v48, %v7868_v25 }
 0x4b6   : > { %2392 = vmax.xlane.f32.xlu0 %v2391_v58  ;;  %2395 = vmax.xlane.f32.xlu1 %v2394_v62 }
 0x4ba   : > { %2398 = vmax.xlane.f32.xlu0 %v2397_v26  ;;  %2401 = vmax.xlane.f32.xlu1 %v2400_v17 }
 0x4be   : > { %2404 = vmax.xlane.f32.xlu0 %v2403_v15  ;;  %2407 = vmax.xlane.f32.xlu1 %v2406_v14 }
 0x4c2   : > { %2410 = vmax.xlane.f32.xlu0 %v2409_v45  ;;  %2413 = vmax.xlane.f32.xlu1 %v2412_v23 }
 0x4c6   : > { %2416 = vmax.xlane.f32.xlu0 %v2415_v9  ;;  %2419 = vmax.xlane.f32.xlu1 %v2418_v0 }
 0x4ca   : > { %2422 = vmax.xlane.f32.xlu0 %v2421_v13  ;;  %2425 = vmax.xlane.f32.xlu1 %v2424_v39 }
 0x4ce   : > { %2428 = vmax.xlane.f32.xlu0 %v2427_v41  ;;  %2431 = vmax.xlane.f32.xlu1 %v2430_v33 }
 0x4d2   : > { %2434 = vmax.xlane.f32.xlu0 %v2433_v24  ;;  %2437 = vmax.xlane.f32.xlu1 %v2436_v2 }
 0x4d6   : > { %2440 = vmax.xlane.f32.xlu0 %v2439_v3  ;;  %2443 = vmax.xlane.f32.xlu1 %v2442_v60 }
 0x4da   : > { %2446 = vmax.xlane.f32.xlu0 %v2445_v5  ;;  %2449 = vmax.xlane.f32.xlu1 %v2448_v8 }
 0x4de   : > { %2452 = vmax.xlane.f32.xlu0 %v2451_v36  ;;  %2455 = vmax.xlane.f32.xlu1 %v2454_v35 }
 0x4e2   : > { %2458 = vmax.xlane.f32.xlu0 %v2457_v55  ;;  %2461 = vmax.xlane.f32.xlu1 %v2460_v52 }
 0x4e6   : > { %2464 = vmax.xlane.f32.xlu0 %v2463_v34  ;;  %2467 = vmax.xlane.f32.xlu1 %v2466_v44 }
 0x4ea   : > { %2470 = vmax.xlane.f32.xlu0 %v2469_v18  ;;  %2473 = vmax.xlane.f32.xlu1 %v2472_v16 }
 0x4fb   : > { %v2255_v40 = vpop.xlane.xlu0 %2254  ;;  %v2252_v58 = vpop.xlane.xlu1 %2251 }
 0x4fc   : > { %v2348_v28 = vmul.f32 0.03125, %v2255_v40  ;;  %v2347_v38 = vmul.f32 0.03125, %v2252_v58 }
 0x4fe   : > { %v2518_v40 = vrot.slane %v2348_v28, %v8186_v63  ;;  %v2513_v58 = vrot.slane %v2347_v38, %v8189_v10 }
 0x4ff   : > { %v2258_v62 = vpop.xlane.xlu0 %2257  ;;  %v2261_v26 = vpop.xlane.xlu1 %2260 }
 0x500   : > { %v2349_v7 = vmul.f32 0.03125, %v2258_v62  ;;  %v2350_v61 = vmul.f32 0.03125, %v2261_v26 }
 0x502   : > { %v2524_v20 = vrot.slane %v2349_v7, %v8189_v10  ;;  %v2528_v59 = vrot.slane %v2350_v61, %v8186_v63 }
 0x503   : > { %v2264_v17 = vpop.xlane.xlu0 %2263  ;;  %v2267_v15 = vpop.xlane.xlu1 %2266 }
 0x504   : > { %v2351_v32 = vmul.f32 0.03125, %v2264_v17  ;;  %v2352_v62 = vmul.f32 0.03125, %v2267_v15  ;;  %v2529_v61 = vsel %vm2519_vm13, %v2528_v59, %v2524_v20  ;;  %v2929_v59 = vstv %s8195_s28  ;;  %s10912_s28 = smov 124  }
 0x506   : > { %v2533_v21 = vrot.slane %v2351_v32, %v8189_v10  ;;  %v2537_v17 = vrot.slane %v2352_v62, %v8186_v63 }
 0x507   : > { %v2270_v14 = vpop.xlane.xlu0 %2269  ;;  %v2273_v45 = vpop.xlane.xlu1 %2272 }
 0x508   : > { %v2353_v48 = vmul.f32 0.03125, %v2270_v14  ;;  %v2354_v26 = vmul.f32 0.03125, %v2273_v45  ;;  %v2520_v45 = vsel %vm2519_vm13, %v2518_v40, %v2513_v58  ;;  %v8222_v62 = vsel %vm2519_vm13, %v2537_v17, %v2533_v21 }
 0x509   : > { %v8216_v50 = vsel %vm2656_vm14, %v2529_v61, %v2520_v45 }
 0x50a   : > { %v2542_v15 = vrot.slane %v2353_v48, %v8189_v10  ;;  %v2546_v14 = vrot.slane %v2354_v26, %v8186_v63 }
 0x50b   : > { %v2276_v23 = vpop.xlane.xlu0 %2275  ;;  %v2279_v9 = vpop.xlane.xlu1 %2278 }
 0x50c   : > { %v8210_v28 = vmul.f32 0.03125, %v2276_v23  ;;  %v8213_v38 = vmul.f32 0.03125, %v2279_v9  ;;  %v8225_v48 = vsel %vm2519_vm13, %v2546_v14, %v2542_v15 }
 0x50e   : > { %v2551_v26 = vrot.slane %v8210_v28, %v8189_v10 }
 0x50f   : > { %v8132_v0 = vpop.xlane.xlu0 %2281  ;;  %v8134_v13 = vpop.xlane.xlu1 %2284 }
 0x510   : > { %v8228_v23 = vmul.f32 0.03125, %v8132_v0  ;;  %v8231_v9 = vmul.f32 0.03125, %v8134_v13 }
 0x512   : > { %v10904_v28 = vrot.slane %v8228_v23, %v8189_v10 }
 0x513   : > { %v8136_v39 = vpop.xlane.xlu0 %2287  ;;  %v8138_v41 = vpop.xlane.xlu1 %2290 }
 0x514   : > { %v8236_v40 = vmul.f32 0.03125, %v8136_v39  ;;  %v8245_v13 = vmul.f32 0.03125, %v8138_v41 }
 0x517   : > { %v8140_v33 = vpop.xlane.xlu0 %2293  ;;  %v8142_v24 = vpop.xlane.xlu1 %2296 }
 0x51b   : > { %v8144_v2 = vpop.xlane.xlu0 %2299  ;;  %v8146_v3 = vpop.xlane.xlu1 %2302 }
 0x51f   : > { %v8148_v60 = vpop.xlane.xlu0 %2305  ;;  %v8150_v5 = vpop.xlane.xlu1 %2308 }
 0x520   : > { %v2365_v20 = vmul.f32 0.03125, %v8148_v60 }
 0x523   : > { %v8152_v8 = vpop.xlane.xlu0 %2311  ;;  %v8154_v36 = vpop.xlane.xlu1 %2314 }
 0x527   : > { %v8156_v35 = vpop.xlane.xlu0 %2317  ;;  %v8158_v55 = vpop.xlane.xlu1 %2320 }
 0x52b   : > { %v8160_v52 = vpop.xlane.xlu0 %2323  ;;  %v8162_v34 = vpop.xlane.xlu1 %2326 }
 0x52f   : > { %v8164_v44 = vpop.xlane.xlu0 %2329  ;;  %v8166_v18 = vpop.xlane.xlu1 %2332 }
 0x533   : > { %v8168_v16 = vpop.xlane.xlu0 %2335  ;;  %v8170_v56 = vpop.xlane.xlu1 %2338 }
 0x537   : > { %v8172_v30 = vpop.xlane.xlu0 %2341  ;;  %v8174_v11 = vpop.xlane.xlu1 %2344 }
 0x53b   : > { %v8177_v37 = vpop.xlane.xlu0 %2380  ;;  %v8179_v43 = vpop.xlane.xlu1 %2383 }
 0x53f   : > { %v8181_v6 = vpop.xlane.xlu0 %2386  ;;  %v8183_v49 = vpop.xlane.xlu1 %2389 }
 0x540   : > { %v2740_v21 = vrot.slane %v8181_v6, %v8189_v10  ;;  %v2744_v58 = vrot.slane %v8183_v49, %v8186_v63  ;;  %v2731_v6 = vrot.slane %v8177_v37, %v8189_v10  ;;  %v2735_v49 = vrot.slane %v8179_v43, %v8186_v63 }
 0x542   : > { %v2745_v43 = vsel %vm2519_vm13, %v2744_v58, %v2740_v21  ;;  %v2736_v21 = vsel %vm2519_vm13, %v2735_v49, %v2731_v6 }
 0x543   : > { %v8191_v4 = vpop.xlane.xlu0 %2392  ;;  %v8193_v57 = vpop.xlane.xlu1 %2395 }
 0x544   : > { %v2749_v61 = vrot.slane %v8191_v4, %v8189_v10  ;;  %v2753_v39 = vrot.slane %v8193_v57, %v8186_v63  ;;  %v8271_v4 = vmul.f32 0.03125, %v8140_v33  ;;  %v2364_v33 = vmul.f32 0.03125, %v8146_v3 }
 0x545   : > { %v2367_v3 = vmul.f32 0.03125, %v8152_v8  ;;  %v2369_v8 = vmul.f32 0.03125, %v8156_v35 }
 0x547   : > { %v2399_v29 = vpop.xlane.xlu0 %2398  ;;  %v2402_v7 = vpop.xlane.xlu1 %2401 }
 0x548   : > { %v2758_v14 = vrot.slane %v2399_v29, %v8189_v10  ;;  %v2762_v41 = vrot.slane %v2402_v7, %v8186_v63 }
 0x54a   : > { %v2763_v58 = vsel %vm2519_vm13, %v2762_v41, %v2758_v14 }
 0x54b   : > { %v2405_v31 = vpop.xlane.xlu0 %2404  ;;  %v2408_v47 = vpop.xlane.xlu1 %2407 }
 0x54c   : > { %v2767_v57 = vrot.slane %v2405_v31, %v8189_v10  ;;  %v2771_v32 = vrot.slane %v2408_v47, %v8186_v63  ;;  %v8274_v31 = vmul.f32 0.03125, %v8144_v2  ;;  %v2754_v47 = vsel %vm2519_vm13, %v2753_v39, %v2749_v61 }
 0x54d   : > { %v2872_v2 = vsel %vm2656_vm14, %v2745_v43, %v2736_v21  ;;  %v8286_v61 = vmul.f32 0.03125, %v8142_v24  ;;  %v2366_v39 = vmul.f32 0.03125, %v8150_v5  ;;  %v2368_v24 = vmul.f32 0.03125, %v8154_v36 }
 0x54e   : > { %v2772_v0 = vsel %vm2519_vm13, %v2771_v32, %v2767_v57  ;;  %v2873_v6 = vsel %vm2658_vm15, %v2754_v47, %v2872_v2  ;;  %v2587_v14 = vrot.slane %v8274_v31, %v8189_v10  ;;  %v2591_v43 = vrot.slane %v2364_v33, %v8186_v63 }
 0x54f   : > { %v2411_v17 = vpop.xlane.xlu0 %2410  ;;  %v2414_v15 = vpop.xlane.xlu1 %2413  ;;  %v2874_v60 = vsel %vm2660_vm0, %v2763_v58, %v2873_v6  ;;  %v2600_v31 = vrot.slane %v2366_v39, %v8186_v63  ;;  %v2370_v47 = vmul.f32 0.03125, %v8158_v55  ;;  %v2605_v21 = vrot.slane %v2367_v3, %v8189_v10 }
 0x550   : > { %v2776_v29 = vrot.slane %v2411_v17, %v8189_v10  ;;  %v2780_v7 = vrot.slane %v2414_v15, %v8186_v63  ;;  %v2875_v5 = vsel %vm2662_vm3, %v2772_v0, %v2874_v60  ;;  %v2371_v58 = vmul.f32 0.03125, %v8160_v52 }
 0x551   : > { %v2609_v33 = vrot.slane %v2368_v24, %v8186_v63  ;;  %v2373_v55 = vmul.f32 0.03125, %v8164_v44  ;;  %v2374_v2 = vmul.f32 0.03125, %v8166_v18  ;;  %v2614_v6 = vrot.slane %v2369_v8, %v8189_v10 }
 0x552   : > { %v2781_v49 = vsel %vm2519_vm13, %v2780_v7, %v2776_v29  ;;  %v2596_v29 = vrot.slane %v2365_v20, %v8189_v10  ;;  %v2375_v52 = vmul.f32 0.03125, %v8168_v16  ;;  %v2618_v3 = vrot.slane %v2370_v47, %v8186_v63 }
 0x553   : > { %v2417_v37 = vpop.xlane.xlu0 %2416  ;;  %v2420_v45 = vpop.xlane.xlu1 %2419  ;;  %v2876_v7 = vsel %vm2664_vm5, %v2781_v49, %v2875_v5  ;;  %v2377_v60 = vmul.f32 0.03125, %v8172_v30  ;;  %v2378_v44 = vmul.f32 0.03125, %v8174_v11  ;;  %v2582_v16 = vrot.slane %v8286_v61, %v8186_v63 }
 0x554   : > { %v2785_v17 = vrot.slane %v2417_v37, %v8189_v10  ;;  %v2789_v15 = vrot.slane %v2420_v45, %v8186_v63  ;;  %v2601_v30 = vsel %vm2519_vm13, %v2600_v31, %v2596_v29  ;;  %v2632_v11 = vrot.slane %v2373_v55, %v8189_v10 }
 0x555   : > { %v2636_v5 = vrot.slane %v2374_v2, %v8186_v63  ;;  %v2610_v61 = vsel %vm2519_vm13, %v2609_v33, %v2605_v21  ;;  %v2592_v29 = vsel %vm2519_vm13, %v2591_v43, %v2587_v14  ;;  %v2650_v31 = vrot.slane %v2377_v60, %v8189_v10 }
 0x556   : > { %v2790_v41 = vsel %vm2519_vm13, %v2789_v15, %v2785_v17  ;;  %v2372_v17 = vmul.f32 0.03125, %v8162_v34  ;;  %v2376_v34 = vmul.f32 0.03125, %v8170_v56  ;;  %v2623_v56 = vrot.slane %v2371_v58, %v8189_v10 }
 0x557   : > { %v2423_v32 = vpop.xlane.xlu0 %2422  ;;  %v2426_v45 = vpop.xlane.xlu1 %2425  ;;  %v2877_v36 = vsel %vm2666_vm6, %v2790_v41, %v2876_v7  ;;  %v2578_v41 = vrot.slane %v8271_v4, %v8189_v10  ;;  %v2619_v7 = vsel %vm2519_vm13, %v2618_v3, %v2614_v6  ;;  %v2654_v47 = vrot.slane %v2378_v44, %v8186_v63 }
 0x558   : > { %v2794_v57 = vrot.slane %v2423_v32, %v8189_v10  ;;  %v2798_v37 = vrot.slane %v2426_v45, %v8186_v63  ;;  %v2627_v32 = vrot.slane %v2372_v17, %v8186_v63  ;;  %v2670_v43 = vsel %vm2656_vm14, %v2601_v30, %v2592_v29 }
 0x559   : > { %v10906_v33 = vrot.slane %v8236_v40, %v8189_v10  ;;  %v10907_v55 = vrot.slane %v8245_v13, %v8186_v63  ;;  %v10909_v30 = vstv %s8201_s16 }
 0x55a   : > { %v2799_v0 = vsel %vm2519_vm13, %v2798_v37, %v2794_v57  ;;  %v2641_v57 = vrot.slane %v2375_v52, %v8189_v10  ;;  %v2645_v37 = vrot.slane %v2376_v34, %v8186_v63  ;;  %v2628_v21 = vsel %vm2519_vm13, %v2627_v32, %v2623_v56 }
 0x55b   : > { %v2878_v20 = vsel %vm2668_vm7, %v2799_v0, %v2877_v36  ;;  %v8312_v15 = vpop.xlane.xlu0 %2428  ;;  %v8314_v35 = vpop.xlane.xlu1 %2431  ;;  %v2659_v36 = vsel %vm2658_vm15, %v8222_v62, %v8216_v50  ;;  %v10903_v0 = vrot.slane %v8213_v38, %v8186_v63  ;;  %v10905_v38 = vrot.slane %v8231_v9, %v8186_v63 }
 0x55c   : > { %v2888_v39 = vsel %vm2679_vm8, 0.0, %v2878_v20  ;;  %v2661_v50 = vsel %vm2660_vm0, %v8225_v48, %v2659_v36  ;;  %v2637_v20 = vsel %vm2519_vm13, %v2636_v5, %v2632_v11  ;;  %v2574_v48 = vsel %vm2519_vm13, %v10907_v55, %v10906_v33 }
 0x55d   : > { %v8324_v49 = vsel %vm2682_vm9, %v2888_v39, 0.0  ;;  %v2556_v14 = vsel %vm2519_vm13, %v10903_v0, %v2551_v26  ;;  %v2565_v62 = vsel %vm2519_vm13, %v10905_v38, %v10904_v28  ;;  %v2671_v26 = vsel %vm2658_vm15, %v2610_v61, %v2670_v43 }
 0x55e   : > { %v2894_v18 = vrot.slane %v8324_v49, 5  ;;  %v2672_v2 = vsel %vm2660_vm0, %v2619_v7, %v2671_v26  ;;  %v2646_v23 = vsel %vm2519_vm13, %v2645_v37, %v2641_v57  ;;  %v10908_v9 = vstv %s8199_s10 }
 0x55f   : > { %v8336_v45 = vpop.xlane.xlu0 %2434  ;;  %v8338_v24 = vpop.xlane.xlu1 %2437  ;;  %v2663_v6 = vsel %vm2662_vm3, %v2556_v14, %v2661_v50  ;;  %v2583_v52 = vsel %vm2519_vm13, %v2582_v16, %v2578_v41  ;;  %v2673_v40 = vsel %vm2662_vm3, %v2628_v21, %v2672_v2  ;;  %v2655_v34 = vsel %vm2519_vm13, %v2654_v47, %v2650_v31 }
 0x560   : > { %v8346_v4 = vsel %vm2687_vm10, 0.0, %v2894_v18  ;;  %v2665_v13 = vsel %vm2664_vm5, %v2565_v62, %v2663_v6  ;;  %v2674_v3 = vsel %vm2664_vm5, %v2637_v20, %v2673_v40  ;;  %v3013_v5 = vstv %s8358_s23  ;;  %s5224_s23 = sld [smem:[#allocation6 + $0x701]] }
 0x561   : > { %v2930_v8 = vmul.f32 %v2929_v59, %v8346_v4  ;;  %v2958_v39 = vmul.f32 %v10908_v9, %v8346_v4  ;;  %v2667_v56 = vsel %vm2666_vm6, %v2574_v48, %v2665_v13  ;;  %v2675_v41 = vsel %vm2666_vm6, %v2646_v23, %v2674_v3 }
 0x562   : > { %v2669_v16 = vsel %vm2668_vm7, %v2583_v52, %v2667_v56  ;;  %v2676_v32 = vsel %vm2668_vm7, %v2655_v34, %v2675_v41  ;;  %v2986_v11 = vmul.f32 %v10909_v30, %v8346_v4  ;;  %v3014_v29 = vmul.f32 %v3013_v5, %v8346_v4 }
 0x563   : > { %v8372_v58 = vpop.xlane.xlu0 %2440  ;;  %2934 = vrot.lane.b32.xlu1 %v2930_v8, %s10760_s24  ;;  %v2444_v17 = vpop.xlane.xlu1 %2443  ;;  %v2680_v37 = vsel %vm2679_vm8, 0.0, %v2669_v16  ;;  %v2681_v8 = vsel %vm2679_vm8, 0.0, %v2676_v32  ;;  %v2812_v7 = vrot.slane %v8336_v45, %v8189_v10  ;;  %v2816_v31 = vrot.slane %v8338_v24, %v8186_v63 }
 0x564   : > { %v3041_v47 = vstv %s8402_s29  ;;  %v2683_v36 = vsel %vm2682_vm9, %v2680_v37, 0.0  ;;  %v8430_v0 = vsel %vm2682_vm9, %v2681_v8, 0.0  ;;  %v2821_v14 = vrot.slane %v8372_v58, %v8189_v10  ;;  %s5228_s29 = sld [smem:[#allocation6 + $0x881]] }
 0x565   : > { %v2825_v43 = vrot.slane %v2444_v17, %v8186_v63  ;;  %v2803_v24 = vrot.slane %v8312_v15, %v8189_v10  ;;  %v2807_v50 = vrot.slane %v8314_v35, %v8186_v63  ;;  %v3042_v62 = vmul.f32 %v3041_v47, %v8346_v4 }
 0x566   : > { %v3069_v26 = vstv %s8414_s12  ;;  %v10766_v20 = vrot.slane %v8430_v0, 5  ;;  %v2817_v15 = vsel %vm2519_vm13, %v2816_v31, %v2812_v7  ;;  %v2688_v55 = vrot.slane %v2683_v36, 5  ;;  %s5230_s12 = sld [smem:[#allocation6 + $0x901]] }
 0x567   : > { %v2447_v60 = vpop.xlane.xlu0 %2446  ;;  %2962 = vrot.lane.b32.xlu1 %v2958_v39, %s10762_s11  ;;  %v2450_v44 = vpop.xlane.xlu1 %2449  ;;  %v2826_v48 = vsel %vm2519_vm13, %v2825_v43, %v2821_v14  ;;  %v2808_v9 = vsel %vm2519_vm13, %v2807_v50, %v2803_v24  ;;  %v3070_v13 = vmul.f32 %v3069_v26, %v8346_v4  ;;  %v2943_v36 = vstv %s8454_s26  ;;  %s5238_s26 = sld [smem:[#allocation6 + $0xb01]] }
 0x568   : > { %v2830_v28 = vrot.slane %v2447_v60, %v8189_v10  ;;  %v2834_v38 = vrot.slane %v2450_v44, %v8186_v63  ;;  %v2879_v40 = vsel %vm2656_vm14, %v2817_v15, %v2808_v9  ;;  %v8470_v3 = vsel %vm2687_vm10, %v2688_v55, %v10766_v20 }
 0x569   : > { %v2880_v60 = vsel %vm2658_vm15, %v2826_v48, %v2879_v40  ;;  %v8559_v9 = vstv %s5216_s0  ;;  %s5222_s0 = sld [smem:[#allocation6 + $0x681]] }
 0x56a   : > { %v2835_v39 = vsel %vm2519_vm13, %v2834_v38, %v2830_v28  ;;  %v3181_v40 = vmul.f32 %v8559_v9, %v8346_v4 }
 0x56b   : > { %v2453_v61 = vpop.xlane.xlu0 %2452  ;;  %2990 = vrot.lane.b32.xlu1 %v2986_v11, %s10764_s27  ;;  %v2456_v57 = vpop.xlane.xlu1 %2455  ;;  %v2881_v56 = vsel %vm2660_vm0, %v2835_v39, %v2880_v60 }
 0x56c   : > { %v2839_v58 = vrot.slane %v2453_v61, %v8189_v10  ;;  %v2843_v17 = vrot.slane %v2456_v57, %v8186_v63  ;;  %v2915_v57 = vstv %s8442_s8  ;;  %s5234_s8 = sld [smem:[#allocation6 + $0xa01]] }
 0x56d   : > { %v2917_v8 = vmul.f32 %v2915_v57, %v8470_v3 }
 0x56e   : > { %v2844_v34 = vsel %vm2519_vm13, %v2843_v17, %v2839_v58 }
 0x56f   : > { %v2459_v21 = vpop.xlane.xlu0 %2458  ;;  %3018 = vrot.lane.b32.xlu1 %v3014_v29, %s10758_s30  ;;  %v2462_v45 = vpop.xlane.xlu1 %2461  ;;  %v2882_v30 = vsel %vm2662_vm3, %v2844_v34, %v2881_v56  ;;  %v8488_v29 = vsel %vm2687_vm10, 0.0, %v2688_v55  ;;  %s5214_s30 = sld [smem:[#allocation6 + $0x481]]  ;;  %v3187_v56 = vrot.slane %v3181_v40, 1 }
 0x570   : > { %v2848_v35 = vrot.slane %v2459_v21, %v8189_v10  ;;  %v2852_v33 = vrot.slane %v2462_v45, %v8186_v63  ;;  %v2944_v43 = vmul.f32 %v2943_v36, %v8488_v29  ;;  %v2971_v45 = vstv %s8474_s15  ;;  %s5246_s15 = sld [smem:[#allocation6 + $0xd81]] }
 0x571   : > { %v2972_v50 = vmul.f32 %v2971_v45, %v8488_v29 }
 0x572   : > { %v2853_v44 = vsel %vm2519_vm13, %v2852_v33, %v2848_v35 }
 0x573   : > { %v2465_v2 = vpop.xlane.xlu0 %2464  ;;  %3046 = vrot.lane.b32.xlu1 %v3042_v62, %s10756_s7  ;;  %v2468_v23 = vpop.xlane.xlu1 %2467  ;;  %v2883_v37 = vsel %vm2664_vm5, %v2853_v44, %v2882_v30  ;;  %s8506_s7 = sld [smem:[#allocation6 + $0x280]]  ;;  %v10914_v62 = vstv %s8201_s16  ;;  %s5220_s16 = sld [smem:[#allocation6 + $0x601]] }
 0x574   : > { %v2857_v6 = vrot.slane %v2465_v2, %v8189_v10  ;;  %v2861_v52 = vrot.slane %v2468_v23, %v8186_v63 }
 0x575   : > { %v8542_v35 = vstv %s5214_s30  ;;  %s10917_s30 = smov 122  }
 0x576   : > { %v2862_v41 = vsel %vm2519_vm13, %v2861_v52, %v2857_v6  ;;  %v3139_v48 = vmul.f32 %v8542_v35, %v8346_v4 }
 0x577   : > { %v2471_v16 = vpop.xlane.xlu0 %2470  ;;  %3074 = vrot.lane.b32.xlu1 %v3070_v13, %s10754_s17  ;;  %v2474_v32 = vpop.xlane.xlu1 %2473  ;;  %v2884_v7 = vsel %vm2666_vm6, %v2862_v41, %v2883_v37  ;;  %s8493_s17 = sld [smem:[#allocation6 + $0x200]]  ;;  %v2916_v37 = vmul.f32 %v2915_v57, %v8488_v29 }
 0x578   : > { %v2866_v11 = vrot.slane %v2471_v16, %v8189_v10  ;;  %v2870_v61 = vrot.slane %v2474_v32, %v8186_v63  ;;  %v3145_v52 = vrot.slane %v3139_v48, 1 }
 0x579   : > { %v3027_v17 = vstv %s8506_s7  ;;  %v8590_v16 = vstv %s5220_s16  ;;  %s5244_s7 = sld [smem:[#allocation6 + $0xd01]] }
 0x57a   : > { %v2871_v31 = vsel %vm2519_vm13, %v2870_v61, %v2866_v11  ;;  %s5248_s16 = sld [smem:[#allocation6 + $0xe01]]  ;;  %vm3949_vm13 = vcmask 1043456  }
 0x57b   : > { %v2885_v63 = vsel %vm2668_vm7, %v2871_v31, %v2884_v7  ;;  %2922 = vrot.lane.b32.xlu1 %v2917_v8, %s10760_s24  ;;  %s8523_s24 = sld [smem:[#allocation6 + $0x300]]  ;;  %v8607_v8 = vstv %s5222_s0  ;;  %s5250_s0 = sld [smem:[#allocation6 + $0xe81]] }
 0x57c   : > { %v2889_v10 = vsel %vm2679_vm8, 0.0, %v2885_v63  ;;  %v3307_v57 = vmul.f32 %v8607_v8, %v8346_v4 }
 0x57d   : > { %v8499_v14 = vsel %vm2682_vm9, %v2889_v10, 0.0  ;;  %v2999_v38 = vstv %s8493_s17  ;;  %s5236_s17 = sld [smem:[#allocation6 + $0xa81]] }
 0x57e   : > { %v2895_v21 = vrot.slane %v8499_v14, 5  ;;  %v3000_v49 = vmul.f32 %v2999_v38, %v8488_v29  ;;  %v3001_v40 = vmul.f32 %v2999_v38, %v8470_v3 }
 0x57f   : > { %2948 = vrot.lane.b32.xlu1 %v2944_v43, %s10762_s11  ;;  %s10910_s11 = smov 127   ;;  %v2945_v43 = vmul.f32 %v2943_v36, %v8470_v3 }
 0x580   : > { %v8514_v24 = vsel %vm2687_vm10, %v2894_v18, %v2895_v21  ;;  %v10911_v18 = vstv %s8199_s10  ;;  %s10915_s10 = smov 123  }
 0x581   : > { %v2931_v28 = vmul.f32 %v2929_v59, %v8514_v24  ;;  %v2959_v58 = vmul.f32 %v10911_v18, %v8514_v24  ;;  %v3028_v59 = vmul.f32 %v3027_v17, %v8488_v29  ;;  %v2987_v15 = vmul.f32 %v10914_v62, %v8514_v24 }
 0x582   : > { %v3055_v33 = vstv %s8523_s24  ;;  %v8547_v55 = vmul.f32 %v8542_v35, %v8514_v24  ;;  %v3015_v23 = vmul.f32 %v3013_v5, %v8514_v24  ;;  %v8564_v6 = vmul.f32 %v8559_v9, %v8514_v24  ;;  %s5242_s24 = sld [smem:[#allocation6 + $0xc81]] }
 0x583   : > { %2976 = vrot.lane.b32.xlu1 %v2972_v50, %s10764_s27  ;;  %2936 = vrot.lane.b32.xlu0 %v2931_v28, %s10910_s11  ;;  %s5218_s27 = sld [smem:[#allocation6 + $0x581]]  ;;  %v3056_v2 = vmul.f32 %v3055_v33, %v8488_v29  ;;  %v3043_v5 = vmul.f32 %v3041_v47, %v8514_v24  ;;  %v3071_v41 = vmul.f32 %v3069_v26, %v8514_v24  ;;  %v8624_v50 = vstv %s5224_s23 }
 0x584   : > { %v3146_v39 = vrot.slane %v8547_v55, 1  ;;  %v3188_v60 = vrot.slane %v8564_v6, 1  ;;  %v8598_v11 = vmul.f32 %v8590_v16, %v8514_v24  ;;  %v3265_v26 = vmul.f32 %v8590_v16, %v8346_v4  ;;  %s5252_s23 = sld [smem:[#allocation6 + $0xf01]] }
 0x585   : > { %v8615_v63 = vmul.f32 %v8607_v8, %v8514_v24  ;;  %v8632_v18 = vmul.f32 %v8624_v50, %v8514_v24  ;;  %v3349_v36 = vmul.f32 %v8624_v50, %v8346_v4  ;;  %v8641_v62 = vstv %s5228_s29  ;;  %s5256_s29 = sld [smem:[#allocation6 + $0x1081]] }
 0x586   : > { %v3147_v13 = vsel %vm490_vm1, %v3145_v52, %v3146_v39  ;;  %v3189_v32 = vsel %vm490_vm1, %v3187_v56, %v3188_v60  ;;  %v3272_v31 = vrot.slane %v8598_v11, 1  ;;  %v3271_v10 = vrot.slane %v3265_v26, 1 }
 0x587   : > { %3004 = vrot.lane.b32.xlu1 %v3000_v49, %s10912_s28  ;;  %2964 = vrot.lane.b32.xlu0 %v2959_v58, %s10913_s1  ;;  %v3314_v49 = vrot.slane %v8615_v63, 1  ;;  %v3313_v58 = vrot.slane %v3307_v57, 1  ;;  %v3356_v48 = vrot.slane %v8632_v18, 1  ;;  %v8655_v52 = vstv %s5230_s12  ;;  %s5258_s12 = sld [smem:[#allocation6 + $0x1101]] }
 0x588   : > { %v3273_v28 = vsel %vm490_vm1, %v3271_v10, %v3272_v31  ;;  %v3467_v38 = vmul.f32 %v8655_v52, %v8346_v4  ;;  %v3057_v57 = vmul.f32 %v3055_v33, %v8470_v3 }
 0x589   : > { %v8573_v34 = vstv %s5218_s27  ;;  %s5232_s27 = sld [smem:[#allocation6 + $0x981]] }
 0x58a   : > { %v8581_v44 = vmul.f32 %v8573_v34, %v8514_v24  ;;  %v3223_v47 = vmul.f32 %v8573_v34, %v8346_v4 }
 0x58b   : > { %3032 = vrot.lane.b32.xlu1 %v3028_v59, %s10915_s10  ;;  %2992 = vrot.lane.b32.xlu0 %v2987_v15, %s10916_s2  ;;  %v2973_v59 = vmul.f32 %v2971_v45, %v8470_v3  ;;  %v3315_v15 = vsel %vm490_vm1, %v3313_v58, %v3314_v49  ;;  %v3425_v45 = vmul.f32 %v8641_v62, %v8346_v4 }
 0x58c   : > { %v3230_v30 = vrot.slane %v8581_v44, 1  ;;  %v3229_v61 = vrot.slane %v3223_v47, 1  ;;  %v8671_v47 = vsel %vm2687_vm10, %v2895_v21, 0.0 }
 0x58d   : > { %v3267_v55 = vmul.f32 %v8590_v16, %v8671_v47  ;;  %v3469_v63 = vmul.f32 %v8655_v52, %v8671_v47 }
 0x58e   : > { %v3231_v7 = vsel %vm490_vm1, %v3229_v61, %v3230_v30 }
 0x58f   : > { %3060 = vrot.lane.b32.xlu1 %v3056_v2, %s10917_s30  ;;  %3020 = vrot.lane.b32.xlu0 %v3015_v23, %s10912_s28  ;;  %v8649_v2 = vmul.f32 %v8641_v62, %v8514_v24  ;;  %v3355_v23 = vrot.slane %v3349_v36, 1  ;;  %v8681_v26 = vstv %s5232_s27  ;;  %v3183_v36 = vmul.f32 %v8559_v9, %v8671_v47  ;;  %s5260_s27 = sld [smem:[#allocation6 + $0x1181]] }
 0x590   : > { %v8688_v21 = vmul.f32 %v8681_v26, %v8514_v24 }
 0x591   : > { %v3432_v56 = vrot.slane %v8649_v2, 2 }
 0x593   : > { %3150 = vrot.lane.b32.xlu1 %v3147_v13, %s10910_s11  ;;  %3048 = vrot.lane.b32.xlu0 %v3043_v5, %s10915_s10  ;;  %v8662_v5 = vmul.f32 %v8655_v52, %v8514_v24  ;;  %v3357_v13 = vsel %vm490_vm1, %v3355_v23, %v3356_v48 }
 0x595   : > { %v3474_v61 = vrot.slane %v8662_v5, 2 }
 0x597   : > { %3192 = vrot.lane.b32.xlu1 %v3189_v32, %s10913_s1  ;;  %3076 = vrot.lane.b32.xlu0 %v3071_v41, %s10917_s30  ;;  %v3431_v41 = vrot.slane %v3425_v45, 2  ;;  %v3029_v32 = vmul.f32 %v3027_v17, %v8470_v3  ;;  %v3473_v17 = vrot.slane %v3467_v38, 2  ;;  %v3225_v45 = vmul.f32 %v8573_v34, %v8671_v47 }
 0x598   : > { %v3190_v38 = vrot.slane %v3183_v36, 1  ;;  %v8754_v36 = vstv %s5242_s24  ;;  %s5270_s24 = sld [smem:[#allocation6 + $0x1481]] }
 0x599   : > { %v3433_v14 = vsel %vm667_vm2, %v3431_v41, %v3432_v56  ;;  %v3475_v10 = vsel %vm667_vm2, %v3473_v17, %v3474_v61 }
 0x59b   : > { %3234 = vrot.lane.b32.xlu1 %v3231_v7, %s10916_s2  ;;  %2920 = vrot.lane.b32.xlu0 %v2916_v37, %s10910_s11  ;;  %v3141_v37 = vmul.f32 %v8542_v35, %v8671_v47  ;;  %v3509_v7 = vmul.f32 %v8681_v26, %v8346_v4  ;;  %v3516_v35 = vrot.slane %v8688_v21, 2 }
 0x59f   : > { %3276 = vrot.lane.b32.xlu1 %v3273_v28, %s10912_s28  ;;  %2950 = vrot.lane.b32.xlu0 %v2945_v43, %s10913_s1  ;;  %v8702_v43 = vstv %s5234_s8  ;;  %v3148_v28 = vrot.slane %v3141_v37, 1  ;;  %v3191_v37 = vsel %vm490_vm1, %v3188_v60, %v3190_v38  ;;  %s5262_s8 = sld [smem:[#allocation6 + $0x1201]] }
 0x5a0   : > { %v8707_v58 = vmul.f32 %v8702_v43, %v8514_v24  ;;  %v3551_v33 = vmul.f32 %v8702_v43, %v8346_v4 }
 0x5a2   : > { %v3557_v41 = vrot.slane %v3551_v33, 2  ;;  %v3309_v33 = vmul.f32 %v8607_v8, %v8671_v47 }
 0x5a3   : > { %3318 = vrot.lane.b32.xlu1 %v3315_v15, %s10915_s10  ;;  %2978 = vrot.lane.b32.xlu0 %v2973_v59, %s10916_s2  ;;  %v3515_v59 = vrot.slane %v3509_v7, 2  ;;  %v8715_v15 = vstv %s5236_s17  ;;  %v3232_v7 = vrot.slane %v3225_v45, 1  ;;  %s5264_s17 = sld [smem:[#allocation6 + $0x1281]] }
 0x5a4   : > { %v8719_v23 = vmul.f32 %v8715_v15, %v8514_v24  ;;  %v3593_v34 = vmul.f32 %v8715_v15, %v8346_v4  ;;  %v3316_v38 = vrot.slane %v3309_v33, 1 }
 0x5a5   : > { %v3517_v9 = vsel %vm667_vm2, %v3515_v59, %v3516_v35  ;;  %v3233_v60 = vsel %vm490_vm1, %v3230_v30, %v3232_v7  ;;  %v8764_v59 = vmul.f32 %v8754_v36, %v8514_v24 }
 0x5a6   : > { %v3600_v17 = vrot.slane %v8719_v23, 2  ;;  %v3599_v16 = vrot.slane %v3593_v34, 2  ;;  %v3351_v34 = vmul.f32 %v8624_v50, %v8671_v47  ;;  %v3317_v7 = vsel %vm490_vm1, %v3314_v49, %v3316_v38 }
 0x5a7   : > { %3360 = vrot.lane.b32.xlu1 %v3357_v13, %s10917_s30  ;;  %3006 = vrot.lane.b32.xlu0 %v3001_v40, %s10912_s28  ;;  %v3149_v40 = vsel %vm490_vm1, %v3146_v39, %v3148_v28  ;;  %v3558_v13 = vrot.slane %v8707_v58, 2  ;;  %v3274_v28 = vrot.slane %v3267_v55, 1  ;;  %v3719_v8 = vrot.slane %v8764_v59, 3 }
 0x5a8   : > { %v3601_v6 = vsel %vm667_vm2, %v3599_v16, %v3600_v17  ;;  %v3358_v16 = vrot.slane %v3351_v34, 1  ;;  %v3476_v38 = vrot.slane %v3469_v63, 2  ;;  %v8830_v34 = vstv %s5250_s0  ;;  %s5278_s0 = sld [smem:[#allocation6 + $0x1681]] }
 0x5a9   : > { %v3559_v39 = vsel %vm667_vm2, %v3557_v41, %v3558_v13  ;;  %v3275_v30 = vsel %vm490_vm1, %v3272_v31, %v3274_v28  ;;  %v8791_v31 = vstv %s5246_s15  ;;  %s5274_s15 = sld [smem:[#allocation6 + $0x1581]] }
 0x5aa   : > { %v3359_v33 = vsel %vm490_vm1, %v3356_v48, %v3358_v16 }
 0x5ab   : > { %3436 = vrot.lane.b32.xlu1 %v3433_v14, %s10910_s11  ;;  %3034 = vrot.lane.b32.xlu0 %v3029_v32, %s10915_s10  ;;  %v8734_v32 = vstv %s5238_s26  ;;  %s5266_s26 = sld [smem:[#allocation6 + $0x1301]] }
 0x5ac   : > { %v8738_v14 = vmul.f32 %v8734_v32, %v8514_v24 }
 0x5af   : > { %3478 = vrot.lane.b32.xlu1 %v3475_v10, %s10913_s1  ;;  %3062 = vrot.lane.b32.xlu0 %v3057_v57, %s10917_s30  ;;  %v3635_v10 = vmul.f32 %v8734_v32, %v8346_v4  ;;  %v3642_v57 = vrot.slane %v8738_v14, 2  ;;  %v9033_v20 = vstv %s5274_s15  ;;  %s5229_s15 = sld [smem:[#allocation6 + $0x900]] }
 0x5b1   : > { %v3641_v45 = vrot.slane %v3635_v10, 2 }
 0x5b3   : > { %3520 = vrot.lane.b32.xlu1 %v3517_v9, %s10916_s2  ;;  %3152 = vrot.lane.b32.xlu0 %v3149_v40, %s10910_s11  ;;  %v3712_v9 = vmul.f32 %v8754_v36, %v8346_v4  ;;  %v3643_v44 = vsel %vm667_vm2, %v3641_v45, %v3642_v57  ;;  %v8778_v40 = vstv %s5244_s7  ;;  %s5272_s7 = sld [smem:[#allocation6 + $0x1501]] }
 0x5b4   : > { %v8783_v41 = vmul.f32 %v8778_v40, %v8514_v24  ;;  %v3754_v11 = vmul.f32 %v8778_v40, %v8346_v4 }
 0x5b5   : > { %v3718_v55 = vrot.slane %v3712_v9, 3 }
 0x5b6   : > { %v3761_v10 = vrot.slane %v8783_v41, 3  ;;  %v3760_v28 = vrot.slane %v3754_v11, 3  ;;  %v3511_v11 = vmul.f32 %v8681_v26, %v8671_v47 }
 0x5b7   : > { %3562 = vrot.lane.b32.xlu1 %v3559_v39, %s10912_s28  ;;  %3194 = vrot.lane.b32.xlu0 %v3191_v37, %s10913_s1  ;;  %v8795_v39 = vmul.f32 %v8791_v31, %v8514_v24  ;;  %v3427_v37 = vmul.f32 %v8641_v62, %v8671_v47  ;;  %v3720_v50 = vsel %vm3662_vm12, %v3718_v55, %v3719_v8 }
 0x5b8   : > { %v3796_v62 = vmul.f32 %v8791_v31, %v8346_v4  ;;  %v3762_v49 = vsel %vm3662_vm12, %v3760_v28, %v3761_v10  ;;  %v8840_v55 = vmul.f32 %v8830_v34, %v8514_v24  ;;  %v3518_v16 = vrot.slane %v3511_v11, 2 }
 0x5b9   : > { %v3803_v45 = vrot.slane %v8795_v39, 3  ;;  %v3434_v9 = vrot.slane %v3427_v37, 2 }
 0x5ba   : > { %v3802_v52 = vrot.slane %v3796_v62, 3  ;;  %v3887_v26 = vrot.slane %v8840_v55, 3  ;;  %v3553_v62 = vmul.f32 %v8702_v43, %v8671_v47 }
 0x5bb   : > { %3604 = vrot.lane.b32.xlu1 %v3601_v6, %s10915_s10  ;;  %3236 = vrot.lane.b32.xlu0 %v3233_v60, %s10916_s2  ;;  %v8810_v6 = vstv %s5248_s16  ;;  %v3435_v48 = vsel %vm667_vm2, %v3432_v56, %v3434_v9  ;;  %v3477_v56 = vsel %vm667_vm2, %v3474_v61, %v3476_v38  ;;  %v8867_v61 = vstv %s5256_s29  ;;  %s5276_s16 = sld [smem:[#allocation6 + $0x1601]]  ;;  %s5213_s29 = sld [smem:[#allocation6 + $0x480]] }
 0x5bc   : > { %v8814_v60 = vmul.f32 %v8810_v6, %v8514_v24  ;;  %v3804_v18 = vsel %vm3662_vm12, %v3802_v52, %v3803_v45  ;;  %v3519_v9 = vsel %vm667_vm2, %v3516_v35, %v3518_v16  ;;  %v3560_v52 = vrot.slane %v3553_v62, 2 }
 0x5bd   : > { %v3637_v35 = vmul.f32 %v8734_v32, %v8671_v47 }
 0x5bf   : > { %3646 = vrot.lane.b32.xlu1 %v3643_v44, %s10917_s30  ;;  %3278 = vrot.lane.b32.xlu0 %v3275_v30, %s10912_s28  ;;  %v3838_v44 = vmul.f32 %v8810_v6, %v8346_v4  ;;  %v3845_v30 = vrot.slane %v8814_v60, 3  ;;  %v3644_v58 = vrot.slane %v3637_v35, 2 }
 0x5c1   : > { %v3844_v37 = vrot.slane %v3838_v44, 3 }
 0x5c3   : > { %3723 = vrot.lane.b32.xlu1 %v3720_v50, %s10910_s11  ;;  %3320 = vrot.lane.b32.xlu0 %v3317_v7, %s10915_s10  ;;  %v3880_v50 = vmul.f32 %v8830_v34, %v8346_v4  ;;  %v3846_v2 = vsel %vm3662_vm12, %v3844_v37, %v3845_v30  ;;  %v8854_v7 = vstv %s5252_s23  ;;  %v3561_v37 = vsel %vm667_vm2, %v3558_v13, %v3560_v52  ;;  %s5280_s23 = sld [smem:[#allocation6 + $0x1701]] }
 0x5c4   : > { %v8859_v28 = vmul.f32 %v8854_v7, %v8514_v24  ;;  %v3922_v5 = vmul.f32 %v8854_v7, %v8346_v4 }
 0x5c5   : > { %v3886_v63 = vrot.slane %v3880_v50, 3 }
 0x5c6   : > { %v3929_v44 = vrot.slane %v8859_v28, 3  ;;  %v3928_v38 = vrot.slane %v3922_v5, 3 }
 0x5c7   : > { %3765 = vrot.lane.b32.xlu1 %v3762_v49, %s10913_s1  ;;  %3362 = vrot.lane.b32.xlu0 %v3359_v33, %s10917_s30  ;;  %v8871_v49 = vmul.f32 %v8867_v61, %v8514_v24  ;;  %v3595_v33 = vmul.f32 %v8715_v15, %v8671_v47  ;;  %v3888_v43 = vsel %vm3662_vm12, %v3886_v63, %v3887_v26  ;;  %v8910_v63 = vstv %s5260_s27  ;;  %s5217_s27 = sld [smem:[#allocation6 + $0x580]] }
 0x5c8   : > { %v3999_v15 = vmul.f32 %v8867_v61, %v8346_v4  ;;  %v3930_v11 = vsel %vm3662_vm12, %v3928_v38, %v3929_v44  ;;  %v4083_v52 = vmul.f32 %v8910_v63, %v8346_v4  ;;  %v8928_v38 = vstv %s5262_s8  ;;  %s5219_s8 = sld [smem:[#allocation6 + $0x600]] }
 0x5c9   : > { %v4006_v50 = vrot.slane %v8871_v49, 4 }
 0x5ca   : > { %v4005_v16 = vrot.slane %v3999_v15, 4  ;;  %v3645_v15 = vsel %vm667_vm2, %v3642_v57, %v3644_v58 }
 0x5cb   : > { %3807 = vrot.lane.b32.xlu1 %v3804_v18, %s10916_s2  ;;  %3438 = vrot.lane.b32.xlu0 %v3435_v48, %s10910_s11  ;;  %v8886_v18 = vstv %s5258_s12  ;;  %s5215_s12 = sld [smem:[#allocation6 + $0x500]] }
 0x5cc   : > { %v8892_v21 = vmul.f32 %v8886_v18, %v8514_v24  ;;  %v4007_v13 = vsel %vm3949_vm13, %v4005_v16, %v4006_v50  ;;  %v8949_v16 = vstv %s5264_s17  ;;  %s5221_s17 = sld [smem:[#allocation6 + $0x680]] }
 0x5cd   : > { %v8956_v57 = vmul.f32 %v8949_v16, %v8514_v24  ;;  %v9169_v19 = vstv %s5217_s27  ;;  %s5241_s27 = sld [smem:[#allocation6 + $0xc80]] }
 0x5ce   : > { %v4048_v62 = vrot.slane %v8892_v21, 4  ;;  %v3202_v27 = vmul.f32 %v9169_v19, %v8488_v29  ;;  %v9192_v22 = vstv %s5219_s8  ;;  %s5243_s8 = sld [smem:[#allocation6 + $0xd00]] }
 0x5cf   : > { %3849 = vrot.lane.b32.xlu1 %v3846_v2, %s10912_s28  ;;  %3480 = vrot.lane.b32.xlu0 %v3477_v56, %s10913_s1  ;;  %v3602_v2 = vrot.slane %v3595_v33, 2  ;;  %v4041_v56 = vmul.f32 %v8886_v18, %v8346_v4  ;;  %v8920_v33 = vmul.f32 %v8910_v63, %v8514_v24  ;;  %v10768_v59 = vrot.slane %v8956_v57, 4 }
 0x5d0   : > { %v3244_v46 = vmul.f32 %v9192_v22, %v8488_v29 }
 0x5d1   : > { %v3603_v5 = vsel %vm667_vm2, %v3600_v17, %v3602_v2  ;;  %v10772_v35 = vrot.slane %v8920_v33, 4  ;;  %v4089_v2 = vrot.slane %v4083_v52, 4 }
 0x5d2   : > { %v9215_v54 = vstv %s5221_s17  ;;  %s9446_s17 = sld [smem:[#allocation6 + $0x1]] }
 0x5d3   : > { %3891 = vrot.lane.b32.xlu1 %v3888_v43, %s10915_s10  ;;  %3522 = vrot.lane.b32.xlu0 %v3519_v9, %s10916_s2  ;;  %v3714_v43 = vmul.f32 %v8754_v36, %v8671_v47  ;;  %v4047_v9 = vrot.slane %v4041_v56, 4  ;;  %v8937_v36 = vmul.f32 %v8928_v38, %v8514_v24  ;;  %v4125_v56 = vmul.f32 %v8928_v38, %v8346_v4 }
 0x5d5   : > { %v8888_v48 = vpop.permute.xlu1 %2934  ;;  %v4049_v17 = vsel %vm3949_vm13, %v4047_v9, %v4048_v62  ;;  %v10769_v14 = vrot.slane %v8937_v36, 4  ;;  %v4167_v9 = vmul.f32 %v8949_v16, %v8346_v4  ;;  %v4131_v52 = vrot.slane %v4125_v56, 4 }
 0x5d7   : > { %3933 = vrot.lane.b32.xlu1 %v3930_v11, %s10917_s30  ;;  %3564 = vrot.lane.b32.xlu0 %v3561_v37, %s10912_s28  ;;  %v3721_v11 = vrot.slane %v3714_v43, 3  ;;  %v3756_v37 = vmul.f32 %v8778_v40, %v8671_v47  ;;  %v4091_v40 = vsel %vm3949_vm13, %v4089_v2, %v10772_v35  ;;  %v3798_v43 = vmul.f32 %v8791_v31, %v8671_v47 }
 0x5d8   : > { %v4133_v31 = vsel %vm3949_vm13, %v4131_v52, %v10769_v14  ;;  %v3840_v2 = vmul.f32 %v8810_v6, %v8671_v47  ;;  %v4173_v56 = vrot.slane %v4167_v9, 4  ;;  %v3882_v52 = vmul.f32 %v8830_v34, %v8671_v47 }
 0x5d9   : > { %v8907_v32 = vpop.permute.xlu1 %2962  ;;  %v3722_v58 = vsel %vm3662_vm12, %v3719_v8, %v3721_v11 }
 0x5da   : > { %v4175_v41 = vsel %vm3949_vm13, %v4173_v56, %v10768_v59  ;;  %v9012_v56 = vstv %s5272_s7  ;;  %v9054_v59 = vstv %s5276_s16  ;;  %s5227_s7 = sld [smem:[#allocation6 + $0x880]] }
 0x5db   : > { %4010 = vrot.lane.b32.xlu1 %v4007_v13, %s10910_s11  ;;  %3606 = vrot.lane.b32.xlu0 %v3603_v5, %s10915_s10  ;;  %v3763_v5 = vrot.slane %v3756_v37, 3  ;;  %v3805_v37 = vrot.slane %v3798_v43, 3  ;;  %v3847_v43 = vrot.slane %v3840_v2, 3  ;;  %v9021_v34 = vmul.f32 %v9012_v56, %v8514_v24  ;;  %s5231_s16 = sld [smem:[#allocation6 + $0x980]] }
 0x5dd   : > { %v8930_v23 = vpop.permute.xlu1 %2990  ;;  %v3764_v11 = vsel %vm3662_vm12, %v3761_v10, %v3763_v5  ;;  %v8997_v5 = vstv %s5270_s24  ;;  %v3806_v6 = vsel %vm3662_vm12, %v3803_v45, %v3805_v37  ;;  %v3848_v37 = vsel %vm3662_vm12, %v3845_v30, %v3847_v43  ;;  %s5284_s24 = sld [smem:[#allocation6 + $0x1881]] }
 0x5de   : > { %v9004_v9 = vmul.f32 %v8997_v5, %v8514_v24  ;;  %v10771_v30 = vrot.slane %v9021_v34, 5  ;;  %v9040_v43 = vmul.f32 %v9033_v20, %v8514_v24 }
 0x5df   : > { %4052 = vrot.lane.b32.xlu1 %v4049_v17, %s10913_s1  ;;  %3648 = vrot.lane.b32.xlu0 %v3645_v15, %s10917_s30  ;;  %v8970_v17 = vstv %s5266_s26  ;;  %s5223_s26 = sld [smem:[#allocation6 + $0x700]] }
 0x5e0   : > { %v8977_v8 = vmul.f32 %v8970_v17, %v8514_v24  ;;  %v10770_v2 = vrot.slane %v9004_v9, 5  ;;  %v10774_v55 = vrot.slane %v9040_v43, 5 }
 0x5e1   : > { %v8951_v13 = vpop.permute.xlu1 %3018 }
 0x5e2   : > { %v10767_v10 = vrot.slane %v8977_v8, 4 }
 0x5e3   : > { %4094 = vrot.lane.b32.xlu1 %v4091_v40, %s10916_s2  ;;  %3725 = vrot.lane.b32.xlu0 %v3722_v58, %s10910_s11  ;;  %v4209_v40 = vmul.f32 %v8970_v17, %v8346_v4 }
 0x5e5   : > { %v8972_v15 = vpop.permute.xlu1 %3046  ;;  %v9238_v25 = vstv %s5223_s26  ;;  %s9450_s26 = sld [smem:[#allocation6]] }
 0x5e6   : > { %v3328_v1 = vmul.f32 %v9238_v25, %v8488_v29 }
 0x5e7   : > { %4136 = vrot.lane.b32.xlu1 %v4133_v31, %s10912_s28  ;;  %3767 = vrot.lane.b32.xlu0 %v3764_v11, %s10913_s1  ;;  %v4215_v31 = vrot.slane %v4209_v40, 4  ;;  %v4285_v11 = vmul.f32 %v8997_v5, %v8346_v4  ;;  %v3889_v40 = vrot.slane %v3882_v52, 3 }
 0x5e9   : > { %v8991_v58 = vpop.permute.xlu1 %3074  ;;  %v4217_v45 = vsel %vm3949_vm13, %v4215_v31, %v10767_v10  ;;  %v4327_v31 = vmul.f32 %v9012_v56, %v8346_v4  ;;  %v3890_v52 = vsel %vm3662_vm12, %v3887_v26, %v3889_v40  ;;  %v4369_v10 = vmul.f32 %v9033_v20, %v8346_v4 }
 0x5ea   : > { %v9063_v26 = vmul.f32 %v9054_v59, %v8514_v24 }
 0x5eb   : > { %4178 = vrot.lane.b32.xlu1 %v4175_v41, %s10915_s10  ;;  %3809 = vrot.lane.b32.xlu0 %v3806_v6, %s10916_s2  ;;  %v3924_v41 = vmul.f32 %v8854_v7, %v8671_v47  ;;  %v4291_v6 = vrot.slane %v4285_v11, 5 }
 0x5ed   : > { %v9014_v39 = vpop.permute.xlu1 %2922  ;;  %v4293_v7 = vsel %vm2687_vm10, %v4291_v6, %v10770_v2  ;;  %v3931_v11 = vrot.slane %v3924_v41, 3  ;;  %v9077_v2 = vstv %s5278_s0  ;;  %s5233_s0 = sld [smem:[#allocation6 + $0xa00]] }
 0x5ef   : > { %4220 = vrot.lane.b32.xlu1 %v4217_v45, %s10917_s30  ;;  %3851 = vrot.lane.b32.xlu0 %v3848_v37, %s10912_s28  ;;  %v4001_v45 = vmul.f32 %v8867_v61, %v8671_v47  ;;  %v4333_v37 = vrot.slane %v4327_v31, 5  ;;  %v3932_v40 = vsel %vm3662_vm12, %v3929_v44, %v3931_v11  ;;  %v4043_v31 = vmul.f32 %v8886_v18, %v8671_v47 }
 0x5f0   : > { %v10773_v44 = vrot.slane %v9063_v26, 5  ;;  %v9086_v18 = vmul.f32 %v9077_v2, %v8514_v24 }
 0x5f1   : > { %v9035_v60 = vpop.permute.xlu1 %2948  ;;  %v4335_v61 = vsel %vm2687_vm10, %v4333_v37, %v10771_v30  ;;  %v4008_v41 = vrot.slane %v4001_v45, 4  ;;  %v4050_v45 = vrot.slane %v4043_v31, 4  ;;  %v4453_v30 = vmul.f32 %v9077_v2, %v8346_v4 }
 0x5f3   : > { %4296 = vrot.lane.b32.xlu1 %v4293_v7, %s10910_s11  ;;  %3893 = vrot.lane.b32.xlu0 %v3890_v52, %s10915_s10  ;;  %v4411_v7 = vmul.f32 %v9054_v59, %v8346_v4  ;;  %v4375_v52 = vrot.slane %v4369_v10, 5  ;;  %v4009_v10 = vsel %vm3949_vm13, %v4006_v50, %v4008_v41  ;;  %v10778_v50 = vrot.slane %v9086_v18, 5 }
 0x5f4   : > { %v4051_v41 = vsel %vm3949_vm13, %v4048_v62, %v4050_v45 }
 0x5f5   : > { %v9056_v14 = vpop.permute.xlu0 %2936  ;;  %v9058_v6 = vpop.permute.xlu1 %2976  ;;  %v4377_v11 = vsel %vm2687_vm10, %v4375_v52, %v10774_v55 }
 0x5f7   : > { %4338 = vrot.lane.b32.xlu1 %v4335_v61, %s10913_s1  ;;  %3935 = vrot.lane.b32.xlu0 %v3932_v40, %s10917_s30  ;;  %v4085_v61 = vmul.f32 %v8910_v63, %v8671_v47  ;;  %v4417_v40 = vrot.slane %v4411_v7, 5  ;;  %v9108_v63 = vstv %s5280_s23  ;;  %s5235_s23 = sld [smem:[#allocation6 + $0xa80]] }
 0x5f8   : > { %v9115_v7 = vmul.f32 %v9108_v63, %v8514_v24 }
 0x5f9   : > { %v9079_v37 = vpop.permute.xlu0 %2964  ;;  %v9081_v28 = vpop.permute.xlu1 %3004  ;;  %v4419_v49 = vsel %vm2687_vm10, %v4417_v40, %v10773_v44  ;;  %v4092_v31 = vrot.slane %v4085_v61, 4  ;;  %v4495_v40 = vmul.f32 %v9108_v63, %v8346_v4  ;;  %v9123_v44 = vstv %s5213_s29  ;;  %s5237_s29 = sld [smem:[#allocation6 + $0xb00]] }
 0x5fa   : > { %v9131_v45 = vmul.f32 %v9123_v44, %v8470_v3  ;;  %v10918_v61 = vrot.slane %v8920_v33, 4  ;;  %v3118_v42 = vmul.f32 %v9123_v44, %v8488_v29 }
 0x5fb   : > { %4380 = vrot.lane.b32.xlu1 %v4377_v11, %s10916_s2  ;;  %4012 = vrot.lane.b32.xlu0 %v4009_v10, %s10910_s11  ;;  %v4127_v11 = vmul.f32 %v8928_v38, %v8671_v47  ;;  %v4459_v10 = vrot.slane %v4453_v30, 5  ;;  %v4169_v38 = vmul.f32 %v8949_v16, %v8671_v47  ;;  %v4501_v53 = vrot.slane %v4495_v40, 5 }
 0x5fc   : > { %v9146_v16 = vstv %s5215_s12  ;;  %v10920_v40 = vrot.slane %v8937_v36, 4  ;;  %s5286_s12 = sld [smem:[#allocation6 + $0x1901]] }
 0x5fd   : > { %v9100_v35 = vpop.permute.xlu0 %2992  ;;  %v9102_v52 = vpop.permute.xlu1 %3032  ;;  %v4461_v30 = vsel %vm2687_vm10, %v4459_v10, %v10778_v50  ;;  %v4134_v55 = vrot.slane %v4127_v11, 4  ;;  %v3124_v50 = vrot.slane %v3118_v42, 1  ;;  %v3160_v33 = vmul.f32 %v9146_v16, %v8488_v29 }
 0x5ff   : > { %4422 = vrot.lane.b32.xlu1 %v4419_v49, %s10912_s28  ;;  %4054 = vrot.lane.b32.xlu0 %v4051_v41, %s10913_s1  ;;  %v4093_v49 = vsel %vm3949_vm13, %v10918_v61, %v4092_v31  ;;  %v10780_v41 = vrot.slane %v9115_v7, 5  ;;  %v9155_v31 = vmul.f32 %v9146_v16, %v8470_v3  ;;  %v4176_v61 = vrot.slane %v4169_v38, 4 }
 0x600   : > { %v10922_v38 = vrot.slane %v9131_v45, 1 }
 0x601   : > { %v9125_v21 = vpop.permute.xlu0 %3020  ;;  %v9127_v62 = vpop.permute.xlu1 %3060  ;;  %v4503_v11 = vsel %vm2687_vm10, %v4501_v53, %v10780_v41  ;;  %v4287_v41 = vmul.f32 %v8997_v5, %v8671_v47  ;;  %v9201_v5 = vmul.f32 %v9192_v22, %v8470_v3 }
 0x602   : > { %v3126_v42 = vsel %vm490_vm1, %v3124_v50, %v10922_v38  ;;  %v10925_v38 = vrot.slane %v8977_v8, 4  ;;  %v3250_v8 = vrot.slane %v3244_v46, 1 }
 0x603   : > { %4464 = vrot.lane.b32.xlu1 %v4461_v30, %s10915_s10  ;;  %4096 = vrot.lane.b32.xlu0 %v4093_v49, %s10916_s2  ;;  %v4135_v30 = vsel %vm3949_vm13, %v10920_v40, %v4134_v55  ;;  %v4211_v49 = vmul.f32 %v8970_v17, %v8671_v47  ;;  %v9178_v17 = vmul.f32 %v9169_v19, %v8470_v3  ;;  %v3166_v55 = vrot.slane %v3160_v33, 1 }
 0x605   : > { %v9148_v12 = vpop.permute.xlu0 %3048  ;;  %v9150_v10 = vpop.permute.xlu1 %3150 }
 0x606   : > { %10919 = vst [vmem:[#allocation45_spill] sm:$0xff] %v9148_v12 }
 0x607   : > { %4506 = vrot.lane.b32.xlu1 %v4503_v11, %s10917_s30  ;;  %4138 = vrot.lane.b32.xlu0 %v4135_v30, %s10912_s28  ;;  %v10923_v11 = vrot.slane %v8956_v57, 4  ;;  %v4218_v30 = vrot.slane %v4211_v49, 4  ;;  %v10924_v49 = vrot.slane %v9155_v31, 1 }
 0x609   : > { %v9171_v53 = vpop.permute.xlu0 %3076  ;;  %v9173_v36 = vpop.permute.xlu1 %3192  ;;  %v4177_v40 = vsel %vm3949_vm13, %v10923_v11, %v4176_v61  ;;  %v3168_v33 = vsel %vm490_vm1, %v3166_v55, %v10924_v49  ;;  %v4294_v11 = vrot.slane %v4287_v41, 5  ;;  %v3208_v61 = vrot.slane %v3202_v27, 1 }
 0x60a   : > { %10921 = vst [vmem:[#allocation46_spill] sm:$0xff] %v9171_v53  ;;  %v9224_v41 = vmul.f32 %v9215_v54, %v8470_v3 }
 0x60b   : > { %3129 = vrot.lane.b32.xlu1 %v3126_v42, %s10910_s11  ;;  %4180 = vrot.lane.b32.xlu0 %v4177_v40, %s10915_s10  ;;  %v4219_v42 = vsel %vm3949_vm13, %v10925_v38, %v4218_v30  ;;  %v4329_v40 = vmul.f32 %v9012_v56, %v8671_v47  ;;  %v10927_v56 = vrot.slane %v9178_v17, 1  ;;  %v10928_v30 = vrot.slane %v9004_v9, 5 }
 0x60c   : > { %v4371_v38 = vmul.f32 %v9033_v20, %v8671_v47  ;;  %v9247_v20 = vmul.f32 %v9238_v25, %v8470_v3 }
 0x60d   : > { %v9194_v50 = vpop.permute.xlu0 %2920  ;;  %v9196_v57 = vpop.permute.xlu1 %3234  ;;  %v3210_v27 = vsel %vm490_vm1, %v3208_v61, %v10927_v56  ;;  %v4295_v49 = vsel %vm2687_vm10, %v10928_v30, %v4294_v11 }
 0x60e   : > { %v4378_v30 = vrot.slane %v4371_v38, 5  ;;  %v9284_v38 = vstv %s5227_s7  ;;  %s9489_s7 = sld [smem:[#allocation6 + $0xe00]] }
 0x60f   : > { %3171 = vrot.lane.b32.xlu1 %v3168_v33, %s10913_s1  ;;  %4222 = vrot.lane.b32.xlu0 %v4219_v42, %s10917_s30  ;;  %v4336_v33 = vrot.slane %v4329_v40, 5  ;;  %v3286_v42 = vmul.f32 %v9215_v54, %v8488_v29  ;;  %v10930_v40 = vrot.slane %v9201_v5, 1 }
 0x611   : > { %v9217_v51 = vpop.permute.xlu0 %2950  ;;  %v9219_v55 = vpop.permute.xlu1 %3276  ;;  %v3252_v56 = vsel %vm490_vm1, %v3250_v8, %v10930_v40  ;;  %v3292_v11 = vrot.slane %v3286_v42, 1  ;;  %v10934_v40 = vrot.slane %v9040_v43, 5  ;;  %v10935_v43 = vrot.slane %v8430_v0, 5 }
 0x612   : > { %10926 = vst [vmem:[#allocation47_spill] sm:$0xff] %v9219_v55 }
 0x613   : > { %3213 = vrot.lane.b32.xlu1 %v3210_v27, %s10916_s2  ;;  %4298 = vrot.lane.b32.xlu0 %v4295_v49, %s10910_s11  ;;  %v10931_v27 = vrot.slane %v9021_v34, 5  ;;  %v4413_v49 = vmul.f32 %v9054_v59, %v8671_v47  ;;  %v10933_v34 = vrot.slane %v9224_v41, 1  ;;  %v9269_v59 = vstv %s5284_s24  ;;  %s5245_s24 = sld [smem:[#allocation6 + $0xd80]] }
 0x614   : > { %v4379_v42 = vsel %vm2687_vm10, %v10934_v40, %v4378_v30  ;;  %v9289_v30 = vsel %vm2687_vm10, %v10935_v43, 0.0 }
 0x615   : > { %v9240_v61 = vpop.permute.xlu0 %2978  ;;  %v9242_v9 = vpop.permute.xlu1 %3318  ;;  %v4337_v46 = vsel %vm2687_vm10, %v10931_v27, %v4336_v33  ;;  %v3294_v33 = vsel %vm490_vm1, %v3292_v11, %v10933_v34  ;;  %v9276_v27 = vmul.f32 %v9269_v59, %v8514_v24  ;;  %v3334_v11 = vrot.slane %v3328_v1, 1 }
 0x616   : > { %10929 = vst [vmem:[#allocation48_spill] sm:$0xff] %v9242_v9  ;;  %v4571_v34 = vmul.f32 %v9269_v59, %v8346_v4  ;;  %v9300_v1 = vmul.f32 %v9284_v38, %v8470_v3  ;;  %v4497_v9 = vmul.f32 %v9108_v63, %v8671_v47 }
 0x617   : > { %3255 = vrot.lane.b32.xlu1 %v3252_v56, %s10912_s28  ;;  %4340 = vrot.lane.b32.xlu0 %v4337_v46, %s10913_s1  ;;  %v4420_v56 = vrot.slane %v4413_v49, 5  ;;  %v4455_v46 = vmul.f32 %v9077_v2, %v8671_v47  ;;  %v10937_v2 = vrot.slane %v9247_v20, 1  ;;  %v10790_v0 = vrot.slane %v9276_v27, 6 }
 0x619   : > { %v9261_v53 = vpop.permute.xlu0 %3006  ;;  %v9263_v8 = vpop.permute.xlu1 %3360  ;;  %v4462_v43 = vrot.slane %v4455_v46, 5  ;;  %v10941_v46 = vrot.slane %v9086_v18, 5  ;;  %v3162_v18 = vmul.f32 %v9146_v16, %v9289_v30 }
 0x61a   : > { %10932 = vst [vmem:[#allocation49_spill] sm:$0xff] %v9263_v8 }
 0x61b   : > { %3297 = vrot.lane.b32.xlu1 %v3294_v33, %s10915_s10  ;;  %4382 = vrot.lane.b32.xlu0 %v4379_v42, %s10916_s2  ;;  %v3336_v33 = vsel %vm490_vm1, %v3334_v11, %v10937_v2  ;;  %v10938_v42 = vrot.slane %v9063_v26, 5  ;;  %v3404_v11 = vmul.f32 %v9284_v38, %v8488_v29  ;;  %v9312_v2 = vstv %s5229_s15  ;;  %s5249_s15 = sld [smem:[#allocation6 + $0xe80]] }
 0x61c   : > { %v9322_v63 = vmul.f32 %v9312_v2, %v8470_v3 }
 0x61d   : > { %v9291_v49 = vpop.permute.xlu0 %3034  ;;  %v9293_v40 = vpop.permute.xlu1 %3436  ;;  %v4421_v8 = vsel %vm2687_vm10, %v10938_v42, %v4420_v56  ;;  %v3120_v56 = vmul.f32 %v9123_v44, %v9289_v30  ;;  %v10791_v42 = vrot.slane %v9300_v1, 2  ;;  %v3410_v44 = vrot.slane %v3404_v11, 2 }
 0x61e   : > { %10936 = vst [vmem:[#allocation50_spill] sm:$0xff] %v9293_v40  ;;  %v4577_v40 = vrot.slane %v4571_v34, 6  ;;  %v4463_v34 = vsel %vm2687_vm10, %v10941_v46, %v4462_v43  ;;  %v10944_v43 = vrot.slane %v9115_v7, 5 }
 0x61f   : > { %3339 = vrot.lane.b32.xlu1 %v3336_v33, %s10917_s30  ;;  %4424 = vrot.lane.b32.xlu0 %v4421_v8, %s10912_s28  ;;  %v4504_v33 = vrot.slane %v4497_v9, 5  ;;  %v3127_v46 = vrot.slane %v3120_v56, 1  ;;  %v10947_v56 = vrot.slane %v9131_v45, 1 }
 0x620   : > { %v4579_v8 = vsel %vm2130_vm11, %v4577_v40, %v10790_v0 }
 0x621   : > { %v9314_v55 = vpop.permute.xlu0 %3062  ;;  %v9316_v26 = vpop.permute.xlu1 %3478  ;;  %v4505_v11 = vsel %vm2687_vm10, %v10944_v43, %v4504_v33  ;;  %v3169_v33 = vrot.slane %v3162_v18, 1  ;;  %v3204_v43 = vmul.f32 %v9169_v19, %v9289_v30 }
 0x622   : > { %10939 = vst [vmem:[#allocation51_spill] sm:$0xff] %v9314_v55  ;;  %10940 = vst [vmem:[#allocation52_spill] sm:$0xff] %v9316_v26  ;;  %v3446_v26 = vmul.f32 %v9312_v2, %v8488_v29  ;;  %v9335_v55 = vstv %s5231_s16  ;;  %s5251_s16 = sld [smem:[#allocation6 + $0xf00]] }
 0x623   : > { %4582 = vrot.lane.b32.xlu1 %v4579_v8, %s10910_s11  ;;  %4466 = vrot.lane.b32.xlu0 %v4463_v34, %s10915_s10  ;;  %v9345_v9 = vmul.f32 %v9335_v55, %v8470_v3  ;;  %v3412_v8 = vsel %vm667_vm2, %v3410_v44, %v10791_v42  ;;  %v10792_v34 = vrot.slane %v9322_v63, 2  ;;  %v3488_v0 = vmul.f32 %v9335_v55, %v8488_v29 }
 0x624   : > { %v3452_v16 = vrot.slane %v3446_v26, 2  ;;  %v9364_v44 = vstv %s5233_s0  ;;  %s5288_s0 = sld [smem:[#allocation6 + $0x1981]] }
 0x625   : > { %v9337_v12 = vpop.permute.xlu0 %3152  ;;  %v9339_v40 = vpop.permute.xlu1 %3520  ;;  %v9375_v42 = vmul.f32 %v9364_v44, %v8470_v3  ;;  %v3494_v19 = vrot.slane %v3488_v0, 2  ;;  %v3530_v45 = vmul.f32 %v9364_v44, %v8488_v29  ;;  %v10951_v0 = vrot.slane %v9345_v9, 2 }
 0x626   : > { %10942 = vst [vmem:[#allocation53_spill] sm:$0xff] %v9337_v12  ;;  %10943 = vst [vmem:[#allocation54_spill] sm:$0xff] %v9339_v40  ;;  %v3454_v26 = vsel %vm667_vm2, %v3452_v16, %v10792_v34  ;;  %v3246_v16 = vmul.f32 %v9192_v22, %v9289_v30  ;;  %v9387_v34 = vstv %s5235_s23  ;;  %s5255_s23 = sld [smem:[#allocation6 + $0x1080]] }
 0x627   : > { %4508 = vrot.lane.b32.xlu0 %v4505_v11, %s10917_s30  ;;  %3415 = vrot.lane.b32.xlu1 %v3412_v8, %s10910_s11  ;;  %v3128_v11 = vsel %vm490_vm1, %v10947_v56, %v3127_v46  ;;  %v3211_v56 = vrot.slane %v3204_v43, 1  ;;  %v10950_v8 = vrot.slane %v9155_v31, 1  ;;  %v3536_v22 = vrot.slane %v3530_v45, 2 }
 0x628   : > { %v3572_v31 = vmul.f32 %v9387_v34, %v8488_v29  ;;  %v9436_v45 = vstv %s5286_s12  ;;  %s5259_s12 = sld [smem:[#allocation6 + $0x1180]] }
 0x629   : > { %v9358_v40 = vpop.permute.xlu0 %3194  ;;  %v9360_v7 = vpop.permute.xlu1 %3562 }
 0x62a   : > { %10945 = vst [vmem:[#allocation55_spill] sm:$0xff] %v9358_v40  ;;  %10946 = vst [vmem:[#allocation56_spill] sm:$0xff] %v9360_v7  ;;  %v9411_v7 = vstv %s5237_s29  ;;  %s5257_s29 = sld [smem:[#allocation6 + $0x1100]] }
 0x62b   : > { %3131 = vrot.lane.b32.xlu0 %v3128_v11, %s10910_s11  ;;  %3457 = vrot.lane.b32.xlu1 %v3454_v26, %s10913_s1  ;;  %v3170_v11 = vsel %vm490_vm1, %v10950_v8, %v3169_v33  ;;  %v3496_v26 = vsel %vm667_vm2, %v3494_v19, %v10951_v0  ;;  %v10954_v8 = vrot.slane %v9178_v17, 1  ;;  %v3253_v0 = vrot.slane %v3246_v16, 1 }
 0x62c   : > { %v3578_v17 = vrot.slane %v3572_v31, 2 }
 0x62d   : > { %v9381_v18 = vpop.permute.xlu0 %3236  ;;  %v9383_v46 = vpop.permute.xlu1 %3604  ;;  %v3212_v19 = vsel %vm490_vm1, %v10954_v8, %v3211_v56  ;;  %v3614_v56 = vmul.f32 %v9411_v7, %v8488_v29  ;;  %v10958_v8 = vrot.slane %v9201_v5, 1  ;;  %v4613_v5 = vmul.f32 %v9436_v45, %v8346_v4 }
 0x62e   : > { %10948 = vst [vmem:[#allocation57_spill] sm:$0xff] %v9381_v18  ;;  %10949 = vst [vmem:[#allocation58_spill] sm:$0xff] %v9383_v46  ;;  %v9398_v46 = vmul.f32 %v9387_v34, %v8470_v3  ;;  %v3288_v18 = vmul.f32 %v9215_v54, %v9289_v30 }
 0x62f   : > { %3173 = vrot.lane.b32.xlu0 %v3170_v11, %s10913_s1  ;;  %3499 = vrot.lane.b32.xlu1 %v3496_v26, %s10916_s2  ;;  %v10955_v11 = vrot.slane %v9375_v42, 2  ;;  %v3254_v54 = vsel %vm490_vm1, %v10958_v8, %v3253_v0  ;;  %v9454_v0 = vstv %s5241_s27  ;;  %s5261_s27 = sld [smem:[#allocation6 + $0x1200]] }
 0x631   : > { %v9404_v33 = vpop.permute.xlu0 %3278  ;;  %v9406_v43 = vpop.permute.xlu1 %3646  ;;  %v3538_v26 = vsel %vm667_vm2, %v3536_v22, %v10955_v11  ;;  %v3330_v11 = vmul.f32 %v9238_v25, %v9289_v30  ;;  %v3620_v25 = vrot.slane %v3614_v56, 2 }
 0x632   : > { %10952 = vst [vmem:[#allocation59_spill] sm:$0xff] %v9404_v33  ;;  %10953 = vst [vmem:[#allocation60_spill] sm:$0xff] %v9406_v43  ;;  %v9421_v33 = vmul.f32 %v9411_v7, %v8470_v3 }
 0x633   : > { %3215 = vrot.lane.b32.xlu0 %v3212_v19, %s10916_s2  ;;  %3541 = vrot.lane.b32.xlu1 %v3538_v26, %s10912_s28  ;;  %v10959_v19 = vrot.slane %v9398_v46, 2  ;;  %v3295_v26 = vrot.slane %v3288_v18, 1  ;;  %v3337_v8 = vrot.slane %v3330_v11, 1  ;;  %v4619_v11 = vrot.slane %v4613_v5, 6 }
 0x634   : > { %v10793_v43 = vrot.slane %v9421_v33, 2  ;;  %v10965_v5 = vrot.slane %v9247_v20, 1 }
 0x635   : > { %v9427_v16 = vpop.permute.xlu0 %3320  ;;  %v9429_v22 = vpop.permute.xlu1 %3723  ;;  %v3580_v31 = vsel %vm667_vm2, %v3578_v17, %v10959_v19  ;;  %v9462_v19 = vmul.f32 %v9454_v0, %v8470_v3 }
 0x636   : > { %10956 = vst [vmem:[#allocation61_spill] sm:$0xff] %v9427_v16  ;;  %10957 = vst [vmem:[#allocation62_spill] sm:$0xff] %v9429_v22  ;;  %v9444_v16 = vmul.f32 %v9436_v45, %v8514_v24  ;;  %v3622_v56 = vsel %vm667_vm2, %v3620_v25, %v10793_v43  ;;  %v3406_v43 = vmul.f32 %v9284_v38, %v9289_v30 }
 0x637   : > { %3257 = vrot.lane.b32.xlu0 %v3254_v54, %s10912_s28  ;;  %3583 = vrot.lane.b32.xlu1 %v3580_v31, %s10915_s10  ;;  %v10962_v54 = vrot.slane %v9224_v41, 1  ;;  %v3691_v41 = vmul.f32 %v9454_v0, %v8488_v29  ;;  %v10969_v40 = vrot.slane %v9462_v19, 3 }
 0x638   : > { %v10794_v22 = vrot.slane %v9444_v16, 6 }
 0x639   : > { %v9456_v18 = vpop.permute.xlu0 %3362  ;;  %v9458_v17 = vpop.permute.xlu1 %3765  ;;  %v3296_v31 = vsel %vm490_vm1, %v10962_v54, %v3295_v26  ;;  %v9477_v26 = vstv %s5243_s8  ;;  %v3697_v20 = vrot.slane %v3691_v41, 3  ;;  %s9678_s8 = sld [smem:[#allocation6 + $0x1280]] }
 0x63a   : > { %10960 = vst [vmem:[#allocation63_spill] sm:$0xff] %v9456_v18  ;;  %10961 = vst [vmem:[#allocation64_spill] sm:$0xff] %v9458_v17  ;;  %v4573_v17 = vmul.f32 %v9269_v59, %v8671_v47  ;;  %v9487_v59 = vmul.f32 %v9477_v26, %v8470_v3  ;;  %v10795_v18 = vstv %s9446_s17  ;;  %v3733_v38 = vmul.f32 %v9477_v26, %v8488_v29 }
 0x63b   : > { %3299 = vrot.lane.b32.xlu0 %v3296_v31, %s10915_s10  ;;  %3625 = vrot.lane.b32.xlu1 %v3622_v56, %s10917_s30  ;;  %v3338_v31 = vsel %vm490_vm1, %v10965_v5, %v3337_v8  ;;  %v4621_v56 = vsel %vm2130_vm11, %v4619_v11, %v10794_v22  ;;  %v3413_v11 = vrot.slane %v3406_v43, 2  ;;  %v3448_v22 = vmul.f32 %v9312_v2, %v9289_v30 }
 0x63c   : > { %v3699_v43 = vsel %vm3662_vm12, %v3697_v20, %v10969_v40  ;;  %v3739_v2 = vrot.slane %v3733_v38, 3  ;;  %v10973_v40 = vrot.slane %v9300_v1, 2  ;;  %v9544_v38 = vstv %s9489_s7  ;;  %s9727_s7 = sld [smem:[#allocation6 + $0x400]] }
 0x63d   : > { %v9479_v54 = vpop.permute.xlu0 %3438  ;;  %v9481_v25 = vpop.permute.xlu1 %3807 }
 0x63e   : > { %10963 = vst [vmem:[#allocation65_spill] sm:$0xff] %v9479_v54  ;;  %10964 = vst [vmem:[#allocation66_spill] sm:$0xff] %v9481_v25  ;;  %v4580_v54 = vrot.slane %v4573_v17, 6  ;;  %v9511_v25 = vstv %s5245_s24  ;;  %v3414_v20 = vsel %vm667_vm2, %v10973_v40, %v3413_v11  ;;  %v9567_v40 = vstv %s5249_s15  ;;  %s9716_s24 = sld [smem:[#allocation6 + $0x1300]]  ;;  %s9748_s15 = sld [smem:[#allocation6 + $0x1a01]] }
 0x63f   : > { %3341 = vrot.lane.b32.xlu0 %v3338_v31, %s10917_s30  ;;  %4624 = vrot.lane.b32.xlu1 %v4621_v56, %s10913_s1  ;;  %v2910_v31 = vmul.f32 %v10795_v18, %v8346_v4  ;;  %v10968_v56 = vrot.slane %v9276_v27, 6  ;;  %v9524_v17 = vmul.f32 %v9511_v25, %v8470_v3  ;;  %v3775_v27 = vmul.f32 %v9511_v25, %v8488_v29 }
 0x641   : > { %v9504_v8 = vpop.permute.xlu0 %3480  ;;  %v9506_v5 = vpop.permute.xlu1 %3849  ;;  %v4581_v41 = vsel %vm2130_vm11, %v10968_v56, %v4580_v54  ;;  %v10796_v12 = vrot.slane %v9524_v17, 3 }
 0x642   : > { %10966 = vst [vmem:[#allocation67_spill] sm:$0xff] %v9504_v8  ;;  %10967 = vst [vmem:[#allocation68_spill] sm:$0xff] %v9506_v5  ;;  %v10970_v5 = vstv %s9450_s26  ;;  %v10974_v8 = vrot.slane %v9487_v59, 3 }
 0x643   : > { %4584 = vrot.lane.b32.xlu0 %v4581_v41, %s10910_s11  ;;  %3702 = vrot.lane.b32.xlu1 %v3699_v43, %s10910_s11  ;;  %v2904_v18 = vmul.f32 %v10970_v5, %v8488_v29  ;;  %v3455_v43 = vrot.slane %v3448_v22, 2  ;;  %v3781_v22 = vrot.slane %v3775_v27, 3 }
 0x644   : > { %v3741_v41 = vsel %vm3662_vm12, %v3739_v2, %v10974_v8  ;;  %v3817_v8 = vmul.f32 %v9544_v38, %v8488_v29  ;;  %v3532_v2 = vmul.f32 %v9364_v44, %v9289_v30 }
 0x645   : > { %v9533_v54 = vpop.permute.xlu0 %3522  ;;  %v9535_v56 = vpop.permute.xlu1 %3891  ;;  %v2912_v5 = vadd.f32 %v2910_v31, %v2904_v18 }
 0x646   : > { %10971 = vst [vmem:[#allocation69_spill] sm:$0xff] %v9533_v54  ;;  %10972 = vst [vmem:[#allocation70_spill] sm:$0xff] %v9535_v56  ;;  %v3490_v54 = vmul.f32 %v9335_v55, %v9289_v30  ;;  %v9551_v56 = vmul.f32 %v9544_v38, %v8470_v3  ;;  %v10975_v55 = vrot.slane %v9322_v63, 2  ;;  %v3823_v44 = vrot.slane %v3817_v8, 3 }
 0x647   : > { %3417 = vrot.lane.b32.xlu0 %v3414_v20, %s10910_s11  ;;  %3744 = vrot.lane.b32.xlu1 %v3741_v41, %s10913_s1  ;;  %v2926_v1 = vadd.f32 %v9194_v50, %v2912_v5  ;;  %v3783_v50 = vsel %vm3662_vm12, %v3781_v22, %v10796_v12  ;;  %v9575_v41 = vmul.f32 %v9567_v40, %v8470_v3  ;;  %v3539_v22 = vrot.slane %v3532_v2, 2 }
 0x648   : > { %v3456_v31 = vsel %vm667_vm2, %v10975_v55, %v3455_v43  ;;  %v3497_v27 = vrot.slane %v3490_v54, 2  ;;  %v10797_v20 = vrot.slane %v9551_v56, 3  ;;  %v3859_v43 = vmul.f32 %v9567_v40, %v8488_v29 }
 0x649   : > { %v9558_v18 = vpop.permute.xlu0 %3564  ;;  %v9560_v11 = vpop.permute.xlu1 %3933  ;;  %v2940_v63 = vadd.f32 %v8888_v48, %v2926_v1  ;;  %v3574_v55 = vmul.f32 %v9387_v34, %v9289_v30  ;;  %v9588_v12 = vstv %s5251_s16  ;;  %s9777_s16 = sld [smem:[#allocation6 + $0x1480]] }
 0x64a   : > { %v3825_v48 = vsel %vm3662_vm12, %v3823_v44, %v10797_v20  ;;  %v9599_v8 = vmul.f32 %v9588_v12, %v8470_v3  ;;  %v3865_v2 = vrot.slane %v3859_v43, 3  ;;  %v3616_v43 = vmul.f32 %v9411_v7, %v9289_v30 }
 0x64b   : > { %3459 = vrot.lane.b32.xlu0 %v3456_v31, %s10913_s1  ;;  %3786 = vrot.lane.b32.xlu1 %v3783_v50, %s10916_s2  ;;  %v10977_v31 = vrot.slane %v9345_v9, 2  ;;  %v2954_v34 = vadd.f32 %v9035_v60, %v2940_v63  ;;  %v3901_v9 = vmul.f32 %v9588_v12, %v8488_v29  ;;  %v3581_v1 = vrot.slane %v3574_v55, 2 }
 0x64c   : > { %v10983_v7 = vrot.slane %v9398_v46, 2 }
 0x64d   : > { %v9582_v5 = vpop.permute.xlu0 %3606  ;;  %v9584_v54 = vpop.permute.xlu1 %4010  ;;  %v3498_v50 = vsel %vm667_vm2, %v10977_v31, %v3497_v27  ;;  %v10979_v31 = vrot.slane %v9375_v42, 2  ;;  %v2968_v42 = vadd.f32 %v8907_v32, %v2954_v34  ;;  %v10984_v32 = vrot.slane %v9599_v8, 3 }
 0x64e   : > { %10976 = vst [vmem:[#allocation71_spill] sm:$0xff] %v9584_v54  ;;  %v9613_v54 = vstv %s5288_s0  ;;  %v3582_v63 = vsel %vm667_vm2, %v10983_v7, %v3581_v1  ;;  %s9848_s0 = sld [smem:[#allocation6 + $0x1580]] }
 0x64f   : > { %3501 = vrot.lane.b32.xlu0 %v3498_v50, %s10916_s2  ;;  %3828 = vrot.lane.b32.xlu1 %v3825_v48, %s10912_s28  ;;  %v3540_v20 = vsel %vm667_vm2, %v10979_v31, %v3539_v22  ;;  %v10980_v50 = vrot.slane %v9575_v41, 3  ;;  %v9623_v48 = vmul.f32 %v9613_v54, %v8514_v24  ;;  %v3907_v22 = vrot.slane %v3901_v9, 3 }
 0x650   : > { %v4655_v55 = vmul.f32 %v9613_v54, %v8346_v4  ;;  %v3623_v9 = vrot.slane %v3616_v43, 2  ;;  %v2982_v46 = vadd.f32 %v9058_v6, %v2968_v42  ;;  %v10986_v6 = vrot.slane %v9421_v33, 2 }
 0x651   : > { %v9606_v27 = vpop.permute.xlu0 %3648  ;;  %v9608_v44 = vpop.permute.xlu1 %4052  ;;  %v3867_v60 = vsel %vm3662_vm12, %v3865_v2, %v10980_v50  ;;  %v9630_v2 = vstv %s5255_s23  ;;  %v3909_v34 = vsel %vm3662_vm12, %v3907_v22, %v10984_v32  ;;  %v3693_v22 = vmul.f32 %v9454_v0, %v9289_v30  ;;  %s9868_s23 = sld [smem:[#allocation6 + $0x1600]] }
 0x652   : > { %10978 = vst [vmem:[#allocation72_spill] sm:$0xff] %v9608_v44  ;;  %v4615_v44 = vmul.f32 %v9436_v45, %v8671_v47  ;;  %v4661_v1 = vrot.slane %v4655_v55, 6  ;;  %v3978_v7 = vmul.f32 %v9630_v2, %v8488_v29 }
 0x653   : > { %3543 = vrot.lane.b32.xlu0 %v3540_v20, %s10912_s28  ;;  %3870 = vrot.lane.b32.xlu1 %v3867_v60, %s10915_s10  ;;  %v9641_v20 = vmul.f32 %v9630_v2, %v8470_v3  ;;  %v10800_v60 = vrot.slane %v9623_v48, 6 }
 0x654   : > { %v4622_v55 = vrot.slane %v4615_v44, 6 }
 0x655   : > { %v9632_v31 = vpop.permute.xlu0 %3725  ;;  %v9634_v50 = vpop.permute.xlu1 %4094  ;;  %v4663_v42 = vsel %vm2130_vm11, %v4661_v1, %v10800_v60  ;;  %v10798_v32 = vrot.slane %v9641_v20, 4  ;;  %v3700_v1 = vrot.slane %v3693_v22, 3 }
 0x656   : > { %10981 = vst [vmem:[#allocation73_spill] sm:$0xff] %v9632_v31  ;;  %10982 = vst [vmem:[#allocation74_spill] sm:$0xff] %v9634_v50  ;;  %v9654_v50 = vstv %s5257_s29  ;;  %s9902_s29 = sld [smem:[#allocation6 + $0x1680]] }
 0x657   : > { %3585 = vrot.lane.b32.xlu0 %v3582_v63, %s10915_s10  ;;  %3912 = vrot.lane.b32.xlu1 %v3909_v34, %s10917_s30  ;;  %v9664_v45 = vmul.f32 %v9654_v50, %v8470_v3  ;;  %v3624_v63 = vsel %vm667_vm2, %v10986_v6, %v3623_v9  ;;  %v4020_v0 = vmul.f32 %v9654_v50, %v8488_v29  ;;  %v9685_v6 = vstv %s5259_s12  ;;  %s9932_s12 = sld [smem:[#allocation6 + $0x1700]] }
 0x658   : > { %v2996_v34 = vadd.f32 %v8930_v23, %v2982_v46  ;;  %v3735_v46 = vmul.f32 %v9477_v26, %v9289_v30  ;;  %v10990_v26 = vrot.slane %v9462_v19, 3 }
 0x659   : > { %v9656_v31 = vpop.permute.xlu0 %3767  ;;  %v9658_v43 = vpop.permute.xlu1 %4136  ;;  %v10799_v44 = vrot.slane %v9664_v45, 4  ;;  %v4026_v22 = vrot.slane %v4020_v0, 4  ;;  %v9714_v0 = vstv %s5261_s27  ;;  %s9937_s27 = sld [smem:[#allocation6 + $0x800]] }
 0x65a   : > { %10985 = vst [vmem:[#allocation75_spill] sm:$0xff] %v9658_v43  ;;  %v3984_v43 = vrot.slane %v3978_v7, 4  ;;  %v9697_v7 = vmul.f32 %v9685_v6, %v8470_v3  ;;  %v9723_v19 = vmul.f32 %v9714_v0, %v8470_v3 }
 0x65b   : > { %3627 = vrot.lane.b32.xlu0 %v3624_v63, %s10917_s30  ;;  %4666 = vrot.lane.b32.xlu1 %v4663_v42, %s10916_s2  ;;  %v10988_v63 = vrot.slane %v9444_v16, 6  ;;  %v3010_v16 = vadd.f32 %v9081_v28, %v2996_v34  ;;  %v3742_v28 = vrot.slane %v3735_v46, 3  ;;  %v4104_v46 = vmul.f32 %v9714_v0, %v8488_v29 }
 0x65c   : > { %v3986_v23 = vsel %vm3949_vm13, %v3984_v43, %v10798_v32  ;;  %v3701_v32 = vsel %vm3662_vm12, %v10990_v26, %v3700_v1  ;;  %v9733_v26 = vstv %s9678_s8  ;;  %s9963_s8 = sld [smem:[#allocation6 + $0x1880]] }
 0x65d   : > { %v9680_v33 = vpop.permute.xlu0 %3809  ;;  %v9682_v9 = vpop.permute.xlu1 %4178  ;;  %v4623_v42 = vsel %vm2130_vm11, %v10988_v63, %v4622_v55  ;;  %v4062_v55 = vmul.f32 %v9685_v6, %v8488_v29  ;;  %v3024_v1 = vadd.f32 %v8951_v13, %v3010_v16  ;;  %v9746_v13 = vmul.f32 %v9733_v26, %v8470_v3 }
 0x65e   : > { %10987 = vst [vmem:[#allocation76_spill] sm:$0xff] %v9682_v9  ;;  %v10994_v16 = vrot.slane %v9487_v59, 3  ;;  %v10996_v59 = vstv %s9450_s26  ;;  %s9791_s26 = sld [smem:[#allocation6 + $0x1500]] }
 0x65f   : > { %4626 = vrot.lane.b32.xlu0 %v4623_v42, %s10913_s1  ;;  %3989 = vrot.lane.b32.xlu1 %v3986_v23, %s10910_s11  ;;  %v4028_v42 = vsel %vm3949_vm13, %v4026_v22, %v10799_v44  ;;  %v3777_v23 = vmul.f32 %v9511_v25, %v9289_v30  ;;  %v4068_v22 = vrot.slane %v4062_v55, 4  ;;  %v10991_v25 = vstv %s9446_s17  ;;  %s9757_s17 = sld [smem:[#allocation6 + $0x401]] }
 0x660   : > { %v2911_v44 = vmul.f32 %v10991_v25, %v8514_v24  ;;  %v3743_v55 = vsel %vm3662_vm12, %v10994_v16, %v3742_v28  ;;  %v2905_v28 = vmul.f32 %v10996_v59, %v8470_v3  ;;  %v3038_v16 = vadd.f32 %v9102_v52, %v3024_v1 }
 0x661   : > { %v9704_v63 = vpop.permute.xlu0 %3851  ;;  %v9706_v43 = vpop.permute.xlu1 %4220  ;;  %v10998_v59 = vrot.slane %v9524_v17, 3  ;;  %v10999_v1 = vrot.slane %v9723_v19, 4 }
 0x662   : > { %10989 = vst [vmem:[#allocation77_spill] sm:$0xff] %v9706_v43  ;;  %v4110_v43 = vrot.slane %v4104_v46, 4 }
 0x663   : > { %3704 = vrot.lane.b32.xlu0 %v3701_v32, %s10910_s11  ;;  %4031 = vrot.lane.b32.xlu1 %v4028_v42, %s10913_s1  ;;  %v3819_v32 = vmul.f32 %v9544_v38, %v9289_v30  ;;  %v10995_v42 = vrot.slane %v9697_v7, 4  ;;  %v4146_v38 = vmul.f32 %v9733_v26, %v8488_v29 }
 0x664   : > { %v4112_v46 = vsel %vm3949_vm13, %v4110_v43, %v10999_v1 }
 0x665   : > { %v9738_v60 = vpop.permute.xlu0 %3893  ;;  %v9740_v34 = vpop.permute.xlu1 %4296  ;;  %v4070_v25 = vsel %vm3949_vm13, %v4068_v22, %v10995_v42  ;;  %v3826_v22 = vrot.slane %v3819_v32, 3  ;;  %v10801_v42 = vrot.slane %v9746_v13, 4 }
 0x666   : > { %10992 = vst [vmem:[#allocation78_spill] sm:$0xff] %v9738_v60  ;;  %10993 = vst [vmem:[#allocation79_spill] sm:$0xff] %v9740_v34  ;;  %v3784_v60 = vrot.slane %v3777_v23, 3  ;;  %v2913_v34 = vadd.f32 %v2911_v44, %v2905_v28  ;;  %v3052_v44 = vadd.f32 %v8972_v15, %v3038_v16 }
 0x667   : > { %3746 = vrot.lane.b32.xlu0 %v3743_v55, %s10913_s1  ;;  %4073 = vrot.lane.b32.xlu1 %v4070_v25, %s10916_s2  ;;  %v3861_v55 = vmul.f32 %v9567_v40, %v9289_v30  ;;  %v9775_v25 = vstv %s9716_s24  ;;  %v4152_v40 = vrot.slane %v4146_v38, 4  ;;  %s9976_s24 = sld [smem:[#allocation6 + $0x1a81]] }
 0x668   : > { %v3785_v52 = vsel %vm3662_vm12, %v10998_v59, %v3784_v60  ;;  %v9787_v32 = vmul.f32 %v9775_v25, %v8470_v3  ;;  %v2927_v17 = vadd.f32 %v9014_v39, %v2913_v34  ;;  %v9795_v60 = vstv %s9727_s7  ;;  %s9987_s7 = sld [smem:[#allocation6 + $0x1900]] }
 0x669   : > { %v9767_v9 = vpop.permute.xlu0 %3935  ;;  %v9769_v23 = vpop.permute.xlu1 %4338  ;;  %v4188_v43 = vmul.f32 %v9775_v25, %v8488_v29  ;;  %v4154_v1 = vsel %vm3949_vm13, %v4152_v40, %v10801_v42  ;;  %v3868_v39 = vrot.slane %v3861_v55, 3  ;;  %v9811_v34 = vstv %s9748_s15  ;;  %s9996_s15 = sld [smem:[#allocation6 + $0x801]] }
 0x66a   : > { %10997 = vst [vmem:[#allocation80_spill] sm:$0xff] %v9769_v23  ;;  %v2941_v15 = vadd.f32 %v9056_v14, %v2927_v17  ;;  %v9826_v40 = vstv %s9757_s17  ;;  %v3066_v14 = vadd.f32 %v9127_v62, %v3052_v44  ;;  %v4657_v62 = vmul.f32 %v9613_v54, %v8671_v47  ;;  %s10059_s17 = sld [smem:[#allocation6 + $0x1980]] }
 0x66b   : > { %3788 = vrot.lane.b32.xlu0 %v3785_v52, %s10916_s2  ;;  %4115 = vrot.lane.b32.xlu1 %v4112_v46, %s10912_s28  ;;  %v11001_v52 = vrot.slane %v9551_v56, 3  ;;  %v3903_v46 = vmul.f32 %v9588_v12, %v9289_v30  ;;  %v9819_v56 = vmul.f32 %v9811_v34, %v8514_v24  ;;  %v4194_v17 = vrot.slane %v4188_v43, 4 }
 0x66c   : > { %v2955_v55 = vadd.f32 %v9217_v51, %v2941_v15  ;;  %v4697_v12 = vmul.f32 %v9811_v34, %v8346_v4  ;;  %v9846_v51 = vstv %s9777_s16  ;;  %v11005_v44 = vrot.slane %v9787_v32, 4  ;;  %s10094_s16 = sld [smem:[#allocation6 + $0x1a00]] }
 0x66d   : > { %v9800_v28 = vpop.permute.xlu0 %4012  ;;  %v9802_v59 = vpop.permute.xlu1 %4380  ;;  %v3827_v38 = vsel %vm3662_vm12, %v11001_v52, %v3826_v22  ;;  %v9823_v22 = vmul.f32 %v9795_v60, %v8470_v3  ;;  %v3084_v52 = vmul.f32 %v9795_v60, %v8488_v29  ;;  %v3910_v15 = vrot.slane %v3903_v46, 3 }
 0x66e   : > { %11000 = vst [vmem:[#allocation81_spill] sm:$0xff] %v9802_v59  ;;  %v4196_v43 = vsel %vm3949_vm13, %v4194_v17, %v11005_v44  ;;  %v9861_v54 = vmul.f32 %v9826_v40, %v8514_v24  ;;  %v3080_v46 = vadd.f32 %v8991_v58, %v3066_v14  ;;  %v2969_v17 = vadd.f32 %v9079_v37, %v2955_v55 }
 0x66f   : > { %3830 = vrot.lane.b32.xlu0 %v3827_v38, %s10912_s28  ;;  %4157 = vrot.lane.b32.xlu1 %v4154_v1, %s10915_s10  ;;  %v11004_v38 = vrot.slane %v9575_v41, 3  ;;  %v4264_v44 = vmul.f32 %v9846_v51, %v8488_v29  ;;  %v3090_v41 = vrot.slane %v3084_v52, 1  ;;  %v3101_v59 = vmul.f32 %v9826_v40, %v8346_v4 }
 0x670   : > { %v3980_v23 = vmul.f32 %v9630_v2, %v9289_v30  ;;  %v11007_v58 = vrot.slane %v9599_v8, 3  ;;  %v11008_v14 = vrot.slane %v9819_v56, 6  ;;  %v10802_v2 = vrot.slane %v9861_v54, 1 }
 0x671   : > { %v9836_v42 = vpop.permute.xlu0 %4054  ;;  %v9838_v16 = vpop.permute.xlu1 %4422  ;;  %v3869_v1 = vsel %vm3662_vm12, %v11004_v38, %v3868_v39  ;;  %v9866_v39 = vstv %s9791_s26  ;;  %v4703_v38 = vrot.slane %v4697_v12, 6  ;;  %s10141_s26 = sld [smem:[#allocation6 + $0x1a80]] }
 0x672   : > { %11002 = vst [vmem:[#allocation82_spill] sm:$0xff] %v9836_v42  ;;  %11003 = vst [vmem:[#allocation83_spill] sm:$0xff] %v9838_v16  ;;  %v9856_v16 = vmul.f32 %v9846_v51, %v8470_v3  ;;  %v3911_v37 = vsel %vm3662_vm12, %v11007_v58, %v3910_v15  ;;  %v9891_v52 = vmul.f32 %v9866_v39, %v8470_v3 }
 0x673   : > { %3872 = vrot.lane.b32.xlu0 %v3869_v1, %s10915_s10  ;;  %4199 = vrot.lane.b32.xlu1 %v4196_v43, %s10917_s30  ;;  %v4664_v43 = vrot.slane %v4657_v62, 6  ;;  %v4705_v55 = vsel %vm2130_vm11, %v4703_v38, %v11008_v14  ;;  %v11009_v62 = vrot.slane %v9823_v22, 1  ;;  %v2983_v15 = vadd.f32 %v9240_v61, %v2969_v17 }
 0x674   : > { %v4270_v38 = vrot.slane %v4264_v44, 5  ;;  %v4306_v58 = vmul.f32 %v9866_v39, %v8488_v29  ;;  %v3107_v14 = vrot.slane %v3101_v59, 1  ;;  %v11011_v61 = vrot.slane %v9623_v48, 6 }
 0x675   : > { %v9876_v42 = vpop.permute.xlu0 %4096  ;;  %v9878_v1 = vpop.permute.xlu1 %4464  ;;  %v11012_v17 = vrot.slane %v9856_v16, 5  ;;  %v10805_v59 = vrot.slane %v9891_v52, 5  ;;  %v9930_v48 = vstv %s9868_s23  ;;  %s10193_s23 = sld [smem:[#allocation6 + $0x1b01]] }
 0x676   : > { %11006 = vst [vmem:[#allocation84_spill] sm:$0xff] %v9878_v1  ;;  %v3092_v1 = vsel %vm490_vm1, %v3090_v41, %v11009_v62  ;;  %v3987_v62 = vrot.slane %v3980_v23, 4 }
 0x677   : > { %3914 = vrot.lane.b32.xlu0 %v3911_v37, %s10917_s30  ;;  %4708 = vrot.lane.b32.xlu1 %v4705_v55, %s10912_s28  ;;  %v3097_v8 = vadd.f32 %v3092_v1, %v3080_v46  ;;  %v4022_v37 = vmul.f32 %v9654_v50, %v9289_v30  ;;  %v9911_v55 = vstv %s9848_s0  ;;  %v4665_v46 = vsel %vm2130_vm11, %v11011_v61, %v4664_v43  ;;  %s10159_s0 = sld [smem:[#allocation6 + $0x1b00]] }
 0x678   : > { %v4272_v44 = vsel %vm2687_vm10, %v4270_v38, %v11012_v17  ;;  %v9922_v1 = vmul.f32 %v9911_v55, %v8470_v3  ;;  %v3109_v50 = vsel %vm490_vm1, %v3107_v14, %v10802_v2  ;;  %v2997_v43 = vadd.f32 %v9100_v35, %v2983_v15 }
 0x679   : > { %v9904_v12 = vpop.permute.xlu0 %4138  ;;  %v9906_v41 = vpop.permute.xlu1 %4506  ;;  %v3114_v23 = vadd.f32 %v3109_v50, %v3097_v8  ;;  %v4312_v38 = vrot.slane %v4306_v58, 5  ;;  %v4348_v61 = vmul.f32 %v9911_v55, %v8488_v29  ;;  %v4029_v2 = vrot.slane %v4022_v37, 4 }
 0x67a   : > { %11010 = vst [vmem:[#allocation85_spill] sm:$0xff] %v9906_v41  ;;  %v4064_v8 = vmul.f32 %v9685_v6, %v9289_v30  ;;  %v10803_v15 = vrot.slane %v9922_v1, 5  ;;  %v9952_v58 = vmul.f32 %v9930_v48, %v8470_v3  ;;  %v3011_v6 = vadd.f32 %v9261_v53, %v2997_v43 }
 0x67b   : > { %4668 = vrot.lane.b32.xlu0 %v4665_v46, %s10916_s2  ;;  %4275 = vrot.lane.b32.xlu1 %v4272_v44, %s10910_s11  ;;  %v11014_v46 = vrot.slane %v9641_v20, 4  ;;  %v4314_v35 = vsel %vm2687_vm10, %v4312_v38, %v10805_v59  ;;  %v4390_v20 = vmul.f32 %v9930_v48, %v8488_v29  ;;  %v4354_v37 = vrot.slane %v4348_v61, 5 }
 0x67c   : > { %v4071_v61 = vrot.slane %v4064_v8, 4  ;;  %v4190_v59 = vmul.f32 %v9775_v25, %v9289_v30 }
 0x67d   : > { %v9939_v17 = vpop.permute.xlu0 %4180  ;;  %v3130_v14 = vpop.permute.xlu1 %3129  ;;  %v3988_v44 = vsel %vm3949_vm13, %v11014_v46, %v3987_v62  ;;  %v11016_v46 = vrot.slane %v9664_v45, 4  ;;  %v4356_v43 = vsel %vm2687_vm10, %v4354_v37, %v10803_v15  ;;  %v10804_v45 = vrot.slane %v9952_v58, 5 }
 0x67e   : > { %11013 = vst [vmem:[#allocation86_spill] sm:$0xff] %v9939_v17  ;;  %v3135_v50 = vadd.f32 %v3130_v14, %v3114_v23  ;;  %v9961_v23 = vstv %s9902_s29  ;;  %v9994_v37 = vstv %s9937_s27  ;;  %s10211_s29 = sld [smem:[#allocation6 + $0xc00]]  ;;  %s5254_s27 = sld [smem:[#allocation6 + $0x1001]] }
 0x67f   : > { %3991 = vrot.lane.b32.xlu0 %v3988_v44, %s10910_s11  ;;  %4317 = vrot.lane.b32.xlu1 %v4314_v35, %s10913_s1  ;;  %v4030_v44 = vsel %vm3949_vm13, %v11016_v46, %v4029_v2  ;;  %v4106_v35 = vmul.f32 %v9714_v0, %v9289_v30  ;;  %v4396_v2 = vrot.slane %v4390_v20, 5  ;;  %v9985_v0 = vstv %s9932_s12  ;;  %s10224_s12 = sld [smem:[#allocation6 + $0xc01]] }
 0x680   : > { %v3156_v62 = vadd.f32 %v9150_v10, %v3135_v50  ;;  %v9974_v10 = vmul.f32 %v9961_v23, %v8470_v3  ;;  %v3025_v50 = vadd.f32 %v9125_v21, %v3011_v6  ;;  %v10011_v15 = vmul.f32 %v9985_v0, %v8470_v3 }
 0x681   : > { %v9965_v38 = vpop.permute.xlu0 %4222  ;;  %v3172_v14 = vpop.permute.xlu1 %3171  ;;  %v4113_v20 = vrot.slane %v4106_v35, 4 }
 0x682   : > { %11015 = vst [vmem:[#allocation87_spill] sm:$0xff] %v9965_v38  ;;  %v3177_v53 = vadd.f32 %v3172_v14, %v3156_v62  ;;  %v4432_v14 = vmul.f32 %v9961_v23, %v8488_v29  ;;  %v3039_v35 = vadd.f32 %v9291_v49, %v3025_v50  ;;  %v11030_v38 = vrot.slane %v9787_v32, 4 }
 0x683   : > { %4033 = vrot.lane.b32.xlu0 %v4030_v44, %s10913_s1  ;;  %4359 = vrot.lane.b32.xlu1 %v4356_v43, %s10916_s2  ;;  %v4148_v43 = vmul.f32 %v9733_v26, %v9289_v30  ;;  %v4474_v26 = vmul.f32 %v9985_v0, %v8488_v29  ;;  %v10034_v44 = vstv %s9976_s24  ;;  %v11032_v32 = vrot.slane %v9823_v22, 1  ;;  %s5303_s24 = sshll.u32 %s6235_s22, 12  ;;  %s5053_s22 = scalar_lea.sflag [#allocation4], %s6343_s9 }
 0x684   : > { %v3198_v62 = vadd.f32 %v9173_v36, %v3177_v53  ;;  %v11018_v36 = vrot.slane %v9697_v7, 4  ;;  %v4398_v53 = vsel %vm2687_vm10, %v4396_v2, %v10804_v45  ;;  %v10019_v7 = vmul.f32 %v9994_v37, %v8488_v29 }
 0x685   : > { %v9998_v8 = vpop.permute.xlu0 %4298  ;;  %v3214_v46 = vpop.permute.xlu1 %3213  ;;  %v4438_v2 = vrot.slane %v4432_v14, 5  ;;  %v4155_v45 = vrot.slane %v4148_v43, 4  ;;  %v4480_v25 = vrot.slane %v4474_v26, 5  ;;  %v10050_v43 = vstv %s9987_s7 }
 0x686   : > { %11017 = vst [vmem:[#allocation88_spill] sm:$0xff] %v9998_v8  ;;  %v3219_v21 = vadd.f32 %v3214_v46, %v3198_v62  ;;  %v4072_v6 = vsel %vm3949_vm13, %v11018_v36, %v4071_v61  ;;  %v10024_v62 = vstv %s9963_s8  ;;  %v4739_v14 = vmul.f32 %v10034_v44, %v8346_v4 }
 0x687   : > { %4075 = vrot.lane.b32.xlu0 %v4072_v6, %s10916_s2  ;;  %4401 = vrot.lane.b32.xlu1 %v4398_v53, %s10912_s28  ;;  %v11020_v6 = vrot.slane %v9723_v19, 4  ;;  %v3086_v19 = vmul.f32 %v9795_v60, %v9289_v30  ;;  %v11025_v26 = vrot.slane %v9746_v13, 4  ;;  %v10078_v13 = vmul.f32 %v10024_v62, %v8470_v3 }
 0x688   : > { %v3240_v61 = vadd.f32 %v9196_v57, %v3219_v21  ;;  %v11021_v57 = vrot.slane %v9974_v10, 5  ;;  %v10042_v21 = vmul.f32 %v10034_v44, %v8514_v24 }
 0x689   : > { %v10026_v46 = vpop.permute.xlu0 %4340  ;;  %v3256_v36 = vpop.permute.xlu1 %3255  ;;  %v4114_v53 = vsel %vm3949_vm13, %v11020_v6, %v4113_v20  ;;  %v3376_v20 = vrot.slane %v10019_v7, 2  ;;  %v4156_v7 = vsel %vm3949_vm13, %v11025_v26, %v4155_v45  ;;  %v3093_v45 = vrot.slane %v3086_v19, 1  ;;  %v11028_v26 = vld [vmem:[#allocation48_spill] sm:$0xff] }
 0x68a   : > { %11019 = vst [vmem:[#allocation89_spill] sm:$0xff] %v10026_v46  ;;  %v3261_v49 = vadd.f32 %v3256_v36, %v3240_v61  ;;  %v4440_v50 = vsel %vm2687_vm10, %v4438_v2, %v11021_v57  ;;  %v11022_v61 = vld [vmem:[#allocation45_spill] sm:$0xff]  ;;  %v11023_v36 = vld [vmem:[#allocation47_spill] sm:$0xff]  ;;  %v10055_v57 = vstv %s9996_s15 }
 0x68b   : > { %4117 = vrot.lane.b32.xlu0 %v4114_v53, %s10912_s28  ;;  %4443 = vrot.lane.b32.xlu1 %v4440_v50, %s10915_s10  ;;  %v3053_v2 = vadd.f32 %v11022_v61, %v3039_v35  ;;  %v10068_v50 = vmul.f32 %v9994_v37, %v8470_v3  ;;  %v4197_v35 = vrot.slane %v4190_v59, 4  ;;  %v10084_v59 = vmul.f32 %v10055_v57, %v8514_v24 }
 0x68c   : > { %v3282_v6 = vadd.f32 %v11023_v36, %v3261_v49  ;;  %v4699_v49 = vmul.f32 %v9811_v34, %v8671_v47  ;;  %v11026_v36 = vrot.slane %v10011_v15, 5  ;;  %v4550_v34 = vmul.f32 %v10024_v62, %v8488_v29 }
 0x68d   : > { %v10061_v60 = vpop.permute.xlu0 %4382  ;;  %v3298_v53 = vpop.permute.xlu1 %3297  ;;  %v3387_v19 = vmul.f32 %v10055_v57, %v8346_v4  ;;  %v4198_v17 = vsel %vm3949_vm13, %v11030_v38, %v4197_v35  ;;  %v3094_v38 = vsel %vm490_vm1, %v11032_v32, %v3093_v45  ;;  %v3103_v35 = vmul.f32 %v9826_v40, %v8671_v47 }
 0x68e   : > { %11024 = vst [vmem:[#allocation45_spill] sm:$0xff] %v10061_v60  ;;  %v3303_v61 = vadd.f32 %v3298_v53, %v3282_v6  ;;  %v4482_v46 = vsel %vm2687_vm10, %v4480_v25, %v11026_v36  ;;  %v4592_v25 = vmul.f32 %v10050_v43, %v8488_v29  ;;  %v11027_v6 = vld [vmem:[#allocation51_spill] sm:$0xff]  ;;  %v4706_v41 = vrot.slane %v4699_v49, 6  ;;  %v11033_v49 = vld [vmem:[#allocation46_spill] sm:$0xff] }
 0x68f   : > { %4159 = vrot.lane.b32.xlu0 %v4156_v7, %s10915_s10  ;;  %4485 = vrot.lane.b32.xlu1 %v4482_v46, %s10917_s30  ;;  %v3067_v53 = vadd.f32 %v11027_v6, %v3053_v2  ;;  %v4745_v7 = vrot.slane %v4739_v14, 6  ;;  %v4266_v2 = vmul.f32 %v9846_v51, %v9289_v30  ;;  %v11031_v6 = vrot.slane %v10042_v21, 6 }
 0x690   : > { %v3324_v36 = vadd.f32 %v11028_v26, %v3303_v61  ;;  %v10110_v60 = vmul.f32 %v10050_v43, %v8470_v3  ;;  %v10811_v51 = vrot.slane %v10084_v59, 2  ;;  %v11035_v22 = vrot.slane %v10068_v50, 2 }
 0x691   : > { %v10096_v46 = vpop.permute.xlu0 %4424  ;;  %v3340_v8 = vpop.permute.xlu1 %3339  ;;  %v4747_v14 = vsel %vm2130_vm11, %v4745_v7, %v11031_v6  ;;  %v3393_v7 = vrot.slane %v3387_v19, 2  ;;  %v11034_v6 = vld [vmem:[#allocation49_spill] sm:$0xff] }
 0x692   : > { %11029 = vst [vmem:[#allocation47_spill] sm:$0xff] %v10096_v46  ;;  %v3345_v61 = vadd.f32 %v3340_v8, %v3324_v36  ;;  %v4556_v8 = vrot.slane %v4550_v34, 6  ;;  %v3081_v36 = vadd.f32 %v11033_v49, %v3067_v53  ;;  %v10123_v46 = vstv %s10059_s17 }
 0x693   : > { %4201 = vrot.lane.b32.xlu0 %v4198_v17, %s10917_s30  ;;  %4750 = vrot.lane.b32.xlu1 %v4747_v14, %s10915_s10  ;;  %v3378_v45 = vsel %vm667_vm2, %v3376_v20, %v11035_v22  ;;  %v11036_v17 = vrot.slane %v9819_v56, 6  ;;  %v4308_v34 = vmul.f32 %v9866_v39, %v9289_v30  ;;  %v10139_v53 = vmul.f32 %v10123_v46, %v8470_v3 }
 0x694   : > { %v3366_v26 = vadd.f32 %v11034_v6, %v3345_v61  ;;  %v11037_v20 = vrot.slane %v10078_v13, 6  ;;  %v4273_v49 = vrot.slane %v4266_v2, 5  ;;  %v10806_v56 = vrot.slane %v10110_v60, 6 }
 0x695   : > { %v10128_v32 = vpop.permute.xlu0 %4466  ;;  %v10130_v40 = vpop.permute.xlu1 %4582  ;;  %v4707_v14 = vsel %vm2130_vm11, %v11036_v17, %v4706_v41  ;;  %v3110_v6 = vrot.slane %v3103_v35, 1  ;;  %v3395_v39 = vsel %vm667_vm2, %v3393_v7, %v10811_v51  ;;  %v4598_v41 = vrot.slane %v4592_v25, 6 }
 0x696   : > { %v3383_v19 = vadd.f32 %v3378_v45, %v3366_v26  ;;  %v4558_v61 = vsel %vm2130_vm11, %v4556_v8, %v11037_v20  ;;  %v4634_v26 = vmul.f32 %v10123_v46, %v8488_v29  ;;  %v3098_v22 = vadd.f32 %v3094_v38, %v3081_v36 }
 0x697   : > { %4710 = vrot.lane.b32.xlu0 %v4707_v14, %s10912_s28  ;;  %4561 = vrot.lane.b32.xlu1 %v4558_v61, %s10910_s11  ;;  %v4350_v2 = vmul.f32 %v9911_v55, %v9289_v30  ;;  %v10157_v8 = vstv %s10094_s16  ;;  %v4315_v17 = vrot.slane %v4308_v34, 5  ;;  %v10808_v14 = vrot.slane %v10139_v53, 6  ;;  %s10644_s16 = scalar_lea.hbm %s10701_s5, %s5303_s24 }
 0x698   : > { %v3400_v45 = vadd.f32 %v3395_v39, %v3383_v19  ;;  %v11038_v25 = vrot.slane %v9856_v16, 5  ;;  %v4600_v55 = vsel %vm2130_vm11, %v4598_v41, %v10806_v56  ;;  %v10172_v38 = vmul.f32 %v10157_v8, %v8470_v3  ;;  %v11040_v39 = vld [vmem:[#allocation50_spill] sm:$0xff] }
 0x699   : > { %v10161_v35 = vpop.permute.xlu0 %4508  ;;  %v3416_v7 = vpop.permute.xlu1 %3415  ;;  %v11039_v36 = vrot.slane %v9861_v54, 1  ;;  %v4640_v16 = vrot.slane %v4634_v26, 6  ;;  %v4676_v19 = vmul.f32 %v10157_v8, %v8488_v29  ;;  %v4357_v41 = vrot.slane %v4350_v2, 5 }
 0x69a   : > { %v3421_v20 = vadd.f32 %v3416_v7, %v3400_v45  ;;  %v4274_v61 = vsel %vm2687_vm10, %v11038_v25, %v4273_v49  ;;  %v11041_v56 = vrot.slane %v9891_v52, 5  ;;  %v4392_v26 = vmul.f32 %v9930_v48, %v9289_v30 }
 0x69b   : > { %v3111_v34 = vsel %vm490_vm1, %v11039_v36, %v3110_v6  ;;  %4277 = vrot.lane.b32.xlu0 %v4274_v61, %s10910_s11  ;;  %4603 = vrot.lane.b32.xlu1 %v4600_v55, %s10913_s1  ;;  %v4642_v6 = vsel %vm2130_vm11, %v4640_v16, %v10808_v14  ;;  %v10191_v61 = vstv %s10141_s26  ;;  %v4434_v48 = vmul.f32 %v9961_v23, %v9289_v30  ;;  %v11043_v36 = vld [vmem:[#allocation52_spill] sm:$0xff] }
 0x69c   : > { %v3115_v49 = vadd.f32 %v3111_v34, %v3098_v22  ;;  %v3442_v45 = vadd.f32 %v11040_v39, %v3421_v20  ;;  %v4316_v54 = vsel %vm2687_vm10, %v11041_v56, %v4315_v17  ;;  %v10807_v20 = vrot.slane %v10172_v38, 6  ;;  %v11042_v17 = vld [vmem:[#allocation53_spill] sm:$0xff] }
 0x69d   : > { %v3132_v7 = vpop.permute.xlu0 %3131  ;;  %v3458_v25 = vpop.permute.xlu1 %3457  ;;  %v10198_v52 = vmul.f32 %v10191_v61, %v8470_v3  ;;  %v4682_v56 = vrot.slane %v4676_v19, 6  ;;  %v4718_v16 = vmul.f32 %v10191_v61, %v8488_v29 }
 0x69e   : > { %v3136_v22 = vadd.f32 %v3132_v7, %v3115_v49  ;;  %v3463_v2 = vadd.f32 %v3458_v25, %v3442_v45  ;;  %v10209_v49 = vstv %s10159_s0  ;;  %v11044_v7 = vrot.slane %v9922_v1, 5  ;;  %s6181_s0 = smov [#allocation7]  }
 0x69f   : > { %4319 = vrot.lane.b32.xlu0 %v4316_v54, %s10913_s1  ;;  %4645 = vrot.lane.b32.xlu1 %v4642_v6, %s10916_s2  ;;  %v4399_v25 = vrot.slane %v4392_v26, 5  ;;  %v10218_v23 = vmul.f32 %v10209_v49, %v8470_v3  ;;  %v4441_v1 = vrot.slane %v4434_v48, 5  ;;  %v11045_v26 = vld [vmem:[#allocation55_spill] sm:$0xff]  ;;  %v4476_v48 = vmul.f32 %v9985_v0, %v9289_v30 }
 0x6a0   : > { %v3157_v55 = vadd.f32 %v11042_v17, %v3136_v22  ;;  %v3484_v34 = vadd.f32 %v11043_v36, %v3463_v2  ;;  %v4358_v19 = vsel %vm2687_vm10, %v11044_v7, %v4357_v41  ;;  %v4684_v22 = vsel %vm2130_vm11, %v4682_v56, %v10807_v20 }
 0x6a1   : > { %v3174_v39 = vpop.permute.xlu0 %3173  ;;  %v3500_v45 = vpop.permute.xlu1 %3499  ;;  %v10810_v2 = vrot.slane %v10198_v52, 6  ;;  %v4760_v41 = vmul.f32 %v10209_v49, %v8488_v29  ;;  %v11047_v56 = vrot.slane %v9952_v58, 5  ;;  %v11048_v58 = vrot.slane %v9974_v10, 5 }
 0x6a2   : > { %v3178_v54 = vadd.f32 %v3174_v39, %v3157_v55  ;;  %v3505_v6 = vadd.f32 %v3500_v45, %v3484_v34  ;;  %v11046_v55 = vld [vmem:[#allocation54_spill] sm:$0xff]  ;;  %v4724_v34 = vrot.slane %v4718_v16, 6  ;;  %v4483_v10 = vrot.slane %v4476_v48, 5 }
 0x6a3   : > { %4361 = vrot.lane.b32.xlu0 %v4358_v19, %s10916_s2  ;;  %4687 = vrot.lane.b32.xlu1 %v4684_v22, %s10912_s28  ;;  %v4400_v7 = vsel %vm2687_vm10, %v11047_v56, %v4399_v25  ;;  %v10809_v19 = vrot.slane %v10218_v23, 6  ;;  %v10239_v22 = vstv %s10193_s23  ;;  %v4442_v0 = vsel %vm2687_vm10, %v11048_v58, %v4441_v1  ;;  %v11051_v58 = vld [vmem:[#allocation59_spill] sm:$0xff]  ;;  %s6093_s23 = sshll.u32 %s6181_s0, 4  ;;  %s6094_s23 = int_to_ptr.vmem [resolvable:$false] %s6093_s23 }
 0x6a4   : > { %v3199_v17 = vadd.f32 %v11045_v26, %v3178_v54  ;;  %v3526_v36 = vadd.f32 %v11046_v55, %v3505_v6  ;;  %v4726_v16 = vsel %vm2130_vm11, %v4724_v34, %v10810_v2  ;;  %v10246_v54 = vmul.f32 %v10239_v22, %v8514_v24  ;;  %v11049_v6 = vld [vmem:[#allocation57_spill] sm:$0xff] }
 0x6a5   : > { %v3216_v39 = vpop.permute.xlu0 %3215  ;;  %v3542_v45 = vpop.permute.xlu1 %3541  ;;  %v4766_v25 = vrot.slane %v4760_v41, 6  ;;  %v10258_v34 = vstv %s10211_s29  ;;  %v4741_v1 = vmul.f32 %v10034_v44, %v8671_v47  ;;  %s6095_s29 = scalar_lea.vmem %s6094_s23, 8192 }
 0x6a6   : > { %v3220_v20 = vadd.f32 %v3216_v39, %v3199_v17  ;;  %v3547_v14 = vadd.f32 %v3542_v45, %v3526_v36  ;;  %v11050_v17 = vld [vmem:[#allocation56_spill] sm:$0xff]  ;;  %v4781_v36 = vmul.f32 %v10239_v22, %v8346_v4  ;;  %v3656_v48 = vmul.f32 %v10258_v34, %v8488_v29 }
 0x6a7   : > { %4403 = vrot.lane.b32.xlu0 %v4400_v7, %s10912_s28  ;;  %4729 = vrot.lane.b32.xlu1 %v4726_v16, %s10915_s10  ;;  %v4768_v56 = vsel %vm2130_vm11, %v4766_v25, %v10809_v19  ;;  %v10271_v16 = vstv %s10224_s12  ;;  %v4748_v19 = vrot.slane %v4741_v1, 6 }
 0x6a8   : > { %v3241_v26 = vadd.f32 %v11049_v6, %v3220_v20  ;;  %v3568_v55 = vadd.f32 %v11050_v17, %v3547_v14  ;;  %v10267_v20 = vmul.f32 %v10258_v34, %v8470_v3  ;;  %v10279_v44 = vmul.f32 %v10271_v16, %v8514_v24  ;;  %v11052_v6 = vld [vmem:[#allocation58_spill] sm:$0xff] }
 0x6a9   : > { %v3258_v39 = vpop.permute.xlu0 %3257  ;;  %v3584_v45 = vpop.permute.xlu1 %3583  ;;  %v4787_v17 = vrot.slane %v4781_v36, 6  ;;  %v3674_v51 = vmul.f32 %v10271_v16, %v8346_v4 }
 0x6aa   : > { %v3262_v14 = vadd.f32 %v3258_v39, %v3241_v26  ;;  %v3589_v41 = vadd.f32 %v3584_v45, %v3568_v55  ;;  %v3372_v55 = vmul.f32 %v9994_v37, %v9289_v30  ;;  %v3664_v2 = vrot.slane %v10267_v20, 3 }
 0x6ab   : > { %4445 = vrot.lane.b32.xlu0 %v4442_v0, %s10915_s10  ;;  %4771 = vrot.lane.b32.xlu1 %v4768_v56, %s10917_s30  ;;  %v11053_v0 = vrot.slane %v10011_v15, 5  ;;  %v4552_v37 = vmul.f32 %v10024_v62, %v9289_v30  ;;  %v3389_v15 = vmul.f32 %v10055_v57, %v8671_v47  ;;  %v3681_v1 = vrot.slane %v10279_v44, 3 }
 0x6ac   : > { %v3283_v25 = vadd.f32 %v11051_v58, %v3262_v14  ;;  %v3610_v26 = vadd.f32 %v11052_v6, %v3589_v41  ;;  %v11054_v41 = vrot.slane %v10246_v54, 6  ;;  %v11055_v58 = vld [vmem:[#allocation61_spill] sm:$0xff]  ;;  %v11056_v6 = vld [vmem:[#allocation60_spill] sm:$0xff]  ;;  %v11057_v62 = vrot.slane %v10042_v21, 6 }
 0x6ad   : > { %v3300_v39 = vpop.permute.xlu0 %3299  ;;  %v3626_v45 = vpop.permute.xlu1 %3625  ;;  %v4484_v56 = vsel %vm2687_vm10, %v11053_v0, %v4483_v10  ;;  %v3663_v10 = vrot.slane %v3656_v48, 3  ;;  %v3680_v57 = vrot.slane %v3674_v51, 3 }
 0x6ae   : > { %v3304_v7 = vadd.f32 %v3300_v39, %v3283_v25  ;;  %v3631_v14 = vadd.f32 %v3626_v45, %v3610_v26  ;;  %v4789_v36 = vsel %vm2130_vm11, %v4787_v17, %v11054_v41  ;;  %v3379_v39 = vrot.slane %v3372_v55, 2  ;;  %v11058_v55 = vld [vmem:[#allocation63_spill] sm:$0xff] }
 0x6af   : > { %4487 = vrot.lane.b32.xlu0 %v4484_v56, %s10917_s30  ;;  %4792 = vrot.lane.b32.xlu1 %v4789_v36, %s10917_s30  ;;  %v4749_v0 = vsel %vm2130_vm11, %v11057_v62, %v4748_v19  ;;  %v3665_v56 = vsel %vm3662_vm12, %v3663_v10, %v3664_v2  ;;  %v4559_v36 = vrot.slane %v4552_v37, 6  ;;  %v3682_v21 = vsel %vm3662_vm12, %v3680_v57, %v3681_v1 }
 0x6b0   : > { %v3325_v25 = vadd.f32 %v11055_v58, %v3304_v7  ;;  %v3652_v26 = vadd.f32 %v11056_v6, %v3631_v14  ;;  %v4594_v7 = vmul.f32 %v10050_v43, %v9289_v30  ;;  %v3396_v14 = vrot.slane %v3389_v15, 2 }
 0x6b1   : > { %v3342_v45 = vpop.permute.xlu0 %3341  ;;  %v10303_v17 = vpop.permute.xlu1 %4624  ;;  %v11059_v6 = vrot.slane %v10068_v50, 2  ;;  %v4636_v43 = vmul.f32 %v10123_v46, %v9289_v30  ;;  %v4678_v46 = vmul.f32 %v10157_v8, %v9289_v30 }
 0x6b2   : > { %v3346_v48 = vadd.f32 %v3342_v45, %v3325_v25  ;;  %v3670_v41 = vadd.f32 %v3665_v56, %v3652_v26  ;;  %v11060_v26 = vrot.slane %v10078_v13, 6  ;;  %v4601_v62 = vrot.slane %v4594_v7, 6 }
 0x6b3   : > { %4752 = vrot.lane.b32.xlu0 %v4749_v0, %s10915_s10  ;;  %v3380_v51 = vsel %vm667_vm2, %v11059_v6, %v3379_v39  ;;  %v11061_v0 = vrot.slane %v10084_v59, 2  ;;  %v11062_v39 = vld [vmem:[#allocation62_spill] sm:$0xff]  ;;  %v11063_v13 = vrot.slane %v10110_v60, 6  ;;  %v4643_v7 = vrot.slane %v4636_v43, 6  ;;  %v11064_v59 = vld [vmem:[#allocation65_spill] sm:$0xff]  ;;  %v11067_v43 = vld [vmem:[#allocation67_spill] sm:$0xff] }
 0x6b4   : > { %v3367_v19 = vadd.f32 %v11058_v55, %v3346_v48  ;;  %v3687_v58 = vadd.f32 %v3682_v21, %v3670_v41  ;;  %v4560_v45 = vsel %vm2130_vm11, %v11060_v26, %v4559_v36  ;;  %v4685_v26 = vrot.slane %v4678_v46, 6  ;;  %v11070_v46 = vld [vmem:[#allocation69_spill] sm:$0xff] }
 0x6b5   : > { %v10321_v10 = vpop.permute.xlu0 %4584  ;;  %v3703_v37 = vpop.permute.xlu1 %3702  ;;  %v3397_v56 = vsel %vm667_vm2, %v11061_v0, %v3396_v14  ;;  %v4602_v36 = vsel %vm2130_vm11, %v11063_v13, %v4601_v62  ;;  %v11068_v62 = vld [vmem:[#allocation66_spill] sm:$0xff] }
 0x6b6   : > { %v3384_v15 = vadd.f32 %v3380_v51, %v3367_v19  ;;  %v3708_v25 = vadd.f32 %v3703_v37, %v3687_v58  ;;  %v11065_v19 = vld [vmem:[#allocation64_spill] sm:$0xff]  ;;  %v4720_v37 = vmul.f32 %v10191_v61, %v9289_v30  ;;  %v11069_v61 = vrot.slane %v10172_v38, 6 }
 0x6b7   : > { %4563 = vrot.lane.b32.xlu0 %v4560_v45, %s10910_s11  ;;  %s5253_s11 = sld [smem:[#allocation6 + $0x1000]]  ;;  %v4783_v38 = vmul.f32 %v10239_v22, %v8671_v47 }
 0x6b8   : > { %v3401_v50 = vadd.f32 %v3397_v56, %v3384_v15  ;;  %v3729_v57 = vadd.f32 %v11062_v39, %v3708_v25  ;;  %v11066_v25 = vrot.slane %v10139_v53, 6  ;;  %v4727_v39 = vrot.slane %v4720_v37, 6 }
 0x6b9   : > { %v3418_v48 = vpop.permute.xlu0 %3417  ;;  %v3745_v41 = vpop.permute.xlu1 %3744  ;;  %v4762_v53 = vmul.f32 %v10209_v49, %v9289_v30  ;;  %v10368_v37 = vstv %s5254_s27 }
 0x6ba   : > { %v3422_v21 = vadd.f32 %v3418_v48, %v3401_v50  ;;  %v3750_v55 = vadd.f32 %v3745_v41, %v3729_v57  ;;  %v4644_v60 = vsel %vm2130_vm11, %v11066_v25, %v4643_v7  ;;  %v4686_v41 = vsel %vm2130_vm11, %v11069_v61, %v4685_v26 }
 0x6bb   : > { %4605 = vrot.lane.b32.xlu0 %v4602_v36, %s10913_s1  ;;  %v3676_v61 = vmul.f32 %v10271_v16, %v8671_v47  ;;  %s5267_s1 = sld [smem:[#allocation6 + $0x1400]] }
 0x6bc   : > { %v3443_v14 = vadd.f32 %v11064_v59, %v3422_v21  ;;  %v3771_v58 = vadd.f32 %v11065_v19, %v3750_v55  ;;  %v11071_v55 = vld [vmem:[#allocation68_spill] sm:$0xff] }
 0x6bd   : > { %v3460_v6 = vpop.permute.xlu0 %3459  ;;  %v3787_v51 = vpop.permute.xlu1 %3786  ;;  %v10357_v36 = vstv %s5253_s11 }
 0x6be   : > { %v3464_v8 = vadd.f32 %v3460_v6, %v3443_v14  ;;  %v3792_v15 = vadd.f32 %v3787_v51, %v3771_v58  ;;  %v11072_v14 = vrot.slane %v10198_v52, 6  ;;  %v10366_v49 = vmul.f32 %v10357_v36, %v8470_v3 }
 0x6bf   : > { %4647 = vrot.lane.b32.xlu0 %v4644_v60, %s10916_s2  ;;  %v4769_v51 = vrot.slane %v4762_v53, 6  ;;  %v10375_v52 = vmul.f32 %v10368_v37, %v8514_v24  ;;  %s5268_s2 = sld [smem:[#allocation6 + $0x1401]] }
 0x6c0   : > { %v3485_v45 = vadd.f32 %v11067_v43, %v3464_v8  ;;  %v3813_v0 = vadd.f32 %v11068_v62, %v3792_v15  ;;  %v4728_v19 = vsel %vm2130_vm11, %v11072_v14, %v4727_v39  ;;  %v3943_v8 = vmul.f32 %v10357_v36, %v8488_v29  ;;  %v11073_v15 = vld [vmem:[#allocation70_spill] sm:$0xff] }
 0x6c1   : > { %v3502_v56 = vpop.permute.xlu0 %3501  ;;  %v3829_v50 = vpop.permute.xlu1 %3828  ;;  %v3951_v43 = vrot.slane %v10366_v49, 4  ;;  %v3658_v62 = vmul.f32 %v10258_v34, %v9289_v30 }
 0x6c2   : > { %v3506_v57 = vadd.f32 %v3502_v56, %v3485_v45  ;;  %v3834_v48 = vadd.f32 %v3829_v50, %v3813_v0  ;;  %v3961_v45 = vmul.f32 %v10368_v37, %v8346_v4  ;;  %v11074_v50 = vrot.slane %v10218_v23, 6 }
 0x6c3   : > { %4689 = vrot.lane.b32.xlu0 %v4686_v41, %s10912_s28  ;;  %s5281_s28 = sld [smem:[#allocation6 + $0x1800]] }
 0x6c4   : > { %v3527_v21 = vadd.f32 %v11070_v46, %v3506_v57  ;;  %v3855_v13 = vadd.f32 %v11071_v55, %v3834_v48  ;;  %v4770_v39 = vsel %vm2130_vm11, %v11074_v50, %v4769_v51  ;;  %v4790_v57 = vrot.slane %v4783_v38, 6 }
 0x6c5   : > { %v3544_v7 = vpop.permute.xlu0 %3543  ;;  %v3871_v59 = vpop.permute.xlu1 %3870  ;;  %v3968_v48 = vrot.slane %v10375_v52, 4  ;;  %v3666_v55 = vrot.slane %v3658_v62, 3  ;;  %v11077_v62 = vld [vmem:[#allocation73_spill] sm:$0xff]  ;;  %v11086_v52 = vld [vmem:[#allocation82_spill] sm:$0xff] }
 0x6c6   : > { %v3548_v58 = vadd.f32 %v3544_v7, %v3527_v21  ;;  %v3876_v6 = vadd.f32 %v3871_v59, %v3855_v13  ;;  %v3967_v21 = vrot.slane %v3961_v45, 4  ;;  %v11075_v7 = vrot.slane %v10246_v54, 6 }
 0x6c7   : > { %4731 = vrot.lane.b32.xlu0 %v4728_v19, %s10915_s10  ;;  %v3667_v54 = vsel %vm3662_vm12, %v3664_v2, %v3666_v55  ;;  %s5282_s10 = sld [smem:[#allocation6 + $0x1801]] }
 0x6c8   : > { %v3569_v22 = vadd.f32 %v9558_v18, %v3548_v58  ;;  %v3897_v25 = vadd.f32 %v11073_v15, %v3876_v6  ;;  %v3950_v18 = vrot.slane %v3943_v8, 4  ;;  %v4791_v59 = vsel %vm2130_vm11, %v11075_v7, %v4790_v57  ;;  %v11076_v15 = vld [vmem:[#allocation71_spill] sm:$0xff] }
 0x6c9   : > { %v3586_v60 = vpop.permute.xlu0 %3585  ;;  %v3913_v26 = vpop.permute.xlu1 %3912 }
 0x6ca   : > { %v3590_v0 = vadd.f32 %v3586_v60, %v3569_v22  ;;  %v3918_v56 = vadd.f32 %v3913_v26, %v3897_v25  ;;  %v3952_v23 = vsel %vm3949_vm13, %v3950_v18, %v3951_v43 }
 0x6cb   : > { %4773 = vrot.lane.b32.xlu0 %v4770_v39, %s10917_s30 }
 0x6cc   : > { %v3939_v41 = vadd.f32 %v9560_v11, %v3918_v56  ;;  %v3611_v53 = vadd.f32 %v9582_v5, %v3590_v0  ;;  %v3969_v11 = vsel %vm3949_vm13, %v3967_v21, %v3968_v48  ;;  %v3683_v5 = vrot.slane %v3676_v61, 3  ;;  %v11078_v56 = vld [vmem:[#allocation72_spill] sm:$0xff]  ;;  %v11080_v21 = vld [vmem:[#allocation75_spill] sm:$0xff] }
 0x6cd   : > { %v3628_v34 = vpop.permute.xlu0 %3627  ;;  %v10393_v46 = vpop.permute.xlu1 %4666 }
 0x6ce   : > { %v3632_v13 = vadd.f32 %v3628_v34, %v3611_v53  ;;  %v3957_v14 = vadd.f32 %v3952_v23, %v3939_v41  ;;  %v3684_v8 = vsel %vm3662_vm12, %v3681_v1, %v3683_v5  ;;  %v11079_v1 = vld [vmem:[#allocation74_spill] sm:$0xff]  ;;  %v10427_v5 = vstv %s5268_s2 }
 0x6cf   : > { %4794 = vrot.lane.b32.xlu0 %v4791_v59, %s10917_s30  ;;  %s11101_s30 = sshll.u32 %s6343_s9, 8 }
 0x6d0   : > { %v3653_v16 = vadd.f32 %v9606_v27, %v3632_v13  ;;  %v3974_v19 = vadd.f32 %v3969_v11, %v3957_v14  ;;  %v10421_v13 = vstv %s5267_s1  ;;  %s10549_s8 = scalar_lea.vmem [#allocation7], %s11101_s30 }
 0x6d1   : > { %v10406_v38 = vpop.permute.xlu0 %4626  ;;  %v3990_v58 = vpop.permute.xlu1 %3989  ;;  %v10425_v14 = vmul.f32 %v10421_v13, %v8470_v3  ;;  %s5066_s7 = sshll.u32 %s10549_s8, 4  ;;  %s10646_s7 = int_to_ptr.vmem [resolvable:$true] %s5066_s7 }
 0x6d2   : > { %v3995_v6 = vadd.f32 %v3990_v58, %v3974_v19  ;;  %v3671_v51 = vadd.f32 %v3667_v54, %v3653_v16  ;;  %v4230_v16 = vmul.f32 %v10421_v13, %v8488_v29  ;;  %v11081_v58 = vld [vmem:[#allocation76_spill] sm:$0xff]  ;;  %s6089_s26 = scalar_lea.vmem %s10646_s7, 4096  ;;  %p6096_p10 = scmp.lt.s32.totalorder %s10646_s7, %s6094_s23 }
 0x6d3   : > { %p6090_p8 = scmp.ne.s32.totalorder %s10646_s7, %s6089_s26  ;;  %p6097_p0 = scmp.lt.s32.totalorder %s6095_s29, %s6089_s26 }
 0x6d4   : > { %v3688_v22 = vadd.f32 %v3684_v8, %v3671_v51  ;;  %v4016_v25 = vadd.f32 %v11076_v15, %v3995_v6  ;;  %v4237_v8 = vrot.slane %v10425_v14, 5  ;;  %v3945_v15 = vmul.f32 %v10357_v36, %v9289_v30 }
 0x6d5   : > { %v3705_v60 = vpop.permute.xlu0 %3704  ;;  %v4032_v26 = vpop.permute.xlu1 %4031  ;;  %p6091_p11 = pnand %p6090_p8, %p11132_p3  ;;  %p6098_p5 = por %p6097_p0, %p6096_p10 }
 0x6d6   : > { %v3709_v27 = vadd.f32 %v3705_v60, %v3688_v22  ;;  %v4037_v45 = vadd.f32 %v4032_v26, %v4016_v25  ;;  %v4247_v22 = vmul.f32 %v10427_v5, %v8346_v4  ;;  %v4236_v26 = vrot.slane %v4230_v16, 5 }
 0x6d7   : > { %p6092_p7 = pneg %p6091_p11 }
 0x6d8   : > { %v3730_v0 = vadd.f32 %v11077_v62, %v3709_v27  ;;  %v4058_v50 = vadd.f32 %v11078_v56, %v4037_v45  ;;  %v11082_v45 = vld [vmem:[#allocation77_spill] sm:$0xff]  ;;  %v4253_v36 = vrot.slane %v4247_v22, 5 }
 0x6d9   : > { %v3747_v20 = vpop.permute.xlu0 %3746  ;;  %v4074_v2 = vpop.permute.xlu1 %4073  ;;  %p6099_p9 = pnand %p6098_p5, %p6092_p7 }
 0x6da   : > { %v3751_v39 = vadd.f32 %v3747_v20, %v3730_v0  ;;  %v4079_v57 = vadd.f32 %v4074_v2, %v4058_v50  ;;  %v11083_v0 = vld [vmem:[#allocation78_spill] sm:$0xff]  ;;  %v4238_v2 = vsel %vm2687_vm10, %v4236_v26, %v4237_v8 }
 0x6dc   : > { %v3772_v44 = vadd.f32 %v9656_v31, %v3751_v39  ;;  %v4100_v18 = vadd.f32 %v11079_v1, %v4079_v57  ;;  %v3953_v39 = vrot.slane %v3945_v15, 4 }
 0x6dd   : > { %v3789_v61 = vpop.permute.xlu0 %3788  ;;  %v4116_v41 = vpop.permute.xlu1 %4115 }
 0x6de   : > { %v3793_v53 = vadd.f32 %v3789_v61, %v3772_v44  ;;  %v4121_v34 = vadd.f32 %v4116_v41, %v4100_v18 }
 0x6e0   : > { %v3814_v23 = vadd.f32 %v9680_v33, %v3793_v53  ;;  %v4142_v55 = vadd.f32 %v11080_v21, %v4121_v34  ;;  %v10433_v33 = vmul.f32 %v10427_v5, %v8514_v24  ;;  %v3954_v34 = vsel %vm3949_vm13, %v3951_v43, %v3953_v39 }
 0x6e1   : > { %v3831_v7 = vpop.permute.xlu0 %3830  ;;  %v4158_v59 = vpop.permute.xlu1 %4157 }
 0x6e2   : > { %v3835_v11 = vadd.f32 %v3831_v7, %v3814_v23  ;;  %v4163_v31 = vadd.f32 %v4158_v59, %v4142_v55  ;;  %v4254_v27 = vrot.slane %v10433_v33, 5  ;;  %v11084_v59 = vld [vmem:[#allocation79_spill] sm:$0xff] }
 0x6e4   : > { %v3856_v19 = vadd.f32 %v9704_v63, %v3835_v11  ;;  %v4184_v54 = vadd.f32 %v11081_v58, %v4163_v31  ;;  %v3963_v63 = vmul.f32 %v10368_v37, %v8671_v47  ;;  %v4255_v1 = vsel %vm2687_vm10, %v4253_v36, %v4254_v27 }
 0x6e5   : > { %v3873_v6 = vpop.permute.xlu0 %3872  ;;  %v4200_v51 = vpop.permute.xlu1 %4199 }
 0x6e6   : > { %v3877_v25 = vadd.f32 %v3873_v6, %v3856_v19  ;;  %v4205_v60 = vadd.f32 %v4200_v51, %v4184_v54  ;;  %v3970_v37 = vrot.slane %v3963_v63, 4  ;;  %v11085_v54 = vld [vmem:[#allocation80_spill] sm:$0xff] }
 0x6e8   : > { %v4226_v62 = vadd.f32 %v11082_v45, %v4205_v60  ;;  %v3898_v56 = vadd.f32 %v11083_v0, %v3877_v25  ;;  %v3971_v55 = vsel %vm3949_vm13, %v3968_v48, %v3970_v37  ;;  %v11087_v48 = vld [vmem:[#allocation81_spill] sm:$0xff]  ;;  %v11088_v0 = vld [vmem:[#allocation83_spill] sm:$0xff] }
 0x6e9   : > { %v3915_v50 = vpop.permute.xlu0 %3914  ;;  %v10447_v20 = vpop.permute.xlu1 %4708 }
 0x6ea   : > { %v3919_v57 = vadd.f32 %v3915_v50, %v3898_v56  ;;  %v4243_v44 = vadd.f32 %v4238_v2, %v4226_v62  ;;  %v10471_v56 = vstv %s5281_s28 }
 0x6eb   : > { %v10475_v36 = vmul.f32 %v10471_v56, %v8470_v3 }
 0x6ec   : > { %v3940_v18 = vadd.f32 %v9767_v9, %v3919_v57  ;;  %v4260_v61 = vadd.f32 %v4255_v1, %v4243_v44  ;;  %v10477_v44 = vstv %s5282_s10  ;;  %v4516_v1 = vmul.f32 %v10471_v56, %v8488_v29 }
 0x6ed   : > { %v10456_v41 = vpop.permute.xlu0 %4668  ;;  %v4276_v53 = vpop.permute.xlu1 %4275  ;;  %v4523_v3 = vrot.slane %v10475_v36, 6 }
 0x6ee   : > { %v4281_v23 = vadd.f32 %v4276_v53, %v4260_v61  ;;  %v3958_v21 = vadd.f32 %v3954_v34, %v3940_v18  ;;  %v11089_v18 = vld [vmem:[#allocation84_spill] sm:$0xff] }
 0x6f0   : > { %v3975_v7 = vadd.f32 %v3971_v55, %v3958_v21  ;;  %v4302_v11 = vadd.f32 %v11084_v59, %v4281_v23  ;;  %v4533_v23 = vmul.f32 %v10477_v44, %v8346_v4  ;;  %v4232_v21 = vmul.f32 %v10421_v13, %v9289_v30  ;;  %v11090_v59 = vld [vmem:[#allocation85_spill] sm:$0xff] }
 0x6f1   : > { %v3992_v31 = vpop.permute.xlu0 %3991  ;;  %v4318_v16 = vpop.permute.xlu1 %4317 }
 0x6f2   : > { %v3996_v9 = vadd.f32 %v3992_v31, %v3975_v7  ;;  %v4323_v19 = vadd.f32 %v4318_v16, %v4302_v11  ;;  %v4522_v7 = vrot.slane %v4516_v1, 6  ;;  %v11091_v31 = vld [vmem:[#allocation86_spill] sm:$0xff]  ;;  %v4239_v13 = vrot.slane %v4232_v21, 5 }
 0x6f4   : > { %v4017_v58 = vadd.f32 %v9800_v28, %v3996_v9  ;;  %v4344_v6 = vadd.f32 %v11085_v54, %v4323_v19  ;;  %v4524_v4 = vsel %vm2130_vm11, %v4522_v7, %v4523_v3 }
 0x6f5   : > { %v4034_v49 = vpop.permute.xlu0 %4033  ;;  %v4360_v43 = vpop.permute.xlu1 %4359 }
 0x6f6   : > { %v4038_v51 = vadd.f32 %v4034_v49, %v4017_v58  ;;  %v4365_v22 = vadd.f32 %v4360_v43, %v4344_v6  ;;  %v4539_v58 = vrot.slane %v4533_v23, 6  ;;  %v11095_v23 = vld [vmem:[#allocation45_spill] sm:$0xff] }
 0x6f8   : > { %v4059_v15 = vadd.f32 %v11086_v52, %v4038_v51  ;;  %v4386_v25 = vadd.f32 %v11087_v48, %v4365_v22  ;;  %v4240_v48 = vsel %vm2687_vm10, %v4237_v8, %v4239_v13 }
 0x6f9   : > { %v4076_v60 = vpop.permute.xlu0 %4075  ;;  %v4402_v26 = vpop.permute.xlu1 %4401 }
 0x6fa   : > { %v4080_v63 = vadd.f32 %v4076_v60, %v4059_v15  ;;  %v4407_v45 = vadd.f32 %v4402_v26, %v4386_v25 }
 0x6fc   : > { %v4101_v62 = vadd.f32 %v9876_v42, %v4080_v63  ;;  %v4428_v28 = vadd.f32 %v11088_v0, %v4407_v45  ;;  %v10483_v42 = vmul.f32 %v10477_v44, %v8514_v24 }
 0x6fd   : > { %v4118_v50 = vpop.permute.xlu0 %4117  ;;  %v4444_v2 = vpop.permute.xlu1 %4443 }
 0x6fe   : > { %v4122_v39 = vadd.f32 %v4118_v50, %v4101_v62  ;;  %v4449_v57 = vadd.f32 %v4444_v2, %v4428_v28  ;;  %v4540_v24 = vrot.slane %v10483_v42, 6  ;;  %v11093_v2 = vld [vmem:[#allocation88_spill] sm:$0xff] }
 0x700   : > { %v4143_v37 = vadd.f32 %v9904_v12, %v4122_v39  ;;  %v4470_v61 = vadd.f32 %v11089_v18, %v4449_v57  ;;  %v4249_v12 = vmul.f32 %v10427_v5, %v8671_v47  ;;  %v4541_v49 = vsel %vm2130_vm11, %v4539_v58, %v4540_v24  ;;  %v11092_v5 = vld [vmem:[#allocation87_spill] sm:$0xff]  ;;  %v11094_v18 = vld [vmem:[#allocation89_spill] sm:$0xff] }
 0x701   : > { %v4160_v53 = vpop.permute.xlu0 %4159  ;;  %v4486_v34 = vpop.permute.xlu1 %4485  ;;  %v4535_v58 = vmul.f32 %v10477_v44, %v8671_v47 }
 0x702   : > { %v4164_v55 = vadd.f32 %v4160_v53, %v4143_v37  ;;  %v4491_v29 = vadd.f32 %v4486_v34, %v4470_v61  ;;  %v4256_v43 = vrot.slane %v4249_v12, 5 }
 0x704   : > { %v4512_v11 = vadd.f32 %v11090_v59, %v4491_v29  ;;  %v4185_v16 = vadd.f32 %v11091_v31, %v4164_v55  ;;  %v4257_v26 = vsel %vm2687_vm10, %v4254_v27, %v4256_v43  ;;  %v11096_v59 = vld [vmem:[#allocation47_spill] sm:$0xff] }
 0x705   : > { %v4202_v9 = vpop.permute.xlu0 %4201  ;;  %v4751_v19 = vpop.permute.xlu1 %4750 }
 0x706   : > { %v4206_v54 = vadd.f32 %v4202_v9, %v4185_v16  ;;  %v4529_v6 = vadd.f32 %v4524_v4, %v4512_v11 }
 0x708   : > { %v4227_v51 = vadd.f32 %v11092_v5, %v4206_v54  ;;  %v4546_v22 = vadd.f32 %v4541_v49, %v4529_v6 }
 0x709   : > { %v10504_v52 = vpop.permute.xlu0 %4710  ;;  %v4562_v15 = vpop.permute.xlu1 %4561 }
 0x70a   : > { %v4567_v25 = vadd.f32 %v4562_v15, %v4546_v22  ;;  %v4244_v60 = vadd.f32 %v4240_v48, %v4227_v51  ;;  %v4542_v51 = vrot.slane %v4535_v58, 6 }
 0x70c   : > { %v4261_v63 = vadd.f32 %v4257_v26, %v4244_v60  ;;  %v4588_v45 = vadd.f32 %v10130_v40, %v4567_v25  ;;  %v4543_v47 = vsel %vm2130_vm11, %v4540_v24, %v4542_v51 }
 0x70d   : > { %v4278_v62 = vpop.permute.xlu0 %4277  ;;  %v4604_v0 = vpop.permute.xlu1 %4603 }
 0x70e   : > { %v4282_v28 = vadd.f32 %v4278_v62, %v4261_v63  ;;  %v4609_v50 = vadd.f32 %v4604_v0, %v4588_v45 }
 0x710   : > { %v4303_v39 = vadd.f32 %v11093_v2, %v4282_v28  ;;  %v4630_v57 = vadd.f32 %v10303_v17, %v4609_v50 }
 0x711   : > { %v4320_v14 = vpop.permute.xlu0 %4319  ;;  %v4646_v1 = vpop.permute.xlu1 %4645 }
 0x712   : > { %v4324_v8 = vadd.f32 %v4320_v14, %v4303_v39  ;;  %v4651_v37 = vadd.f32 %v4646_v1, %v4630_v57  ;;  %v11097_v57 = vld [vmem:[#allocation12_spill] sm:$0xff]  ;;  %v11098_v1 = vld [vmem:[#allocation25_spill] sm:$0xff] }
 0x714   : > { %v4345_v61 = vadd.f32 %v11094_v18, %v4324_v8  ;;  %v4672_v33 = vadd.f32 %v10393_v46, %v4651_v37  ;;  %v4518_v46 = vmul.f32 %v10471_v56, %v9289_v30  ;;  %v4825_v8 = vsub.s32 1, %v11098_v1 }
 0x715   : > { %v4362_v27 = vpop.permute.xlu0 %4361  ;;  %v4688_v53 = vpop.permute.xlu1 %4687 }
 0x716   : > { %v4366_v34 = vadd.f32 %v4362_v27, %v4345_v61  ;;  %v4693_v40 = vadd.f32 %v4688_v53, %v4672_v33  ;;  %v4525_v49 = vrot.slane %v4518_v46, 6  ;;  %v4847_v27 = vsub.s32 3, %v11098_v1 }
 0x718   : > { %v4387_v21 = vadd.f32 %v11095_v23, %v4366_v34  ;;  %v4714_v55 = vadd.f32 %v10447_v20, %v4693_v40  ;;  %v4526_v30 = vsel %vm2130_vm11, %v4523_v3, %v4525_v49  ;;  %v4858_v34 = vsub.s32 4, %v11098_v1  ;;  %v11099_v49 = vld [vmem:[#allocation18_spill] sm:$0xff] }
 0x719   : > { %v4404_v29 = vpop.permute.xlu0 %4403  ;;  %v4730_v7 = vpop.permute.xlu1 %4729  ;;  %v4869_v23 = vsub.s32 5, %v11098_v1 }
 0x71a   : > { %v4408_v12 = vadd.f32 %v4404_v29, %v4387_v21  ;;  %v4735_v17 = vadd.f32 %v4730_v7, %v4714_v55  ;;  %v4880_v7 = vsub.s32 6, %v11098_v1 }
 0x71c   : > { %v4429_v11 = vadd.f32 %v11096_v59, %v4408_v12  ;;  %v4756_v31 = vadd.f32 %v4751_v19, %v4735_v17  ;;  %v4891_v17 = vsub.s32 7, %v11098_v1 }
 0x71d   : > { %v4446_v16 = vpop.permute.xlu0 %4445  ;;  %v4772_v9 = vpop.permute.xlu1 %4771 }
 0x71e   : > { %v4450_v4 = vadd.f32 %v4446_v16, %v4429_v11  ;;  %v4777_v13 = vadd.f32 %v4772_v9, %v4756_v31 }
 0x720   : > { %v4471_v54 = vadd.f32 %v10128_v32, %v4450_v4 }
 0x721   : > { %v4488_v20 = vpop.permute.xlu0 %4487  ;;  %v4793_v6 = vpop.permute.xlu1 %4792 }
 0x722   : > { %v4492_v43 = vadd.f32 %v4488_v20, %v4471_v54  ;;  %v4798_v5 = vadd.f32 %v4793_v6, %v4777_v13 }
 0x724   : > { %v4513_v19 = vadd.f32 %v10161_v35, %v4492_v43  ;;  %v5295_v22 = vmul.f32 -1.442695, %v4798_v5  ;;  %v11100_v5 = vld [vmem:[#allocation11_spill] sm:$0xff] }
 0x725   : > { %v4753_v15 = vpop.permute.xlu0 %4752 }
 0x726   : > { %6004 = vpow2.f32 %v5295_v22  ;;  %v4530_v56 = vadd.f32 %v4526_v30, %v4513_v19 }
 0x728   : > { %v4547_v32 = vadd.f32 %v4543_v47, %v4530_v56  ;;  %v11103_v56 = vld [vmem:[#allocation13_spill] sm:$0xff] }
 0x729   : > { %v4564_v44 = vpop.permute.xlu0 %4563 }
 0x72a   : > { %v4568_v48 = vadd.f32 %v4564_v44, %v4547_v32 }
 0x72c   : > { %v4589_v25 = vadd.f32 %v10321_v10, %v4568_v48  ;;  %v11104_v48 = vld [vmem:[#allocation16_spill] sm:$0xff] }
 0x72d   : > { %v4606_v60 = vpop.permute.xlu0 %4605 }
 0x72e   : > { %v4610_v26 = vadd.f32 %v4606_v60, %v4589_v25  ;;  %v11105_v60 = vld [vmem:[#allocation20_spill] sm:$0xff] }
 0x730   : > { %v6005_v35 = vpop.eup %6004  ;;  %v4631_v63 = vadd.f32 %v10406_v38, %v4610_v26 }
 0x731   : > { %v4806_v45 = vadd.f32 1.0, %v6005_v35  ;;  %v4648_v36 = vpop.permute.xlu0 %4647 }
 0x732   : > { %v4652_v62 = vadd.f32 %v4648_v36, %v4631_v63 }
 0x733   : > { %6006 = vrcp.f32 %v4806_v45  ;;  %v11106_v45 = vld [vmem:[#allocation23_spill] sm:$0xff] }
 0x734   : > { %v4673_v3 = vadd.f32 %v10456_v41, %v4652_v62  ;;  %v4836_v41 = vsub.s32 2, %v11098_v1  ;;  %v11107_v62 = vld [vmem:[#allocation21_spill] sm:$0xff]  ;;  %v11111_v1 = vld [vmem:[#allocation24_spill] sm:$0xff] }
 0x735   : > { %v4690_v0 = vpop.permute.xlu0 %4689 }
 0x736   : > { %v4694_v42 = vadd.f32 %v4690_v0, %v4673_v3 }
 0x738   : > { %v4715_v24 = vadd.f32 %v10504_v52, %v4694_v42 }
 0x739   : > { %v4732_v28 = vpop.permute.xlu0 %4731 }
 0x73a   : > { %v4736_v50 = vadd.f32 %v4732_v28, %v4715_v24  ;;  %v11108_v24 = vld [vmem:[#allocation22_spill] sm:$0xff] }
 0x73c   : > { %v4757_v2 = vadd.f32 %v4753_v15, %v4736_v50  ;;  %v11102_v15 = vld [vmem:[#allocation17_spill] sm:$0xff]  ;;  %v11109_v50 = vld [vmem:[#allocation19_spill] sm:$0xff] }
 0x73d   : > { %v6007_v39 = vpop.eup %6006  ;;  %v4774_v10 = vpop.permute.xlu0 %4773 }
 0x73e   : > { %v4815_v14 = vrot.slane %v6007_v39, %v11097_v57  ;;  %v4778_v38 = vadd.f32 %v4774_v10, %v4757_v2  ;;  %v4826_v61 = vrot.slane %v6007_v39, %v4825_v8  ;;  %v4837_v52 = vrot.slane %v6007_v39, %v4836_v41 }
 0x73f   : > { %v4848_v53 = vrot.slane %v6007_v39, %v4847_v27  ;;  %v4859_v40 = vrot.slane %v6007_v39, %v4858_v34  ;;  %v4870_v29 = vrot.slane %v6007_v39, %v4869_v23  ;;  %v4881_v12 = vrot.slane %v6007_v39, %v4880_v7 }
 0x740   : > { %4821 = vbcast.lane.b32.xlu0 %v4815_v14, 264  ;;  %4817 = vbcast.lane.b32.xlu1 %v4815_v14, 256  ;;  %v4892_v59 = vrot.slane %v6007_v39, %v4891_v17 }
 0x741   : > { %v4795_v37 = vpop.permute.xlu0 %4794 }
 0x742   : > { %v4799_v18 = vadd.f32 %v4795_v37, %v4778_v38 }
 0x744   : > { %v5296_v33 = vmul.f32 -1.442695, %v4799_v18  ;;  %4832 = vbcast.lane.b32.xlu0 %v4826_v61, 264  ;;  %4828 = vbcast.lane.b32.xlu1 %v4826_v61, 256  ;;  %v11112_v18 = vld [vmem:[#allocation26_spill] sm:$0xff] }
 0x746   : > { %6008 = vpow2.f32 %v5296_v33 }
 0x748   : > { %4843 = vbcast.lane.b32.xlu0 %v4837_v52, 264  ;;  %4839 = vbcast.lane.b32.xlu1 %v4837_v52, 256 }
 0x74c   : > { %4854 = vbcast.lane.b32.xlu0 %v4848_v53, 264  ;;  %4850 = vbcast.lane.b32.xlu1 %v4848_v53, 256  ;;  %v11114_v53 = vld [vmem:[#allocation28_spill] sm:$0xff] }
 0x750   : > { %v6009_v21 = vpop.eup %6008  ;;  %4865 = vbcast.lane.b32.xlu0 %v4859_v40, 264  ;;  %4861 = vbcast.lane.b32.xlu1 %v4859_v40, 256  ;;  %v11115_v40 = vld [vmem:[#allocation27_spill] sm:$0xff] }
 0x751   : > { %v4807_v55 = vadd.f32 1.0, %v6009_v21 }
 0x753   : > { %6010 = vrcp.f32 %v4807_v55 }
 0x754   : > { %4876 = vbcast.lane.b32.xlu0 %v4870_v29, 264  ;;  %4872 = vbcast.lane.b32.xlu1 %v4870_v29, 256  ;;  %v11116_v29 = vld [vmem:[#allocation30_spill] sm:$0xff] }
 0x758   : > { %4887 = vbcast.lane.b32.xlu0 %v4881_v12, 264  ;;  %4883 = vbcast.lane.b32.xlu1 %v4881_v12, 256  ;;  %v11117_v12 = vld [vmem:[#allocation29_spill] sm:$0xff] }
 0x75c   : > { %4898 = vbcast.lane.b32.xlu0 %v4892_v59, 264  ;;  %4894 = vbcast.lane.b32.xlu1 %v4892_v59, 256 }
 0x75d   : > { %v6011_v11 = vpop.eup %6010 }
 0x75e   : > { %v4903_v31 = vrot.slane %v6011_v11, %v11097_v57  ;;  %v4914_v16 = vrot.slane %v6011_v11, %v4825_v8  ;;  %v4925_v9 = vrot.slane %v6011_v11, %v4836_v41  ;;  %v4936_v46 = vrot.slane %v6011_v11, %v4847_v27  ;;  %v11110_v57 = vld [vmem:[#allocation14_spill] sm:$0xff]  ;;  %v11113_v41 = vld [vmem:[#allocation15_spill] sm:$0xff] }
 0x75f   : > { %v4947_v4 = vrot.slane %v6011_v11, %v4858_v34  ;;  %v4958_v58 = vrot.slane %v6011_v11, %v4869_v23  ;;  %v4969_v13 = vrot.slane %v6011_v11, %v4880_v7  ;;  %v4980_v54 = vrot.slane %v6011_v11, %v4891_v17 }
 0x760   : > { %4909 = vbcast.lane.b32.xlu0 %v4903_v31, 264  ;;  %4905 = vbcast.lane.b32.xlu1 %v4903_v31, 256  ;;  %v11118_v31 = vld [vmem:[#allocation32_spill] sm:$0xff] }
 0x764   : > { %4920 = vbcast.lane.b32.xlu0 %v4914_v16, 264  ;;  %4916 = vbcast.lane.b32.xlu1 %v4914_v16, 256 }
 0x768   : > { %4931 = vbcast.lane.b32.xlu0 %v4925_v9, 264  ;;  %4927 = vbcast.lane.b32.xlu1 %v4925_v9, 256  ;;  %v11119_v9 = vld [vmem:[#allocation31_spill] sm:$0xff] }
 0x76c   : > { %4942 = vbcast.lane.b32.xlu0 %v4936_v46, 264  ;;  %4938 = vbcast.lane.b32.xlu1 %v4936_v46, 256 }
 0x770   : > { %4953 = vbcast.lane.b32.xlu0 %v4947_v4, 264  ;;  %4949 = vbcast.lane.b32.xlu1 %v4947_v4, 256 }
 0x774   : > { %4964 = vbcast.lane.b32.xlu0 %v4958_v58, 264  ;;  %4960 = vbcast.lane.b32.xlu1 %v4958_v58, 256 }
 0x778   : > { %4975 = vbcast.lane.b32.xlu0 %v4969_v13, 264  ;;  %4971 = vbcast.lane.b32.xlu1 %v4969_v13, 256  ;;  %v11120_v13 = vld [vmem:[#allocation34_spill] sm:$0xff] }
 0x77c   : > { %4986 = vbcast.lane.b32.xlu0 %v4980_v54, 264  ;;  %4982 = vbcast.lane.b32.xlu1 %v4980_v54, 256 }
 0x7b2   : > { %v4822_v20 = vpop.permute.xlu0 %4821  ;;  %v4818_v6 = vpop.permute.xlu1 %4817 }
 0x7b3   : > { %v4989_v43 = vmul.f32 %v4822_v20, %v11099_v49  ;;  %v4988_v51 = vmul.f32 %v4818_v6, %v11100_v5  ;;  %v11121_v20 = vld [vmem:[#allocation33_spill] sm:$0xff]  ;;  %v11122_v5 = vld [vmem:[#allocation36_spill] sm:$0xff] }
 0x7b5   : > { %5021 = vst.msk [vmem:[%s10549_s8 + $0x8] sm:$0xff] %vm1369_vm4, %v4989_v43  ;;  %5020 = vst.msk [vmem:[%s10549_s8] sm:$0xff] %vm1369_vm4, %v4988_v51 }
 0x7b6   : > { %v4833_v19 = vpop.permute.xlu0 %4832  ;;  %v4829_v22 = vpop.permute.xlu1 %4828 }
 0x7b7   : > { %v4991_v30 = vmul.f32 %v4833_v19, %v11102_v15  ;;  %v4990_v47 = vmul.f32 %v4829_v22, %v11103_v56  ;;  %v11123_v19 = vld [vmem:[#allocation35_spill] sm:$0xff]  ;;  %v11124_v56 = vld [vmem:[#allocation38_spill] sm:$0xff] }
 0x7b9   : > { %5023 = vst.msk [vmem:[%s10549_s8 + $0x18] sm:$0xff] %vm1369_vm4, %v4991_v30  ;;  %5022 = vst.msk [vmem:[%s10549_s8 + $0x10] sm:$0xff] %vm1369_vm4, %v4990_v47 }
 0x7ba   : > { %v4844_v32 = vpop.permute.xlu0 %4843  ;;  %v4840_v44 = vpop.permute.xlu1 %4839 }
 0x7bb   : > { %v4993_v25 = vmul.f32 %v4844_v32, %v11104_v48  ;;  %v4992_v26 = vmul.f32 %v4840_v44, %v11105_v60  ;;  %v11125_v32 = vld [vmem:[#allocation37_spill] sm:$0xff]  ;;  %v11126_v60 = vld [vmem:[#allocation40_spill] sm:$0xff] }
 0x7bd   : > { %5025 = vst.msk [vmem:[%s10549_s8 + $0x28] sm:$0xff] %vm1369_vm4, %v4993_v25  ;;  %5024 = vst.msk [vmem:[%s10549_s8 + $0x20] sm:$0xff] %vm1369_vm4, %v4992_v26 }
 0x7be   : > { %v4855_v35 = vpop.permute.xlu0 %4854  ;;  %v4851_v63 = vpop.permute.xlu1 %4850 }
 0x7bf   : > { %v4995_v36 = vmul.f32 %v4855_v35, %v11106_v45  ;;  %v4994_v3 = vmul.f32 %v4851_v63, %v11107_v62  ;;  %v11127_v35 = vld [vmem:[#allocation39_spill] sm:$0xff]  ;;  %v11128_v62 = vld [vmem:[#allocation42_spill] sm:$0xff] }
 0x7c1   : > { %5027 = vst.msk [vmem:[%s10549_s8 + $0x38] sm:$0xff] %vm1369_vm4, %v4995_v36  ;;  %5026 = vst.msk [vmem:[%s10549_s8 + $0x30] sm:$0xff] %vm1369_vm4, %v4994_v3 }
 0x7c2   : > { %v4866_v0 = vpop.permute.xlu0 %4865  ;;  %v4862_v42 = vpop.permute.xlu1 %4861 }
 0x7c3   : > { %v4997_v28 = vmul.f32 %v4866_v0, %v11108_v24  ;;  %v4996_v2 = vmul.f32 %v4862_v42, %v11109_v50  ;;  %v11129_v0 = vld [vmem:[#allocation41_spill] sm:$0xff]  ;;  %v11130_v50 = vld [vmem:[#allocation44_spill] sm:$0xff] }
 0x7c5   : > { %5029 = vst.msk [vmem:[%s10549_s8 + $0x48] sm:$0xff] %vm1369_vm4, %v4997_v28  ;;  %5028 = vst.msk [vmem:[%s10549_s8 + $0x40] sm:$0xff] %vm1369_vm4, %v4996_v2 }
 0x7c6   : > { %v4877_v39 = vpop.permute.xlu0 %4876  ;;  %v4873_v10 = vpop.permute.xlu1 %4872 }
 0x7c7   : > { %v4999_v14 = vmul.f32 %v4877_v39, %v11110_v57  ;;  %v4998_v8 = vmul.f32 %v4873_v10, %v11111_v1  ;;  %v11131_v39 = vld [vmem:[#allocation43_spill] sm:$0xff] }
 0x7c9   : > { %5031 = vst.msk [vmem:[%s10549_s8 + $0x58] sm:$0xff] %vm1369_vm4, %v4999_v14  ;;  %5030 = vst.msk [vmem:[%s10549_s8 + $0x50] sm:$0xff] %vm1369_vm4, %v4998_v8 }
 0x7ca   : > { %v4888_v38 = vpop.permute.xlu0 %4887  ;;  %v4884_v37 = vpop.permute.xlu1 %4883 }
 0x7cb   : > { %v5001_v61 = vmul.f32 %v4888_v38, %v11112_v18  ;;  %v5000_v33 = vmul.f32 %v4884_v37, %v11113_v41 }
 0x7cd   : > { %5033 = vst.msk [vmem:[%s10549_s8 + $0x68] sm:$0xff] %vm1369_vm4, %v5001_v61  ;;  %5032 = vst.msk [vmem:[%s10549_s8 + $0x60] sm:$0xff] %vm1369_vm4, %v5000_v33 }
 0x7ce   : > { %v4899_v52 = vpop.permute.xlu0 %4898  ;;  %v4895_v27 = vpop.permute.xlu1 %4894 }
 0x7cf   : > { %v5003_v34 = vmul.f32 %v4899_v52, %v11114_v53  ;;  %v5002_v23 = vmul.f32 %v4895_v27, %v11115_v40 }
 0x7d1   : > { %5035 = vst.msk [vmem:[%s10549_s8 + $0x78] sm:$0xff] %vm1369_vm4, %v5003_v34  ;;  %5034 = vst.msk [vmem:[%s10549_s8 + $0x70] sm:$0xff] %vm1369_vm4, %v5002_v23 }
 0x7d2   : > { %v4910_v21 = vpop.permute.xlu0 %4909  ;;  %v4906_v55 = vpop.permute.xlu1 %4905 }
 0x7d3   : > { %v5005_v7 = vmul.f32 %v4910_v21, %v11116_v29  ;;  %v5004_v17 = vmul.f32 %v4906_v55, %v11117_v12 }
 0x7d5   : > { %5037 = vst.msk [vmem:[%s10549_s8 + $0x88] sm:$0xff] %vm1369_vm4, %v5005_v7  ;;  %5036 = vst.msk [vmem:[%s10549_s8 + $0x80] sm:$0xff] %vm1369_vm4, %v5004_v17 }
 0x7d6   : > { %v4921_v59 = vpop.permute.xlu0 %4920  ;;  %v4917_v11 = vpop.permute.xlu1 %4916 }
 0x7d7   : > { %v5007_v16 = vmul.f32 %v4921_v59, %v11118_v31  ;;  %v5006_v46 = vmul.f32 %v4917_v11, %v11119_v9 }
 0x7d9   : > { %5039 = vst.msk [vmem:[%s10549_s8 + $0x98] sm:$0xff] %vm1369_vm4, %v5007_v16  ;;  %5038 = vst.msk [vmem:[%s10549_s8 + $0x90] sm:$0xff] %vm1369_vm4, %v5006_v46 }
 0x7da   : > { %v4932_v4 = vpop.permute.xlu0 %4931  ;;  %v4928_v58 = vpop.permute.xlu1 %4927 }
 0x7db   : > { %v5009_v54 = vmul.f32 %v4932_v4, %v11120_v13  ;;  %v5008_v6 = vmul.f32 %v4928_v58, %v11121_v20 }
 0x7dd   : > { %5041 = vst.msk [vmem:[%s10549_s8 + $0xa8] sm:$0xff] %vm1369_vm4, %v5009_v54  ;;  %5040 = vst.msk [vmem:[%s10549_s8 + $0xa0] sm:$0xff] %vm1369_vm4, %v5008_v6 }
 0x7de   : > { %v4943_v49 = vpop.permute.xlu0 %4942  ;;  %v4939_v43 = vpop.permute.xlu1 %4938 }
 0x7df   : > { %v5011_v51 = vmul.f32 %v4943_v49, %v11122_v5  ;;  %v5010_v22 = vmul.f32 %v4939_v43, %v11123_v19 }
 0x7e1   : > { %5043 = vst.msk [vmem:[%s10549_s8 + $0xb8] sm:$0xff] %vm1369_vm4, %v5011_v51  ;;  %5042 = vst.msk [vmem:[%s10549_s8 + $0xb0] sm:$0xff] %vm1369_vm4, %v5010_v22 }
 0x7e2   : > { %v4954_v15 = vpop.permute.xlu0 %4953  ;;  %v4950_v30 = vpop.permute.xlu1 %4949 }
 0x7e3   : > { %v5013_v47 = vmul.f32 %v4954_v15, %v11124_v56  ;;  %v5012_v44 = vmul.f32 %v4950_v30, %v11125_v32 }
 0x7e5   : > { %5045 = vst.msk [vmem:[%s10549_s8 + $0xc8] sm:$0xff] %vm1369_vm4, %v5013_v47  ;;  %5044 = vst.msk [vmem:[%s10549_s8 + $0xc0] sm:$0xff] %vm1369_vm4, %v5012_v44 }
 0x7e6   : > { %v4965_v48 = vpop.permute.xlu0 %4964  ;;  %v4961_v25 = vpop.permute.xlu1 %4960 }
 0x7e7   : > { %v5015_v26 = vmul.f32 %v4965_v48, %v11126_v60  ;;  %v5014_v63 = vmul.f32 %v4961_v25, %v11127_v35 }
 0x7e9   : > { %5047 = vst.msk [vmem:[%s10549_s8 + $0xd8] sm:$0xff] %vm1369_vm4, %v5015_v26  ;;  %5046 = vst.msk [vmem:[%s10549_s8 + $0xd0] sm:$0xff] %vm1369_vm4, %v5014_v63 }
 0x7ea   : > { %v4976_v45 = vpop.permute.xlu0 %4975  ;;  %v4972_v36 = vpop.permute.xlu1 %4971 }
 0x7eb   : > { %v5017_v3 = vmul.f32 %v4976_v45, %v11128_v62  ;;  %v5016_v42 = vmul.f32 %v4972_v36, %v11129_v0 }
 0x7ed   : > { %5049 = vst.msk [vmem:[%s10549_s8 + $0xe8] sm:$0xff] %vm1369_vm4, %v5017_v3  ;;  %5048 = vst.msk [vmem:[%s10549_s8 + $0xe0] sm:$0xff] %vm1369_vm4, %v5016_v42 }
 0x7ee   : > { %v4987_v24 = vpop.permute.xlu0 %4986  ;;  %v4983_v28 = vpop.permute.xlu1 %4982 }
 0x7ef   : > { %v5019_v2 = vmul.f32 %v4987_v24, %v11130_v50  ;;  %v5018_v10 = vmul.f32 %v4983_v28, %v11131_v39 }
 0x7f1   : > { %5051 = vst.msk [vmem:[%s10549_s8 + $0xf8] sm:$0xff] %vm1369_vm4, %v5019_v2  ;;  %5050 = vst.msk [vmem:[%s10549_s8 + $0xf0] sm:$0xff] %vm1369_vm4, %v5018_v10 }
 0x7f2   : > { %6102 = shalt.err (!%p6099_p9)
}
 0x7f3   : > { %s6103_s12 = scalar_lea.hbm %s10644_s16, 4096  ;;  %s6107_s1 = scalar_lea.hbm %s10701_s5, 8192 }
 0x7f4   : > { %p6104_p2 = scmp.ne.s32.totalorder %s10644_s16, %s6103_s12  ;;  %p6108_p1 = scmp.lt.u32.totalorder %s10644_s16, %s10701_s5 }
 0x7f5   : > { %p6109_p4 = scmp.lt.u32.totalorder %s6107_s1, %s6103_s12  ;;  %p6111_p8 = scmp.lt.u32.totalorder %s6103_s12, %s10644_s16 }
 0x7f6   : > { %p6105_p12 = pnand %p6104_p2, %p11132_p3 }
 0x7f7   : > { %p6110_p6 = por %p6109_p4, %p6108_p1 }
 0x7f8   : > { %p6106_p13 = pneg %p6105_p12 }
 0x7f9   : > { %p6112_p11 = por %p6111_p8, %p6110_p6 }
 0x7fb   : > { %p6113_p7 = pnand %p6112_p11, %p6106_p13 }
 0x7fd   : > { %6116 = shalt.err (!%p6113_p7)
}
 0x7fe   : > { %s6182_s10 = smov 128   ;;  %s6183_s30 = smov 8  }
 0x7ff   : > { %5384 = dma.vmem_to_hbm [thread:$0]  (%p11132_p3), %s10646_s7, 4096, %s10644_s16, %s5053_s22, %s6182_s10, %s6182_s10, %s6183_s30  }
 0x800 PF: > { %s5081_s8 = sand.u32 1, %s6147_s18   ;;  %p11133_p10 = scmp.ne.s32.totalorder %s10816_s25, 0 }
 0x801   : > { %p11134_p0 = scmp.ge.s32.totalorder %s6159_s21, 2  ;;  %s5082_s24 = scalar_lea.sflag [#allocation4], %s5081_s8 }
 0x803   : > { %p5395_p5 = pnand %p11134_p0, %p11133_p10 }
 0x805   : > { %6142 = dma.done.wait (!%p5395_p5), %s5082_s24, 4096  }
 0x806   : > { %6144 = vsyncadd (!%p5395_p5), %s5082_s24, 4294963200  ;;  %p19_p9 = scmp.ge.s32.totalorder %s6271_s6, 4   ;;  %s11135_s18 = smov %s6151_s19 }
 0x807   : > { %s11136_s19 = smov %s6155_s20  ;;  %s11137_s20 = smov %s6288_s13 }
 0x808   : > { %s11138_s21 = smov %s6271_s6  ;;  %21 = sbr.rel (!%p19_p9) target bundleno = 10 (0xa), region = 90 }
 0x80f   :  { %5087 = vsyncpa [#allocation3], 1 }
 0x810   :  { %5089 = vsyncpa [#allocation3 + $0x1], 1 }
 0x811   :  { %5090 = vsyncpa [#allocation4], 1 }
 0x812   :  { %5092 = vsyncpa [#allocation4 + $0x1], 1 }
 0x813   :  { %5093 = vsyncpa [#allocation5], 1 }
 0x814   :  { %5095 = vsyncpa [#allocation5 + $0x1], 1 }

</bundles_post_ra>
